<compile_context>
chip_gen: v6e
topology: v6e:2x2x1
jax: 0.10.0
libtpu: 0.0.40
codegen_flags: <defaults>
</compile_context>

<pallas_src>
import jax
import jax.numpy as jnp
from jax import lax
from jax.experimental import pallas as pl
from jax.experimental.pallas import tpu as pltpu

EPS = 1e-5      # nn.BatchNorm2d default eps
LANE = 128      # TPU lane width
WPAD = 8        # W halo width (multiple of 8 -> aligned sublane concats)


# ------------------------------ kernel bodies ------------------------------ #
def _partial_stats(y_f32, ssum_ref, ssq_ref):
    """Per-grid-step partial per-channel sum / sum-of-squares."""
    c = y_f32.shape[-1]
    ps = jnp.sum(y_f32, axis=0).reshape(1, 1, c)
    pq = jnp.sum(y_f32 * y_f32, axis=0).reshape(1, 1, c)
    ssum_ref[...] = jnp.broadcast_to(ps, (1, 8, c))
    ssq_ref[...] = jnp.broadcast_to(pq, (1, 8, c))


def _conv1_kernel(x_ref, w_ref, y_ref, ssum_ref, ssq_ref):
    """y1 = x @ w1 (1x1 conv as GEMM, bf16 operands) + BN1 partial stats."""
    y = jnp.dot(x_ref[...].astype(jnp.bfloat16), w_ref[...],
                preferred_element_type=jnp.float32)
    y_ref[...] = y.astype(y_ref.dtype)
    _partial_stats(y, ssum_ref, ssq_ref)


def _conv2_kernel(y1_ref, sc_ref, sh_ref, w2_ref, y2_ref, ssum_ref, ssq_ref,
                  apad_ref):
    """BN1+ReLU prologue, 3x3 conv as 9 shifted GEMMs, + BN2 partial stats.

    y1_ref block: (1, H, W, C) raw (unpadded) conv1 output in bf16.
    """
    _, h, w, c = y1_ref.shape
    scale = sc_ref[...].reshape(1, 1, c)
    shift = sh_ref[...].reshape(1, 1, c)
    a1 = jnp.maximum(y1_ref[0].astype(jnp.float32) * scale + shift, 0.0)

    # Build the zero-haloed plane as a value using only *aligned* concats
    # (W pieces are multiples of 8 sublanes), then one aligned full store to
    # the bf16 scratch.  No HBM pad pass, no per-element interior masking.
    zw = jnp.zeros((h, WPAD, c), jnp.float32)
    zh = jnp.zeros((1, w + 2 * WPAD, c), jnp.float32)
    plane = jnp.concatenate(
        [zh, jnp.concatenate([zw, a1, zw], axis=1), zh], axis=0)
    apad_ref[...] = plane.astype(apad_ref.dtype)

    # 9 taps, unrolled; bf16 operands, f32 accumulation (lives in vregs for
    # these strip sizes).
    acc = jnp.zeros((h * w, c), jnp.float32)
    for k in range(9):
        ky, kx = k // 3, k % 3
        # TODO(synk): the shifted-window reshape still materializes one VMEM
        # copy per tap; a flat shift-GEMM layout would avoid it.
        tap = apad_ref[ky:ky + h, WPAD - 1 + kx:WPAD - 1 + kx + w, :]
        acc = acc + jnp.dot(tap.reshape(h * w, c), w2_ref[k],
                            preferred_element_type=jnp.float32)

    y2_ref[0] = acc.reshape(h, w, c).astype(y2_ref.dtype)
    _partial_stats(acc, ssum_ref, ssq_ref)


def _conv3_kernel(x_ref, sc_ref, sh_ref, w_ref, y_ref, ssum_ref, ssq_ref):
    """BN2+ReLU prologue, 1x1 conv GEMM (bf16 operands), + BN3 partial stats."""
    a = jnp.maximum(
        x_ref[...].astype(jnp.float32) * sc_ref[...] + sh_ref[...], 0.0)
    y = jnp.dot(a.astype(jnp.bfloat16), w_ref[...],
                preferred_element_type=jnp.float32)
    y_ref[...] = y
    _partial_stats(y, ssum_ref, ssq_ref)


def _bn_add_relu_kernel(y_ref, sc_ref, sh_ref, res_ref, o_ref):
    """out = relu(bn3(y3) + residual)."""
    o_ref[...] = jnp.maximum(
        y_ref[...] * sc_ref[...] + sh_ref[...] + res_ref[...], 0.0)


# ----------------------------- pallas wrappers ------------------------------ #
_PARALLEL = pltpu.CompilerParams(dimension_semantics=("parallel",))


def _row_spec(tm, c):
    return pl.BlockSpec((tm, c), lambda i: (i, 0))


def _const2_spec(shape):
    # TODO(synk): single-buffer these constant-index blocks (pl.Buffered(1))
    # to reclaim VMEM at real ResNet channel counts (v7x 64 MiB budget).
    return pl.BlockSpec(shape, lambda i: (0, 0))


def _stats_spec(c):
    return pl.BlockSpec((1, 8, c), lambda i: (i, 0, 0))


def _conv1_gemm(x2d, w_bf, tm):
    m, cin = x2d.shape
    cout = w_bf.shape[1]
    g = m // tm
    return pl.pallas_call(
        _conv1_kernel,
        out_shape=(jax.ShapeDtypeStruct((m, cout), jnp.bfloat16),
                   jax.ShapeDtypeStruct((g, 8, cout), jnp.float32),
                   jax.ShapeDtypeStruct((g, 8, cout), jnp.float32)),
        grid=(g,),
        in_specs=[_row_spec(tm, cin), _const2_spec((cin, cout))],
        out_specs=(_row_spec(tm, cout), _stats_spec(cout), _stats_spec(cout)),
        compiler_params=_PARALLEL,
    )(x2d, w_bf)


def _conv2_3x3(y1_nhwc, scale, shift, w2_bf):
    n, h, w, c = y1_nhwc.shape
    # TODO(synk): for very large H*W per image, tile spatially (row strips
    # with a 2-row halo) instead of one full image per grid step.
    return pl.pallas_call(
        _conv2_kernel,
        out_shape=(jax.ShapeDtypeStruct((n, h, w, c), jnp.bfloat16),
                   jax.ShapeDtypeStruct((n, 8, c), jnp.float32),
                   jax.ShapeDtypeStruct((n, 8, c), jnp.float32)),
        grid=(n,),
        in_specs=[pl.BlockSpec((1, h, w, c), lambda i: (i, 0, 0, 0)),
                  _const2_spec((1, c)), _const2_spec((1, c)),
                  pl.BlockSpec((9, c, c), lambda i: (0, 0, 0))],
        out_specs=(pl.BlockSpec((1, h, w, c), lambda i: (i, 0, 0, 0)),
                   _stats_spec(c), _stats_spec(c)),
        scratch_shapes=[pltpu.VMEM((h + 2, w + 2 * WPAD, c), jnp.bfloat16)],
        compiler_params=_PARALLEL,
    )(y1_nhwc, scale, shift, w2_bf)


def _conv3_gemm(x2d_bf, scale, shift, w_bf, tm):
    m, cin = x2d_bf.shape
    cout = w_bf.shape[1]
    g = m // tm
    return pl.pallas_call(
        _conv3_kernel,
        out_shape=(jax.ShapeDtypeStruct((m, cout), jnp.float32),
                   jax.ShapeDtypeStruct((g, 8, cout), jnp.float32),
                   jax.ShapeDtypeStruct((g, 8, cout), jnp.float32)),
        grid=(g,),
        in_specs=[_row_spec(tm, cin), _const2_spec((1, cin)),
                  _const2_spec((1, cin)), _const2_spec((cin, cout))],
        out_specs=(_row_spec(tm, cout), _stats_spec(cout), _stats_spec(cout)),
        compiler_params=_PARALLEL,
    )(x2d_bf, scale, shift, w_bf)


def _bn_add_relu(y, scale, shift, residual, tm):
    m, c = y.shape
    return pl.pallas_call(
        _bn_add_relu_kernel,
        out_shape=jax.ShapeDtypeStruct((m, c), jnp.float32),
        grid=(m // tm,),
        in_specs=[_row_spec(tm, c), _const2_spec((1, c)), _const2_spec((1, c)),
                  _row_spec(tm, c)],
        out_specs=_row_spec(tm, c),
        compiler_params=_PARALLEL,
    )(y, scale, shift, residual)


# ------------------------------- JAX glue ---------------------------------- #
def _round_up(v, m):
    return ((v + m - 1) // m) * m


def _pad_channels(c):
    # Lane-dense 128-multiples only when it does not blow up FLOPs/DMA for
    # small widths (perf feedback: width=8 padded to 128 wasted ~256x work).
    return _round_up(c, LANE) if c >= LANE else _round_up(c, 8)


def _pad_last(a, target):
    pad = target - a.shape[-1]
    if pad == 0:
        return a
    widths = [(0, 0)] * (a.ndim - 1) + [(0, pad)]
    return jnp.pad(a, widths)


def _pick_row_tile(m, target=512):
    """Largest multiple of 8 dividing m, <= target; prefer >=2 grid steps."""
    best, d = 8, 8
    while d <= min(m, target):
        if m % d == 0:
            best = d
        d += 8
    if best == m and m > 8:
        return _pick_row_tile(m, m // 2)
    return best


def _affine_from_partials(ssum, ssq, gamma, beta, count):
    """Merge per-tile partial stats and fold gamma/beta into scale/shift."""
    s = jnp.sum(ssum[:, 0, :], axis=0)
    q = jnp.sum(ssq[:, 0, :], axis=0)
    mu = s / count
    # TODO(synk): E[x^2]-mu^2 can cancel at very large M; switch to a per-tile
    # (mean, M2) Chan-style merge for production scale.
    var = jnp.maximum(q / count - mu * mu, 0.0)
    scale = gamma * lax.rsqrt(var + EPS)
    shift = beta - mu * scale
    return scale.reshape(1, -1), shift.reshape(1, -1)


def bottleneck_forward(x_nchw, params):
    """Pallas Bottleneck.forward (stride=1, no downsample, groups=1)."""
    n, c_in, h, w = x_nchw.shape
    width = params["w1"].shape[0]
    out4 = params["w3"].shape[0]
    if c_in != out4:
        raise ValueError("identity shortcut requires in_c == out_c * 4")
    m = n * h * w
    if m % 8 != 0:
        raise ValueError("N*H*W must be a multiple of 8")

    cp = _pad_channels(c_in)
    wp_ = _pad_channels(width)
    op = _pad_channels(out4)          # == cp because c_in == out4

    # activations: NCHW -> NHWC -> (M, Cp)
    # TODO(synk): keep the whole network in NHWC/(M,C) to drop this round trip.
    x_nhwc = jnp.transpose(x_nchw, (0, 2, 3, 1)).astype(jnp.float32)
    x2d = _pad_last(x_nhwc.reshape(m, c_in), cp)

    # weights -> bf16 GEMM layouts (zero padded)
    w1p = jnp.zeros((cp, wp_), jnp.float32).at[:c_in, :width].set(
        jnp.transpose(params["w1"][:, :, 0, 0])).astype(jnp.bfloat16)
    w2hwio = jnp.transpose(params["w2"], (2, 3, 1, 0)).reshape(9, width, width)
    w2p = jnp.zeros((9, wp_, wp_), jnp.float32).at[:, :width, :width].set(
        w2hwio).astype(jnp.bfloat16)
    w3p = jnp.zeros((wp_, op), jnp.float32).at[:width, :out4].set(
        jnp.transpose(params["w3"][:, :, 0, 0])).astype(jnp.bfloat16)

    g1p, b1p = _pad_last(params["g1"], wp_), _pad_last(params["b1"], wp_)
    g2p, b2p = _pad_last(params["g2"], wp_), _pad_last(params["b2"], wp_)
    g3p, b3p = _pad_last(params["g3"], op), _pad_last(params["b3"], op)

    tm = _pick_row_tile(m)

    # stage 1: 1x1 conv GEMM + BN1 partial stats
    y1, s1, q1 = _conv1_gemm(x2d, w1p, tm)
    sc1, sh1 = _affine_from_partials(s1, q1, g1p, b1p, m)

    # stage 2: BN1+ReLU prologue fused with 3x3 conv (in-VMEM halo) + BN2 stats
    y2, s2, q2 = _conv2_3x3(y1.reshape(n, h, w, wp_), sc1, sh1, w2p)
    sc2, sh2 = _affine_from_partials(s2, q2, g2p, b2p, m)

    # stage 3: BN2+ReLU prologue fused with 1x1 conv GEMM + BN3 stats
    y3, s3, q3 = _conv3_gemm(y2.reshape(m, wp_), sc2, sh2, w3p, tm)
    sc3, sh3 = _affine_from_partials(s3, q3, g3p, b3p, m)

    # stage 4: BN3 + residual add + ReLU
    out2d = _bn_add_relu(y3, sc3, sh3, x2d, tm)

    out = out2d.reshape(n, h, w, op)[:, :, :, :out4]
    return jnp.transpose(out, (0, 3, 1, 2))       # back to NCHW


# --------------------------- pure-JAX reference ----------------------------- #
def _bn_ref(y_nchw, g, b):
    mu = y_nchw.mean(axis=(0, 2, 3), keepdims=True)
    var = jnp.square(y_nchw - mu).mean(axis=(0, 2, 3), keepdims=True)
    return (y_nchw - mu) * lax.rsqrt(var + EPS) * g.reshape(1, -1, 1, 1) + \
        b.reshape(1, -1, 1, 1)


def bottleneck_ref(x, params):
    dn = ("NCHW", "OIHW", "NCHW")
    y = lax.conv_general_dilated(x, params["w1"], (1, 1), "VALID",
                                 dimension_numbers=dn)
    y = jnp.maximum(_bn_ref(y, params["g1"], params["b1"]), 0.0)
    y = lax.conv_general_dilated(y, params["w2"], (1, 1), ((1, 1), (1, 1)),
                                 dimension_numbers=dn)
    y = jnp.maximum(_bn_ref(y, params["g2"], params["b2"]), 0.0)
    y = lax.conv_general_dilated(y, params["w3"], (1, 1), "VALID",
                                 dimension_numbers=dn)
    y = _bn_ref(y, params["g3"], params["b3"]) + x
    return jnp.maximum(y, 0.0)


# --------------------------------- main ------------------------------------- #
if __name__ == "__main__":
    # Bottleneck(in_c=64, out_c=16): width = 16, output channels = 16*4 = 64,
    # so the identity shortcut is valid with downsample=None, stride=1.
    N, IN_C, H, W = 2, 64, 16, 16
    OUT_C = 16
    WIDTH = OUT_C          # base_width=64, groups=1 -> width = out_c
    OUT4 = OUT_C * 4

    key = jax.random.PRNGKey(0)
    ks = jax.random.split(key, 10)
    params = {
        "w1": 0.1 * jax.random.normal(ks[0], (WIDTH, IN_C, 1, 1), jnp.float32),
        "w2": 0.1 * jax.random.normal(ks[1], (WIDTH, WIDTH, 3, 3), jnp.float32),
        "w3": 0.1 * jax.random.normal(ks[2], (OUT4, WIDTH, 1, 1), jnp.float32),
        "g1": 1.0 + 0.1 * jax.random.normal(ks[3], (WIDTH,), jnp.float32),
        "b1": 0.1 * jax.random.normal(ks[4], (WIDTH,), jnp.float32),
        "g2": 1.0 + 0.1 * jax.random.normal(ks[5], (WIDTH,), jnp.float32),
        "b2": 0.1 * jax.random.normal(ks[6], (WIDTH,), jnp.float32),
        "g3": 1.0 + 0.1 * jax.random.normal(ks[7], (OUT4,), jnp.float32),
        "b3": 0.1 * jax.random.normal(ks[8], (OUT4,), jnp.float32),
    }
    x = jax.random.normal(ks[9], (N, IN_C, H, W), jnp.float32)

    fwd = jax.jit(bottleneck_forward)
    out = jax.block_until_ready(fwd(x, params))

    ref = jax.block_until_ready(bottleneck_ref(x, params))
    assert out.shape == ref.shape == (N, OUT4, H, W)
    # bf16 MXU operands + bf16 inter-stage activations vs. an all-f32
    # reference (BatchNorm divides by the batch std, amplifying rounding):
    # observed max-abs error is a few 1e-2, so compare at 1e-1.
    if not bool(jnp.allclose(out, ref, atol=1e-1, rtol=1e-1)):
        raise AssertionError(
            f"mismatch: max abs err = {float(jnp.max(jnp.abs(out - ref)))}")

    print("KERNEL_OK")
</pallas_src>

<mosaic_0001>
module attributes {stable_mosaic.version = 11 : i64} {
  func.func @_conv1_kernel(%arg0: i32, %arg1: memref<256x64xf32, #tpu.memory_space<vmem>>, %arg2: memref<64x16xbf16, #tpu.memory_space<vmem>>, %arg3: memref<256x16xbf16, #tpu.memory_space<vmem>>, %arg4: memref<1x8x16xf32, #tpu.memory_space<vmem>>, %arg5: memref<1x8x16xf32, #tpu.memory_space<vmem>>) attributes {dimension_semantics = [#tpu.dimension_semantics<parallel>], iteration_bounds = array<i64: 2>, scalar_prefetch = 0 : i64, scratch_operands = 0 : i64, tpu.core_type = #tpu.core_type<tc>, window_params = [{transform_indices = @transform_0, window_bounds = array<i64: 256, 64>}, {pipeline_mode = #tpu.pipeline_mode<synchronous>, transform_indices = @transform_1, window_bounds = array<i64: 64, 16>}, {transform_indices = @transform_2, window_bounds = array<i64: 256, 16>}, {transform_indices = @transform_3, window_bounds = array<i64: 1, 8, 16>}, {transform_indices = @transform_4, window_bounds = array<i64: 1, 8, 16>}]} {
    %c0 = arith.constant 0 : index
    %c0_0 = arith.constant 0 : index
    %0 = vector.load %arg1[%c0, %c0_0] : memref<256x64xf32, #tpu.memory_space<vmem>>, vector<256x64xf32>
    %1 = arith.truncf %0 : vector<256x64xf32> to vector<256x64xbf16>
    %c0_1 = arith.constant 0 : index
    %c0_2 = arith.constant 0 : index
    %2 = vector.load %arg2[%c0_1, %c0_2] : memref<64x16xbf16, #tpu.memory_space<vmem>>, vector<64x16xbf16>
    %cst = arith.constant dense<0.000000e+00> : vector<256x16xf32>
    %3 = tpu.matmul %1, %2, %cst {dimension_numbers = #tpu.dot_dimension_numbers<[1], [0], [0], [1], [0, 0, 1, 1], [], []>} : vector<256x64xbf16>, vector<64x16xbf16>, vector<256x16xf32> -> vector<256x16xf32>
    %4 = arith.truncf %3 : vector<256x16xf32> to vector<256x16xbf16>
    %c0_3 = arith.constant 0 : index
    %c0_4 = arith.constant 0 : index
    %5 = vector.load %arg3[%c0_3, %c0_4] : memref<256x16xbf16, #tpu.memory_space<vmem>>, vector<256x16xbf16>
    tpu.vector_store %arg3[%c0_3, %c0_4], %4 {strides = array<i32>} : memref<256x16xbf16, #tpu.memory_space<vmem>>, vector<256x16xbf16>,
    %cst_5 = arith.constant dense<0.000000e+00> : vector<16xf32>
    %6 = vector.multi_reduction <add>, %3, %cst_5 [0] : vector<256x16xf32> to vector<16xf32>
    %7 = vector.shape_cast %6 : vector<16xf32> to vector<1x1x16xf32>
    %8 = arith.mulf %3, %3 : vector<256x16xf32>
    %cst_6 = arith.constant dense<0.000000e+00> : vector<16xf32>
    %9 = vector.multi_reduction <add>, %8, %cst_6 [0] : vector<256x16xf32> to vector<16xf32>
    %10 = vector.shape_cast %9 : vector<16xf32> to vector<1x1x16xf32>
    %11 = vector.shape_cast %7 : vector<1x1x16xf32> to vector<1x1x16xf32>
    %12 = vector.broadcast %11 : vector<1x1x16xf32> to vector<1x8x16xf32>
    %c0_7 = arith.constant 0 : index
    %c0_8 = arith.constant 0 : index
    %c0_9 = arith.constant 0 : index
    %13 = vector.load %arg4[%c0_7, %c0_8, %c0_9] : memref<1x8x16xf32, #tpu.memory_space<vmem>>, vector<1x8x16xf32>
    tpu.vector_store %arg4[%c0_7, %c0_8, %c0_9], %12 {strides = array<i32>} : memref<1x8x16xf32, #tpu.memory_space<vmem>>, vector<1x8x16xf32>,
    %14 = vector.shape_cast %10 : vector<1x1x16xf32> to vector<1x1x16xf32>
    %15 = vector.broadcast %14 : vector<1x1x16xf32> to vector<1x8x16xf32>
    %c0_10 = arith.constant 0 : index
    %c0_11 = arith.constant 0 : index
    %c0_12 = arith.constant 0 : index
    %16 = vector.load %arg5[%c0_10, %c0_11, %c0_12] : memref<1x8x16xf32, #tpu.memory_space<vmem>>, vector<1x8x16xf32>
    tpu.vector_store %arg5[%c0_10, %c0_11, %c0_12], %15 {strides = array<i32>} : memref<1x8x16xf32, #tpu.memory_space<vmem>>, vector<1x8x16xf32>,
    return
  }
  func.func @transform_0(%arg0: i32) -> (i32, i32) {
    %c0_i32 = arith.constant 0 : i32
    %c0_i32_0 = arith.constant 0 : i32
    return %arg0, %c0_i32 : i32, i32
  }
  func.func @transform_1(%arg0: i32) -> (i32, i32) {
    %c0_i32 = arith.constant 0 : i32
    %c0_i32_0 = arith.constant 0 : i32
    %c0_i32_1 = arith.constant 0 : i32
    return %c0_i32, %c0_i32_0 : i32, i32
  }
  func.func @transform_2(%arg0: i32) -> (i32, i32) {
    %c0_i32 = arith.constant 0 : i32
    %c0_i32_0 = arith.constant 0 : i32
    return %arg0, %c0_i32 : i32, i32
  }
  func.func @transform_3(%arg0: i32) -> (i32, i32, i32) {
    %c0_i32 = arith.constant 0 : i32
    %c0_i32_0 = arith.constant 0 : i32
    %c0_i32_1 = arith.constant 0 : i32
    return %arg0, %c0_i32, %c0_i32_0 : i32, i32, i32
  }
  func.func @transform_4(%arg0: i32) -> (i32, i32, i32) {
    %c0_i32 = arith.constant 0 : i32
    %c0_i32_0 = arith.constant 0 : i32
    %c0_i32_1 = arith.constant 0 : i32
    return %arg0, %c0_i32, %c0_i32_0 : i32, i32, i32
  }
}

module attributes {stable_mosaic.version = 11 : i64} {
  func.func @_conv3_kernel(%arg0: i32, %arg1: memref<256x16xbf16, #tpu.memory_space<vmem>>, %arg2: memref<1x16xf32, #tpu.memory_space<vmem>>, %arg3: memref<1x16xf32, #tpu.memory_space<vmem>>, %arg4: memref<16x64xbf16, #tpu.memory_space<vmem>>, %arg5: memref<256x64xf32, #tpu.memory_space<vmem>>, %arg6: memref<1x8x64xf32, #tpu.memory_space<vmem>>, %arg7: memref<1x8x64xf32, #tpu.memory_space<vmem>>) attributes {dimension_semantics = [#tpu.dimension_semantics<parallel>], iteration_bounds = array<i64: 2>, scalar_prefetch = 0 : i64, scratch_operands = 0 : i64, tpu.core_type = #tpu.core_type<tc>, window_params = [{transform_indices = @transform_0, window_bounds = array<i64: 256, 16>}, {pipeline_mode = #tpu.pipeline_mode<synchronous>, transform_indices = @transform_1, window_bounds = array<i64: 1, 16>}, {pipeline_mode = #tpu.pipeline_mode<synchronous>, transform_indices = @transform_2, window_bounds = array<i64: 1, 16>}, {pipeline_mode = #tpu.pipeline_mode<synchronous>, transform_indices = @transform_3, window_bounds = array<i64: 16, 64>}, {transform_indices = @transform_4, window_bounds = array<i64: 256, 64>}, {transform_indices = @transform_5, window_bounds = array<i64: 1, 8, 64>}, {transform_indices = @transform_6, window_bounds = array<i64: 1, 8, 64>}]} {
    %c0 = arith.constant 0 : index
    %c0_0 = arith.constant 0 : index
    %0 = vector.load %arg1[%c0, %c0_0] : memref<256x16xbf16, #tpu.memory_space<vmem>>, vector<256x16xbf16>
    %1 = arith.extf %0 : vector<256x16xbf16> to vector<256x16xf32>
    %c0_1 = arith.constant 0 : index
    %c0_2 = arith.constant 0 : index
    %2 = vector.load %arg2[%c0_1, %c0_2] : memref<1x16xf32, #tpu.memory_space<vmem>>, vector<1x16xf32>
    %3 = vector.broadcast %2 : vector<1x16xf32> to vector<256x16xf32>
    %4 = arith.mulf %1, %3 : vector<256x16xf32>
    %c0_3 = arith.constant 0 : index
    %c0_4 = arith.constant 0 : index
    %5 = vector.load %arg3[%c0_3, %c0_4] : memref<1x16xf32, #tpu.memory_space<vmem>>, vector<1x16xf32>
    %6 = vector.broadcast %5 : vector<1x16xf32> to vector<256x16xf32>
    %7 = arith.addf %4, %6 : vector<256x16xf32>
    %cst = arith.constant 0.000000e+00 : f32
    %8 = vector.broadcast %cst : f32 to vector<256x16xf32>
    %9 = arith.maximumf %7, %8 : vector<256x16xf32>
    %10 = arith.truncf %9 : vector<256x16xf32> to vector<256x16xbf16>
    %c0_5 = arith.constant 0 : index
    %c0_6 = arith.constant 0 : index
    %11 = vector.load %arg4[%c0_5, %c0_6] : memref<16x64xbf16, #tpu.memory_space<vmem>>, vector<16x64xbf16>
    %cst_7 = arith.constant dense<0.000000e+00> : vector<256x64xf32>
    %12 = tpu.matmul %10, %11, %cst_7 {dimension_numbers = #tpu.dot_dimension_numbers<[1], [0], [0], [1], [0, 0, 1, 1], [], []>} : vector<256x16xbf16>, vector<16x64xbf16>, vector<256x64xf32> -> vector<256x64xf32>
    %c0_8 = arith.constant 0 : index
    %c0_9 = arith.constant 0 : index
    %13 = vector.load %arg5[%c0_8, %c0_9] : memref<256x64xf32, #tpu.memory_space<vmem>>, vector<256x64xf32>
    tpu.vector_store %arg5[%c0_8, %c0_9], %12 {strides = array<i32>} : memref<256x64xf32, #tpu.memory_space<vmem>>, vector<256x64xf32>,
    %cst_10 = arith.constant dense<0.000000e+00> : vector<64xf32>
    %14 = vector.multi_reduction <add>, %12, %cst_10 [0] : vector<256x64xf32> to vector<64xf32>
    %15 = vector.shape_cast %14 : vector<64xf32> to vector<1x1x64xf32>
    %16 = arith.mulf %12, %12 : vector<256x64xf32>
    %cst_11 = arith.constant dense<0.000000e+00> : vector<64xf32>
    %17 = vector.multi_reduction <add>, %16, %cst_11 [0] : vector<256x64xf32> to vector<64xf32>
    %18 = vector.shape_cast %17 : vector<64xf32> to vector<1x1x64xf32>
    %19 = vector.shape_cast %15 : vector<1x1x64xf32> to vector<1x1x64xf32>
    %20 = vector.broadcast %19 : vector<1x1x64xf32> to vector<1x8x64xf32>
    %c0_12 = arith.constant 0 : index
    %c0_13 = arith.constant 0 : index
    %c0_14 = arith.constant 0 : index
    %21 = vector.load %arg6[%c0_12, %c0_13, %c0_14] : memref<1x8x64xf32, #tpu.memory_space<vmem>>, vector<1x8x64xf32>
    tpu.vector_store %arg6[%c0_12, %c0_13, %c0_14], %20 {strides = array<i32>} : memref<1x8x64xf32, #tpu.memory_space<vmem>>, vector<1x8x64xf32>,
    %22 = vector.shape_cast %18 : vector<1x1x64xf32> to vector<1x1x64xf32>
    %23 = vector.broadcast %22 : vector<1x1x64xf32> to vector<1x8x64xf32>
    %c0_15 = arith.constant 0 : index
    %c0_16 = arith.constant 0 : index
    %c0_17 = arith.constant 0 : index
    %24 = vector.load %arg7[%c0_15, %c0_16, %c0_17] : memref<1x8x64xf32, #tpu.memory_space<vmem>>, vector<1x8x64xf32>
    tpu.vector_store %arg7[%c0_15, %c0_16, %c0_17], %23 {strides = array<i32>} : memref<1x8x64xf32, #tpu.memory_space<vmem>>, vector<1x8x64xf32>,
    return
  }
  func.func @transform_0(%arg0: i32) -> (i32, i32) {
    %c0_i32 = arith.constant 0 : i32
    %c0_i32_0 = arith.constant 0 : i32
    return %arg0, %c0_i32 : i32, i32
  }
  func.func @transform_1(%arg0: i32) -> (i32, i32) {
    %c0_i32 = arith.constant 0 : i32
    %c0_i32_0 = arith.constant 0 : i32
    %c0_i32_1 = arith.constant 0 : i32
    return %c0_i32, %c0_i32_0 : i32, i32
  }
  func.func @transform_2(%arg0: i32) -> (i32, i32) {
    %c0_i32 = arith.constant 0 : i32
    %c0_i32_0 = arith.constant 0 : i32
    %c0_i32_1 = arith.constant 0 : i32
    return %c0_i32, %c0_i32_0 : i32, i32
  }
  func.func @transform_3(%arg0: i32) -> (i32, i32) {
    %c0_i32 = arith.constant 0 : i32
    %c0_i32_0 = arith.constant 0 : i32
    %c0_i32_1 = arith.constant 0 : i32
    return %c0_i32, %c0_i32_0 : i32, i32
  }
  func.func @transform_4(%arg0: i32) -> (i32, i32) {
    %c0_i32 = arith.constant 0 : i32
    %c0_i32_0 = arith.constant 0 : i32
    return %arg0, %c0_i32 : i32, i32
  }
  func.func @transform_5(%arg0: i32) -> (i32, i32, i32) {
    %c0_i32 = arith.constant 0 : i32
    %c0_i32_0 = arith.constant 0 : i32
    %c0_i32_1 = arith.constant 0 : i32
    return %arg0, %c0_i32, %c0_i32_0 : i32, i32, i32
  }
  func.func @transform_6(%arg0: i32) -> (i32, i32, i32) {
    %c0_i32 = arith.constant 0 : i32
    %c0_i32_0 = arith.constant 0 : i32
    %c0_i32_1 = arith.constant 0 : i32
    return %arg0, %c0_i32, %c0_i32_0 : i32, i32, i32
  }
}

module attributes {stable_mosaic.version = 11 : i64} {
  func.func @_conv2_kernel(%arg0: i32, %arg1: memref<1x16x16x16xbf16, #tpu.memory_space<vmem>>, %arg2: memref<1x16xf32, #tpu.memory_space<vmem>>, %arg3: memref<1x16xf32, #tpu.memory_space<vmem>>, %arg4: memref<9x16x16xbf16, #tpu.memory_space<vmem>>, %arg5: memref<1x16x16x16xbf16, #tpu.memory_space<vmem>>, %arg6: memref<1x8x16xf32, #tpu.memory_space<vmem>>, %arg7: memref<1x8x16xf32, #tpu.memory_space<vmem>>, %arg8: memref<18x32x16xbf16, #tpu.memory_space<vmem>>) attributes {dimension_semantics = [#tpu.dimension_semantics<parallel>], iteration_bounds = array<i64: 2>, scalar_prefetch = 0 : i64, scratch_operands = 1 : i64, tpu.core_type = #tpu.core_type<tc>, window_params = [{transform_indices = @transform_0, window_bounds = array<i64: 1, 16, 16, 16>}, {pipeline_mode = #tpu.pipeline_mode<synchronous>, transform_indices = @transform_1, window_bounds = array<i64: 1, 16>}, {pipeline_mode = #tpu.pipeline_mode<synchronous>, transform_indices = @transform_2, window_bounds = array<i64: 1, 16>}, {pipeline_mode = #tpu.pipeline_mode<synchronous>, transform_indices = @transform_3, window_bounds = array<i64: 9, 16, 16>}, {transform_indices = @transform_4, window_bounds = array<i64: 1, 16, 16, 16>}, {transform_indices = @transform_5, window_bounds = array<i64: 1, 8, 16>}, {transform_indices = @transform_6, window_bounds = array<i64: 1, 8, 16>}]} {
    %c0 = arith.constant 0 : index
    %c0_0 = arith.constant 0 : index
    %0 = vector.load %arg2[%c0, %c0_0] : memref<1x16xf32, #tpu.memory_space<vmem>>, vector<1x16xf32>
    %1 = vector.shape_cast %0 : vector<1x16xf32> to vector<1x1x16xf32>
    %c0_1 = arith.constant 0 : index
    %c0_2 = arith.constant 0 : index
    %2 = vector.load %arg3[%c0_1, %c0_2] : memref<1x16xf32, #tpu.memory_space<vmem>>, vector<1x16xf32>
    %3 = vector.shape_cast %2 : vector<1x16xf32> to vector<1x1x16xf32>
    %c0_3 = arith.constant 0 : index
    %c0_4 = arith.constant 0 : index
    %c0_5 = arith.constant 0 : index
    %c0_6 = arith.constant 0 : index
    %4 = vector.load %arg1[%c0_3, %c0_4, %c0_5, %c0_6] : memref<1x16x16x16xbf16, #tpu.memory_space<vmem>>, vector<1x16x16x16xbf16>
    %5 = vector.shape_cast %4 : vector<1x16x16x16xbf16> to vector<16x16x16xbf16>
    %6 = arith.extf %5 : vector<16x16x16xbf16> to vector<16x16x16xf32>
    %7 = vector.broadcast %1 : vector<1x1x16xf32> to vector<16x16x16xf32>
    %8 = arith.mulf %6, %7 : vector<16x16x16xf32>
    %9 = vector.broadcast %3 : vector<1x1x16xf32> to vector<16x16x16xf32>
    %10 = arith.addf %8, %9 : vector<16x16x16xf32>
    %cst = arith.constant 0.000000e+00 : f32
    %11 = vector.broadcast %cst : f32 to vector<16x16x16xf32>
    %12 = arith.maximumf %10, %11 : vector<16x16x16xf32>
    %cst_7 = arith.constant 0.000000e+00 : f32
    %13 = vector.broadcast %cst_7 : f32 to vector<16x8x16xf32>
    %cst_8 = arith.constant 0.000000e+00 : f32
    %14 = vector.broadcast %cst_8 : f32 to vector<1x32x16xf32>
    %15 = tpu.concatenate %13, %12, %13 in 1 : vector<16x8x16xf32>, vector<16x16x16xf32>, vector<16x8x16xf32> -> vector<16x32x16xf32>
    %16 = tpu.concatenate %14, %15, %14 in 0 : vector<1x32x16xf32>, vector<16x32x16xf32>, vector<1x32x16xf32> -> vector<18x32x16xf32>
    %17 = arith.truncf %16 : vector<18x32x16xf32> to vector<18x32x16xbf16>
    %c0_9 = arith.constant 0 : index
    %c0_10 = arith.constant 0 : index
    %c0_11 = arith.constant 0 : index
    %18 = vector.load %arg8[%c0_9, %c0_10, %c0_11] : memref<18x32x16xbf16, #tpu.memory_space<vmem>>, vector<18x32x16xbf16>
    tpu.vector_store %arg8[%c0_9, %c0_10, %c0_11], %17 {strides = array<i32>} : memref<18x32x16xbf16, #tpu.memory_space<vmem>>, vector<18x32x16xbf16>,
    %cst_12 = arith.constant 0.000000e+00 : f32
    %19 = vector.broadcast %cst_12 : f32 to vector<256x16xf32>
    %c0_13 = arith.constant 0 : index
    %c7 = arith.constant 7 : index
    %c0_14 = arith.constant 0 : index
    %20 = vector.load %arg8[%c0_13, %c7, %c0_14] : memref<18x32x16xbf16, #tpu.memory_space<vmem>>, vector<16x16x16xbf16>
    %21 = vector.shape_cast %20 : vector<16x16x16xbf16> to vector<256x16xbf16>
    %c0_15 = arith.constant 0 : index
    %c0_16 = arith.constant 0 : index
    %c0_17 = arith.constant 0 : index
    %22 = vector.load %arg4[%c0_15, %c0_16, %c0_17] : memref<9x16x16xbf16, #tpu.memory_space<vmem>>, vector<1x16x16xbf16>
    %23 = vector.shape_cast %22 : vector<1x16x16xbf16> to vector<16x16xbf16>
    %cst_18 = arith.constant dense<0.000000e+00> : vector<256x16xf32>
    %24 = tpu.matmul %21, %23, %cst_18 {dimension_numbers = #tpu.dot_dimension_numbers<[1], [0], [0], [1], [0, 0, 1, 1], [], []>} : vector<256x16xbf16>, vector<16x16xbf16>, vector<256x16xf32> -> vector<256x16xf32>
    %25 = arith.addf %19, %24 : vector<256x16xf32>
    %c0_19 = arith.constant 0 : index
    %c8 = arith.constant 8 : index
    %c0_20 = arith.constant 0 : index
    %26 = vector.load %arg8[%c0_19, %c8, %c0_20] : memref<18x32x16xbf16, #tpu.memory_space<vmem>>, vector<16x16x16xbf16>
    %27 = vector.shape_cast %26 : vector<16x16x16xbf16> to vector<256x16xbf16>
    %c1 = arith.constant 1 : index
    %c0_21 = arith.constant 0 : index
    %c0_22 = arith.constant 0 : index
    %28 = vector.load %arg4[%c1, %c0_21, %c0_22] : memref<9x16x16xbf16, #tpu.memory_space<vmem>>, vector<1x16x16xbf16>
    %29 = vector.shape_cast %28 : vector<1x16x16xbf16> to vector<16x16xbf16>
    %cst_23 = arith.constant dense<0.000000e+00> : vector<256x16xf32>
    %30 = tpu.matmul %27, %29, %cst_23 {dimension_numbers = #tpu.dot_dimension_numbers<[1], [0], [0], [1], [0, 0, 1, 1], [], []>} : vector<256x16xbf16>, vector<16x16xbf16>, vector<256x16xf32> -> vector<256x16xf32>
    %31 = arith.addf %25, %30 : vector<256x16xf32>
    %c0_24 = arith.constant 0 : index
    %c9 = arith.constant 9 : index
    %c0_25 = arith.constant 0 : index
    %32 = vector.load %arg8[%c0_24, %c9, %c0_25] : memref<18x32x16xbf16, #tpu.memory_space<vmem>>, vector<16x16x16xbf16>
    %33 = vector.shape_cast %32 : vector<16x16x16xbf16> to vector<256x16xbf16>
    %c2 = arith.constant 2 : index
    %c0_26 = arith.constant 0 : index
    %c0_27 = arith.constant 0 : index
    %34 = vector.load %arg4[%c2, %c0_26, %c0_27] : memref<9x16x16xbf16, #tpu.memory_space<vmem>>, vector<1x16x16xbf16>
    %35 = vector.shape_cast %34 : vector<1x16x16xbf16> to vector<16x16xbf16>
    %cst_28 = arith.constant dense<0.000000e+00> : vector<256x16xf32>
    %36 = tpu.matmul %33, %35, %cst_28 {dimension_numbers = #tpu.dot_dimension_numbers<[1], [0], [0], [1], [0, 0, 1, 1], [], []>} : vector<256x16xbf16>, vector<16x16xbf16>, vector<256x16xf32> -> vector<256x16xf32>
    %37 = arith.addf %31, %36 : vector<256x16xf32>
    %c1_29 = arith.constant 1 : index
    %c7_30 = arith.constant 7 : index
    %c0_31 = arith.constant 0 : index
    %38 = vector.load %arg8[%c1_29, %c7_30, %c0_31] : memref<18x32x16xbf16, #tpu.memory_space<vmem>>, vector<16x16x16xbf16>
    %39 = vector.shape_cast %38 : vector<16x16x16xbf16> to vector<256x16xbf16>
    %c3 = arith.constant 3 : index
    %c0_32 = arith.constant 0 : index
    %c0_33 = arith.constant 0 : index
    %40 = vector.load %arg4[%c3, %c0_32, %c0_33] : memref<9x16x16xbf16, #tpu.memory_space<vmem>>, vector<1x16x16xbf16>
    %41 = vector.shape_cast %40 : vector<1x16x16xbf16> to vector<16x16xbf16>
    %cst_34 = arith.constant dense<0.000000e+00> : vector<256x16xf32>
    %42 = tpu.matmul %39, %41, %cst_34 {dimension_numbers = #tpu.dot_dimension_numbers<[1], [0], [0], [1], [0, 0, 1, 1], [], []>} : vector<256x16xbf16>, vector<16x16xbf16>, vector<256x16xf32> -> vector<256x16xf32>
    %43 = arith.addf %37, %42 : vector<256x16xf32>
    %c1_35 = arith.constant 1 : index
    %c8_36 = arith.constant 8 : index
    %c0_37 = arith.constant 0 : index
    %44 = vector.load %arg8[%c1_35, %c8_36, %c0_37] : memref<18x32x16xbf16, #tpu.memory_space<vmem>>, vector<16x16x16xbf16>
    %45 = vector.shape_cast %44 : vector<16x16x16xbf16> to vector<256x16xbf16>
    %c4 = arith.constant 4 : index
    %c0_38 = arith.constant 0 : index
    %c0_39 = arith.constant 0 : index
    %46 = vector.load %arg4[%c4, %c0_38, %c0_39] : memref<9x16x16xbf16, #tpu.memory_space<vmem>>, vector<1x16x16xbf16>
    %47 = vector.shape_cast %46 : vector<1x16x16xbf16> to vector<16x16xbf16>
    %cst_40 = arith.constant dense<0.000000e+00> : vector<256x16xf32>
    %48 = tpu.matmul %45, %47, %cst_40 {dimension_numbers = #tpu.dot_dimension_numbers<[1], [0], [0], [1], [0, 0, 1, 1], [], []>} : vector<256x16xbf16>, vector<16x16xbf16>, vector<256x16xf32> -> vector<256x16xf32>
    %49 = arith.addf %43, %48 : vector<256x16xf32>
    %c1_41 = arith.constant 1 : index
    %c9_42 = arith.constant 9 : index
    %c0_43 = arith.constant 0 : index
    %50 = vector.load %arg8[%c1_41, %c9_42, %c0_43] : memref<18x32x16xbf16, #tpu.memory_space<vmem>>, vector<16x16x16xbf16>
    %51 = vector.shape_cast %50 : vector<16x16x16xbf16> to vector<256x16xbf16>
    %c5 = arith.constant 5 : index
    %c0_44 = arith.constant 0 : index
    %c0_45 = arith.constant 0 : index
    %52 = vector.load %arg4[%c5, %c0_44, %c0_45] : memref<9x16x16xbf16, #tpu.memory_space<vmem>>, vector<1x16x16xbf16>
    %53 = vector.shape_cast %52 : vector<1x16x16xbf16> to vector<16x16xbf16>
    %cst_46 = arith.constant dense<0.000000e+00> : vector<256x16xf32>
    %54 = tpu.matmul %51, %53, %cst_46 {dimension_numbers = #tpu.dot_dimension_numbers<[1], [0], [0], [1], [0, 0, 1, 1], [], []>} : vector<256x16xbf16>, vector<16x16xbf16>, vector<256x16xf32> -> vector<256x16xf32>
    %55 = arith.addf %49, %54 : vector<256x16xf32>
    %c2_47 = arith.constant 2 : index
    %c7_48 = arith.constant 7 : index
    %c0_49 = arith.constant 0 : index
    %56 = vector.load %arg8[%c2_47, %c7_48, %c0_49] : memref<18x32x16xbf16, #tpu.memory_space<vmem>>, vector<16x16x16xbf16>
    %57 = vector.shape_cast %56 : vector<16x16x16xbf16> to vector<256x16xbf16>
    %c6 = arith.constant 6 : index
    %c0_50 = arith.constant 0 : index
    %c0_51 = arith.constant 0 : index
    %58 = vector.load %arg4[%c6, %c0_50, %c0_51] : memref<9x16x16xbf16, #tpu.memory_space<vmem>>, vector<1x16x16xbf16>
    %59 = vector.shape_cast %58 : vector<1x16x16xbf16> to vector<16x16xbf16>
    %cst_52 = arith.constant dense<0.000000e+00> : vector<256x16xf32>
    %60 = tpu.matmul %57, %59, %cst_52 {dimension_numbers = #tpu.dot_dimension_numbers<[1], [0], [0], [1], [0, 0, 1, 1], [], []>} : vector<256x16xbf16>, vector<16x16xbf16>, vector<256x16xf32> -> vector<256x16xf32>
    %61 = arith.addf %55, %60 : vector<256x16xf32>
    %c2_53 = arith.constant 2 : index
    %c8_54 = arith.constant 8 : index
    %c0_55 = arith.constant 0 : index
    %62 = vector.load %arg8[%c2_53, %c8_54, %c0_55] : memref<18x32x16xbf16, #tpu.memory_space<vmem>>, vector<16x16x16xbf16>
    %63 = vector.shape_cast %62 : vector<16x16x16xbf16> to vector<256x16xbf16>
    %c7_56 = arith.constant 7 : index
    %c0_57 = arith.constant 0 : index
    %c0_58 = arith.constant 0 : index
    %64 = vector.load %arg4[%c7_56, %c0_57, %c0_58] : memref<9x16x16xbf16, #tpu.memory_space<vmem>>, vector<1x16x16xbf16>
    %65 = vector.shape_cast %64 : vector<1x16x16xbf16> to vector<16x16xbf16>
    %cst_59 = arith.constant dense<0.000000e+00> : vector<256x16xf32>
    %66 = tpu.matmul %63, %65, %cst_59 {dimension_numbers = #tpu.dot_dimension_numbers<[1], [0], [0], [1], [0, 0, 1, 1], [], []>} : vector<256x16xbf16>, vector<16x16xbf16>, vector<256x16xf32> -> vector<256x16xf32>
    %67 = arith.addf %61, %66 : vector<256x16xf32>
    %c2_60 = arith.constant 2 : index
    %c9_61 = arith.constant 9 : index
    %c0_62 = arith.constant 0 : index
    %68 = vector.load %arg8[%c2_60, %c9_61, %c0_62] : memref<18x32x16xbf16, #tpu.memory_space<vmem>>, vector<16x16x16xbf16>
    %69 = vector.shape_cast %68 : vector<16x16x16xbf16> to vector<256x16xbf16>
    %c8_63 = arith.constant 8 : index
    %c0_64 = arith.constant 0 : index
    %c0_65 = arith.constant 0 : index
    %70 = vector.load %arg4[%c8_63, %c0_64, %c0_65] : memref<9x16x16xbf16, #tpu.memory_space<vmem>>, vector<1x16x16xbf16>
    %71 = vector.shape_cast %70 : vector<1x16x16xbf16> to vector<16x16xbf16>
    %cst_66 = arith.constant dense<0.000000e+00> : vector<256x16xf32>
    %72 = tpu.matmul %69, %71, %cst_66 {dimension_numbers = #tpu.dot_dimension_numbers<[1], [0], [0], [1], [0, 0, 1, 1], [], []>} : vector<256x16xbf16>, vector<16x16xbf16>, vector<256x16xf32> -> vector<256x16xf32>
    %73 = arith.addf %67, %72 : vector<256x16xf32>
    %74 = vector.shape_cast %73 : vector<256x16xf32> to vector<16x16x16xf32>
    %75 = arith.truncf %74 : vector<16x16x16xf32> to vector<16x16x16xbf16>
    %c0_67 = arith.constant 0 : index
    %c0_68 = arith.constant 0 : index
    %c0_69 = arith.constant 0 : index
    %c0_70 = arith.constant 0 : index
    %76 = vector.load %arg5[%c0_67, %c0_68, %c0_69, %c0_70] : memref<1x16x16x16xbf16, #tpu.memory_space<vmem>>, vector<1x16x16x16xbf16>
    %77 = vector.shape_cast %76 : vector<1x16x16x16xbf16> to vector<16x16x16xbf16>
    %78 = vector.shape_cast %75 : vector<16x16x16xbf16> to vector<1x16x16x16xbf16>
    tpu.vector_store %arg5[%c0_67, %c0_68, %c0_69, %c0_70], %78 {strides = array<i32>} : memref<1x16x16x16xbf16, #tpu.memory_space<vmem>>, vector<1x16x16x16xbf16>,
    %cst_71 = arith.constant dense<0.000000e+00> : vector<16xf32>
    %79 = vector.multi_reduction <add>, %73, %cst_71 [0] : vector<256x16xf32> to vector<16xf32>
    %80 = vector.shape_cast %79 : vector<16xf32> to vector<1x1x16xf32>
    %81 = arith.mulf %73, %73 : vector<256x16xf32>
    %cst_72 = arith.constant dense<0.000000e+00> : vector<16xf32>
    %82 = vector.multi_reduction <add>, %81, %cst_72 [0] : vector<256x16xf32> to vector<16xf32>
    %83 = vector.shape_cast %82 : vector<16xf32> to vector<1x1x16xf32>
    %84 = vector.shape_cast %80 : vector<1x1x16xf32> to vector<1x1x16xf32>
    %85 = vector.broadcast %84 : vector<1x1x16xf32> to vector<1x8x16xf32>
    %c0_73 = arith.constant 0 : index
    %c0_74 = arith.constant 0 : index
    %c0_75 = arith.constant 0 : index
    %86 = vector.load %arg6[%c0_73, %c0_74, %c0_75] : memref<1x8x16xf32, #tpu.memory_space<vmem>>, vector<1x8x16xf32>
    tpu.vector_store %arg6[%c0_73, %c0_74, %c0_75], %85 {strides = array<i32>} : memref<1x8x16xf32, #tpu.memory_space<vmem>>, vector<1x8x16xf32>,
    %87 = vector.shape_cast %83 : vector<1x1x16xf32> to vector<1x1x16xf32>
    %88 = vector.broadcast %87 : vector<1x1x16xf32> to vector<1x8x16xf32>
    %c0_76 = arith.constant 0 : index
    %c0_77 = arith.constant 0 : index
    %c0_78 = arith.constant 0 : index
    %89 = vector.load %arg7[%c0_76, %c0_77, %c0_78] : memref<1x8x16xf32, #tpu.memory_space<vmem>>, vector<1x8x16xf32>
    tpu.vector_store %arg7[%c0_76, %c0_77, %c0_78], %88 {strides = array<i32>} : memref<1x8x16xf32, #tpu.memory_space<vmem>>, vector<1x8x16xf32>,
    return
  }
  func.func @transform_0(%arg0: i32) -> (i32, i32, i32, i32) {
    %c0_i32 = arith.constant 0 : i32
    %c0_i32_0 = arith.constant 0 : i32
    %c0_i32_1 = arith.constant 0 : i32
    %c0_i32_2 = arith.constant 0 : i32
    return %arg0, %c0_i32, %c0_i32_0, %c0_i32_1 : i32, i32, i32, i32
  }
  func.func @transform_1(%arg0: i32) -> (i32, i32) {
    %c0_i32 = arith.constant 0 : i32
    %c0_i32_0 = arith.constant 0 : i32
    %c0_i32_1 = arith.constant 0 : i32
    return %c0_i32, %c0_i32_0 : i32, i32
  }
  func.func @transform_2(%arg0: i32) -> (i32, i32) {
    %c0_i32 = arith.constant 0 : i32
    %c0_i32_0 = arith.constant 0 : i32
    %c0_i32_1 = arith.constant 0 : i32
    return %c0_i32, %c0_i32_0 : i32, i32
  }
  func.func @transform_3(%arg0: i32) -> (i32, i32, i32) {
    %c0_i32 = arith.constant 0 : i32
    %c0_i32_0 = arith.constant 0 : i32
    %c0_i32_1 = arith.constant 0 : i32
    %c0_i32_2 = arith.constant 0 : i32
    return %c0_i32, %c0_i32_0, %c0_i32_1 : i32, i32, i32
  }
  func.func @transform_4(%arg0: i32) -> (i32, i32, i32, i32) {
    %c0_i32 = arith.constant 0 : i32
    %c0_i32_0 = arith.constant 0 : i32
    %c0_i32_1 = arith.constant 0 : i32
    %c0_i32_2 = arith.constant 0 : i32
    return %arg0, %c0_i32, %c0_i32_0, %c0_i32_1 : i32, i32, i32, i32
  }
  func.func @transform_5(%arg0: i32) -> (i32, i32, i32) {
    %c0_i32 = arith.constant 0 : i32
    %c0_i32_0 = arith.constant 0 : i32
    %c0_i32_1 = arith.constant 0 : i32
    return %arg0, %c0_i32, %c0_i32_0 : i32, i32, i32
  }
  func.func @transform_6(%arg0: i32) -> (i32, i32, i32) {
    %c0_i32 = arith.constant 0 : i32
    %c0_i32_0 = arith.constant 0 : i32
    %c0_i32_1 = arith.constant 0 : i32
    return %arg0, %c0_i32, %c0_i32_0 : i32, i32, i32
  }
}

module attributes {stable_mosaic.version = 11 : i64} {
  func.func @_bn_add_relu_kernel(%arg0: i32, %arg1: memref<256x64xf32, #tpu.memory_space<vmem>>, %arg2: memref<1x64xf32, #tpu.memory_space<vmem>>, %arg3: memref<1x64xf32, #tpu.memory_space<vmem>>, %arg4: memref<256x64xf32, #tpu.memory_space<vmem>>, %arg5: memref<256x64xf32, #tpu.memory_space<vmem>>) attributes {dimension_semantics = [#tpu.dimension_semantics<parallel>], iteration_bounds = array<i64: 2>, scalar_prefetch = 0 : i64, scratch_operands = 0 : i64, tpu.core_type = #tpu.core_type<tc>, window_params = [{transform_indices = @transform_0, window_bounds = array<i64: 256, 64>}, {pipeline_mode = #tpu.pipeline_mode<synchronous>, transform_indices = @transform_1, window_bounds = array<i64: 1, 64>}, {pipeline_mode = #tpu.pipeline_mode<synchronous>, transform_indices = @transform_2, window_bounds = array<i64: 1, 64>}, {transform_indices = @transform_3, window_bounds = array<i64: 256, 64>}, {transform_indices = @transform_4, window_bounds = array<i64: 256, 64>}]} {
    %c0 = arith.constant 0 : index
    %c0_0 = arith.constant 0 : index
    %0 = vector.load %arg1[%c0, %c0_0] : memref<256x64xf32, #tpu.memory_space<vmem>>, vector<256x64xf32>
    %c0_1 = arith.constant 0 : index
    %c0_2 = arith.constant 0 : index
    %1 = vector.load %arg2[%c0_1, %c0_2] : memref<1x64xf32, #tpu.memory_space<vmem>>, vector<1x64xf32>
    %2 = vector.broadcast %1 : vector<1x64xf32> to vector<256x64xf32>
    %3 = arith.mulf %0, %2 : vector<256x64xf32>
    %c0_3 = arith.constant 0 : index
    %c0_4 = arith.constant 0 : index
    %4 = vector.load %arg3[%c0_3, %c0_4] : memref<1x64xf32, #tpu.memory_space<vmem>>, vector<1x64xf32>
    %5 = vector.broadcast %4 : vector<1x64xf32> to vector<256x64xf32>
    %6 = arith.addf %3, %5 : vector<256x64xf32>
    %c0_5 = arith.constant 0 : index
    %c0_6 = arith.constant 0 : index
    %7 = vector.load %arg4[%c0_5, %c0_6] : memref<256x64xf32, #tpu.memory_space<vmem>>, vector<256x64xf32>
    %8 = arith.addf %6, %7 : vector<256x64xf32>
    %cst = arith.constant 0.000000e+00 : f32
    %9 = vector.broadcast %cst : f32 to vector<256x64xf32>
    %10 = arith.maximumf %8, %9 : vector<256x64xf32>
    %c0_7 = arith.constant 0 : index
    %c0_8 = arith.constant 0 : index
    %11 = vector.load %arg5[%c0_7, %c0_8] : memref<256x64xf32, #tpu.memory_space<vmem>>, vector<256x64xf32>
    tpu.vector_store %arg5[%c0_7, %c0_8], %10 {strides = array<i32>} : memref<256x64xf32, #tpu.memory_space<vmem>>, vector<256x64xf32>,
    return
  }
  func.func @transform_0(%arg0: i32) -> (i32, i32) {
    %c0_i32 = arith.constant 0 : i32
    %c0_i32_0 = arith.constant 0 : i32
    return %arg0, %c0_i32 : i32, i32
  }
  func.func @transform_1(%arg0: i32) -> (i32, i32) {
    %c0_i32 = arith.constant 0 : i32
    %c0_i32_0 = arith.constant 0 : i32
    %c0_i32_1 = arith.constant 0 : i32
    return %c0_i32, %c0_i32_0 : i32, i32
  }
  func.func @transform_2(%arg0: i32) -> (i32, i32) {
    %c0_i32 = arith.constant 0 : i32
    %c0_i32_0 = arith.constant 0 : i32
    %c0_i32_1 = arith.constant 0 : i32
    return %c0_i32, %c0_i32_0 : i32, i32
  }
  func.func @transform_3(%arg0: i32) -> (i32, i32) {
    %c0_i32 = arith.constant 0 : i32
    %c0_i32_0 = arith.constant 0 : i32
    return %arg0, %c0_i32 : i32, i32
  }
  func.func @transform_4(%arg0: i32) -> (i32, i32) {
    %c0_i32 = arith.constant 0 : i32
    %c0_i32_0 = arith.constant 0 : i32
    return %arg0, %c0_i32 : i32, i32
  }
}

</mosaic_0001>

<bundles_post_ra>
// kernel: bottleneck_forward.7
= control target key start
LH: loop header
LB: loop body
LE: loop exit
PB: predicated region body
PF: predicated region fallthrough
CT: control target
= control target key end

     0   :  { %9 = vsyncpa [#allocation3], 0  ;;  %s1016_s0 = inlined_call_operand.vmem [shape: f32[512,64], index: 0, kind: input, shape index: {}]   ;;  %s1017_s1 = inlined_call_operand.vmem [shape: f32[1,64], index: 1, kind: input, shape index: {}]   ;;  %s1018_s2 = inlined_call_operand.vmem [shape: f32[1,64], index: 2, kind: input, shape index: {}]   ;;  %s1019_s3 = inlined_call_operand.vmem [shape: f32[512,64], index: 3, kind: input, shape index: {}]   ;;  %s1020_s4 = inlined_call_operand.hbm [shape: f32[512,64], index: 4, kind: output, shape index: {}]  }
   0x1   :  { %11 = vsyncpa [#allocation3 + $0x1], 0  ;;  %s696_s15 = smov 0   ;;  %s698_s16 = smov 0  }
   0x2   :  { %s700_s17 = smov 0   ;;  %s702_s18 = smov 0  }
   0x3 LB: > { %s717_s19 = sadd.s32 4294967295, %s666_s18   ;;  %s548_s20 = sadd.s32 4294967294, %s666_s18   ;;  %s666_s18 = sphi %s702_s18, %s1026_s18   ;;  %s662_s17 = sphi %s700_s17, %s1025_s17   ;;  %s658_s16 = sphi %s698_s16, %s1024_s16   ;;  %s654_s15 = sphi %s696_s15, %s1023_s15  }
   0x4   : > { %s721_s21 = sadd.s32 1, %s666_s18   ;;  %s118_s22 = sadd.s32 1, %s662_s17 }
   0x5   : > { %s115_s23 = ssub.s32 %s666_s18, %s721_s21  ;;  %p128_p0 = scmp.ne.s32.totalorder %s662_s17, %s658_s16 }
   0x6   : > { %p116_p1 = scmp.eq.s32.totalorder %s115_s23, 0  ;;  %p129_p2 = scmp.eq.s32.totalorder %s717_s19, 1 }
   0x7   : > { %p134_p3 = scmp.ne.s32.totalorder %s658_s16, %s654_s15  ;;  %p135_p4 = scmp.eq.s32.totalorder %s548_s20, 1 }
   0x8   : > { %s732_s24 = scalar_select %p116_p1, %s662_s17, %s118_s22  }
   0x9   : > { %p734_p5 = por %p129_p2, %p128_p0  ;;  %p738_p6 = por %p135_p4, %p134_p3 }
   0xa   : > { %p551_p7 = scmp.ge.s32.totalorder %s666_s18, 1  ;;  %p177_p8 = scmp.lt.s32.totalorder %s666_s18, 3 }
   0xc   : > { %p178_p9 = pnand %p551_p7, %p177_p8 }
   0xd   : > { %s553_s27 = sshll.u32 (!%p178_p9), %s717_s19, 5  ;;  %s205_s11 = sand.u32 (!%p178_p9), 1, %s658_s16  }
   0xe   : > { %181 = sbr.rel (%p178_p9) target bundleno = 74 (0x4a), region = 36  ;;  %p209_p10 = scmp.lt.s32.totalorder (!%p178_p9), %s553_s27, 63 }
   0xf   : > { %s778_s14 = sshll.u32 (!%p178_p9), %s205_s11, 8  ;;  %s564_s22 = sshll.u32 (!%p178_p9), %s717_s19, 12 }
  0x10   : > { %s808_s20 = scalar_lea.vmem (!%p178_p9), [#allocation2], %s778_s14  ;;  %s976_s29 = scalar_lea.sflag (!%p178_p9), [#allocation3], %s205_s11 }
  0x11   : > { %s474_s23 = sshll.u32 (!%p178_p9), %s808_s20, 4  ;;  %s668_s5 = smov (!%p178_p9), [#allocation2]   ;;  %s966_s23 = int_to_ptr.vmem [resolvable:$true] %s474_s23 }
  0x12   : > { %s606_s30 = scalar_lea.vmem (!%p178_p9), %s966_s23, 4096  ;;  %s610_s6 = sshll.u32 (!%p178_p9), %s668_s5, 4  ;;  %s611_s6 = int_to_ptr.vmem [resolvable:$false] %s610_s6 }
  0x13   : > { %s1028_s27 = smov (!%p209_p10, %s553_s27), 63  ;;  %v748_v0 = vld [vmem:[%s1017_s1] ss:$0 sm:$0xff]  ;;  %vm427_vm0 = vcmask 523264   ;;  %p607_p11 = scmp.ne.s32.totalorder %s966_s23, %s606_s30 }
  0x14   : > { %s554_s28 = sshll.u32 %s1028_s27, 3  ;;  %v765_v2 = vld [vmem:[%s1018_s2] ss:$0 sm:$0xff]  ;;  %p613_p0 = scmp.lt.s32.totalorder %s966_s23, %s611_s6 }
  0x15   : > { %s753_s7 = scalar_lea.vmem %s1016_s0, %s554_s28  ;;  %s758_s10 = scalar_lea.vmem %s1019_s3, %s554_s28 }
  0x16   : > { %v221_v1 = vld [vmem:[%s753_s7] sm:$0xff]  ;;  %v222_v3 = vld [vmem:[%s753_s7 + $0x8] sm:$0xff]  ;;  %v223_v7 = vld [vmem:[%s753_s7 + $0x10] sm:$0xff]  ;;  %s964_s28 = scalar_lea.hbm %s1020_s4, %s564_s22  ;;  %p608_p12 = pnand %p607_p11, %p734_p5 }
  0x17   : > { %v260_v4 = vmul.f32 %v748_v0, %v221_v1  ;;  %v331_v5 = vld [vmem:[%s758_s10] sm:$0xff]  ;;  %v261_v6 = vmul.f32 %v748_v0, %v222_v3  ;;  %v332_v8 = vld [vmem:[%s758_s10 + $0x8] sm:$0xff]  ;;  %v262_v9 = vmul.f32 %v748_v0, %v223_v7  ;;  %v224_v10 = vld [vmem:[%s753_s7 + $0x18] sm:$0xff] }
  0x18   : > { %v225_v11 = vld [vmem:[%s753_s7 + $0x20] sm:$0xff]  ;;  %v333_v14 = vld [vmem:[%s758_s10 + $0x10] sm:$0xff]  ;;  %v263_v15 = vmul.f32 %v748_v0, %v224_v10  ;;  %v334_v16 = vld [vmem:[%s758_s10 + $0x18] sm:$0xff]  ;;  %p609_p13 = pneg %p608_p12 }
  0x19   : > { %v299_v12 = vadd.f32 %v765_v2, %v260_v4  ;;  %v300_v13 = vadd.f32 %v765_v2, %v261_v6  ;;  %v264_v17 = vmul.f32 %v748_v0, %v225_v11  ;;  %v226_v18 = vld [vmem:[%s753_s7 + $0x28] sm:$0xff]  ;;  %v301_v19 = vadd.f32 %v765_v2, %v262_v9  ;;  %v335_v20 = vld [vmem:[%s758_s10 + $0x20] sm:$0xff]  ;;  %v227_v22 = vld [vmem:[%s753_s7 + $0x30] sm:$0xff] }
  0x1a   : > { %v265_v21 = vmul.f32 %v748_v0, %v226_v18  ;;  %v228_v23 = vld [vmem:[%s753_s7 + $0x38] sm:$0xff]  ;;  %v302_v26 = vadd.f32 %v765_v2, %v263_v15  ;;  %v336_v28 = vld [vmem:[%s758_s10 + $0x28] sm:$0xff]  ;;  %v266_v31 = vmul.f32 %v748_v0, %v227_v22  ;;  %v229_v33 = vld [vmem:[%s753_s7 + $0x40] sm:$0xff] }
  0x1b   : > { %v363_v24 = vadd.f32 %v331_v5, %v299_v12  ;;  %v364_v25 = vadd.f32 %v332_v8, %v300_v13  ;;  %v303_v27 = vadd.f32 %v765_v2, %v264_v17  ;;  %v365_v29 = vadd.f32 %v333_v14, %v301_v19  ;;  %v230_v34 = vld [vmem:[%s753_s7 + $0x48] sm:$0xff]  ;;  %v337_v39 = vld [vmem:[%s758_s10 + $0x30] sm:$0xff]  ;;  %v338_v40 = vld [vmem:[%s758_s10 + $0x38] sm:$0xff] }
  0x1c   : > { %v304_v30 = vadd.f32 %v765_v2, %v265_v21  ;;  %v267_v32 = vmul.f32 %v748_v0, %v228_v23  ;;  %v366_v37 = vadd.f32 %v334_v16, %v302_v26  ;;  %v231_v41 = vld [vmem:[%s753_s7 + $0x50] sm:$0xff]  ;;  %v305_v44 = vadd.f32 %v765_v2, %v266_v31  ;;  %v232_v46 = vld [vmem:[%s753_s7 + $0x58] sm:$0xff]  ;;  %v233_v47 = vld [vmem:[%s753_s7 + $0x60] sm:$0xff] }
  0x1d   : > { %v395_v35 = vmax.f32 %v363_v24, 0.0  ;;  %v396_v36 = vmax.f32 %v364_v25, 0.0  ;;  %v367_v38 = vadd.f32 %v335_v20, %v303_v27  ;;  %v397_v42 = vmax.f32 %v365_v29, 0.0  ;;  %v234_v52 = vld [vmem:[%s753_s7 + $0x68] sm:$0xff]  ;;  %v339_v56 = vld [vmem:[%s758_s10 + $0x40] sm:$0xff]  ;;  %v341_v61 = vld [vmem:[%s758_s10 + $0x50] sm:$0xff] }
  0x1e   : > { %v368_v43 = vadd.f32 %v336_v28, %v304_v30  ;;  %v306_v45 = vadd.f32 %v765_v2, %v267_v32  ;;  %v398_v48 = vmax.f32 %v366_v37, 0.0  ;;  %v268_v50 = vmul.f32 %v748_v0, %v229_v33  ;;  %v340_v57 = vld [vmem:[%s758_s10 + $0x48] sm:$0xff]  ;;  %v235_v1 = vld [vmem:[%s753_s7 + $0x70] sm:$0xff]  ;;  %v236_v3 = vld [vmem:[%s753_s7 + $0x78] sm:$0xff] }
  0x1f   : > { %428 = vst.msk [vmem:[%s808_s20] sm:$0xff] %vm427_vm0, %v395_v35  ;;  %429 = vst.msk [vmem:[%s808_s20 + $0x8] sm:$0xff] %vm427_vm0, %v396_v36  ;;  %v399_v49 = vmax.f32 %v367_v38, 0.0  ;;  %v269_v51 = vmul.f32 %v748_v0, %v230_v34  ;;  %v369_v54 = vadd.f32 %v337_v39, %v305_v44  ;;  %v270_v58 = vmul.f32 %v748_v0, %v231_v41  ;;  %v342_v7 = vld [vmem:[%s758_s10 + $0x58] sm:$0xff]  ;;  %v343_v8 = vld [vmem:[%s758_s10 + $0x60] sm:$0xff] }
  0x20   : > { %430 = vst.msk [vmem:[%s808_s20 + $0x10] sm:$0xff] %vm427_vm0, %v397_v42  ;;  %v400_v53 = vmax.f32 %v368_v43, 0.0  ;;  %v370_v55 = vadd.f32 %v338_v40, %v306_v45  ;;  %431 = vst.msk [vmem:[%s808_s20 + $0x18] sm:$0xff] %vm427_vm0, %v398_v48  ;;  %v307_v59 = vadd.f32 %v765_v2, %v268_v50  ;;  %v271_v62 = vmul.f32 %v748_v0, %v232_v46  ;;  %v344_v14 = vld [vmem:[%s758_s10 + $0x68] sm:$0xff]  ;;  %v237_v19 = vld [vmem:[%s753_s7 + $0x80] sm:$0xff] }
  0x21   : > { %432 = vst.msk [vmem:[%s808_s20 + $0x20] sm:$0xff] %vm427_vm0, %v399_v49  ;;  %v308_v60 = vadd.f32 %v765_v2, %v269_v51  ;;  %v272_v63 = vmul.f32 %v748_v0, %v233_v47  ;;  %v401_v4 = vmax.f32 %v369_v54, 0.0  ;;  %v309_v6 = vadd.f32 %v765_v2, %v270_v58  ;;  %v238_v20 = vld [vmem:[%s753_s7 + $0x88] sm:$0xff]  ;;  %v345_v25 = vld [vmem:[%s758_s10 + $0x70] sm:$0xff]  ;;  %v346_v26 = vld [vmem:[%s758_s10 + $0x78] sm:$0xff] }
  0x22   : > { %433 = vst.msk [vmem:[%s808_s20 + $0x28] sm:$0xff] %vm427_vm0, %v400_v53  ;;  %v402_v5 = vmax.f32 %v370_v55, 0.0  ;;  %v273_v9 = vmul.f32 %v748_v0, %v234_v52  ;;  %v371_v10 = vadd.f32 %v339_v56, %v307_v59  ;;  %v310_v12 = vadd.f32 %v765_v2, %v271_v62  ;;  %v239_v27 = vld [vmem:[%s753_s7 + $0x90] sm:$0xff]  ;;  %v240_v32 = vld [vmem:[%s753_s7 + $0x98] sm:$0xff]  ;;  %v241_v33 = vld [vmem:[%s753_s7 + $0xa0] sm:$0xff] }
  0x23   : > { %v372_v11 = vadd.f32 %v340_v57, %v308_v60  ;;  %v311_v13 = vadd.f32 %v765_v2, %v272_v63  ;;  %434 = vst.msk [vmem:[%s808_s20 + $0x30] sm:$0xff] %vm427_vm0, %v401_v4  ;;  %v373_v15 = vadd.f32 %v341_v61, %v309_v6  ;;  %v274_v17 = vmul.f32 %v748_v0, %v235_v1  ;;  %v242_v38 = vld [vmem:[%s753_s7 + $0xa8] sm:$0xff]  ;;  %v347_v42 = vld [vmem:[%s758_s10 + $0x80] sm:$0xff]  ;;  %v349_v47 = vld [vmem:[%s758_s10 + $0x90] sm:$0xff] }
  0x24   : > { %435 = vst.msk [vmem:[%s808_s20 + $0x38] sm:$0xff] %vm427_vm0, %v402_v5  ;;  %v312_v16 = vadd.f32 %v765_v2, %v273_v9  ;;  %v275_v18 = vmul.f32 %v748_v0, %v236_v3  ;;  %v403_v21 = vmax.f32 %v371_v10, 0.0  ;;  %v374_v23 = vadd.f32 %v342_v7, %v310_v12  ;;  %v348_v43 = vld [vmem:[%s758_s10 + $0x88] sm:$0xff]  ;;  %v243_v50 = vld [vmem:[%s753_s7 + $0xb0] sm:$0xff]  ;;  %v244_v51 = vld [vmem:[%s753_s7 + $0xb8] sm:$0xff] }
  0x25   : > { %v404_v22 = vmax.f32 %v372_v11, 0.0  ;;  %v375_v24 = vadd.f32 %v343_v8, %v311_v13  ;;  %v405_v28 = vmax.f32 %v373_v15, 0.0  ;;  %v313_v30 = vadd.f32 %v765_v2, %v274_v17  ;;  %v350_v55 = vld [vmem:[%s758_s10 + $0x98] sm:$0xff]  ;;  %v351_v56 = vld [vmem:[%s758_s10 + $0xa0] sm:$0xff]  ;;  %v352_v62 = vld [vmem:[%s758_s10 + $0xa8] sm:$0xff] }
  0x26   : > { %v376_v29 = vadd.f32 %v344_v14, %v312_v16  ;;  %v314_v31 = vadd.f32 %v765_v2, %v275_v18  ;;  %436 = vst.msk [vmem:[%s808_s20 + $0x40] sm:$0xff] %vm427_vm0, %v403_v21  ;;  %v406_v34 = vmax.f32 %v374_v23, 0.0  ;;  %v276_v36 = vmul.f32 %v748_v0, %v237_v19  ;;  %v245_v5 = vld [vmem:[%s753_s7 + $0xc0] sm:$0xff]  ;;  %v246_v6 = vld [vmem:[%s753_s7 + $0xc8] sm:$0xff]  ;;  %v353_v11 = vld [vmem:[%s758_s10 + $0xb0] sm:$0xff] }
  0x27   : > { %437 = vst.msk [vmem:[%s808_s20 + $0x48] sm:$0xff] %vm427_vm0, %v404_v22  ;;  %v407_v35 = vmax.f32 %v375_v24, 0.0  ;;  %v277_v37 = vmul.f32 %v748_v0, %v238_v20  ;;  %438 = vst.msk [vmem:[%s808_s20 + $0x50] sm:$0xff] %vm427_vm0, %v405_v28  ;;  %v377_v40 = vadd.f32 %v345_v25, %v313_v30  ;;  %v278_v44 = vmul.f32 %v748_v0, %v239_v27  ;;  %v354_v12 = vld [vmem:[%s758_s10 + $0xb8] sm:$0xff]  ;;  %v247_v13 = vld [vmem:[%s753_s7 + $0xd0] sm:$0xff] }
  0x28   : > { %v408_v39 = vmax.f32 %v376_v29, 0.0  ;;  %v378_v41 = vadd.f32 %v346_v26, %v314_v31  ;;  %439 = vst.msk [vmem:[%s808_s20 + $0x58] sm:$0xff] %vm427_vm0, %v406_v34  ;;  %v315_v45 = vadd.f32 %v765_v2, %v276_v36  ;;  %v279_v48 = vmul.f32 %v748_v0, %v240_v32  ;;  %v248_v18 = vld [vmem:[%s753_s7 + $0xd8] sm:$0xff]  ;;  %v249_v19 = vld [vmem:[%s753_s7 + $0xe0] sm:$0xff]  ;;  %v250_v24 = vld [vmem:[%s753_s7 + $0xe8] sm:$0xff] }
  0x29   : > { %440 = vst.msk [vmem:[%s808_s20 + $0x60] sm:$0xff] %vm427_vm0, %v407_v35  ;;  %v316_v46 = vadd.f32 %v765_v2, %v277_v37  ;;  %v280_v49 = vmul.f32 %v748_v0, %v241_v33  ;;  %v409_v52 = vmax.f32 %v377_v40, 0.0  ;;  %v317_v54 = vadd.f32 %v765_v2, %v278_v44  ;;  %v355_v28 = vld [vmem:[%s758_s10 + $0xc0] sm:$0xff]  ;;  %v356_v29 = vld [vmem:[%s758_s10 + $0xc8] sm:$0xff]  ;;  %v357_v33 = vld [vmem:[%s758_s10 + $0xd0] sm:$0xff] }
  0x2a   : > { %441 = vst.msk [vmem:[%s808_s20 + $0x68] sm:$0xff] %vm427_vm0, %v408_v39  ;;  %v410_v53 = vmax.f32 %v378_v41, 0.0  ;;  %v281_v57 = vmul.f32 %v748_v0, %v242_v38  ;;  %v379_v58 = vadd.f32 %v347_v42, %v315_v45  ;;  %v318_v60 = vadd.f32 %v765_v2, %v279_v48  ;;  %v251_v36 = vld [vmem:[%s753_s7 + $0xf0] sm:$0xff]  ;;  %v252_v37 = vld [vmem:[%s753_s7 + $0xf8] sm:$0xff]  ;;  %v359_v42 = vld [vmem:[%s758_s10 + $0xe0] sm:$0xff]  ;;  %s612_s7 = scalar_lea.vmem %s611_s6, 8192 }
  0x2b   : > { %v380_v59 = vadd.f32 %v348_v43, %v316_v46  ;;  %v319_v61 = vadd.f32 %v765_v2, %v280_v49  ;;  %442 = vst.msk [vmem:[%s808_s20 + $0x70] sm:$0xff] %vm427_vm0, %v409_v52  ;;  %v381_v63 = vadd.f32 %v349_v47, %v317_v54  ;;  %v282_v3 = vmul.f32 %v748_v0, %v243_v50  ;;  %v358_v41 = vld [vmem:[%s758_s10 + $0xd8] sm:$0xff]  ;;  %v360_v48 = vld [vmem:[%s758_s10 + $0xe8] sm:$0xff]  ;;  %p614_p1 = scmp.lt.s32.totalorder %s612_s7, %s606_s30 }
  0x2c   : > { %443 = vst.msk [vmem:[%s808_s20 + $0x78] sm:$0xff] %vm427_vm0, %v410_v53  ;;  %v320_v1 = vadd.f32 %v765_v2, %v281_v57  ;;  %v283_v4 = vmul.f32 %v748_v0, %v244_v51  ;;  %v411_v7 = vmax.f32 %v379_v58, 0.0  ;;  %v382_v9 = vadd.f32 %v350_v55, %v318_v60  ;;  %v361_v57 = vld [vmem:[%s758_s10 + $0xf0] sm:$0xff]  ;;  %v362_v58 = vld [vmem:[%s758_s10 + $0xf8] sm:$0xff] }
  0x2d   : > { %v412_v8 = vmax.f32 %v380_v59, 0.0  ;;  %v383_v10 = vadd.f32 %v351_v56, %v319_v61  ;;  %v413_v14 = vmax.f32 %v381_v63, 0.0  ;;  %v321_v16 = vadd.f32 %v765_v2, %v282_v3  ;;  %p615_p2 = por %p614_p1, %p613_p0 }
  0x2e   : > { %v384_v15 = vadd.f32 %v352_v62, %v320_v1  ;;  %v322_v17 = vadd.f32 %v765_v2, %v283_v4  ;;  %444 = vst.msk [vmem:[%s808_s20 + $0x80] sm:$0xff] %vm427_vm0, %v411_v7  ;;  %v414_v20 = vmax.f32 %v382_v9, 0.0  ;;  %v284_v22 = vmul.f32 %v748_v0, %v245_v5 }
  0x2f   : > { %445 = vst.msk [vmem:[%s808_s20 + $0x88] sm:$0xff] %vm427_vm0, %v412_v8  ;;  %v415_v21 = vmax.f32 %v383_v10, 0.0  ;;  %v285_v23 = vmul.f32 %v748_v0, %v246_v6  ;;  %446 = vst.msk [vmem:[%s808_s20 + $0x90] sm:$0xff] %vm427_vm0, %v413_v14  ;;  %v385_v26 = vadd.f32 %v353_v11, %v321_v16  ;;  %v286_v30 = vmul.f32 %v748_v0, %v247_v13  ;;  %p616_p3 = pnand %p615_p2, %p609_p13 }
  0x30   : > { %v416_v25 = vmax.f32 %v384_v15, 0.0  ;;  %v386_v27 = vadd.f32 %v354_v12, %v322_v17  ;;  %447 = vst.msk [vmem:[%s808_s20 + $0x98] sm:$0xff] %vm427_vm0, %v414_v20  ;;  %v323_v31 = vadd.f32 %v765_v2, %v284_v22  ;;  %v287_v34 = vmul.f32 %v748_v0, %v248_v18 }
  0x31   : > { %448 = vst.msk [vmem:[%s808_s20 + $0xa0] sm:$0xff] %vm427_vm0, %v415_v21  ;;  %v324_v32 = vadd.f32 %v765_v2, %v285_v23  ;;  %v288_v35 = vmul.f32 %v748_v0, %v249_v19  ;;  %v417_v38 = vmax.f32 %v385_v26, 0.0  ;;  %v325_v40 = vadd.f32 %v765_v2, %v286_v30 }
  0x32   : > { %449 = vst.msk [vmem:[%s808_s20 + $0xa8] sm:$0xff] %vm427_vm0, %v416_v25  ;;  %v418_v39 = vmax.f32 %v386_v27, 0.0  ;;  %v289_v43 = vmul.f32 %v748_v0, %v250_v24  ;;  %v387_v44 = vadd.f32 %v355_v28, %v323_v31  ;;  %v326_v46 = vadd.f32 %v765_v2, %v287_v34 }
  0x33   : > { %v388_v45 = vadd.f32 %v356_v29, %v324_v32  ;;  %v327_v47 = vadd.f32 %v765_v2, %v288_v35  ;;  %450 = vst.msk [vmem:[%s808_s20 + $0xb0] sm:$0xff] %vm427_vm0, %v417_v38  ;;  %v389_v49 = vadd.f32 %v357_v33, %v325_v40  ;;  %v290_v51 = vmul.f32 %v748_v0, %v251_v36 }
  0x34   : > { %451 = vst.msk [vmem:[%s808_s20 + $0xb8] sm:$0xff] %vm427_vm0, %v418_v39  ;;  %v328_v50 = vadd.f32 %v765_v2, %v289_v43  ;;  %v291_v52 = vmul.f32 %v748_v0, %v252_v37  ;;  %v419_v53 = vmax.f32 %v387_v44, 0.0  ;;  %v390_v55 = vadd.f32 %v358_v41, %v326_v46 }
  0x35   : > { %v420_v54 = vmax.f32 %v388_v45, 0.0  ;;  %v391_v56 = vadd.f32 %v359_v42, %v327_v47  ;;  %v421_v59 = vmax.f32 %v389_v49, 0.0  ;;  %v329_v61 = vadd.f32 %v765_v2, %v290_v51 }
  0x36   : > { %v392_v60 = vadd.f32 %v360_v48, %v328_v50  ;;  %v330_v62 = vadd.f32 %v765_v2, %v291_v52  ;;  %452 = vst.msk [vmem:[%s808_s20 + $0xc0] sm:$0xff] %vm427_vm0, %v419_v53  ;;  %v422_v0 = vmax.f32 %v390_v55, 0.0 }
  0x37   : > { %453 = vst.msk [vmem:[%s808_s20 + $0xc8] sm:$0xff] %vm427_vm0, %v420_v54  ;;  %v423_v63 = vmax.f32 %v391_v56, 0.0  ;;  %454 = vst.msk [vmem:[%s808_s20 + $0xd0] sm:$0xff] %vm427_vm0, %v421_v59  ;;  %v393_v3 = vadd.f32 %v361_v57, %v329_v61 }
  0x38   : > { %v424_v1 = vmax.f32 %v392_v60, 0.0  ;;  %v394_v4 = vadd.f32 %v362_v58, %v330_v62  ;;  %455 = vst.msk [vmem:[%s808_s20 + $0xd8] sm:$0xff] %vm427_vm0, %v422_v0 }
  0x39   : > { %456 = vst.msk [vmem:[%s808_s20 + $0xe0] sm:$0xff] %vm427_vm0, %v423_v63  ;;  %v425_v2 = vmax.f32 %v393_v3, 0.0 }
  0x3a   : > { %457 = vst.msk [vmem:[%s808_s20 + $0xe8] sm:$0xff] %vm427_vm0, %v424_v1  ;;  %v426_v5 = vmax.f32 %v394_v4, 0.0 }
  0x3b   : > { %458 = vst.msk [vmem:[%s808_s20 + $0xf0] sm:$0xff] %vm427_vm0, %v425_v2 }
  0x3c   : > { %459 = vst.msk [vmem:[%s808_s20 + $0xf8] sm:$0xff] %vm427_vm0, %v426_v5 }
  0x3d   : > { %619 = shalt.err (!%p616_p3)
}
  0x3e   : > { %s620_s8 = scalar_lea.hbm %s964_s28, 4096  ;;  %s624_s11 = scalar_lea.hbm %s1020_s4, 8192 }
  0x3f   : > { %p621_p4 = scmp.ne.s32.totalorder %s964_s28, %s620_s8  ;;  %p625_p9 = scmp.lt.s32.totalorder %s964_s28, %s1020_s4 }
  0x40   : > { %p626_p10 = scmp.lt.s32.totalorder %s624_s11, %s620_s8 }
  0x41   : > { %p622_p7 = pnand %p621_p4, %p734_p5 }
  0x42   : > { %p627_p11 = por %p626_p10, %p625_p9 }
  0x43   : > { %p623_p8 = pneg %p622_p7 }
  0x45   : > { %p628_p12 = pnand %p627_p11, %p623_p8 }
  0x47   : > { %631 = shalt.err (!%p628_p12)
}
  0x48   : > { %s669_s14 = smov 128   ;;  %s670_s20 = smov 8  }
  0x49   : > { %565 = dma.vmem_to_hbm [thread:$0]  (%p734_p5), %s966_s23, 4096, %s964_s28, %s976_s29, %s669_s14, %s669_s14, %s670_s20  }
  0x4a PF: > { %p571_p13 = scmp.ge.s32.totalorder %s666_s18, 2  ;;  %s489_s22 = sand.u32 1, %s654_s15  }
  0x4b   : > { %s490_s19 = scalar_lea.sflag [#allocation3], %s489_s22 }
  0x4c   : > { %p568_p0 = pnand %p571_p13, %p738_p6 }
  0x4e   : > { %p569_p1 = pneg %p568_p0 }
  0x50   : > { %649 = dma.done.wait (%p569_p1), %s490_s19, 4096  }
  0x51   : > { %651 = vsyncadd (%p569_p1), %s490_s19, 4294963200  ;;  %p14_p2 = scmp.ge.s32.totalorder %s721_s21, 4   ;;  %s1023_s15 = smov %s658_s16 }
  0x52   : > { %s1024_s16 = smov %s662_s17  ;;  %s1025_s17 = smov %s732_s24 }
  0x53   : > { %s1026_s18 = smov %s721_s21  ;;  %16 = sbr.rel (!%p14_p2) target bundleno = 3 (0x3), region = 74 }
  0x58   :  { %495 = vsyncpa [#allocation3], 1 }
  0x59   :  { %497 = vsyncpa [#allocation3 + $0x1], 1 }

// kernel: bottleneck_forward.6
= control target key start
LH: loop header
LB: loop body
LE: loop exit
PB: predicated region body
PF: predicated region fallthrough
CT: control target
= control target key end

     0   :  { %s1224_s21 = smov 0   ;;  %s1567_s0 = inlined_call_operand.vmem [shape: bf16[512,16], index: 0, kind: input, shape index: {}]   ;;  %s1568_s1 = inlined_call_operand.vmem [shape: f32[1,16], index: 1, kind: input, shape index: {}]   ;;  %s1569_s2 = inlined_call_operand.vmem [shape: f32[1,16], index: 2, kind: input, shape index: {}]   ;;  %s1570_s3 = inlined_call_operand.vmem [shape: bf16[16,64], index: 3, kind: input, shape index: {}]   ;;  %s1571_s4 = inlined_call_operand.vmem [shape: f32[512,64], index: 4, kind: output, shape index: {0}]   ;;  %s1572_s5 = inlined_call_operand.vmem [shape: f32[2,8,64], index: 5, kind: output, shape index: {1}]   ;;  %s1573_s6 = inlined_call_operand.vmem [shape: f32[2,8,64], index: 6, kind: output, shape index: {2}]  }
   0x1 LB: > { %s1230_s22 = sadd.s32 4294967295, %s1187_s21   ;;  %p1012_p0 = scmp.ge.s32.totalorder %s1187_s21, 1  ;;  %s1187_s21 = sphi %s1224_s21, %s17_s21  }
   0x2   : > { %p218_p1 = scmp.lt.s32.totalorder %s1187_s21, 3 }
   0x4   : > { %p219_p2 = pnand %p1012_p0, %p218_p1 }
   0x5   : > { %s1013_s25 = sshll.u32 (!%p219_p2), %s1230_s22, 5  ;;  %p268_p4 = scmp.lt.s32.totalorder (!%p219_p2), %s1230_s22, 1 }
   0x6   : > { %222 = sbr.rel (%p219_p2) target bundleno = 303 (0x12f), region = 36  ;;  %p257_p3 = scmp.lt.s32.totalorder (!%p219_p2), %s1013_s25, 63 }
   0xb   : > { %v1180_v0 = vld [vmem:[%s1570_s3] sm:$0xff]   ;;  %s1575_s25 = smov (!%p257_p3, %s1013_s25), 63  ;;  %vm475_vm0 = vcmask 130048   ;;  %vm685_vm1 = vcmask 523264   ;;  %s1577_s22 = smov (!%p268_p4, %s1230_s22), 1 }
   0xc   : > { %1136 = vmatprep.subr.bf16.mxu0 %v1180_v0  ;;  %1170 = vmatprep.subr.bf16.mxu1 %v1180_v0  ;;  %s1014_s26 = sshll.u32 %s1575_s25, 2  ;;  %v1249_v1 = vld [vmem:[%s1568_s1] ss:$0 sm:$0xff]  ;;  %s1016_s10 = sshll.u32 %s1575_s25, 3 }
   0xd   : > { %1137 = vmatpush3.bf16.msra.mxu0 %v1180_v0  ;;  %1171 = vmatpush3.bf16.msra.mxu1 %v1180_v0  ;;  %s1244_s29 = scalar_lea.vmem %s1567_s0, %s1014_s26  ;;  %v1258_v10 = vld [vmem:[%s1569_s2] ss:$0 sm:$0xff]  ;;  %s1364_s13 = scalar_lea.vmem %s1571_s4, %s1016_s10 }
   0xe   : > { %v1041_v2 = vld [vmem:[%s1244_s29] sm:$0xff]   ;;  %v1104_v3 = vld [vmem:[%s1244_s29 + $0x8] sm:$0xff]   ;;  %v1105_v4 = vld [vmem:[%s1244_s29 + $0x10] sm:$0xff]   ;;  %s1017_s14 = sshll.u32 %s1577_s22, 3 }
   0xf   : > { %v1042_v5 = vunpack.c.l.bf16 %v1041_v2  ;;  %v1043_v6 = vunpack.c.h.bf16 %v1041_v2  ;;  %v1046_v7 = vunpack.c.l.bf16 %v1104_v3  ;;  %v1047_v8 = vunpack.c.h.bf16 %v1104_v3  ;;  %v1106_v9 = vld [vmem:[%s1244_s29 + $0x18] sm:$0xff]   ;;  %v1107_v31 = vld [vmem:[%s1244_s29 + $0x20] sm:$0xff]   ;;  %v1108_v36 = vld [vmem:[%s1244_s29 + $0x28] sm:$0xff]   ;;  %s271_s17 = scalar_lea.vmem %s1572_s5, %s1017_s14  ;;  %s275_s20 = scalar_lea.vmem %s1573_s6, %s1017_s14 }
  0x10   : > { %v1050_v11 = vunpack.c.l.bf16 %v1105_v4  ;;  %v1051_v12 = vunpack.c.h.bf16 %v1105_v4  ;;  %v1054_v13 = vunpack.c.l.bf16 %v1106_v9  ;;  %v1055_v14 = vunpack.c.h.bf16 %v1106_v9  ;;  %v1109_v41 = vld [vmem:[%s1244_s29 + $0x30] sm:$0xff]   ;;  %v1110_v46 = vld [vmem:[%s1244_s29 + $0x38] sm:$0xff]   ;;  %v1111_v4 = vld [vmem:[%s1244_s29 + $0x40] sm:$0xff]  }
  0x11   : > { %v348_v15 = vmul.f32 %v1042_v5, %v1249_v1  ;;  %v349_v16 = vmul.f32 %v1043_v6, %v1249_v1  ;;  %v350_v17 = vmul.f32 %v1046_v7, %v1249_v1  ;;  %v351_v18 = vmul.f32 %v1047_v8, %v1249_v1 }
  0x12   : > { %v352_v19 = vmul.f32 %v1050_v11, %v1249_v1  ;;  %v353_v20 = vmul.f32 %v1051_v12, %v1249_v1  ;;  %v354_v21 = vmul.f32 %v1054_v13, %v1249_v1  ;;  %v355_v22 = vmul.f32 %v1055_v14, %v1249_v1  ;;  %v1112_v14 = vld [vmem:[%s1244_s29 + $0x48] sm:$0xff]  }
  0x13   : > { %v387_v23 = vadd.f32 %v1258_v10, %v348_v15  ;;  %v388_v24 = vadd.f32 %v1258_v10, %v349_v16  ;;  %v389_v25 = vadd.f32 %v1258_v10, %v350_v17  ;;  %v390_v26 = vadd.f32 %v1258_v10, %v351_v18 }
  0x14   : > { %v391_v27 = vadd.f32 %v1258_v10, %v352_v19  ;;  %v392_v28 = vadd.f32 %v1258_v10, %v353_v20  ;;  %v393_v29 = vadd.f32 %v1258_v10, %v354_v21  ;;  %v394_v30 = vadd.f32 %v1258_v10, %v355_v22  ;;  %v1113_v19 = vld [vmem:[%s1244_s29 + $0x50] sm:$0xff]  }
  0x15   : > { %v419_v32 = vmax.f32 %v387_v23, 0.0  ;;  %v420_v33 = vmax.f32 %v388_v24, 0.0  ;;  %v421_v34 = vmax.f32 %v389_v25, 0.0  ;;  %v422_v35 = vmax.f32 %v390_v26, 0.0  ;;  %v1114_v23 = vld [vmem:[%s1244_s29 + $0x58] sm:$0xff]  }
  0x16   : > { %v423_v37 = vmax.f32 %v391_v27, 0.0  ;;  %v424_v38 = vmax.f32 %v392_v28, 0.0  ;;  %v425_v39 = vmax.f32 %v393_v29, 0.0  ;;  %v426_v40 = vmax.f32 %v394_v30, 0.0 }
  0x17   : > { %v451_v42 = vpack.c.bf16 %v420_v33, %v419_v32  ;;  %v452_v43 = vpack.c.bf16 %v422_v35, %v421_v34  ;;  %v1058_v44 = vunpack.c.l.bf16 %v1107_v31  ;;  %v1059_v45 = vunpack.c.h.bf16 %v1107_v31 }
  0x18   : > { %v453_v47 = vpack.c.bf16 %v424_v38, %v423_v37  ;;  %v454_v48 = vpack.c.bf16 %v426_v40, %v425_v39  ;;  %v1062_v49 = vunpack.c.l.bf16 %v1108_v36  ;;  %v1063_v50 = vunpack.c.h.bf16 %v1108_v36  ;;  %v1115_v40 = vld [vmem:[%s1244_s29 + $0x60] sm:$0xff]  }
  0x19   : > { %1138 = vmatprep.mubr.msk.bf16.mxu0 %vm475_vm0, %v451_v42  ;;  %v356_v51 = vmul.f32 %v1058_v44, %v1249_v1  ;;  %v357_v52 = vmul.f32 %v1059_v45, %v1249_v1  ;;  %v1066_v53 = vunpack.c.l.bf16 %v1109_v41  ;;  %v1067_v54 = vunpack.c.h.bf16 %v1109_v41 }
  0x1a   : > { %1139 = vmatmul.mubr.msk.bf16.vlgmr.msra.gmra.mxu0 %vm475_vm0, %v452_v43  ;;  %v358_v55 = vmul.f32 %v1062_v49, %v1249_v1  ;;  %v359_v56 = vmul.f32 %v1063_v50, %v1249_v1  ;;  %v1070_v57 = vunpack.c.l.bf16 %v1110_v46  ;;  %v1071_v58 = vunpack.c.h.bf16 %v1110_v46 }
  0x1b   : > { %1142 = vmatprep.mubr.msk.bf16.mxu0 %vm475_vm0, %v453_v47  ;;  %v395_v59 = vadd.f32 %v1258_v10, %v356_v51  ;;  %v396_v60 = vadd.f32 %v1258_v10, %v357_v52  ;;  %v360_v61 = vmul.f32 %v1066_v53, %v1249_v1  ;;  %v361_v62 = vmul.f32 %v1067_v54, %v1249_v1  ;;  %v1116_v53 = vld [vmem:[%s1244_s29 + $0x68] sm:$0xff]  }
  0x1c   : > { %v397_v63 = vadd.f32 %v1258_v10, %v358_v55  ;;  %v398_v0 = vadd.f32 %v1258_v10, %v359_v56  ;;  %v362_v2 = vmul.f32 %v1070_v57, %v1249_v1  ;;  %v363_v3 = vmul.f32 %v1071_v58, %v1249_v1  ;;  %v1117_v58 = vld [vmem:[%s1244_s29 + $0x70] sm:$0xff]  }
  0x1d   : > { %v427_v5 = vmax.f32 %v395_v59, 0.0  ;;  %v428_v6 = vmax.f32 %v396_v60, 0.0  ;;  %v399_v7 = vadd.f32 %v1258_v10, %v360_v61  ;;  %v400_v8 = vadd.f32 %v1258_v10, %v361_v62 }
  0x1e   : > { %v429_v9 = vmax.f32 %v397_v63, 0.0  ;;  %v430_v11 = vmax.f32 %v398_v0, 0.0  ;;  %v1299_v12 = vadd.f32 %v1258_v10, %v362_v2  ;;  %v1302_v13 = vadd.f32 %v1258_v10, %v363_v3 }
  0x1f   : > { %v455_v15 = vpack.c.bf16 %v428_v6, %v427_v5  ;;  %v431_v16 = vmax.f32 %v399_v7, 0.0  ;;  %v432_v17 = vmax.f32 %v400_v8, 0.0  ;;  %v1074_v18 = vunpack.c.l.bf16 %v1111_v4  ;;  %v1118_v8 = vld [vmem:[%s1244_s29 + $0x78] sm:$0xff]  }
  0x20   : > { %v456_v20 = vpack.c.bf16 %v430_v11, %v429_v9  ;;  %v433_v21 = vmax.f32 %v1299_v12, 0.0  ;;  %v1075_v22 = vunpack.c.h.bf16 %v1111_v4  ;;  %v434_v24 = vmax.f32 %v1302_v13, 0.0 }
  0x21   : > { %v364_v25 = vmul.f32 %v1074_v18, %v1249_v1  ;;  %v1078_v26 = vunpack.c.l.bf16 %v1112_v14  ;;  %v1079_v27 = vunpack.c.h.bf16 %v1112_v14  ;;  %v457_v28 = vpack.c.bf16 %v432_v17, %v431_v16 }
  0x22   : > { %1143 = vmatmul.mubr.msk.bf16.gmra.mxu0 %vm475_vm0, %v454_v48  ;;  %v365_v29 = vmul.f32 %v1075_v22, %v1249_v1  ;;  %v1082_v30 = vunpack.c.l.bf16 %v1113_v19  ;;  %v1083_v31 = vunpack.c.h.bf16 %v1113_v19  ;;  %v1086_v35 = vunpack.c.l.bf16 %v1114_v23 }
  0x23   : > { %1146 = vmatprep.mubr.msk.bf16.mxu0 %vm475_vm0, %v455_v15  ;;  %v403_v32 = vadd.f32 %v1258_v10, %v364_v25  ;;  %v366_v33 = vmul.f32 %v1078_v26, %v1249_v1  ;;  %v367_v34 = vmul.f32 %v1079_v27, %v1249_v1  ;;  %v1087_v39 = vunpack.c.h.bf16 %v1114_v23 }
  0x24   : > { %v404_v36 = vadd.f32 %v1258_v10, %v365_v29  ;;  %v368_v37 = vmul.f32 %v1082_v30, %v1249_v1  ;;  %v369_v38 = vmul.f32 %v1083_v31, %v1249_v1  ;;  %v370_v44 = vmul.f32 %v1086_v35, %v1249_v1 }
  0x25   : > { %v435_v41 = vmax.f32 %v403_v32, 0.0  ;;  %v405_v42 = vadd.f32 %v1258_v10, %v366_v33  ;;  %v406_v43 = vadd.f32 %v1258_v10, %v367_v34  ;;  %v371_v48 = vmul.f32 %v1087_v39, %v1249_v1 }
  0x26   : > { %v436_v45 = vmax.f32 %v404_v36, 0.0  ;;  %v407_v46 = vadd.f32 %v1258_v10, %v368_v37  ;;  %v408_v47 = vadd.f32 %v1258_v10, %v369_v38  ;;  %v409_v51 = vadd.f32 %v1258_v10, %v370_v44 }
  0x27   : > { %v437_v49 = vmax.f32 %v405_v42, 0.0  ;;  %v438_v50 = vmax.f32 %v406_v43, 0.0  ;;  %v1090_v52 = vunpack.c.l.bf16 %v1115_v40  ;;  %v410_v57 = vadd.f32 %v1258_v10, %v371_v48 }
  0x28   : > { %v459_v54 = vpack.c.bf16 %v436_v45, %v435_v41  ;;  %v439_v55 = vmax.f32 %v407_v46, 0.0  ;;  %v440_v56 = vmax.f32 %v408_v47, 0.0  ;;  %v441_v60 = vmax.f32 %v409_v51, 0.0 }
  0x29   : > { %v460_v59 = vpack.c.bf16 %v438_v50, %v437_v49  ;;  %v1091_v61 = vunpack.c.h.bf16 %v1115_v40  ;;  %v372_v62 = vmul.f32 %v1090_v52, %v1249_v1  ;;  %v442_v0 = vmax.f32 %v410_v57, 0.0 }
  0x2a   : > { %1147 = vmatmul.mubr.msk.bf16.gmra.mxu0 %vm475_vm0, %v456_v20  ;;  %1154 = vmatprep.mubr.msk.bf16.mxu1 %vm475_vm0, %v459_v54  ;;  %v461_v63 = vpack.c.bf16 %v440_v56, %v439_v55  ;;  %v1094_v2 = vunpack.c.l.bf16 %v1116_v53  ;;  %v1095_v3 = vunpack.c.h.bf16 %v1116_v53  ;;  %v1098_v6 = vunpack.c.l.bf16 %v1117_v58 }
  0x2b   : > { %1150 = vmatprep.mubr.msk.bf16.mxu0 %vm475_vm0, %v457_v28  ;;  %1155 = vmatmul.mubr.msk.bf16.vlgmr.msra.gmra.mxu1 %vm475_vm0, %v460_v59  ;;  %v373_v4 = vmul.f32 %v1091_v61, %v1249_v1  ;;  %v411_v5 = vadd.f32 %v1258_v10, %v372_v62  ;;  %v1099_v7 = vunpack.c.h.bf16 %v1117_v58  ;;  %v458_v17 = vpack.c.bf16 %v434_v24, %v433_v21 }
  0x2c   : > { %1158 = vmatprep.mubr.msk.bf16.mxu1 %vm475_vm0, %v461_v63  ;;  %v374_v9 = vmul.f32 %v1094_v2, %v1249_v1  ;;  %v375_v11 = vmul.f32 %v1095_v3, %v1249_v1  ;;  %v376_v15 = vmul.f32 %v1098_v6, %v1249_v1  ;;  %v462_v18 = vpack.c.bf16 %v442_v0, %v441_v60 }
  0x2d   : > { %v412_v13 = vadd.f32 %v1258_v10, %v373_v4  ;;  %v443_v14 = vmax.f32 %v411_v5, 0.0  ;;  %v377_v16 = vmul.f32 %v1099_v7, %v1249_v1  ;;  %v1102_v19 = vunpack.c.l.bf16 %v1118_v8 }
  0x2e   : > { %v413_v22 = vadd.f32 %v1258_v10, %v374_v9  ;;  %v414_v23 = vadd.f32 %v1258_v10, %v375_v11  ;;  %v1103_v25 = vunpack.c.h.bf16 %v1118_v8  ;;  %v415_v26 = vadd.f32 %v1258_v10, %v376_v15 }
  0x2f   : > { %v444_v20 = vmax.f32 %v412_v13, 0.0  ;;  %v416_v27 = vadd.f32 %v1258_v10, %v377_v16  ;;  %v378_v21 = vmul.f32 %v1102_v19, %v1249_v1 }
  0x30   : > { %v445_v29 = vmax.f32 %v413_v22, 0.0  ;;  %v446_v12 = vmax.f32 %v414_v23, 0.0  ;;  %v379_v24 = vmul.f32 %v1103_v25, %v1249_v1  ;;  %v447_v30 = vmax.f32 %v415_v26, 0.0 }
  0x31   : > { %v463_v28 = vpack.c.bf16 %v444_v20, %v443_v14  ;;  %v448_v31 = vmax.f32 %v416_v27, 0.0  ;;  %v417_v33 = vadd.f32 %v1258_v10, %v378_v21 }
  0x32   : > { %1151 = vmatmul.mubr.msk.bf16.gmra.mxu0 %vm475_vm0, %v458_v17  ;;  %v464_v32 = vpack.c.bf16 %v446_v12, %v445_v29  ;;  %v418_v34 = vadd.f32 %v1258_v10, %v379_v24 }
  0x33   : > { %1159 = vmatmul.mubr.msk.bf16.gmra.mxu1 %vm475_vm0, %v462_v18  ;;  %v465_v35 = vpack.c.bf16 %v448_v31, %v447_v30  ;;  %v449_v36 = vmax.f32 %v417_v33, 0.0 }
  0x34   : > { %1162 = vmatprep.mubr.msk.bf16.mxu1 %vm475_vm0, %v463_v28  ;;  %v450_v37 = vmax.f32 %v418_v34, 0.0 }
  0x36   : > { %v466_v38 = vpack.c.bf16 %v450_v37, %v449_v36 }
  0x3b   : > { %1163 = vmatmul.mubr.msk.bf16.gmra.mxu1 %vm475_vm0, %v464_v32 }
  0x3c   : > { %1166 = vmatprep.mubr.msk.bf16.mxu1 %vm475_vm0, %v465_v35 }
  0x43   : > { %1167 = vmatmul.mubr.msk.bf16.gmra.mxu1 %vm475_vm0, %v466_v38 }
  0xda   : > { %v1140_v1 = vpop.f32.mrf.mxu0 }
  0xdb   : > { %688 = vst.msk [vmem:[%s1364_s13 + $0x10] sm:$0xff] %vm685_vm1, %v1140_v1  ;;  %v789_v42 = vmul.f32 %v1140_v1, %v1140_v1  ;;  %v721_v48 = vsel %vm685_vm1, %v1140_v1, 0.0 }
  0xdc   : > { %v558_v10 = vpop.f32.mrf.mxu0 }
  0xdd   : > { %686 = vst.msk [vmem:[%s1364_s13] sm:$0xff] %vm685_vm1, %v558_v10  ;;  %v787_v40 = vmul.f32 %v558_v10, %v558_v10  ;;  %v718_v43 = vsel %vm685_vm1, %v558_v10, 0.0  ;;  %v822_v55 = vsel %vm685_vm1, %v789_v42, 0.0 }
  0xde   : > { %v1141_v39 = vpop.f32.mrf.mxu0 }
  0xdf   : > { %689 = vst.msk [vmem:[%s1364_s13 + $0x18] sm:$0xff] %vm685_vm1, %v1141_v39  ;;  %v819_v49 = vsel %vm685_vm1, %v787_v40, 0.0  ;;  %v790_v50 = vmul.f32 %v1141_v39, %v1141_v39  ;;  %v723_v56 = vsel %vm685_vm1, %v1141_v39, 0.0 }
  0xe0   : > { %v561_v41 = vpop.f32.mrf.mxu0 }
  0xe1   : > { %687 = vst.msk [vmem:[%s1364_s13 + $0x8] sm:$0xff] %vm685_vm1, %v561_v41  ;;  %v719_v44 = vsel %vm685_vm1, %v561_v41, 0.0  ;;  %v788_v45 = vmul.f32 %v561_v41, %v561_v41  ;;  %v824_v61 = vsel %vm685_vm1, %v790_v50, 0.0 }
  0xe2   : > { %v720_v46 = vadd.f32 %v719_v44, %v718_v43  ;;  %v1144_v47 = vpop.f32.mrf.mxu0 }
  0xe3   : > { %v820_v51 = vsel %vm685_vm1, %v788_v45, 0.0  ;;  %692 = vst.msk [vmem:[%s1364_s13 + $0x30] sm:$0xff] %vm685_vm1, %v1144_v47  ;;  %v793_v3 = vmul.f32 %v1144_v47, %v1144_v47  ;;  %v729_v11 = vsel %vm685_vm1, %v1144_v47, 0.0 }
  0xe4   : > { %v722_v52 = vadd.f32 %v721_v48, %v720_v46  ;;  %v821_v53 = vadd.f32 %v820_v51, %v819_v49  ;;  %v574_v54 = vpop.f32.mrf.mxu0 }
  0xe5   : > { %690 = vst.msk [vmem:[%s1364_s13 + $0x20] sm:$0xff] %vm685_vm1, %v574_v54  ;;  %v791_v57 = vmul.f32 %v574_v54, %v574_v54  ;;  %v725_v62 = vsel %vm685_vm1, %v574_v54, 0.0  ;;  %v830_v19 = vsel %vm685_vm1, %v793_v3, 0.0 }
  0xe6   : > { %v823_v58 = vadd.f32 %v822_v55, %v821_v53  ;;  %v724_v59 = vadd.f32 %v723_v56, %v722_v52  ;;  %v1145_v60 = vpop.f32.mrf.mxu0 }
  0xe7   : > { %693 = vst.msk [vmem:[%s1364_s13 + $0x38] sm:$0xff] %vm685_vm1, %v1145_v60  ;;  %v826_v4 = vsel %vm685_vm1, %v791_v57, 0.0  ;;  %v794_v13 = vmul.f32 %v1145_v60, %v1145_v60  ;;  %v731_v20 = vsel %vm685_vm1, %v1145_v60, 0.0 }
  0xe8   : > { %v726_v63 = vadd.f32 %v725_v62, %v724_v59  ;;  %v825_v0 = vadd.f32 %v824_v61, %v823_v58  ;;  %v577_v2 = vpop.f32.mrf.mxu0 }
  0xe9   : > { %691 = vst.msk [vmem:[%s1364_s13 + $0x28] sm:$0xff] %vm685_vm1, %v577_v2  ;;  %v727_v5 = vsel %vm685_vm1, %v577_v2, 0.0  ;;  %v792_v6 = vmul.f32 %v577_v2, %v577_v2  ;;  %v832_v28 = vsel %vm685_vm1, %v794_v13, 0.0 }
  0xea   : > { %v827_v7 = vadd.f32 %v826_v4, %v825_v0  ;;  %v728_v8 = vadd.f32 %v727_v5, %v726_v63  ;;  %v1148_v9 = vpop.f32.mrf.mxu0 }
  0xeb   : > { %v828_v14 = vsel %vm685_vm1, %v792_v6, 0.0  ;;  %696 = vst.msk [vmem:[%s1364_s13 + $0x50] sm:$0xff] %vm685_vm1, %v1148_v9  ;;  %v1397_v15 = vpop.f32.mrf.mxu1  ;;  %v797_v31 = vmul.f32 %v1148_v9, %v1148_v9  ;;  %v737_v1 = vsel %vm685_vm1, %v1148_v9, 0.0 }
  0xec   : > { %v730_v16 = vadd.f32 %v729_v11, %v728_v8  ;;  %v829_v17 = vadd.f32 %v828_v14, %v827_v7  ;;  %v590_v18 = vpop.f32.mrf.mxu0  ;;  %704 = vst.msk [vmem:[%s1364_s13 + $0x90] sm:$0xff] %vm685_vm1, %v1397_v15 }
  0xed   : > { %694 = vst.msk [vmem:[%s1364_s13 + $0x40] sm:$0xff] %vm685_vm1, %v590_v18  ;;  %v795_v22 = vmul.f32 %v590_v18, %v590_v18  ;;  %v1406_v23 = vpop.f32.mrf.mxu1  ;;  %v733_v29 = vsel %vm685_vm1, %v590_v18, 0.0  ;;  %v838_v44 = vsel %vm685_vm1, %v797_v31, 0.0 }
  0xee   : > { %v831_v25 = vadd.f32 %v830_v19, %v829_v17  ;;  %v732_v26 = vadd.f32 %v731_v20, %v730_v16  ;;  %v1149_v27 = vpop.f32.mrf.mxu0  ;;  %702 = vst.msk [vmem:[%s1364_s13 + $0x80] sm:$0xff] %vm685_vm1, %v1406_v23  ;;  %v803_v9 = vmul.f32 %v1406_v23, %v1406_v23  ;;  %v749_v17 = vsel %vm685_vm1, %v1406_v23, 0.0 }
  0xef   : > { %697 = vst.msk [vmem:[%s1364_s13 + $0x58] sm:$0xff] %vm685_vm1, %v1149_v27  ;;  %v1415_v12 = vpop.f32.mrf.mxu1  ;;  %v834_v32 = vsel %vm685_vm1, %v795_v22, 0.0  ;;  %v798_v10 = vmul.f32 %v1149_v27, %v1149_v27  ;;  %v739_v45 = vsel %vm685_vm1, %v1149_v27, 0.0 }
  0xf0   : > { %v734_v21 = vadd.f32 %v733_v29, %v732_v26  ;;  %v833_v24 = vadd.f32 %v832_v28, %v831_v25  ;;  %v593_v30 = vpop.f32.mrf.mxu0  ;;  %705 = vst.msk [vmem:[%s1364_s13 + $0x98] sm:$0xff] %vm685_vm1, %v1415_v12  ;;  %v805_v25 = vmul.f32 %v1397_v15, %v1397_v15  ;;  %v850_v26 = vsel %vm685_vm1, %v803_v9, 0.0 }
  0xf1   : > { %695 = vst.msk [vmem:[%s1364_s13 + $0x48] sm:$0xff] %vm685_vm1, %v593_v30  ;;  %v735_v33 = vsel %vm685_vm1, %v593_v30, 0.0  ;;  %v796_v34 = vmul.f32 %v593_v30, %v593_v30  ;;  %v1424_v35 = vpop.f32.mrf.mxu1  ;;  %v840_v51 = vsel %vm685_vm1, %v798_v10, 0.0 }
  0xf2   : > { %v835_v36 = vadd.f32 %v834_v32, %v833_v24  ;;  %v736_v37 = vadd.f32 %v735_v33, %v734_v21  ;;  %v1152_v38 = vpop.f32.mrf.mxu0  ;;  %703 = vst.msk [vmem:[%s1364_s13 + $0x88] sm:$0xff] %vm685_vm1, %v1424_v35  ;;  %v804_v18 = vmul.f32 %v1424_v35, %v1424_v35  ;;  %v751_v27 = vsel %vm685_vm1, %v1424_v35, 0.0 }
  0xf3   : > { %v836_v39 = vsel %vm685_vm1, %v796_v34, 0.0  ;;  %700 = vst.msk [vmem:[%s1364_s13 + $0x70] sm:$0xff] %vm685_vm1, %v1152_v38  ;;  %v1433_v40 = vpop.f32.mrf.mxu1  ;;  %v801_v57 = vmul.f32 %v1152_v38, %v1152_v38  ;;  %v745_v0 = vsel %vm685_vm1, %v1152_v38, 0.0  ;;  %v753_v21 = vsel %vm685_vm1, %v1397_v15, 0.0 }
  0xf4   : > { %v738_v41 = vadd.f32 %v737_v1, %v736_v37  ;;  %v837_v42 = vadd.f32 %v836_v39, %v835_v36  ;;  %v606_v43 = vpop.f32.mrf.mxu0  ;;  %708 = vst.msk [vmem:[%s1364_s13 + $0xb0] sm:$0xff] %vm685_vm1, %v1433_v40  ;;  %v806_v24 = vmul.f32 %v1415_v12, %v1415_v12  ;;  %v852_v30 = vsel %vm685_vm1, %v804_v18, 0.0 }
  0xf5   : > { %698 = vst.msk [vmem:[%s1364_s13 + $0x60] sm:$0xff] %vm685_vm1, %v606_v43  ;;  %v799_v46 = vmul.f32 %v606_v43, %v606_v43  ;;  %v1442_v47 = vpop.f32.mrf.mxu1  ;;  %v741_v52 = vsel %vm685_vm1, %v606_v43, 0.0  ;;  %v846_v7 = vsel %vm685_vm1, %v801_v57, 0.0  ;;  %v854_v34 = vsel %vm685_vm1, %v805_v25, 0.0 }
  0xf6   : > { %v839_v48 = vadd.f32 %v838_v44, %v837_v42  ;;  %v740_v49 = vadd.f32 %v739_v45, %v738_v41  ;;  %v1153_v50 = vpop.f32.mrf.mxu0  ;;  %706 = vst.msk [vmem:[%s1364_s13 + $0xa0] sm:$0xff] %vm685_vm1, %v1442_v47  ;;  %v755_v35 = vsel %vm685_vm1, %v1415_v12, 0.0  ;;  %v807_v15 = vmul.f32 %v1442_v47, %v1442_v47 }
  0xf7   : > { %701 = vst.msk [vmem:[%s1364_s13 + $0x78] sm:$0xff] %vm685_vm1, %v1153_v50  ;;  %v1451_v53 = vpop.f32.mrf.mxu1  ;;  %v842_v58 = vsel %vm685_vm1, %v799_v46, 0.0  ;;  %v802_v2 = vmul.f32 %v1153_v50, %v1153_v50  ;;  %v747_v8 = vsel %vm685_vm1, %v1153_v50, 0.0  ;;  %v856_v1 = vsel %vm685_vm1, %v806_v24, 0.0 }
  0xf8   : > { %v742_v54 = vadd.f32 %v741_v52, %v740_v49  ;;  %v841_v55 = vadd.f32 %v840_v51, %v839_v48  ;;  %v609_v56 = vpop.f32.mrf.mxu0  ;;  %709 = vst.msk [vmem:[%s1364_s13 + $0xb8] sm:$0xff] %vm685_vm1, %v1451_v53  ;;  %v757_v10 = vsel %vm685_vm1, %v1442_v47, 0.0  ;;  %v809_v12 = vmul.f32 %v1433_v40, %v1433_v40 }
  0xf9   : > { %699 = vst.msk [vmem:[%s1364_s13 + $0x68] sm:$0xff] %vm685_vm1, %v609_v56  ;;  %v743_v59 = vsel %vm685_vm1, %v609_v56, 0.0  ;;  %v800_v60 = vmul.f32 %v609_v56, %v609_v56  ;;  %v641_v61 = vpop.f32.mrf.mxu1  ;;  %v848_v16 = vsel %vm685_vm1, %v802_v2, 0.0  ;;  %v858_v44 = vsel %vm685_vm1, %v807_v15, 0.0 }
  0xfa   : > { %v843_v62 = vadd.f32 %v842_v58, %v841_v55  ;;  %v744_v63 = vadd.f32 %v743_v59, %v742_v54  ;;  %707 = vst.msk [vmem:[%s1364_s13 + $0xa8] sm:$0xff] %vm685_vm1, %v641_v61  ;;  %v808_v39 = vmul.f32 %v641_v61, %v641_v61  ;;  %v759_v45 = vsel %vm685_vm1, %v641_v61, 0.0 }
  0xfb   : > { %v844_v3 = vsel %vm685_vm1, %v800_v60, 0.0  ;;  %v1464_v4 = vpop.f32.mrf.mxu1  ;;  %v761_v47 = vsel %vm685_vm1, %v1433_v40, 0.0  ;;  %v810_v50 = vmul.f32 %v1451_v53, %v1451_v53  ;;  %v862_v55 = vsel %vm685_vm1, %v809_v12, 0.0 }
  0xfc   : > { %v746_v5 = vadd.f32 %v745_v0, %v744_v63  ;;  %v845_v6 = vadd.f32 %v844_v3, %v843_v62  ;;  %712 = vst.msk [vmem:[%s1364_s13 + $0xd0] sm:$0xff] %vm685_vm1, %v1464_v4  ;;  %v860_v51 = vsel %vm685_vm1, %v808_v39, 0.0  ;;  %v763_v56 = vsel %vm685_vm1, %v1451_v53, 0.0 }
  0xfd   : > { %v654_v11 = vpop.f32.mrf.mxu1  ;;  %v864_v60 = vsel %vm685_vm1, %v810_v50, 0.0  ;;  %v813_v0 = vmul.f32 %v1464_v4, %v1464_v4  ;;  %v769_v53 = vsel %vm685_vm1, %v1464_v4, 0.0 }
  0xfe   : > { %v748_v13 = vadd.f32 %v747_v8, %v746_v5  ;;  %v847_v14 = vadd.f32 %v846_v7, %v845_v6  ;;  %710 = vst.msk [vmem:[%s1364_s13 + $0xc0] sm:$0xff] %vm685_vm1, %v654_v11  ;;  %v811_v57 = vmul.f32 %v654_v11, %v654_v11  ;;  %v765_v61 = vsel %vm685_vm1, %v654_v11, 0.0 }
  0xff   : > { %v1480_v19 = vpop.f32.mrf.mxu1 }
 0x100   : > { %v849_v20 = vadd.f32 %v848_v16, %v847_v14  ;;  %v750_v22 = vadd.f32 %v749_v17, %v748_v13  ;;  %713 = vst.msk [vmem:[%s1364_s13 + $0xd8] sm:$0xff] %vm685_vm1, %v1480_v19  ;;  %v866_v2 = vsel %vm685_vm1, %v811_v57, 0.0  ;;  %v814_v7 = vmul.f32 %v1480_v19, %v1480_v19 }
 0x101   : > { %v657_v23 = vpop.f32.mrf.mxu1  ;;  %v870_v13 = vsel %vm685_vm1, %v813_v0, 0.0  ;;  %v771_v14 = vsel %vm685_vm1, %v1480_v19, 0.0 }
 0x102   : > { %v752_v28 = vadd.f32 %v751_v27, %v750_v22  ;;  %v851_v29 = vadd.f32 %v850_v26, %v849_v20  ;;  %711 = vst.msk [vmem:[%s1364_s13 + $0xc8] sm:$0xff] %vm685_vm1, %v657_v23  ;;  %v812_v40 = vmul.f32 %v657_v23, %v657_v23  ;;  %v767_v3 = vsel %vm685_vm1, %v657_v23, 0.0 }
 0x103   : > { %v1497_v31 = vpop.f32.mrf.mxu1  ;;  %v872_v20 = vsel %vm685_vm1, %v814_v7, 0.0 }
 0x104   : > { %v754_v32 = vadd.f32 %v753_v21, %v752_v28  ;;  %v853_v33 = vadd.f32 %v852_v30, %v851_v29  ;;  %716 = vst.msk [vmem:[%s1364_s13 + $0xf0] sm:$0xff] %vm685_vm1, %v1497_v31  ;;  %v868_v8 = vsel %vm685_vm1, %v812_v40, 0.0  ;;  %v817_v27 = vmul.f32 %v1497_v31, %v1497_v31 }
 0x105   : > { %v670_v36 = vpop.f32.mrf.mxu1  ;;  %v777_v21 = vsel %vm685_vm1, %v1497_v31, 0.0 }
 0x106   : > { %v855_v37 = vadd.f32 %v854_v34, %v853_v33  ;;  %v756_v38 = vadd.f32 %v755_v35, %v754_v32  ;;  %714 = vst.msk [vmem:[%s1364_s13 + $0xe0] sm:$0xff] %vm685_vm1, %v670_v36  ;;  %v815_v16 = vmul.f32 %v670_v36, %v670_v36  ;;  %v773_v22 = vsel %vm685_vm1, %v670_v36, 0.0 }
 0x107   : > { %v1169_v41 = vpop.f32.mrf.mxu1  ;;  %v878_v34 = vsel %vm685_vm1, %v817_v27, 0.0 }
 0x108   : > { %v758_v42 = vadd.f32 %v757_v10, %v756_v38  ;;  %v857_v43 = vadd.f32 %v856_v1, %v855_v37  ;;  %717 = vst.msk [vmem:[%s1364_s13 + $0xf8] sm:$0xff] %vm685_vm1, %v1169_v41  ;;  %v874_v23 = vsel %vm685_vm1, %v815_v16, 0.0  ;;  %v818_v24 = vmul.f32 %v1169_v41, %v1169_v41 }
 0x109   : > { %v673_v46 = vpop.f32.mrf.mxu1  ;;  %v779_v35 = vsel %vm685_vm1, %v1169_v41, 0.0 }
 0x10a   : > { %v859_v48 = vadd.f32 %v858_v44, %v857_v43  ;;  %v760_v49 = vadd.f32 %v759_v45, %v758_v42  ;;  %715 = vst.msk [vmem:[%s1364_s13 + $0xe8] sm:$0xff] %vm685_vm1, %v673_v46  ;;  %v816_v4 = vmul.f32 %v673_v46, %v673_v46  ;;  %v775_v28 = vsel %vm685_vm1, %v673_v46, 0.0 }
 0x10b   : > { %v880_v37 = vsel %vm685_vm1, %v818_v24, 0.0 }
 0x10c   : > { %v762_v52 = vadd.f32 %v761_v47, %v760_v49  ;;  %v861_v54 = vadd.f32 %v860_v51, %v859_v48  ;;  %v876_v30 = vsel %vm685_vm1, %v816_v4, 0.0 }
 0x10e   : > { %v863_v58 = vadd.f32 %v862_v55, %v861_v54  ;;  %v764_v59 = vadd.f32 %v763_v56, %v762_v52 }
 0x110   : > { %v766_v62 = vadd.f32 %v765_v61, %v764_v59  ;;  %v865_v63 = vadd.f32 %v864_v60, %v863_v58 }
 0x112   : > { %v867_v5 = vadd.f32 %v866_v2, %v865_v63  ;;  %v768_v6 = vadd.f32 %v767_v3, %v766_v62 }
 0x114   : > { %v770_v9 = vadd.f32 %v769_v53, %v768_v6  ;;  %v869_v11 = vadd.f32 %v868_v8, %v867_v5 }
 0x116   : > { %v871_v17 = vadd.f32 %v870_v13, %v869_v11  ;;  %v772_v18 = vadd.f32 %v771_v14, %v770_v9 }
 0x118   : > { %v774_v25 = vadd.f32 %v773_v22, %v772_v18  ;;  %v873_v26 = vadd.f32 %v872_v20, %v871_v17 }
 0x11a   : > { %v875_v19 = vadd.f32 %v874_v23, %v873_v26  ;;  %v776_v29 = vadd.f32 %v775_v28, %v774_v25 }
 0x11c   : > { %v778_v32 = vadd.f32 %v777_v21, %v776_v29  ;;  %v877_v33 = vadd.f32 %v876_v30, %v875_v19 }
 0x11e   : > { %v780_v15 = vadd.f32 %v779_v35, %v778_v32  ;;  %v879_v36 = vadd.f32 %v878_v34, %v877_v33 }
 0x120   : > { %v781_v38 = vrot.slane %v780_v15, 4  ;;  %v881_v1 = vadd.f32 %v880_v37, %v879_v36 }
 0x122   : > { %v782_v10 = vadd.f32 %v781_v38, %v780_v15  ;;  %v882_v39 = vrot.slane %v881_v1, 4 }
 0x124   : > { %v783_v31 = vrot.slane %v782_v10, 2  ;;  %v883_v42 = vadd.f32 %v882_v39, %v881_v1 }
 0x126   : > { %v784_v43 = vadd.f32 %v783_v31, %v782_v10  ;;  %v884_v12 = vrot.slane %v883_v42, 2 }
 0x128   : > { %v785_v44 = vrot.slane %v784_v43, 1  ;;  %v885_v45 = vadd.f32 %v884_v12, %v883_v42 }
 0x12a   : > { %v786_v41 = vadd.f32 %v785_v44, %v784_v43  ;;  %v886_v46 = vrot.slane %v885_v45, 1 }
 0x12c   : > { %v887_v48 = vadd.f32 %v886_v46, %v885_v45  ;;  %888 = vst.msk [vmem:[%s271_s17] sm:$0xff] %vm685_vm1, %v786_v41 }
 0x12e   : > { %889 = vst.msk [vmem:[%s275_s20] sm:$0xff] %vm685_vm1, %v887_v48 }
 0x12f PF: > { %s17_s21 = sadd.s32 1, %s1187_s21  }
 0x130   : > { %p14_p5 = scmp.ge.s32.totalorder %s17_s21, 4  }
 0x132   :  { %16 = sbr.rel (!%p14_p5) target bundleno = 1 (0x1), region = 90 }

// kernel: bottleneck_forward.4
= control target key start
LH: loop header
LB: loop body
LE: loop exit
PB: predicated region body
PF: predicated region fallthrough
CT: control target
= control target key end

     0   :  { %10 = vsyncpa [#allocation3], 0  ;;  %s1714_s0 = inlined_call_operand.hbm [shape: f32[512,64], index: 0, kind: input, shape index: {}]   ;;  %s1715_s1 = inlined_call_operand.vmem [shape: bf16[64,16], index: 1, kind: input, shape index: {}]   ;;  %s1716_s2 = inlined_call_operand.vmem [shape: bf16[512,16], index: 2, kind: output, shape index: {0}]   ;;  %s1717_s3 = inlined_call_operand.vmem [shape: f32[2,8,16], index: 3, kind: output, shape index: {1}]   ;;  %s1718_s4 = inlined_call_operand.vmem [shape: f32[2,8,16], index: 4, kind: output, shape index: {2}]  }
   0x1   :  { %12 = vsyncpa [#allocation3 + $0x1], 0  ;;  %s1300_s15 = smov 0   ;;  %s1302_s16 = smov 0  }
   0x2   :  { %s1304_s17 = smov 0   ;;  %s1306_s18 = smov 0  }
   0x3 LB: > { %s1319_s19 = sadd.s32 4294967295, %s1270_s18   ;;  %s1322_s20 = sadd.s32 1, %s1270_s18   ;;  %s1270_s18 = sphi %s1306_s18, %s1727_s18   ;;  %s1266_s17 = sphi %s1304_s17, %s1726_s17   ;;  %s1262_s16 = sphi %s1302_s16, %s1725_s16   ;;  %s1258_s15 = sphi %s1300_s15, %s1724_s15  }
   0x4   : > { %s22_s21 = ssub.s32 %s1270_s18, %s1322_s20  ;;  %s25_s22 = sadd.s32 1, %s1266_s17 }
   0x5   : > { %p23_p0 = scmp.eq.s32.totalorder %s22_s21, 0  ;;  %p32_p1 = scmp.ne.s32.totalorder %s1266_s17, %s1262_s16 }
   0x6   : > { %p33_p2 = scmp.eq.s32.totalorder %s1270_s18, 0  ;;  %p38_p3 = scmp.ne.s32.totalorder %s1262_s16, %s1258_s15 }
   0x7   : > { %s1332_s23 = scalar_select %p23_p0, %s1266_s17, %s25_s22  }
   0x8   : > { %p34_p4 = por %p33_p2, %p32_p1  ;;  %p39_p5 = scmp.eq.s32.totalorder %s1319_s19, 0 }
   0x9   : > { %p1169_p6 = scmp.lt.s32.totalorder %s1270_s18, 2  ;;  %s164_s25 = sand.u32 1, %s1266_s17  }
   0xa   : > { %p1336_p7 = por %p39_p5, %p38_p3  ;;  %s999_s26 = sshll.u32 %s164_s25, 8 }
   0xb   : > { %s1062_s27 = sshll.u32 %s1270_s18, 12  ;;  %s168_s5 = scalar_lea.vmem [#allocation2], %s999_s26 }
   0xc   : > { %s1720_s24 = scalar_select %p1336_p7, 1, 0 }
   0xd   : > { %s1345_s30 = scalar_lea.hbm %s1714_s0, %s1062_s27  ;;  %s175_s6 = sshll.u32 %s168_s5, 4  ;;  %s1347_s6 = int_to_ptr.vmem [resolvable:$true] %s175_s6 }
   0xe   : > { %p1349_p8 = pnand %p1169_p6, %p34_p4  ;;  %s1354_s8 = scalar_lea.sflag [#allocation3], %s164_s25 }
   0xf   : > { %s1208_s9 = scalar_lea.hbm %s1345_s30, 4096  ;;  %s1213_s12 = scalar_lea.hbm %s1714_s0, 8192 }
  0x10   : > { %p1209_p10 = scmp.ne.s32.totalorder %s1345_s30, %s1208_s9  ;;  %p1210_p11 = pneg %p1349_p8 }
  0x11   : > { %p1214_p0 = scmp.lt.s32.totalorder %s1345_s30, %s1714_s0  ;;  %p1215_p1 = scmp.lt.s32.totalorder %s1213_s12, %s1208_s9 }
  0x12   : > { %p1211_p12 = pnand %p1210_p11, %p1209_p10 }
  0x13   : > { %p1216_p2 = por %p1215_p1, %p1214_p0 }
  0x14   : > { %p1212_p13 = pneg %p1211_p12 }
  0x16   : > { %p1217_p3 = pnand %p1216_p2, %p1212_p13 }
  0x18   : > { %1220 = shalt.err (!%p1217_p3)
}
  0x19   : > { %s1221_s15 = scalar_lea.vmem %s1347_s6, 4096  ;;  %s1272_s21 = smov [#allocation2]  }
  0x1a   : > { %p1222_p4 = scmp.ne.s32.totalorder %s1347_s6, %s1221_s15  ;;  %s1226_s22 = sshll.u32 %s1272_s21, 4  ;;  %s1227_s22 = int_to_ptr.vmem [resolvable:$false] %s1226_s22 }
  0x1b   : > { %s1228_s25 = scalar_lea.vmem %s1227_s22, 8192  ;;  %p1229_p10 = scmp.lt.s32.totalorder %s1347_s6, %s1227_s22 }
  0x1c   : > { %p1224_p5 = pnand %p1222_p4, %p1210_p11  ;;  %p1230_p12 = scmp.lt.s32.totalorder %s1228_s25, %s1221_s15 }
  0x1e   : > { %p1225_p6 = pneg %p1224_p5  ;;  %p1231_p9 = por %p1230_p12, %p1229_p10 }
  0x20   : > { %p1232_p7 = pnand %p1231_p9, %p1225_p6 }
  0x22   : > { %1235 = shalt.err (!%p1232_p7)
}
  0x23   : > { %s1273_s26 = smov 128   ;;  %s1274_s27 = smov 8  }
  0x24   : > { %1168 = dma.hbm_to_vmem [thread:$0]  (!%p1349_p8), %s1345_s30, 4096, %s1347_s6, %s1354_s8, %s1273_s26, %s1273_s26, %s1274_s27  }
  0x25   : > { %p183_p11 = scmp.lt.s32.totalorder %s1270_s18, 3  ;;  %p1722_p13 = scmp.ge.s32.totalorder %s1270_s18, 1 }
  0x27   : > { %p184_p0 = pnand %p1722_p13, %p183_p11 }
  0x28   : > { %s189_s28 = sand.u32 (!%p184_p0), 1, %s1262_s16   ;;  %p1723_p7 = scmp.ne.s32.totalorder (!%p184_p0), %s1720_s24, 0 }
  0x29   : > { %187 = sbr.rel (%p184_p0) target bundleno = 341 (0x155), region = 28  ;;  %s1003_s29 = sshll.u32 (!%p184_p0), %s189_s28, 8 }
  0x2a   : > { %s190_s5 = scalar_lea.sflag (!%p184_p0), [#allocation3], %s189_s28  ;;  %s1379_s9 = scalar_lea.vmem (!%p184_p0), [#allocation2], %s1003_s29 }
  0x2e   : > { %1253 = dma.done.wait (%p1723_p7), %s190_s5, 4096  }
  0x2f   : > { %1255 = vsyncadd (%p1723_p7), %s190_s5, 4294963200  ;;  %v1204_v0 = vld [vmem:[%s1715_s1 + $0x18] sm:$0xff]   ;;  %v1205_v1 = vld [vmem:[%s1715_s1 + $0x10] sm:$0xff]   ;;  %vm322_vm0 = vcmask 523264   ;;  %s1004_s12 = sshll.u32 %s1319_s19, 5  ;;  %vm660_vm1 = vcmask 125952  }
  0x30   : > { %1115 = vmatprep.subr.bf16.mxu0 %v1204_v0  ;;  %1155 = vmatprep.subr.bf16.mxu1 %v1204_v0  ;;  %v1206_v2 = vld [vmem:[%s1715_s1 + $0x8] sm:$0xff]   ;;  %v242_v3 = vld [vmem:[%s1379_s9] sm:$0xff]  ;;  %v244_v10 = vld [vmem:[%s1379_s9 + $0x10] sm:$0xff]  ;;  %p228_p8 = scmp.lt.s32.totalorder %s1004_s12, 63  ;;  %vm693_vm2 = vcmask 130048   ;;  %p233_p9 = scmp.lt.s32.totalorder %s1319_s19, 1 }
  0x31   : > { %1116 = vmatpush3.bf16.msra.mxu0 %v1204_v0  ;;  %1159 = vmatpush3.bf16.msra.mxu1 %v1204_v0  ;;  %v243_v4 = vld [vmem:[%s1379_s9 + $0x8] sm:$0xff]  ;;  %v1207_v6 = vld [vmem:[%s1715_s1] sm:$0xff]   ;;  %v245_v11 = vld [vmem:[%s1379_s9 + $0x18] sm:$0xff] }
  0x32   : > { %1117 = vmatprep.subr.bf16.mxu0 %v1205_v1  ;;  %1156 = vmatprep.subr.bf16.mxu1 %v1205_v1  ;;  %v274_v5 = vpack.c.bf16 %v243_v4, %v242_v3  ;;  %v258_v7 = vld [vmem:[%s1379_s9 + $0x80] sm:$0xff]  ;;  %v259_v8 = vld [vmem:[%s1379_s9 + $0x88] sm:$0xff]  ;;  %v260_v14 = vld [vmem:[%s1379_s9 + $0x90] sm:$0xff]  ;;  %v275_v18 = vpack.c.bf16 %v245_v11, %v244_v10  ;;  %s1729_s12 = smov (!%p228_p8, %s1004_s12), 63  ;;  %s1731_s19 = smov (!%p233_p9, %s1319_s19), 1 }
  0x33   : > { %v282_v9 = vpack.c.bf16 %v259_v8, %v258_v7  ;;  %v246_v12 = vld [vmem:[%s1379_s9 + $0x20] sm:$0xff]  ;;  %v247_v13 = vld [vmem:[%s1379_s9 + $0x28] sm:$0xff]  ;;  %v261_v15 = vld [vmem:[%s1379_s9 + $0x98] sm:$0xff]  ;;  %s1005_s13 = sshll.u32 %s1729_s12, 2  ;;  %s1006_s22 = sshll.u32 %s1731_s19, 3 }
  0x34   : > { %1123 = vmatprep.mubr.msk.bf16.mxu0 %vm322_vm0, %v274_v5  ;;  %v262_v16 = vld [vmem:[%s1379_s9 + $0xa0] sm:$0xff]  ;;  %v263_v17 = vld [vmem:[%s1379_s9 + $0xa8] sm:$0xff]  ;;  %v276_v19 = vpack.c.bf16 %v247_v13, %v246_v12  ;;  %v283_v20 = vpack.c.bf16 %v261_v15, %v260_v14  ;;  %v248_v22 = vld [vmem:[%s1379_s9 + $0x30] sm:$0xff]  ;;  %s1449_s21 = scalar_lea.vmem %s1716_s2, %s1005_s13  ;;  %s236_s27 = scalar_lea.vmem %s1717_s3, %s1006_s22 }
  0x35   : > { %1118 = vmatpush3.bf16.msra.mxu0 %v1205_v1  ;;  %1160 = vmatpush3.bf16.msra.mxu1 %v1205_v1  ;;  %v284_v21 = vpack.c.bf16 %v263_v17, %v262_v16  ;;  %v249_v23 = vld [vmem:[%s1379_s9 + $0x38] sm:$0xff]  ;;  %v250_v24 = vld [vmem:[%s1379_s9 + $0x40] sm:$0xff]  ;;  %v251_v25 = vld [vmem:[%s1379_s9 + $0x48] sm:$0xff]  ;;  %s240_s5 = scalar_lea.vmem %s1718_s4, %s1006_s22 }
  0x36   : > { %1119 = vmatprep.subr.bf16.mxu0 %v1206_v2  ;;  %1157 = vmatprep.subr.bf16.mxu1 %v1206_v2  ;;  %v264_v26 = vld [vmem:[%s1379_s9 + $0xb0] sm:$0xff]  ;;  %v265_v27 = vld [vmem:[%s1379_s9 + $0xb8] sm:$0xff]  ;;  %v266_v28 = vld [vmem:[%s1379_s9 + $0xc0] sm:$0xff]  ;;  %v277_v30 = vpack.c.bf16 %v249_v23, %v248_v22  ;;  %v278_v31 = vpack.c.bf16 %v251_v25, %v250_v24 }
  0x37   : > { %1139 = vmatprep.mubr.msk.bf16.mxu1 %vm322_vm0, %v282_v9  ;;  %v267_v29 = vld [vmem:[%s1379_s9 + $0xc8] sm:$0xff]  ;;  %v285_v32 = vpack.c.bf16 %v265_v27, %v264_v26  ;;  %v252_v34 = vld [vmem:[%s1379_s9 + $0x50] sm:$0xff]  ;;  %v253_v35 = vld [vmem:[%s1379_s9 + $0x58] sm:$0xff] }
  0x38   : > { %v286_v33 = vpack.c.bf16 %v267_v29, %v266_v28  ;;  %v254_v36 = vld [vmem:[%s1379_s9 + $0x60] sm:$0xff]  ;;  %v255_v37 = vld [vmem:[%s1379_s9 + $0x68] sm:$0xff]  ;;  %v268_v38 = vld [vmem:[%s1379_s9 + $0xd0] sm:$0xff]  ;;  %v279_v42 = vpack.c.bf16 %v253_v35, %v252_v34 }
  0x39   : > { %1120 = vmatpush3.bf16.msra.mxu0 %v1206_v2  ;;  %1161 = vmatpush3.bf16.msra.mxu1 %v1206_v2  ;;  %v269_v39 = vld [vmem:[%s1379_s9 + $0xd8] sm:$0xff]  ;;  %v270_v40 = vld [vmem:[%s1379_s9 + $0xe0] sm:$0xff]  ;;  %v271_v41 = vld [vmem:[%s1379_s9 + $0xe8] sm:$0xff]  ;;  %v280_v43 = vpack.c.bf16 %v255_v37, %v254_v36 }
  0x3a   : > { %1121 = vmatprep.subr.bf16.mxu0 %v1207_v6  ;;  %1158 = vmatprep.subr.bf16.mxu1 %v1207_v6  ;;  %v287_v44 = vpack.c.bf16 %v269_v39, %v268_v38  ;;  %v288_v45 = vpack.c.bf16 %v271_v41, %v270_v40  ;;  %v256_v46 = vld [vmem:[%s1379_s9 + $0x70] sm:$0xff]  ;;  %v257_v47 = vld [vmem:[%s1379_s9 + $0x78] sm:$0xff] }
  0x3b   : > { %v272_v48 = vld [vmem:[%s1379_s9 + $0xf0] sm:$0xff]  ;;  %v273_v49 = vld [vmem:[%s1379_s9 + $0xf8] sm:$0xff]  ;;  %v281_v50 = vpack.c.bf16 %v257_v47, %v256_v46 }
  0x3c   : > { %v289_v51 = vpack.c.bf16 %v273_v49, %v272_v48 }
  0x3d   : > { %1122 = vmatpush3.bf16.msra.mxu0 %v1207_v6  ;;  %1162 = vmatpush3.bf16.msra.mxu1 %v1207_v6 }
  0x40   : > { %1124 = vmatmul.mubr.msk.bf16.vlgmr.msra.gmra.mxu0 %vm322_vm0, %v275_v18  ;;  %1140 = vmatmul.mubr.msk.bf16.vlgmr.msra.gmra.mxu1 %vm322_vm0, %v283_v20 }
  0x41   : > { %1127 = vmatprep.mubr.msk.bf16.mxu0 %vm322_vm0, %v276_v19  ;;  %1143 = vmatprep.mubr.msk.bf16.mxu1 %vm322_vm0, %v284_v21 }
  0x48   : > { %1128 = vmatmul.mubr.msk.bf16.gmra.mxu0 %vm322_vm0, %v277_v30  ;;  %1144 = vmatmul.mubr.msk.bf16.gmra.mxu1 %vm322_vm0, %v285_v32 }
  0x49   : > { %1131 = vmatprep.mubr.msk.bf16.mxu0 %vm322_vm0, %v278_v31  ;;  %1147 = vmatprep.mubr.msk.bf16.mxu1 %vm322_vm0, %v286_v33 }
  0x50   : > { %1132 = vmatmul.mubr.msk.bf16.gmra.mxu0 %vm322_vm0, %v279_v42  ;;  %1148 = vmatmul.mubr.msk.bf16.gmra.mxu1 %vm322_vm0, %v287_v44 }
  0x51   : > { %1135 = vmatprep.mubr.msk.bf16.mxu0 %vm322_vm0, %v280_v43  ;;  %1151 = vmatprep.mubr.msk.bf16.mxu1 %vm322_vm0, %v288_v45 }
  0x58   : > { %1136 = vmatmul.mubr.msk.bf16.gmra.mxu0 %vm322_vm0, %v281_v50  ;;  %1152 = vmatmul.mubr.msk.bf16.gmra.mxu1 %vm322_vm0, %v289_v51 }
 0x100   : > { %v1125_v52 = vpop.f32.mrf.mxu0  ;;  %v1451_v54 = vpop.f32.mrf.mxu1 }
 0x101   : > { %v1065_v53 = vpack.c.bf16 %v1125_v52, %v1125_v52  ;;  %v1081_v56 = vpack.c.bf16 %v1451_v54, %v1451_v54  ;;  %v765_v0 = vmul.f32 %v1125_v52, %v1125_v52  ;;  %v697_v8 = vsel %vm693_vm2, %v1125_v52, 0.0 }
 0x102   : > { %v405_v55 = vpop.f32.mrf.mxu0  ;;  %v1457_v58 = vpop.f32.mrf.mxu1 }
 0x103   : > { %663 = vst.msk [vmem:[%s1449_s21 + $0x8] sm:$0xf] %vm660_vm1, %v1065_v53  ;;  %v1063_v57 = vpack.c.bf16 %v405_v55, %v405_v55  ;;  %679 = vst.msk [vmem:[%s1449_s21 + $0x48] sm:$0xf] %vm660_vm1, %v1081_v56  ;;  %v1079_v60 = vpack.c.bf16 %v1457_v58, %v1457_v58  ;;  %v763_v61 = vmul.f32 %v405_v55, %v405_v55  ;;  %v694_v3 = vsel %vm693_vm2, %v405_v55, 0.0 }
 0x104   : > { %v1126_v59 = vpop.f32.mrf.mxu0  ;;  %v1465_v63 = vpop.f32.mrf.mxu1  ;;  %v798_v21 = vsel %vm693_vm2, %v765_v0, 0.0 }
 0x105   : > { %661 = vst.msk [vmem:[%s1449_s21] sm:$0xf] %vm660_vm1, %v1063_v57  ;;  %v1066_v62 = vpack.c.bf16 %v1126_v59, %v1126_v59  ;;  %677 = vst.msk [vmem:[%s1449_s21 + $0x40] sm:$0xf] %vm660_vm1, %v1079_v60  ;;  %v1082_v2 = vpack.c.bf16 %v1465_v63, %v1465_v63  ;;  %v795_v12 = vsel %vm693_vm2, %v763_v61, 0.0  ;;  %v766_v13 = vmul.f32 %v1126_v59, %v1126_v59 }
 0x106   : > { %v408_v1 = vpop.f32.mrf.mxu0  ;;  %v1475_v7 = vpop.f32.mrf.mxu1  ;;  %v699_v22 = vsel %vm693_vm2, %v1126_v59, 0.0 }
 0x107   : > { %664 = vst.msk [vmem:[%s1449_s21 + $0xc] sm:$0xf] %vm660_vm1, %v1066_v62  ;;  %v1064_v4 = vpack.c.bf16 %v408_v1, %v408_v1  ;;  %v695_v5 = vsel %vm693_vm2, %v408_v1, 0.0  ;;  %v764_v6 = vmul.f32 %v408_v1, %v408_v1  ;;  %680 = vst.msk [vmem:[%s1449_s21 + $0x4c] sm:$0xf] %vm660_vm1, %v1082_v2  ;;  %v1080_v11 = vpack.c.bf16 %v1475_v7, %v1475_v7 }
 0x108   : > { %v696_v9 = vadd.f32 %v695_v5, %v694_v3  ;;  %v1129_v10 = vpop.f32.mrf.mxu0  ;;  %v1486_v16 = vpop.f32.mrf.mxu1  ;;  %v800_v29 = vsel %vm693_vm2, %v766_v13, 0.0 }
 0x109   : > { %662 = vst.msk [vmem:[%s1449_s21 + $0x4] sm:$0xf] %vm660_vm1, %v1064_v4  ;;  %v796_v14 = vsel %vm693_vm2, %v764_v6, 0.0  ;;  %v1069_v15 = vpack.c.bf16 %v1129_v10, %v1129_v10  ;;  %678 = vst.msk [vmem:[%s1449_s21 + $0x44] sm:$0xf] %vm660_vm1, %v1080_v11  ;;  %v1085_v20 = vpack.c.bf16 %v1486_v16, %v1486_v16  ;;  %v769_v33 = vmul.f32 %v1129_v10, %v1129_v10 }
 0x10a   : > { %v698_v17 = vadd.f32 %v697_v8, %v696_v9  ;;  %v797_v18 = vadd.f32 %v796_v14, %v795_v12  ;;  %v421_v19 = vpop.f32.mrf.mxu0  ;;  %v1496_v25 = vpop.f32.mrf.mxu1  ;;  %v705_v46 = vsel %vm693_vm2, %v1129_v10, 0.0 }
 0x10b   : > { %667 = vst.msk [vmem:[%s1449_s21 + $0x18] sm:$0xf] %vm660_vm1, %v1069_v15  ;;  %v1067_v23 = vpack.c.bf16 %v421_v19, %v421_v19  ;;  %v767_v24 = vmul.f32 %v421_v19, %v421_v19  ;;  %683 = vst.msk [vmem:[%s1449_s21 + $0x58] sm:$0xf] %vm660_vm1, %v1085_v20  ;;  %v701_v30 = vsel %vm693_vm2, %v421_v19, 0.0  ;;  %v1083_v37 = vpack.c.bf16 %v1496_v25, %v1496_v25 }
 0x10c   : > { %v799_v26 = vadd.f32 %v798_v21, %v797_v18  ;;  %v700_v27 = vadd.f32 %v699_v22, %v698_v17  ;;  %v1130_v28 = vpop.f32.mrf.mxu0  ;;  %v1504_v32 = vpop.f32.mrf.mxu1  ;;  %v806_v56 = vsel %vm693_vm2, %v769_v33, 0.0 }
 0x10d   : > { %665 = vst.msk [vmem:[%s1449_s21 + $0x10] sm:$0xf] %vm660_vm1, %v1067_v23  ;;  %v1070_v31 = vpack.c.bf16 %v1130_v28, %v1130_v28  ;;  %v802_v38 = vsel %vm693_vm2, %v767_v24, 0.0  ;;  %681 = vst.msk [vmem:[%s1449_s21 + $0x50] sm:$0xf] %vm660_vm1, %v1083_v37  ;;  %v770_v47 = vmul.f32 %v1130_v28, %v1130_v28  ;;  %v1086_v55 = vpack.c.bf16 %v1504_v32, %v1504_v32 }
 0x10e   : > { %v702_v34 = vadd.f32 %v701_v30, %v700_v27  ;;  %v801_v35 = vadd.f32 %v800_v29, %v799_v26  ;;  %v424_v36 = vpop.f32.mrf.mxu0  ;;  %v1512_v42 = vpop.f32.mrf.mxu1  ;;  %v707_v57 = vsel %vm693_vm2, %v1130_v28, 0.0 }
 0x10f   : > { %668 = vst.msk [vmem:[%s1449_s21 + $0x1c] sm:$0xf] %vm660_vm1, %v1070_v31  ;;  %v1068_v39 = vpack.c.bf16 %v424_v36, %v424_v36  ;;  %v703_v40 = vsel %vm693_vm2, %v424_v36, 0.0  ;;  %v768_v41 = vmul.f32 %v424_v36, %v424_v36  ;;  %684 = vst.msk [vmem:[%s1449_s21 + $0x5c] sm:$0xf] %vm660_vm1, %v1086_v55  ;;  %v808_v2 = vsel %vm693_vm2, %v770_v47, 0.0 }
 0x110   : > { %v803_v43 = vadd.f32 %v802_v38, %v801_v35  ;;  %v704_v44 = vadd.f32 %v703_v40, %v702_v34  ;;  %v1133_v45 = vpop.f32.mrf.mxu0  ;;  %v1520_v50 = vpop.f32.mrf.mxu1  ;;  %v1084_v11 = vpack.c.bf16 %v1512_v42, %v1512_v42 }
 0x111   : > { %666 = vst.msk [vmem:[%s1449_s21 + $0x14] sm:$0xf] %vm660_vm1, %v1068_v39  ;;  %v804_v48 = vsel %vm693_vm2, %v768_v41, 0.0  ;;  %v1073_v49 = vpack.c.bf16 %v1133_v45, %v1133_v45  ;;  %v773_v6 = vmul.f32 %v1133_v45, %v1133_v45  ;;  %v713_v21 = vsel %vm693_vm2, %v1133_v45, 0.0 }
 0x112   : > { %v706_v51 = vadd.f32 %v705_v46, %v704_v44  ;;  %v805_v52 = vadd.f32 %v804_v48, %v803_v43  ;;  %v437_v53 = vpop.f32.mrf.mxu0  ;;  %v1528_v61 = vpop.f32.mrf.mxu1  ;;  %682 = vst.msk [vmem:[%s1449_s21 + $0x54] sm:$0xf] %vm660_vm1, %v1084_v11  ;;  %v1089_v30 = vpack.c.bf16 %v1520_v50, %v1520_v50 }
 0x113   : > { %671 = vst.msk [vmem:[%s1449_s21 + $0x28] sm:$0xf] %vm660_vm1, %v1073_v49  ;;  %v1071_v59 = vpack.c.bf16 %v437_v53, %v437_v53  ;;  %v771_v60 = vmul.f32 %v437_v53, %v437_v53  ;;  %v709_v3 = vsel %vm693_vm2, %v437_v53, 0.0  ;;  %v814_v31 = vsel %vm693_vm2, %v773_v6, 0.0 }
 0x114   : > { %v807_v62 = vadd.f32 %v806_v56, %v805_v52  ;;  %v708_v0 = vadd.f32 %v707_v57, %v706_v51  ;;  %v1134_v1 = vpop.f32.mrf.mxu0  ;;  %v1536_v5 = vpop.f32.mrf.mxu1  ;;  %687 = vst.msk [vmem:[%s1449_s21 + $0x68] sm:$0xf] %vm660_vm1, %v1089_v30  ;;  %v1087_v48 = vpack.c.bf16 %v1528_v61, %v1528_v61  ;;  %v782_v30 = vmul.f32 %v1465_v63, %v1465_v63 }
 0x115   : > { %669 = vst.msk [vmem:[%s1449_s21 + $0x20] sm:$0xf] %vm660_vm1, %v1071_v59  ;;  %v1074_v4 = vpack.c.bf16 %v1134_v1, %v1134_v1  ;;  %v810_v12 = vsel %vm693_vm2, %v771_v60, 0.0  ;;  %v774_v22 = vmul.f32 %v1134_v1, %v1134_v1  ;;  %v715_v33 = vsel %vm693_vm2, %v1134_v1, 0.0 }
 0x116   : > { %v710_v8 = vadd.f32 %v709_v3, %v708_v0  ;;  %v809_v9 = vadd.f32 %v808_v2, %v807_v62  ;;  %v440_v10 = vpop.f32.mrf.mxu0  ;;  %v1544_v17 = vpop.f32.mrf.mxu1  ;;  %685 = vst.msk [vmem:[%s1449_s21 + $0x60] sm:$0xf] %vm660_vm1, %v1087_v48  ;;  %v1090_v0 = vpack.c.bf16 %v1536_v5, %v1536_v5 }
 0x117   : > { %672 = vst.msk [vmem:[%s1449_s21 + $0x2c] sm:$0xf] %vm660_vm1, %v1074_v4  ;;  %v1072_v13 = vpack.c.bf16 %v440_v10, %v440_v10  ;;  %v711_v14 = vsel %vm693_vm2, %v440_v10, 0.0  ;;  %v772_v15 = vmul.f32 %v440_v10, %v440_v10  ;;  %v816_v40 = vsel %vm693_vm2, %v774_v22, 0.0 }
 0x118   : > { %v811_v18 = vadd.f32 %v810_v12, %v809_v9  ;;  %v712_v19 = vadd.f32 %v711_v14, %v710_v8  ;;  %v1137_v20 = vpop.f32.mrf.mxu0  ;;  %v1552_v26 = vpop.f32.mrf.mxu1  ;;  %v1088_v3 = vpack.c.bf16 %v1544_v17, %v1544_v17  ;;  %v779_v8 = vmul.f32 %v1457_v58, %v1457_v58  ;;  %688 = vst.msk [vmem:[%s1449_s21 + $0x6c] sm:$0xf] %vm660_vm1, %v1090_v0 }
 0x119   : > { %670 = vst.msk [vmem:[%s1449_s21 + $0x24] sm:$0xf] %vm660_vm1, %v1072_v13  ;;  %v812_v23 = vsel %vm693_vm2, %v772_v15, 0.0  ;;  %v1077_v24 = vpack.c.bf16 %v1137_v20, %v1137_v20  ;;  %v777_v44 = vmul.f32 %v1137_v20, %v1137_v20  ;;  %v721_v59 = vsel %vm693_vm2, %v1137_v20, 0.0 }
 0x11a   : > { %v714_v27 = vadd.f32 %v713_v21, %v712_v19  ;;  %v813_v28 = vadd.f32 %v812_v23, %v811_v18  ;;  %v453_v29 = vpop.f32.mrf.mxu0  ;;  %v1562_v39 = vpop.f32.mrf.mxu1  ;;  %v1093_v9 = vpack.c.bf16 %v1552_v26, %v1552_v26  ;;  %686 = vst.msk [vmem:[%s1449_s21 + $0x64] sm:$0xf] %vm660_vm1, %v1088_v3  ;;  %v725_v14 = vsel %vm693_vm2, %v1457_v58, 0.0 }
 0x11b   : > { %675 = vst.msk [vmem:[%s1449_s21 + $0x38] sm:$0xf] %vm660_vm1, %v1077_v24  ;;  %v1075_v34 = vpack.c.bf16 %v453_v29, %v453_v29  ;;  %v775_v35 = vmul.f32 %v453_v29, %v453_v29  ;;  %v717_v41 = vsel %vm693_vm2, %v453_v29, 0.0  ;;  %v822_v4 = vsel %vm693_vm2, %v777_v44, 0.0 }
 0x11c   : > { %v815_v36 = vadd.f32 %v814_v31, %v813_v28  ;;  %v716_v37 = vadd.f32 %v715_v33, %v714_v27  ;;  %v1138_v38 = vpop.f32.mrf.mxu0  ;;  %v1576_v57 = vpop.f32.mrf.mxu1  ;;  %v780_v15 = vmul.f32 %v1475_v7, %v1475_v7  ;;  %691 = vst.msk [vmem:[%s1449_s21 + $0x78] sm:$0xf] %vm660_vm1, %v1093_v9  ;;  %v1091_v18 = vpack.c.bf16 %v1562_v39, %v1562_v39 }
 0x11d   : > { %673 = vst.msk [vmem:[%s1449_s21 + $0x30] sm:$0xf] %vm660_vm1, %v1075_v34  ;;  %v1078_v43 = vpack.c.bf16 %v1138_v38, %v1138_v38  ;;  %v818_v49 = vsel %vm693_vm2, %v775_v35, 0.0  ;;  %v778_v60 = vmul.f32 %v1138_v38, %v1138_v38  ;;  %v723_v6 = vsel %vm693_vm2, %v1138_v38, 0.0 }
 0x11e   : > { %v718_v45 = vadd.f32 %v717_v41, %v716_v37  ;;  %v817_v46 = vadd.f32 %v816_v40, %v815_v36  ;;  %v456_v47 = vpop.f32.mrf.mxu0  ;;  %v1596_v12 = vpop.f32.mrf.mxu1  ;;  %v1094_v21 = vpack.c.bf16 %v1576_v57, %v1576_v57  ;;  %v781_v22 = vmul.f32 %v1451_v54, %v1451_v54  ;;  %689 = vst.msk [vmem:[%s1449_s21 + $0x70] sm:$0xf] %vm660_vm1, %v1091_v18 }
 0x11f   : > { %676 = vst.msk [vmem:[%s1449_s21 + $0x3c] sm:$0xf] %vm660_vm1, %v1078_v43  ;;  %v1076_v51 = vpack.c.bf16 %v456_v47, %v456_v47  ;;  %v719_v52 = vsel %vm693_vm2, %v456_v47, 0.0  ;;  %v776_v53 = vmul.f32 %v456_v47, %v456_v47  ;;  %v824_v13 = vsel %vm693_vm2, %v778_v60, 0.0 }
 0x120   : > { %v819_v55 = vadd.f32 %v818_v49, %v817_v46  ;;  %v720_v56 = vadd.f32 %v719_v52, %v718_v45  ;;  %v826_v23 = vsel %vm693_vm2, %v779_v8, 0.0  ;;  %v727_v58 = vsel %vm693_vm2, %v1475_v7, 0.0  ;;  %692 = vst.msk [vmem:[%s1449_s21 + $0x7c] sm:$0xf] %vm660_vm1, %v1094_v21 }
 0x121   : > { %674 = vst.msk [vmem:[%s1449_s21 + $0x34] sm:$0xf] %vm660_vm1, %v1076_v51  ;;  %v820_v62 = vsel %vm693_vm2, %v776_v53, 0.0  ;;  %v1092_v24 = vpack.c.bf16 %v1596_v12, %v1596_v12  ;;  %v729_v29 = vsel %vm693_vm2, %v1451_v54, 0.0  ;;  %v828_v31 = vsel %vm693_vm2, %v780_v15, 0.0 }
 0x122   : > { %v722_v1 = vadd.f32 %v721_v59, %v720_v56  ;;  %v821_v2 = vadd.f32 %v820_v62, %v819_v55  ;;  %v830_v34 = vsel %vm693_vm2, %v781_v22, 0.0  ;;  %v731_v35 = vsel %vm693_vm2, %v1465_v63, 0.0 }
 0x123   : > { %690 = vst.msk [vmem:[%s1449_s21 + $0x74] sm:$0xf] %vm660_vm1, %v1092_v24  ;;  %v783_v36 = vmul.f32 %v1496_v25, %v1496_v25  ;;  %v832_v54 = vsel %vm693_vm2, %v782_v30, 0.0  ;;  %v733_v40 = vsel %vm693_vm2, %v1496_v25, 0.0  ;;  %v784_v41 = vmul.f32 %v1512_v42, %v1512_v42 }
 0x124   : > { %v724_v10 = vadd.f32 %v723_v6, %v722_v1  ;;  %v823_v11 = vadd.f32 %v822_v4, %v821_v2  ;;  %v785_v45 = vmul.f32 %v1486_v16, %v1486_v16  ;;  %v735_v46 = vsel %vm693_vm2, %v1512_v42, 0.0 }
 0x125   : > { %v834_v63 = vsel %vm693_vm2, %v783_v36, 0.0  ;;  %v737_v49 = vsel %vm693_vm2, %v1486_v16, 0.0  ;;  %v786_v25 = vmul.f32 %v1504_v32, %v1504_v32  ;;  %v836_v51 = vsel %vm693_vm2, %v784_v41, 0.0 }
 0x126   : > { %v825_v19 = vadd.f32 %v824_v13, %v823_v11  ;;  %v726_v20 = vadd.f32 %v725_v14, %v724_v10  ;;  %v838_v55 = vsel %vm693_vm2, %v785_v45, 0.0  ;;  %v739_v56 = vsel %vm693_vm2, %v1504_v32, 0.0 }
 0x127   : > { %v787_v42 = vmul.f32 %v1528_v61, %v1528_v61  ;;  %v840_v62 = vsel %vm693_vm2, %v786_v25, 0.0  ;;  %v741_v16 = vsel %vm693_vm2, %v1528_v61, 0.0  ;;  %v788_v0 = vmul.f32 %v1544_v17, %v1544_v17 }
 0x128   : > { %v728_v27 = vadd.f32 %v727_v58, %v726_v20  ;;  %v827_v28 = vadd.f32 %v826_v23, %v825_v19  ;;  %v789_v3 = vmul.f32 %v1520_v50, %v1520_v50  ;;  %v743_v4 = vsel %vm693_vm2, %v1544_v17, 0.0 }
 0x129   : > { %v842_v32 = vsel %vm693_vm2, %v787_v42, 0.0  ;;  %v745_v9 = vsel %vm693_vm2, %v1520_v50, 0.0  ;;  %v790_v61 = vmul.f32 %v1536_v5, %v1536_v5  ;;  %v844_v10 = vsel %vm693_vm2, %v788_v0, 0.0 }
 0x12a   : > { %v730_v7 = vadd.f32 %v729_v29, %v728_v27  ;;  %v829_v33 = vadd.f32 %v828_v31, %v827_v28  ;;  %v846_v14 = vsel %vm693_vm2, %v789_v3, 0.0  ;;  %v747_v15 = vsel %vm693_vm2, %v1536_v5, 0.0 }
 0x12b   : > { %v791_v17 = vmul.f32 %v1562_v39, %v1562_v39  ;;  %v848_v20 = vsel %vm693_vm2, %v790_v61, 0.0  ;;  %v749_v50 = vsel %vm693_vm2, %v1562_v39, 0.0  ;;  %v792_v21 = vmul.f32 %v1596_v12, %v1596_v12 }
 0x12c   : > { %v831_v37 = vadd.f32 %v830_v34, %v829_v33  ;;  %v732_v38 = vadd.f32 %v731_v35, %v730_v7  ;;  %v793_v58 = vmul.f32 %v1552_v26, %v1552_v26  ;;  %v751_v24 = vsel %vm693_vm2, %v1596_v12, 0.0 }
 0x12d   : > { %v850_v5 = vsel %vm693_vm2, %v791_v17, 0.0  ;;  %v753_v39 = vsel %vm693_vm2, %v1552_v26, 0.0  ;;  %v794_v29 = vmul.f32 %v1576_v57, %v1576_v57  ;;  %v852_v30 = vsel %vm693_vm2, %v792_v21, 0.0 }
 0x12e   : > { %v734_v43 = vadd.f32 %v733_v40, %v732_v38  ;;  %v833_v44 = vadd.f32 %v832_v54, %v831_v37  ;;  %v854_v33 = vsel %vm693_vm2, %v793_v58, 0.0  ;;  %v755_v34 = vsel %vm693_vm2, %v1576_v57, 0.0 }
 0x12f   : > { %v856_v36 = vsel %vm693_vm2, %v794_v29, 0.0 }
 0x130   : > { %v835_v47 = vadd.f32 %v834_v63, %v833_v44  ;;  %v736_v48 = vadd.f32 %v735_v46, %v734_v43 }
 0x132   : > { %v738_v52 = vadd.f32 %v737_v49, %v736_v48  ;;  %v837_v53 = vadd.f32 %v836_v51, %v835_v47 }
 0x134   : > { %v839_v59 = vadd.f32 %v838_v55, %v837_v53  ;;  %v740_v60 = vadd.f32 %v739_v56, %v738_v52 }
 0x136   : > { %v742_v1 = vadd.f32 %v741_v16, %v740_v60  ;;  %v841_v2 = vadd.f32 %v840_v62, %v839_v59 }
 0x138   : > { %v843_v6 = vadd.f32 %v842_v32, %v841_v2  ;;  %v744_v8 = vadd.f32 %v743_v4, %v742_v1 }
 0x13a   : > { %v746_v11 = vadd.f32 %v745_v9, %v744_v8  ;;  %v845_v13 = vadd.f32 %v844_v10, %v843_v6 }
 0x13c   : > { %v847_v18 = vadd.f32 %v846_v14, %v845_v13  ;;  %v748_v19 = vadd.f32 %v747_v15, %v746_v11 }
 0x13e   : > { %v750_v22 = vadd.f32 %v749_v50, %v748_v19  ;;  %v849_v23 = vadd.f32 %v848_v20, %v847_v18 }
 0x140   : > { %v851_v27 = vadd.f32 %v850_v5, %v849_v23  ;;  %v752_v28 = vadd.f32 %v751_v24, %v750_v22 }
 0x142   : > { %v754_v31 = vadd.f32 %v753_v39, %v752_v28  ;;  %v853_v7 = vadd.f32 %v852_v30, %v851_v27 }
 0x144   : > { %v756_v12 = vadd.f32 %v755_v34, %v754_v31  ;;  %v855_v35 = vadd.f32 %v854_v33, %v853_v7 }
 0x146   : > { %v757_v37 = vrot.slane %v756_v12, 4  ;;  %v857_v38 = vadd.f32 %v856_v36, %v855_v35 }
 0x148   : > { %v758_v26 = vadd.f32 %v757_v37, %v756_v12  ;;  %v858_v54 = vrot.slane %v857_v38, 4 }
 0x14a   : > { %v759_v40 = vrot.slane %v758_v26, 2  ;;  %v859_v41 = vadd.f32 %v858_v54, %v857_v38 }
 0x14c   : > { %v760_v43 = vadd.f32 %v759_v40, %v758_v26  ;;  %v860_v44 = vrot.slane %v859_v41, 2 }
 0x14e   : > { %v761_v45 = vrot.slane %v760_v43, 1  ;;  %v861_v63 = vadd.f32 %v860_v44, %v859_v41 }
 0x150   : > { %v762_v57 = vadd.f32 %v761_v45, %v760_v43  ;;  %v862_v46 = vrot.slane %v861_v63, 1 }
 0x152   : > { %v863_v47 = vadd.f32 %v862_v46, %v861_v63  ;;  %864 = vst.msk [vmem:[%s236_s27] sm:$0xff] %vm693_vm2, %v762_v57 }
 0x154   : > { %865 = vst.msk [vmem:[%s240_s5] sm:$0xff] %vm693_vm2, %v863_v47 }
 0x155 PF: > { %p15_p1 = scmp.ge.s32.totalorder %s1322_s20, 4   ;;  %s1724_s15 = smov %s1262_s16 }
 0x156   : > { %s1725_s16 = smov %s1266_s17  ;;  %s1726_s17 = smov %s1332_s23 }
 0x157   : > { %s1727_s18 = smov %s1322_s20  ;;  %17 = sbr.rel (!%p15_p1) target bundleno = 3 (0x3), region = 92 }
 0x15c   :  { %916 = vsyncpa [#allocation3], 1 }
 0x15d   :  { %918 = vsyncpa [#allocation3 + $0x1], 1 }

// kernel: bottleneck_forward.5
= control target key start
LH: loop header
LB: loop body
LE: loop exit
PB: predicated region body
PF: predicated region fallthrough
CT: control target
= control target key end

     0   :  { %s7704_s21 = smov 0   ;;  %s9737_s0 = inlined_call_operand.vmem [shape: bf16[2,16,16,16], index: 0, kind: input, shape index: {}]   ;;  %s9738_s1 = inlined_call_operand.vmem [shape: f32[1,16], index: 1, kind: input, shape index: {}]   ;;  %s9739_s2 = inlined_call_operand.vmem [shape: f32[1,16], index: 2, kind: input, shape index: {}]   ;;  %s9740_s3 = inlined_call_operand.vmem [shape: bf16[9,16,16], index: 3, kind: input, shape index: {}]   ;;  %s9741_s4 = inlined_call_operand.vmem [shape: bf16[2,16,16,16], index: 4, kind: output, shape index: {0}]   ;;  %s9742_s5 = inlined_call_operand.vmem [shape: f32[2,8,16], index: 5, kind: output, shape index: {1}]   ;;  %s9743_s6 = inlined_call_operand.vmem [shape: f32[2,8,16], index: 6, kind: output, shape index: {2}]  }
   0x1 LB: > { %s6452_s22 = sadd.s32 4294967295, %s7666_s21   ;;  %p6456_p0 = scmp.ge.s32.totalorder %s7666_s21, 1  ;;  %s7666_s21 = sphi %s7704_s21, %s17_s21  }
   0x2   : > { %p217_p1 = scmp.lt.s32.totalorder %s7666_s21, 3 }
   0x4   : > { %p218_p2 = pnand %p6456_p0, %p217_p1 }
   0x6   : > { %221 = sbr.rel (%p218_p2) target bundleno = 680 (0x2a8), region = 36 }
   0xb   : > { %v7573_v0 = vld [vmem:[%s9740_s3 + $0x8] sm:$0xff]   ;;  %v7668_v1 = vmov 0.0|0.0   ;;  %vm712_vm0 = vcmask 125952   ;;  %p7717_p3 = scmp.lt.s32.totalorder %s6452_s22, 1  ;;  %v7724_v4 = vld [vmem:[%s9740_s3] sm:$0xff]   ;;  %v7775_v5 = vld [vmem:[%s9740_s3 + $0x10] sm:$0xff]  }
   0xc   : > { %v6465_v2 = vcombine.low %v7668_v1, %v7668_v1  ;;  %v6466_v3 = vcombine.high %v7668_v1, %v7668_v1  ;;  %7256 = vmatprep.subr.bf16.mxu0 %v7573_v0  ;;  %7562 = vmatprep.subr.bf16.mxu1 %v7573_v0  ;;  %717 = vst.msk [vmem:[#allocation2 + $0x10] sm:$0xf] %vm712_vm0, %v7668_v1  ;;  %720 = vst.msk [vmem:[#allocation2 + $0x1c] sm:$0xf] %vm712_vm0, %v7668_v1  ;;  %v7790_v6 = vld [vmem:[%s9738_s1] ss:$0 sm:$0xff] }
   0xd   : > { %721 = vst.msk [vmem:[#allocation2 + $0x20] sm:$0xf] %vm712_vm0, %v7668_v1  ;;  %724 = vst.msk [vmem:[#allocation2 + $0x2c] sm:$0xf] %vm712_vm0, %v7668_v1  ;;  %7257 = vmatpush3.bf16.msra.mxu0 %v7573_v0  ;;  %7563 = vmatpush3.bf16.msra.mxu1 %v7573_v0  ;;  %s10099_s22 = smov (!%p7717_p3, %s6452_s22), 1  ;;  %vm1279_vm1 = vcmask 130048  }
   0xe   : > { %725 = vst.msk [vmem:[#allocation2 + $0x30] sm:$0xf] %vm712_vm0, %v7668_v1  ;;  %728 = vst.msk [vmem:[#allocation2 + $0x3c] sm:$0xf] %vm712_vm0, %v7668_v1  ;;  %7290 = vmatprep.subr.bf16.mxu1 %v7724_v4  ;;  %s6926_s30 = sshll.u32 %s10099_s22, 7  ;;  %7324 = vmatprep.subr.bf16.mxu0 %v7775_v5 }
   0xf   : > { %729 = vst.msk [vmem:[#allocation2 + $0x40] sm:$0xf] %vm712_vm0, %v7668_v1  ;;  %732 = vst.msk [vmem:[#allocation2 + $0x4c] sm:$0xf] %vm712_vm0, %v7668_v1  ;;  %s7785_s9 = scalar_lea.vmem %s9737_s0, %s6926_s30  ;;  %v7799_v15 = vld [vmem:[%s9739_s2] ss:$0 sm:$0xff]  ;;  %s9547_s11 = scalar_lea.vmem %s9741_s4, %s6926_s30 }
  0x10   : > { %733 = vst.msk [vmem:[#allocation2 + $0x50] sm:$0xf] %vm712_vm0, %v7668_v1  ;;  %736 = vst.msk [vmem:[#allocation2 + $0x5c] sm:$0xf] %vm712_vm0, %v7668_v1  ;;  %v7025_v7 = vld [vmem:[%s7785_s9] sm:$0xff]   ;;  %v7094_v8 = vld [vmem:[%s7785_s9 + $0x38] sm:$0xff]  }
  0x11   : > { %737 = vst.msk [vmem:[#allocation2 + $0x60] sm:$0xf] %vm712_vm0, %v7668_v1  ;;  %740 = vst.msk [vmem:[#allocation2 + $0x6c] sm:$0xf] %vm712_vm0, %v7668_v1  ;;  %v7095_v9 = vld [vmem:[%s7785_s9 + $0x40] sm:$0xff]   ;;  %v7026_v10 = vunpack.c.l.bf16 %v7025_v7  ;;  %v7027_v11 = vunpack.c.h.bf16 %v7025_v7  ;;  %v7054_v12 = vunpack.c.l.bf16 %v7094_v8  ;;  %v7055_v13 = vunpack.c.h.bf16 %v7094_v8  ;;  %v7088_v14 = vld [vmem:[%s7785_s9 + $0x8] sm:$0xff]  }
  0x12   : > { %741 = vst.msk [vmem:[#allocation2 + $0x70] sm:$0xf] %vm712_vm0, %v7668_v1  ;;  %744 = vst.msk [vmem:[#allocation2 + $0x7c] sm:$0xf] %vm712_vm0, %v7668_v1  ;;  %v7058_v16 = vunpack.c.l.bf16 %v7095_v9  ;;  %v7059_v17 = vunpack.c.h.bf16 %v7095_v9  ;;  %v7030_v18 = vunpack.c.l.bf16 %v7088_v14  ;;  %v7031_v19 = vunpack.c.h.bf16 %v7088_v14  ;;  %v7089_v46 = vld [vmem:[%s7785_s9 + $0x10] sm:$0xff]   ;;  %v7096_v47 = vld [vmem:[%s7785_s9 + $0x48] sm:$0xff]  }
  0x13   : > { %745 = vst.msk [vmem:[#allocation2 + $0x80] sm:$0xf] %vm712_vm0, %v7668_v1  ;;  %748 = vst.msk [vmem:[#allocation2 + $0x8c] sm:$0xf] %vm712_vm0, %v7668_v1  ;;  %v346_v22 = vmul.f32 %v7026_v10, %v7790_v6  ;;  %v347_v23 = vmul.f32 %v7027_v11, %v7790_v6  ;;  %v360_v24 = vmul.f32 %v7054_v12, %v7790_v6  ;;  %v7034_v57 = vunpack.c.l.bf16 %v7089_v46  ;;  %v7097_v0 = vld [vmem:[%s7785_s9 + $0x50] sm:$0xff]   ;;  %s6461_s30 = sshll.u32 %s10099_s22, 3 }
  0x14   : > { %749 = vst.msk [vmem:[#allocation2 + $0x90] sm:$0xf] %vm712_vm0, %v7668_v1  ;;  %752 = vst.msk [vmem:[#allocation2 + $0x9c] sm:$0xf] %vm712_vm0, %v7668_v1  ;;  %v361_v25 = vmul.f32 %v7055_v13, %v7790_v6  ;;  %v362_v37 = vmul.f32 %v7058_v16, %v7790_v6  ;;  %v363_v41 = vmul.f32 %v7059_v17, %v7790_v6  ;;  %v7035_v58 = vunpack.c.h.bf16 %v7089_v46  ;;  %v7844_v17 = vld [vmem:[%s7785_s9 + $0x18] sm:$0xff]   ;;  %s268_s14 = scalar_lea.vmem %s9742_s5, %s6461_s30  ;;  %s272_s17 = scalar_lea.vmem %s9743_s6, %s6461_s30 }
  0x15   : > { %753 = vst.msk [vmem:[#allocation2 + $0xa0] sm:$0xf] %vm712_vm0, %v7668_v1  ;;  %756 = vst.msk [vmem:[#allocation2 + $0xac] sm:$0xf] %vm712_vm0, %v7668_v1  ;;  %v384_v31 = vadd.f32 %v7799_v15, %v346_v22  ;;  %v385_v32 = vadd.f32 %v7799_v15, %v347_v23  ;;  %v398_v33 = vadd.f32 %v7799_v15, %v360_v24  ;;  %v7062_v59 = vunpack.c.l.bf16 %v7096_v47 }
  0x16   : > { %757 = vst.msk [vmem:[#allocation2 + $0xb0] sm:$0xf] %vm712_vm0, %v7668_v1  ;;  %760 = vst.msk [vmem:[#allocation2 + $0xbc] sm:$0xf] %vm712_vm0, %v7668_v1  ;;  %v399_v36 = vadd.f32 %v7799_v15, %v361_v25  ;;  %v400_v51 = vadd.f32 %v7799_v15, %v362_v37  ;;  %v401_v53 = vadd.f32 %v7799_v15, %v363_v41  ;;  %v7063_v63 = vunpack.c.h.bf16 %v7096_v47  ;;  %v7866_v47 = vld [vmem:[%s9740_s3 + $0x20] sm:$0xff]  }
  0x17   : > { %761 = vst.msk [vmem:[#allocation2 + $0xc0] sm:$0xf] %vm712_vm0, %v7668_v1  ;;  %764 = vst.msk [vmem:[#allocation2 + $0xcc] sm:$0xf] %vm712_vm0, %v7668_v1  ;;  %v416_v38 = vmax.f32 %v384_v31, 0.0  ;;  %v417_v39 = vmax.f32 %v385_v32, 0.0  ;;  %v348_v54 = vmul.f32 %v7030_v18, %v7790_v6  ;;  %v349_v55 = vmul.f32 %v7031_v19, %v7790_v6 }
  0x18   : > { %765 = vst.msk [vmem:[#allocation2 + $0xd0] sm:$0xf] %vm712_vm0, %v7668_v1  ;;  %768 = vst.msk [vmem:[#allocation2 + $0xdc] sm:$0xf] %vm712_vm0, %v7668_v1  ;;  %v430_v40 = vmax.f32 %v398_v33, 0.0  ;;  %v431_v45 = vmax.f32 %v399_v36, 0.0  ;;  %v364_v7 = vmul.f32 %v7062_v59, %v7790_v6  ;;  %v365_v11 = vmul.f32 %v7063_v63, %v7790_v6 }
  0x19   : > { %769 = vst.msk [vmem:[#allocation2 + $0xe0] sm:$0xf] %vm712_vm0, %v7668_v1  ;;  %772 = vst.msk [vmem:[#allocation2 + $0xec] sm:$0xf] %vm712_vm0, %v7668_v1  ;;  %v6929_v48 = vpack.c.bf16 %v416_v38, %v416_v38  ;;  %v6930_v49 = vpack.c.bf16 %v417_v39, %v417_v39  ;;  %v432_v56 = vmax.f32 %v400_v51, 0.0  ;;  %v433_v60 = vmax.f32 %v401_v53, 0.0 }
  0x1a   : > { %773 = vst.msk [vmem:[#allocation2 + $0xf0] sm:$0xf] %vm712_vm0, %v7668_v1  ;;  %776 = vst.msk [vmem:[#allocation2 + $0xfc] sm:$0xf] %vm712_vm0, %v7668_v1  ;;  %v6957_v50 = vpack.c.bf16 %v430_v40, %v430_v40  ;;  %v6958_v52 = vpack.c.bf16 %v431_v45, %v431_v45  ;;  %v386_v61 = vadd.f32 %v7799_v15, %v348_v54  ;;  %v7066_v16 = vunpack.c.l.bf16 %v7097_v0  ;;  %v7847_v18 = vld [vmem:[%s7785_s9 + $0x20] sm:$0xff]  }
  0x1b   : > { %777 = vst.msk [vmem:[#allocation2 + $0x100] sm:$0xf] %vm712_vm0, %v7668_v1  ;;  %780 = vst.msk [vmem:[#allocation2 + $0x10c] sm:$0xf] %vm712_vm0, %v7668_v1  ;;  %v387_v62 = vadd.f32 %v7799_v15, %v349_v55  ;;  %v6961_v1 = vpack.c.bf16 %v432_v56, %v432_v56  ;;  %v6962_v8 = vpack.c.bf16 %v433_v60, %v433_v60  ;;  %v7067_v22 = vunpack.c.h.bf16 %v7097_v0 }
  0x1c   : > { %714 = vst.msk [vmem:[#allocation2 + $0x4] sm:$0xf] %vm712_vm0, %v6466_v3  ;;  %715 = vst.msk [vmem:[#allocation2 + $0x8] sm:$0xf] %vm712_vm0, %v6465_v2  ;;  %v418_v9 = vmax.f32 %v386_v61, 0.0  ;;  %v7841_v14 = vadd.f32 %v7799_v15, %v364_v7  ;;  %v7038_v31 = vunpack.c.l.bf16 %v7844_v17  ;;  %v7039_v32 = vunpack.c.h.bf16 %v7844_v17 }
  0x1d   : > { %713 = vst.msk [vmem:[#allocation2] sm:$0xf] %vm712_vm0, %v6465_v2  ;;  %716 = vst.msk [vmem:[#allocation2 + $0xc] sm:$0xf] %vm712_vm0, %v6466_v3  ;;  %v419_v10 = vmax.f32 %v387_v62, 0.0  ;;  %v7042_v33 = vunpack.c.l.bf16 %v7847_v18 }
  0x1e   : > { %781 = vst.msk [vmem:[#allocation2 + $0x110] sm:$0xf] %vm712_vm0, %v6465_v2  ;;  %782 = vst.msk [vmem:[#allocation2 + $0x114] sm:$0xf] %vm712_vm0, %v6466_v3  ;;  %v6933_v19 = vpack.c.bf16 %v418_v9, %v418_v9  ;;  %v434_v25 = vmax.f32 %v7841_v14, 0.0  ;;  %v7907_v9 = vld [vmem:[%s9740_s3 + $0x18] sm:$0xff]  }
  0x1f   : > { %783 = vst.msk [vmem:[#allocation2 + $0x118] sm:$0xf] %vm712_vm0, %v6465_v2  ;;  %784 = vst.msk [vmem:[#allocation2 + $0x11c] sm:$0xf] %vm712_vm0, %v6466_v3  ;;  %v350_v2 = vmul.f32 %v7034_v57, %v7790_v6  ;;  %v351_v3 = vmul.f32 %v7035_v58, %v7790_v6  ;;  %vm833_vm2 = vsmask.f32 256 }
  0x20   : > { %718 = vst.msk [vmem:[#allocation2 + $0x14] sm:$0xf] %vm712_vm0, %v6929_v48  ;;  %719 = vst.msk [vmem:[#allocation2 + $0x18] sm:$0xf] %vm712_vm0, %v6930_v49  ;;  %v6965_v14 = vpack.c.bf16 %v434_v25, %v434_v25  ;;  %vm834_vm3 = vsmask.f32 4368 }
  0x21   : > { %746 = vst.msk [vmem:[#allocation2 + $0x84] sm:$0xf] %vm712_vm0, %v6957_v50  ;;  %747 = vst.msk [vmem:[#allocation2 + $0x88] sm:$0xf] %vm712_vm0, %v6958_v52  ;;  %v388_v12 = vadd.f32 %v7799_v15, %v350_v2  ;;  %v389_v13 = vadd.f32 %v7799_v15, %v351_v3  ;;  %vm1800_vm4 = vsmask.f32 3328 }
  0x22   : > { %750 = vst.msk [vmem:[#allocation2 + $0x94] sm:$0xf] %vm712_vm0, %v6961_v1  ;;  %751 = vst.msk [vmem:[#allocation2 + $0x98] sm:$0xf] %vm712_vm0, %v6962_v8  ;;  %vm1801_vm5 = vsmask.f32 7440 }
  0x23   : > { %v786_v20 = vld [vmem:[#allocation2 + $0x4] sm:$0xf]  ;;  %v787_v21 = vld [vmem:[#allocation2 + $0x8] sm:$0xf]  ;;  %v420_v23 = vmax.f32 %v388_v12, 0.0  ;;  %v421_v24 = vmax.f32 %v389_v13, 0.0  ;;  %vm8105_vm6 = vmor %vm833_vm2, %vm834_vm3 }
  0x24   : > { %v842_v26 = vshrl.u32 %v786_v20, 16  ;;  %v845_v27 = vshll.u32 %v786_v20, 16  ;;  %v851_v28 = vshrl.u32 %v787_v21, 16  ;;  %v854_v29 = vshll.u32 %v787_v21, 16  ;;  %722 = vst.msk [vmem:[#allocation2 + $0x24] sm:$0xf] %vm712_vm0, %v6933_v19  ;;  %vm8124_vm7 = vmor %vm1800_vm4, %vm1801_vm5 }
  0x25   : > { %v6549_v30 = vcombine.low %v786_v20, %v787_v21  ;;  %v6934_v20 = vpack.c.bf16 %v419_v10, %v419_v10  ;;  %v7851_v21 = vadd.f32 %v7799_v15, %v365_v11  ;;  %v6937_v55 = vpack.c.bf16 %v420_v23, %v420_v23  ;;  %754 = vst.msk [vmem:[#allocation2 + $0xa4] sm:$0xf] %vm712_vm0, %v6965_v14 }
  0x26   : > { %v7808_v34 = vrot.slane %v842_v26, 7  ;;  %v853_v35 = vrot.slane %v851_v28, 7  ;;  %v7855_v26 = vmul.f32 %v7066_v16, %v7790_v6  ;;  %v6938_v56 = vpack.c.bf16 %v421_v24, %v421_v24 }
  0x27   : > { %7258 = vmatprep.mubr.msk.bf16.mxu0 %vm1279_vm1, %v6549_v30  ;;  %v790_v28 = vld [vmem:[#allocation2 + $0x18] sm:$0xf]  ;;  %723 = vst.msk [vmem:[#allocation2 + $0x28] sm:$0xf] %vm712_vm0, %v6934_v20  ;;  %v367_v30 = vmul.f32 %v7067_v22, %v7790_v6  ;;  %726 = vst.msk [vmem:[#allocation2 + $0x34] sm:$0xf] %vm712_vm0, %v6937_v55 }
  0x28   : > { %v7815_v42 = vor.u32 %v845_v27, %v7808_v34  ;;  %v7818_v44 = vor.u32 %v854_v29, %v853_v35  ;;  %v789_v27 = vld [vmem:[#allocation2 + $0x14] sm:$0xf]  ;;  %v810_v29 = vld [vmem:[#allocation2 + $0x84] sm:$0xf]  ;;  %v873_v37 = vshrl.u32 %v790_v28, 16  ;;  %v876_v38 = vshll.u32 %v790_v28, 16 }
  0x29   : > { %v864_v35 = vshrl.u32 %v789_v27, 16  ;;  %v867_v36 = vshll.u32 %v789_v27, 16  ;;  %v811_v39 = vld [vmem:[#allocation2 + $0x88] sm:$0xf]  ;;  %v6550_v40 = vcombine.low %v789_v27, %v790_v28  ;;  %v1018_v41 = vshrl.u32 %v810_v29, 16  ;;  %v7098_v22 = vld [vmem:[%s7785_s9 + $0x58] sm:$0xff]  }
  0x2a   : > { %v1021_v45 = vshll.u32 %v810_v29, 16  ;;  %v1027_v46 = vshrl.u32 %v811_v39, 16  ;;  %v875_v49 = vrot.slane %v873_v37, 7  ;;  %v1030_v50 = vshll.u32 %v811_v39, 16  ;;  %v7873_v54 = vld [vmem:[#allocation2 + $0x94] sm:$0xf] }
  0x2b   : > { %v7868_v48 = vrot.slane %v864_v35, 7  ;;  %v6557_v51 = vcombine.low %v810_v29, %v811_v39  ;;  %7259 = vmatmul.mubr.msk.bf16.vlgmr.msra.gmra.mxu0 %vm1279_vm1, %v6550_v40  ;;  %v7871_v52 = vrot.slane %v1018_v41, 7  ;;  %v7882_v60 = vld [vmem:[#allocation2 + $0x98] sm:$0xf]  ;;  %v1040_v61 = vshrl.u32 %v7873_v54, 16 }
  0x2c   : > { %v1029_v53 = vrot.slane %v1027_v46, 7  ;;  %v7879_v59 = vor.u32 %v876_v38, %v875_v49  ;;  %7325 = vmatpush3.bf16.msra.mxu0 %v7775_v5  ;;  %727 = vst.msk [vmem:[#allocation2 + $0x38] sm:$0xf] %vm712_vm0, %v6938_v56  ;;  %v1049_v5 = vshrl.u32 %v7882_v60, 16  ;;  %v6558_v7 = vcombine.low %v7873_v54, %v7882_v60  ;;  %v7902_v8 = vld [vmem:[#allocation2 + $0x24] sm:$0xf] }
  0x2d   : > { %v7876_v57 = vor.u32 %v867_v36, %v7868_v48  ;;  %7274 = vmatprep.mubr.msk.bf16.mxu1 %vm1279_vm1, %v6557_v51  ;;  %v7887_v62 = vor.u32 %v1021_v45, %v7871_v52  ;;  %7392 = vmatprep.subr.bf16.mxu0 %v7866_v47  ;;  %v7896_v2 = vrot.slane %v1040_v61, 7  ;;  %v886_v11 = vshrl.u32 %v7902_v8, 16 }
  0x2e   : > { %v7890_v0 = vor.u32 %v1030_v50, %v1029_v53  ;;  %v7909_v10 = vld [vmem:[#allocation2 + $0x28] sm:$0xf]  ;;  %v435_v13 = vmax.f32 %v7851_v21, 0.0  ;;  %v7914_v16 = vrot.slane %v1049_v5, 7  ;;  %7275 = vmatmul.mubr.msk.bf16.vlgmr.msra.gmra.mxu1 %vm1279_vm1, %v6558_v7  ;;  %v404_v21 = vadd.f32 %v7799_v15, %v7855_v26  ;;  %v7940_v37 = vld [vmem:[#allocation2 + $0x34] sm:$0xf] }
  0x2f   : > { %v895_v17 = vshrl.u32 %v7909_v10, 16  ;;  %v6551_v20 = vcombine.low %v7902_v8, %v7909_v10  ;;  %7291 = vmatpush3.bf16.msra.mxu1 %v7724_v4  ;;  %v7923_v23 = vrot.slane %v886_v11, 7  ;;  %v405_v25 = vadd.f32 %v7799_v15, %v367_v30  ;;  %v7099_v5 = vld [vmem:[%s7785_s9 + $0x60] sm:$0xff]  }
  0x30   : > { %v6966_v24 = vpack.c.bf16 %v435_v13, %v435_v13  ;;  %v352_v28 = vmul.f32 %v7038_v31, %v7790_v6  ;;  %v353_v29 = vmul.f32 %v7039_v32, %v7790_v6  ;;  %v7043_v4 = vunpack.c.h.bf16 %v7847_v18  ;;  %7358 = vmatprep.subr.bf16.mxu1 %v7907_v9  ;;  %v7960_v7 = vld [vmem:[#allocation2 + $0xa4] sm:$0xf] }
  0x31   : > { %v7929_v27 = vrot.slane %v895_v17, 7  ;;  %7262 = vmatprep.mubr.msk.bf16.mxu0 %vm1279_vm1, %v6551_v20  ;;  %v436_v35 = vmax.f32 %v404_v21, 0.0  ;;  %v437_v36 = vmax.f32 %v405_v25, 0.0  ;;  %v354_v26 = vmul.f32 %v7042_v33, %v7790_v6  ;;  %9761 = vst [vmem:[#allocation3_spill] sm:$0xff] %v7960_v7 }
  0x32   : > { %755 = vst.msk [vmem:[#allocation2 + $0xa8] sm:$0xf] %vm712_vm0, %v6966_v24  ;;  %v7070_v30 = vunpack.c.l.bf16 %v7098_v22  ;;  %v390_v31 = vadd.f32 %v7799_v15, %v352_v28  ;;  %v391_v32 = vadd.f32 %v7799_v15, %v353_v29  ;;  %v355_v39 = vmul.f32 %v7043_v4, %v7790_v6 }
  0x33   : > { %v7942_v38 = vld [vmem:[#allocation2 + $0x38] sm:$0xf]  ;;  %v7071_v40 = vunpack.c.h.bf16 %v7098_v22  ;;  %v908_v41 = vshrl.u32 %v7940_v37, 16  ;;  %v6969_v49 = vpack.c.bf16 %v436_v35, %v436_v35  ;;  %v6970_v50 = vpack.c.bf16 %v437_v36, %v437_v36  ;;  %v7092_v36 = vld [vmem:[%s7785_s9 + $0x28] sm:$0xff]  }
  0x34   : > { %v917_v18 = vshrl.u32 %v7942_v38, 16  ;;  %v6552_v46 = vcombine.low %v7940_v37, %v7942_v38  ;;  %v422_v51 = vmax.f32 %v390_v31, 0.0  ;;  %v423_v56 = vmax.f32 %v391_v32, 0.0 }
  0x35   : > { %v7953_v53 = vrot.slane %v908_v41, 7  ;;  %v392_v61 = vadd.f32 %v7799_v15, %v354_v26  ;;  %758 = vst.msk [vmem:[#allocation2 + $0xb4] sm:$0xf] %vm712_vm0, %v6969_v49  ;;  %759 = vst.msk [vmem:[#allocation2 + $0xb8] sm:$0xf] %vm712_vm0, %v6970_v50  ;;  %v393_v13 = vadd.f32 %v7799_v15, %v355_v39  ;;  %v368_v14 = vmul.f32 %v7070_v30, %v7790_v6  ;;  %v7093_v39 = vld [vmem:[%s7785_s9 + $0x30] sm:$0xff]  }
  0x36   : > { %v7955_v55 = vrot.slane %v917_v18, 7  ;;  %7263 = vmatmul.mubr.msk.bf16.gmra.mxu0 %vm1279_vm1, %v6552_v46  ;;  %v6941_v11 = vpack.c.bf16 %v422_v51, %v422_v51  ;;  %v369_v17 = vmul.f32 %v7071_v40, %v7790_v6  ;;  %v1062_v20 = vshrl.u32 %v7960_v7, 16 }
  0x37   : > { %v6942_v24 = vpack.c.bf16 %v423_v56, %v423_v56  ;;  %v424_v21 = vmax.f32 %v392_v61, 0.0  ;;  %v425_v28 = vmax.f32 %v393_v13, 0.0  ;;  %v406_v29 = vadd.f32 %v7799_v15, %v368_v14 }
  0x38   : > { %730 = vst.msk [vmem:[#allocation2 + $0x44] sm:$0xf] %vm712_vm0, %v6941_v11  ;;  %v407_v4 = vadd.f32 %v7799_v15, %v369_v17  ;;  %v7074_v35 = vunpack.c.l.bf16 %v7099_v5  ;;  %v7975_v26 = vrot.slane %v1062_v20, 7  ;;  %v7075_v50 = vunpack.c.h.bf16 %v7099_v5 }
  0x39   : > { %v7969_v25 = vld [vmem:[#allocation2 + $0xa8] sm:$0xf]  ;;  %731 = vst.msk [vmem:[#allocation2 + $0x48] sm:$0xf] %vm712_vm0, %v6942_v24  ;;  %v6945_v40 = vpack.c.bf16 %v424_v21, %v424_v21  ;;  %v6946_v41 = vpack.c.bf16 %v425_v28, %v425_v28  ;;  %v438_v18 = vmax.f32 %v406_v29, 0.0  ;;  %v7046_v56 = vunpack.c.l.bf16 %v7092_v36 }
  0x3a   : > { %9762 = vst [vmem:[#allocation4_spill] sm:$0xff] %v7969_v25  ;;  %v1071_v30 = vshrl.u32 %v7969_v25, 16  ;;  %v6559_v32 = vcombine.low %v7960_v7, %v7969_v25  ;;  %v439_v46 = vmax.f32 %v407_v4, 0.0  ;;  %v370_v51 = vmul.f32 %v7074_v35, %v7790_v6 }
  0x3b   : > { %734 = vst.msk [vmem:[#allocation2 + $0x54] sm:$0xf] %vm712_vm0, %v6945_v40  ;;  %735 = vst.msk [vmem:[#allocation2 + $0x58] sm:$0xf] %vm712_vm0, %v6946_v41  ;;  %v6973_v61 = vpack.c.bf16 %v438_v18, %v438_v18  ;;  %v7047_v13 = vunpack.c.h.bf16 %v7092_v36  ;;  %v7050_v14 = vunpack.c.l.bf16 %v7093_v39  ;;  %v371_v24 = vmul.f32 %v7075_v50, %v7790_v6 }
  0x3c   : > { %v7983_v49 = vrot.slane %v1071_v30, 7  ;;  %7278 = vmatprep.mubr.msk.bf16.mxu1 %vm1279_vm1, %v6559_v32  ;;  %v6974_v11 = vpack.c.bf16 %v439_v46, %v439_v46  ;;  %v7989_v17 = vld [vmem:[#allocation2 + $0xb4] sm:$0xf]  ;;  %v7991_v20 = vld [vmem:[#allocation2 + $0xb8] sm:$0xf]  ;;  %v408_v21 = vadd.f32 %v7799_v15, %v370_v51  ;;  %v356_v5 = vmul.f32 %v7046_v56, %v7790_v6 }
  0x3d   : > { %9764 = vst [vmem:[#allocation6_spill] sm:$0xff] %v7989_v17  ;;  %9765 = vst [vmem:[#allocation7_spill] sm:$0xff] %v7991_v20  ;;  %v7051_v28 = vunpack.c.h.bf16 %v7093_v39  ;;  %v1084_v29 = vshrl.u32 %v7989_v17, 16  ;;  %v1093_v35 = vshrl.u32 %v7991_v20, 16  ;;  %v6560_v30 = vcombine.low %v7989_v17, %v7991_v20  ;;  %v7101_v56 = vld [vmem:[%s7785_s9 + $0x70] sm:$0xff]  }
  0x3e   : > { %9763 = vst [vmem:[#allocation5_spill] sm:$0xff] %v7983_v49  ;;  %762 = vst.msk [vmem:[#allocation2 + $0xc4] sm:$0xf] %vm712_vm0, %v6973_v61  ;;  %v409_v40 = vadd.f32 %v7799_v15, %v371_v24  ;;  %v440_v39 = vmax.f32 %v408_v21, 0.0  ;;  %v357_v41 = vmul.f32 %v7047_v13, %v7790_v6  ;;  %v358_v3 = vmul.f32 %v7050_v14, %v7790_v6 }
  0x3f   : > { %763 = vst.msk [vmem:[#allocation2 + $0xc8] sm:$0xf] %vm712_vm0, %v6974_v11  ;;  %v8004_v32 = vld [vmem:[#allocation2 + $0x44] sm:$0xf]  ;;  %v8008_v18 = vrot.slane %v1084_v29, 7  ;;  %v8010_v46 = vrot.slane %v1093_v35, 7  ;;  %7279 = vmatmul.mubr.msk.bf16.gmra.mxu1 %vm1279_vm1, %v6560_v30  ;;  %v394_v35 = vadd.f32 %v7799_v15, %v356_v5  ;;  %v7082_v12 = vunpack.c.l.bf16 %v7101_v56 }
  0x40   : > { %v8012_v50 = vld [vmem:[#allocation2 + $0x48] sm:$0xf]  ;;  %v930_v51 = vshrl.u32 %v8004_v32, 16  ;;  %v441_v13 = vmax.f32 %v409_v40, 0.0  ;;  %v6977_v29 = vpack.c.bf16 %v440_v39, %v440_v39  ;;  %v395_v36 = vadd.f32 %v7799_v15, %v357_v41 }
  0x41   : > { %9766 = vst [vmem:[#allocation8_spill] sm:$0xff] %v8008_v18  ;;  %9767 = vst [vmem:[#allocation9_spill] sm:$0xff] %v8010_v46  ;;  %v939_v61 = vshrl.u32 %v8012_v50, 16  ;;  %v6553_v24 = vcombine.low %v8004_v32, %v8012_v50  ;;  %v359_v40 = vmul.f32 %v7051_v28, %v7790_v6  ;;  %v426_v28 = vmax.f32 %v394_v35, 0.0  ;;  %v7100_v11 = vld [vmem:[%s7785_s9 + $0x68] sm:$0xff]  }
  0x42   : > { %v8021_v21 = vrot.slane %v930_v51, 7  ;;  %v8028_v30 = vld [vmem:[#allocation2 + $0x54] sm:$0xf]  ;;  %v8030_v31 = vld [vmem:[#allocation2 + $0x58] sm:$0xf]  ;;  %v6978_v22 = vpack.c.bf16 %v441_v13, %v441_v13  ;;  %v427_v13 = vmax.f32 %v395_v36, 0.0  ;;  %v396_v1 = vadd.f32 %v7799_v15, %v358_v3 }
  0x43   : > { %v8025_v4 = vrot.slane %v939_v61, 7  ;;  %7266 = vmatprep.mubr.msk.bf16.mxu0 %vm1279_vm1, %v6553_v24  ;;  %v952_v51 = vshrl.u32 %v8028_v30, 16  ;;  %v961_v39 = vshrl.u32 %v8030_v31, 16  ;;  %766 = vst.msk [vmem:[#allocation2 + $0xd4] sm:$0xf] %vm712_vm0, %v6977_v29  ;;  %v6554_v61 = vcombine.low %v8028_v30, %v8030_v31 }
  0x44   : > { %767 = vst.msk [vmem:[#allocation2 + $0xd8] sm:$0xf] %vm712_vm0, %v6978_v22  ;;  %v6949_v3 = vpack.c.bf16 %v426_v28, %v426_v28  ;;  %v1752_v35 = vld [vmem:[#allocation2 + $0x4] sm:$0xf]  ;;  %v397_v29 = vadd.f32 %v7799_v15, %v359_v40  ;;  %v428_v45 = vmax.f32 %v396_v1, 0.0  ;;  %v7079_v22 = vunpack.c.h.bf16 %v7100_v11 }
  0x45   : > { %v8041_v24 = vld [vmem:[#allocation2 + $0xc4] sm:$0xf]  ;;  %v8047_v63 = vrot.slane %v952_v51, 7  ;;  %v8049_v5 = vrot.slane %v961_v39, 7  ;;  %7267 = vmatmul.mubr.msk.bf16.gmra.mxu0 %vm1279_vm1, %v6554_v61  ;;  %v6950_v39 = vpack.c.bf16 %v427_v13, %v427_v13  ;;  %v7078_v61 = vunpack.c.l.bf16 %v7100_v11  ;;  %v1757_v46 = vld [vmem:[#allocation2 + $0x1c] sm:$0x1] }
  0x46   : > { %9768 = vst [vmem:[#allocation10_spill] sm:$0xff] %v8041_v24  ;;  %v8043_v14 = vld [vmem:[#allocation2 + $0xc8] sm:$0xf]  ;;  %v1106_v41 = vshrl.u32 %v8041_v24, 16  ;;  %738 = vst.msk [vmem:[#allocation2 + $0x64] sm:$0xf] %vm712_vm0, %v6949_v3  ;;  %v7083_v58 = vunpack.c.h.bf16 %v7101_v56  ;;  %v374_v40 = vmul.f32 %v7082_v12, %v7790_v6 }
  0x47   : > { %9769 = vst [vmem:[#allocation11_spill] sm:$0xff] %v8043_v14  ;;  %v1115_v33 = vshrl.u32 %v8043_v14, 16  ;;  %v6561_v36 = vcombine.low %v8041_v24, %v8043_v14  ;;  %739 = vst.msk [vmem:[#allocation2 + $0x68] sm:$0xf] %vm712_vm0, %v6950_v39  ;;  %v429_v28 = vmax.f32 %v397_v29, 0.0  ;;  %v1804_v13 = vshrl.u32 %v1752_v35, 16 }
  0x48   : > { %v8060_v51 = vrot.slane %v1106_v41, 7  ;;  %v6953_v41 = vpack.c.bf16 %v428_v45, %v428_v45  ;;  %v372_v1 = vmul.f32 %v7078_v61, %v7790_v6  ;;  %v375_v45 = vmul.f32 %v7083_v58, %v7790_v6 }
  0x49   : > { %v8063_v19 = vrot.slane %v1115_v33, 7  ;;  %7282 = vmatprep.mubr.msk.bf16.mxu1 %vm1279_vm1, %v6561_v36  ;;  %v373_v33 = vmul.f32 %v7079_v22, %v7790_v6  ;;  %v1807_v36 = vshll.u32 %v1752_v35, 16  ;;  %v6954_v39 = vpack.c.bf16 %v429_v28, %v429_v28  ;;  %v1753_v35 = vld [vmem:[#allocation2 + $0x8] sm:$0xf] }
  0x4a   : > { %9770 = vst [vmem:[#allocation12_spill] sm:$0xff] %v8060_v51  ;;  %v8068_v43 = vld [vmem:[#allocation2 + $0xd4] sm:$0xf]  ;;  %742 = vst.msk [vmem:[#allocation2 + $0x74] sm:$0xf] %vm712_vm0, %v6953_v41  ;;  %v410_v12 = vadd.f32 %v7799_v15, %v372_v1  ;;  %v412_v41 = vadd.f32 %v7799_v15, %v374_v40  ;;  %v413_v6 = vadd.f32 %v7799_v15, %v375_v45  ;;  %v1806_v14 = vrot.slane %v1804_v13, 4 }
  0x4b   : > { %9771 = vst [vmem:[#allocation13_spill] sm:$0xff] %v8063_v19  ;;  %9772 = vst [vmem:[#allocation14_spill] sm:$0xff] %v8068_v43  ;;  %v8073_v3 = vld [vmem:[#allocation2 + $0xd8] sm:$0xf]  ;;  %v1128_v11 = vshrl.u32 %v8068_v43, 16  ;;  %v411_v28 = vadd.f32 %v7799_v15, %v373_v33  ;;  %v1813_v19 = vshll.u32 %v1753_v35, 16 }
  0x4c   : > { %9773 = vst [vmem:[#allocation15_spill] sm:$0xff] %v8073_v3  ;;  %v1137_v56 = vshrl.u32 %v8073_v3, 16  ;;  %v6562_v22 = vcombine.low %v8068_v43, %v8073_v3  ;;  %743 = vst.msk [vmem:[#allocation2 + $0x78] sm:$0xf] %vm712_vm0, %v6954_v39  ;;  %v442_v29 = vmax.f32 %v410_v12, 0.0  ;;  %v1809_v3 = vrot.slane %v1807_v36, 5 }
  0x4d   : > { %v8084_v61 = vrot.slane %v1128_v11, 7  ;;  %v8093_v43 = vld [vmem:[#allocation2 + $0x64] sm:$0xf]  ;;  %v443_v1 = vmax.f32 %v411_v28, 0.0  ;;  %v444_v11 = vmax.f32 %v412_v41, 0.0  ;;  %v1847_v25 = vshll.u32 %v1757_v46, 16 }
  0x4e   : > { %v8090_v58 = vrot.slane %v1137_v56, 7  ;;  %7283 = vmatmul.mubr.msk.bf16.gmra.mxu1 %vm1279_vm1, %v6562_v22  ;;  %v8095_v39 = vld [vmem:[#allocation2 + $0x68] sm:$0xf]  ;;  %v974_v33 = vshrl.u32 %v8093_v43, 16  ;;  %v6981_v15 = vpack.c.bf16 %v442_v29, %v442_v29  ;;  %v1810_v45 = vor.u32 %v1809_v3, %v1806_v14  ;;  %v1754_v12 = vld [vmem:[#allocation2 + $0xc] sm:$0x1] }
  0x4f   : > { %9774 = vst [vmem:[#allocation16_spill] sm:$0xff] %v8084_v61  ;;  %v445_v61 = vmax.f32 %v413_v6, 0.0  ;;  %v983_v56 = vshrl.u32 %v8095_v39, 16  ;;  %v6555_v13 = vcombine.low %v8093_v43, %v8095_v39  ;;  %v6982_v36 = vpack.c.bf16 %v443_v1, %v443_v1  ;;  %v785_v28 = vld [vmem:[#allocation2] sm:$0x8] }
  0x50   : > { %9775 = vst [vmem:[#allocation17_spill] sm:$0xff] %v8090_v58  ;;  %v8109_v6 = vrot.slane %v974_v33, 7  ;;  %770 = vst.msk [vmem:[#allocation2 + $0xe4] sm:$0xf] %vm712_vm0, %v6981_v15  ;;  %v6985_v14 = vpack.c.bf16 %v444_v11, %v444_v11  ;;  %v8114_v22 = vrot.slane %v1810_v45, 4  ;;  %v1817_v45 = vshrl.u32 %v1753_v35, 16 }
  0x51   : > { %v8111_v29 = vld [vmem:[#allocation2 + $0x74] sm:$0xf]  ;;  %v6986_v3 = vpack.c.bf16 %v445_v61, %v445_v61  ;;  %v8116_v1 = vrot.slane %v983_v56, 7  ;;  %7270 = vmatprep.mubr.msk.bf16.mxu0 %vm1279_vm1, %v6555_v13  ;;  %771 = vst.msk [vmem:[#allocation2 + $0xe8] sm:$0xf] %vm712_vm0, %v6982_v36  ;;  %v1815_v61 = vrot.slane %v1813_v19, 5 }
  0x52   : > { %v1755_v40 = vld [vmem:[#allocation2 + $0x14] sm:$0xf]  ;;  %v996_v58 = vshrl.u32 %v8111_v29, 16  ;;  %v1756_v11 = vld [vmem:[#allocation2 + $0x18] sm:$0xf]  ;;  %v1823_v56 = vshll.u32 %v1754_v12, 16 }
  0x53   : > { %v8128_v15 = vld [vmem:[#allocation2 + $0x78] sm:$0xf]  ;;  %774 = vst.msk [vmem:[#allocation2 + $0xf4] sm:$0xf] %vm712_vm0, %v6985_v14  ;;  %775 = vst.msk [vmem:[#allocation2 + $0xf8] sm:$0xf] %vm712_vm0, %v6986_v3  ;;  %v1816_v35 = vsel %vm8124_vm7, %v8114_v22, %v1815_v61 }
  0x54   : > { %v837_v13 = vshrl.u32 %v785_v28, 16  ;;  %v9780_v36 = vrot.slane %v7808_v34, 4  ;;  %v8137_v51 = vrot.slane %v996_v58, 7  ;;  %v1005_v19 = vshrl.u32 %v8128_v15, 16 }
  0x55   : > { %v6556_v14 = vcombine.low %v8111_v29, %v8128_v15  ;;  %v1819_v12 = vrot.slane %v1817_v45, 4  ;;  %v1825_v28 = vrot.slane %v1823_v56, 5  ;;  %v1831_v58 = vshll.u32 %v1755_v40, 16 }
  0x56   : > { %v857_v24 = vsel %vm8105_vm6, %v9780_v36, %v7818_v44  ;;  %v6531_v34 = vrot.slane %v837_v13, 11  ;;  %v8146_v3 = vrot.slane %v1005_v19, 7  ;;  %v1828_v44 = vshrl.u32 %v1755_v40, 16 }
  0x57   : > { %7271 = vmatmul.mubr.msk.bf16.gmra.mxu0 %vm1279_vm1, %v6556_v14  ;;  %v1837_v36 = vshll.u32 %v1756_v11, 16  ;;  %v1820_v17 = vor.u32 %v1819_v12, %v1815_v61  ;;  %v1841_v18 = vshrl.u32 %v1756_v11, 16  ;;  %v8152_v49 = vld [vmem:[#allocation2 + $0xe4] sm:$0xf]  ;;  %v1833_v56 = vrot.slane %v1831_v58, 5 }
  0x58   : > { %v848_v20 = vsel %vm8105_vm6, %v6531_v34, %v7815_v42  ;;  %9781 = vst [vmem:[#allocation18_spill] sm:$0xff] %v8152_v49  ;;  %v1830_v45 = vrot.slane %v1828_v44, 4  ;;  %v8154_v19 = vld [vmem:[#allocation2 + $0xe8] sm:$0xf]  ;;  %v1150_v14 = vshrl.u32 %v8152_v49, 16 }
  0x59   : > { %v6582_v22 = vcombine.low %v848_v20, %v857_v24  ;;  %v1839_v13 = vrot.slane %v1837_v36, 5  ;;  %9782 = vst [vmem:[#allocation19_spill] sm:$0xff] %v8154_v19  ;;  %v1821_v7 = vrot.slane %v1820_v17, 4  ;;  %v1843_v61 = vrot.slane %v1841_v18, 4  ;;  %v788_v18 = vld [vmem:[#allocation2 + $0x10] sm:$0x8] }
  0x5a   : > { %v1159_v12 = vshrl.u32 %v8154_v19, 16  ;;  %v6563_v46 = vcombine.low %v8152_v49, %v8154_v19  ;;  %v8162_v11 = vld [vmem:[#allocation2 + $0xf4] sm:$0xf]  ;;  %v8164_v20 = vld [vmem:[#allocation2 + $0xf8] sm:$0xf]  ;;  %v1834_v24 = vor.u32 %v1833_v56, %v1830_v45  ;;  %v8166_v34 = vrot.slane %v1150_v14, 7 }
  0x5b   : > { %9783 = vst [vmem:[#allocation20_spill] sm:$0xff] %v8162_v11  ;;  %9784 = vst [vmem:[#allocation21_spill] sm:$0xff] %v8164_v20  ;;  %v1172_v44 = vshrl.u32 %v8162_v11, 16  ;;  %v1181_v17 = vshrl.u32 %v8164_v20, 16  ;;  %v6564_v40 = vcombine.low %v8162_v11, %v8164_v20  ;;  %v1826_v45 = vsel %vm8124_vm7, %v1821_v7, %v1825_v28  ;;  %v1758_v56 = vld [vmem:[#allocation2 + $0x24] sm:$0xf] }
  0x5c   : > { %9785 = vst [vmem:[#allocation22_spill] sm:$0xff] %v8166_v34  ;;  %v8171_v36 = vrot.slane %v1159_v12, 7  ;;  %7286 = vmatprep.mubr.msk.bf16.mxu1 %vm1279_vm1, %v6563_v46  ;;  %v1759_v14 = vld [vmem:[#allocation2 + $0x28] sm:$0xf]  ;;  %v6617_v49 = vcombine.low %v1816_v35, %v1826_v45  ;;  %v1835_v34 = vrot.slane %v1834_v24, 4  ;;  %v1844_v46 = vor.u32 %v1843_v61, %v1839_v13 }
  0x5d   : > { %v8179_v19 = vrot.slane %v1172_v44, 7  ;;  %v8181_v58 = vrot.slane %v1181_v17, 7  ;;  %v1760_v12 = vld [vmem:[#allocation2 + $0x2c] sm:$0x1]  ;;  %7287 = vmatmul.mubr.msk.bf16.gmra.mxu1 %vm1279_vm1, %v6564_v40  ;;  %v859_v42 = vshrl.u32 %v788_v18, 16  ;;  %v9788_v20 = vrot.slane %v7868_v48, 4 }
  0x5e   : > { %9786 = vst [vmem:[#allocation23_spill] sm:$0xff] %v8171_v36  ;;  %v1849_v36 = vrot.slane %v1847_v25, 5  ;;  %v791_v28 = vld [vmem:[#allocation2 + $0x20] sm:$0x8]  ;;  %7326 = vmatprep.mubr.msk.bf16.mxu0 %vm1279_vm1, %v6617_v49  ;;  %7292 = vmatprep.mubr.msk.bf16.mxu1 %vm1279_vm1, %v6582_v22  ;;  %v1840_v35 = vsel %vm8124_vm7, %v1835_v34, %v1839_v13  ;;  %v1852_v24 = vshrl.u32 %v1758_v56, 16  ;;  %v1855_v44 = vshll.u32 %v1758_v56, 16 }
  0x5f   : > { %9787 = vst [vmem:[#allocation24_spill] sm:$0xff] %v8181_v58  ;;  %v879_v7 = vsel %vm8105_vm6, %v9788_v20, %v7879_v59  ;;  %v1861_v40 = vshll.u32 %v1759_v14, 16  ;;  %v1845_v61 = vrot.slane %v1844_v46, 4  ;;  %v6532_v25 = vrot.slane %v859_v42, 11  ;;  %v1761_v20 = vld [vmem:[#allocation2 + $0x34] sm:$0xf] }
  0x60   : > { %v1865_v17 = vshrl.u32 %v1759_v14, 16  ;;  %v1871_v18 = vshll.u32 %v1760_v12, 16  ;;  %v1854_v45 = vrot.slane %v1852_v24, 4  ;;  %v1857_v48 = vrot.slane %v1855_v44, 5  ;;  %v1762_v34 = vld [vmem:[#allocation2 + $0x38] sm:$0xf] }
  0x61   : > { %v1863_v58 = vrot.slane %v1861_v40, 5  ;;  %v881_v11 = vshrl.u32 %v791_v28, 16  ;;  %v1850_v59 = vsel %vm8124_vm7, %v1845_v61, %v1849_v36  ;;  %v870_v49 = vsel %vm8105_vm6, %v6532_v25, %v7876_v57  ;;  %v8201_v12 = vld [vmem:[%s9740_s3 + $0x30] sm:$0xff]  }
  0x62   : > { %v1867_v22 = vrot.slane %v1865_v17, 4  ;;  %v1873_v13 = vrot.slane %v1871_v18, 5  ;;  %v6618_v56 = vcombine.low %v1840_v35, %v1850_v59  ;;  %v6583_v46 = vcombine.low %v870_v49, %v879_v7  ;;  %v1763_v35 = vld [vmem:[#allocation2 + $0x3c] sm:$0x1]  ;;  %v794_v18 = vld [vmem:[#allocation2 + $0x30] sm:$0x8] }
  0x63   : > { %v1858_v42 = vor.u32 %v1857_v48, %v1854_v45  ;;  %v6533_v14 = vrot.slane %v881_v11, 11  ;;  %v9789_v36 = vshll.u32 %v7902_v8, 16  ;;  %v893_v57 = vrot.slane %v7923_v23, 4  ;;  %v8213_v11 = vld [vmem:[%s9740_s3 + $0x28] sm:$0xff]  }
  0x64   : > { %v1868_v28 = vor.u32 %v1867_v22, %v1863_v58  ;;  %v9790_v44 = vshll.u32 %v7909_v10, 16  ;;  %7327 = vmatmul.mubr.msk.bf16.vlgmr.msra.gmra.mxu0 %vm1279_vm1, %v6618_v56  ;;  %v1876_v61 = vshrl.u32 %v1761_v20, 16  ;;  %v1879_v25 = vshll.u32 %v1761_v20, 16 }
  0x65   : > { %v891_v24 = vor.u32 %v9789_v36, %v7923_v23  ;;  %v1859_v7 = vrot.slane %v1858_v42, 4  ;;  %v1885_v17 = vshll.u32 %v1762_v34, 16  ;;  %7293 = vmatmul.mubr.msk.bf16.vlgmr.msra.gmra.mxu1 %vm1279_vm1, %v6583_v46  ;;  %7393 = vmatpush3.bf16.msra.mxu0 %v7866_v47  ;;  %v1895_v56 = vshll.u32 %v1763_v35, 16  ;;  %v1764_v46 = vld [vmem:[#allocation2 + $0x44] sm:$0xf] }
  0x66   : > { %v900_v40 = vor.u32 %v9790_v44, %v7929_v27  ;;  %v1869_v8 = vrot.slane %v1868_v28, 4  ;;  %v1889_v27 = vshrl.u32 %v1762_v34, 16  ;;  %7359 = vmatpush3.bf16.msra.mxu1 %v7907_v9  ;;  %v1878_v59 = vrot.slane %v1876_v61, 4  ;;  %7460 = vmatprep.subr.bf16.mxu0 %v8201_v12  ;;  %v1765_v28 = vld [vmem:[#allocation2 + $0x48] sm:$0xf] }
  0x67   : > { %v892_v10 = vsel %vm8105_vm6, %v6533_v14, %v891_v24  ;;  %v1864_v45 = vsel %vm8124_vm7, %v1859_v7, %v1863_v58  ;;  %v1881_v49 = vrot.slane %v1879_v25, 5  ;;  %v1887_v22 = vrot.slane %v1885_v17, 5  ;;  %7426 = vmatprep.subr.bf16.mxu1 %v8213_v11  ;;  %v1766_v35 = vld [vmem:[#allocation2 + $0x4c] sm:$0x1] }
  0x68   : > { %v901_v23 = vsel %vm8105_vm6, %v893_v57, %v900_v40  ;;  %v1874_v47 = vsel %vm8124_vm7, %v1869_v8, %v1873_v13  ;;  %v1891_v20 = vrot.slane %v1889_v27, 4  ;;  %v903_v42 = vshrl.u32 %v794_v18, 16 }
  0x69   : > { %v6584_v48 = vcombine.low %v892_v10, %v901_v23  ;;  %v6619_v34 = vcombine.low %v1864_v45, %v1874_v47  ;;  %v1882_v9 = vor.u32 %v1881_v49, %v1878_v59  ;;  %v9791_v58 = vshll.u32 %v7940_v37, 16  ;;  %v797_v23 = vld [vmem:[#allocation2 + $0x40] sm:$0x8]  ;;  %v1767_v49 = vld [vmem:[#allocation2 + $0x54] sm:$0xf] }
  0x6a   : > { %v1892_v36 = vor.u32 %v1891_v20, %v1887_v22  ;;  %v1897_v24 = vrot.slane %v1895_v56, 5  ;;  %v915_v13 = vrot.slane %v7953_v53, 4  ;;  %v9792_v57 = vshll.u32 %v7942_v38, 16 }
  0x6b   : > { %7296 = vmatprep.mubr.msk.bf16.mxu1 %vm1279_vm1, %v6584_v48  ;;  %v913_v14 = vor.u32 %v9791_v58, %v7953_v53  ;;  %7330 = vmatprep.mubr.msk.bf16.mxu0 %vm1279_vm1, %v6619_v34  ;;  %v1883_v40 = vrot.slane %v1882_v9, 4  ;;  %v6534_v7 = vrot.slane %v903_v42, 11  ;;  %v1900_v61 = vshrl.u32 %v1764_v46, 16  ;;  %v1768_v34 = vld [vmem:[#allocation2 + $0x58] sm:$0xf] }
  0x6c   : > { %v922_v44 = vor.u32 %v9792_v57, %v7955_v55  ;;  %v1903_v25 = vshll.u32 %v1764_v46, 16  ;;  %v1893_v17 = vrot.slane %v1892_v36, 4  ;;  %v1909_v8 = vshll.u32 %v1765_v28, 16  ;;  %v1769_v57 = vld [vmem:[#allocation2 + $0x5c] sm:$0x1] }
  0x6d   : > { %v1913_v10 = vshrl.u32 %v1765_v28, 16  ;;  %v1888_v53 = vsel %vm8124_vm7, %v1883_v40, %v1887_v22  ;;  %v914_v38 = vsel %vm8105_vm6, %v6534_v7, %v913_v14  ;;  %v1902_v55 = vrot.slane %v1900_v61, 4  ;;  %v800_v61 = vld [vmem:[#allocation2 + $0x50] sm:$0x8] }
  0x6e   : > { %v923_v37 = vsel %vm8105_vm6, %v915_v13, %v922_v44  ;;  %v1905_v27 = vrot.slane %v1903_v25, 5  ;;  %v1898_v18 = vsel %vm8124_vm7, %v1893_v17, %v1897_v24  ;;  %v1911_v48 = vrot.slane %v1909_v8, 5 }
  0x6f   : > { %v6585_v45 = vcombine.low %v914_v38, %v923_v37  ;;  %v1915_v59 = vrot.slane %v1913_v10, 4  ;;  %v6620_v47 = vcombine.low %v1888_v53, %v1898_v18  ;;  %v1919_v56 = vshll.u32 %v1766_v35, 16  ;;  %v1771_v18 = vld [vmem:[#allocation2 + $0x68] sm:$0xf] }
  0x70   : > { %v1906_v20 = vor.u32 %v1905_v27, %v1902_v55  ;;  %v925_v46 = vshrl.u32 %v797_v23, 16  ;;  %v9793_v9 = vshll.u32 %v8004_v32, 16  ;;  %v937_v58 = vrot.slane %v8021_v21, 4  ;;  %v1770_v23 = vld [vmem:[#allocation2 + $0x64] sm:$0xf] }
  0x71   : > { %7297 = vmatmul.mubr.msk.bf16.gmra.mxu1 %vm1279_vm1, %v6585_v45  ;;  %v1916_v22 = vor.u32 %v1915_v59, %v1911_v48  ;;  %v9794_v14 = vshll.u32 %v8012_v50, 16  ;;  %7331 = vmatmul.mubr.msk.bf16.gmra.mxu0 %vm1279_vm1, %v6620_v47  ;;  %v1921_v24 = vrot.slane %v1919_v56, 5  ;;  %v1924_v44 = vshrl.u32 %v1767_v49, 16 }
  0x72   : > { %v935_v42 = vor.u32 %v9793_v9, %v8021_v21  ;;  %v1907_v36 = vrot.slane %v1906_v20, 4  ;;  %v6535_v13 = vrot.slane %v925_v46, 11  ;;  %v1927_v35 = vshll.u32 %v1767_v49, 16 }
  0x73   : > { %v944_v28 = vor.u32 %v9794_v14, %v8025_v4  ;;  %v1917_v40 = vrot.slane %v1916_v22, 4  ;;  %v1933_v32 = vshll.u32 %v1768_v34, 16  ;;  %v1926_v50 = vrot.slane %v1924_v44, 4  ;;  %v1772_v22 = vld [vmem:[#allocation2 + $0x6c] sm:$0x1] }
  0x74   : > { %v1912_v21 = vsel %vm8124_vm7, %v1907_v36, %v1911_v48  ;;  %v936_v4 = vsel %vm8105_vm6, %v6535_v13, %v935_v42  ;;  %v1937_v25 = vshrl.u32 %v1768_v34, 16  ;;  %v1929_v8 = vrot.slane %v1927_v35, 5 }
  0x75   : > { %v945_v7 = vsel %vm8105_vm6, %v937_v58, %v944_v28  ;;  %v1922_v17 = vsel %vm8124_vm7, %v1917_v40, %v1921_v24  ;;  %v1935_v10 = vrot.slane %v1933_v32, 5  ;;  %v1943_v55 = vshll.u32 %v1769_v57, 16  ;;  %v803_v28 = vld [vmem:[#allocation2 + $0x60] sm:$0x8]  ;;  %v1773_v40 = vld [vmem:[#allocation2 + $0x74] sm:$0xf] }
  0x76   : > { %v6586_v37 = vcombine.low %v936_v4, %v945_v7  ;;  %v6621_v53 = vcombine.low %v1912_v21, %v1922_v17  ;;  %v1939_v38 = vrot.slane %v1937_v25, 4  ;;  %v947_v27 = vshrl.u32 %v800_v61, 16  ;;  %v1774_v21 = vld [vmem:[#allocation2 + $0x78] sm:$0xf] }
  0x77   : > { %v1930_v45 = vor.u32 %v1929_v8, %v1926_v50  ;;  %v9795_v48 = vshll.u32 %v8028_v30, 16  ;;  %v959_v49 = vrot.slane %v8047_v63, 4  ;;  %v9796_v47 = vshll.u32 %v8030_v31, 16 }
  0x78   : > { %7300 = vmatprep.mubr.msk.bf16.mxu1 %vm1279_vm1, %v6586_v37  ;;  %7334 = vmatprep.mubr.msk.bf16.mxu0 %vm1279_vm1, %v6621_v53  ;;  %v1940_v56 = vor.u32 %v1939_v38, %v1935_v10  ;;  %v1945_v46 = vrot.slane %v1943_v55, 5  ;;  %v6536_v34 = vrot.slane %v947_v27, 11  ;;  %v1948_v9 = vshrl.u32 %v1770_v23, 16  ;;  %v1775_v27 = vld [vmem:[#allocation2 + $0x7c] sm:$0x1] }
  0x79   : > { %v957_v59 = vor.u32 %v9795_v48, %v8047_v63  ;;  %v966_v20 = vor.u32 %v9796_v47, %v8049_v5  ;;  %v1931_v42 = vrot.slane %v1930_v45, 4  ;;  %v1951_v14 = vshll.u32 %v1770_v23, 16  ;;  %v806_v47 = vld [vmem:[#allocation2 + $0x70] sm:$0x8] }
  0x7a   : > { %v1957_v30 = vshll.u32 %v1771_v18, 16  ;;  %v1941_v36 = vrot.slane %v1940_v56, 4  ;;  %v1950_v31 = vrot.slane %v1948_v9, 4  ;;  %v1961_v5 = vshrl.u32 %v1771_v18, 16 }
  0x7b   : > { %v967_v58 = vsel %vm8105_vm6, %v959_v49, %v966_v20  ;;  %v958_v63 = vsel %vm8105_vm6, %v6536_v34, %v957_v59  ;;  %v1936_v24 = vsel %vm8124_vm7, %v1931_v42, %v1935_v10  ;;  %v1953_v57 = vrot.slane %v1951_v14, 5  ;;  %v1776_v42 = vld [vmem:[#allocation2 + $0x84] sm:$0xf] }
  0x7c   : > { %v6587_v13 = vcombine.low %v958_v63, %v967_v58  ;;  %v1959_v44 = vrot.slane %v1957_v30, 5  ;;  %v1946_v7 = vsel %vm8124_vm7, %v1941_v36, %v1945_v46  ;;  %v1963_v35 = vrot.slane %v1961_v5, 4  ;;  %v1777_v63 = vld [vmem:[#allocation2 + $0x88] sm:$0xf] }
  0x7d   : > { %v1967_v32 = vshll.u32 %v1772_v22, 16  ;;  %v969_v61 = vshrl.u32 %v803_v28, 16  ;;  %v6622_v4 = vcombine.low %v1936_v24, %v1946_v7  ;;  %v1954_v50 = vor.u32 %v1953_v57, %v1950_v31  ;;  %v1778_v7 = vld [vmem:[#allocation2 + $0x8c] sm:$0x1] }
  0x7e   : > { %7301 = vmatmul.mubr.msk.bf16.gmra.mxu1 %vm1279_vm1, %v6587_v13  ;;  %v9797_v25 = vshll.u32 %v8093_v43, 16  ;;  %v981_v37 = vrot.slane %v8109_v6, 4  ;;  %v1964_v8 = vor.u32 %v1963_v35, %v1959_v44  ;;  %v9798_v53 = vshll.u32 %v8095_v39, 16 }
  0x7f   : > { %v1969_v10 = vrot.slane %v1967_v32, 5  ;;  %v6537_v23 = vrot.slane %v969_v61, 11  ;;  %7335 = vmatmul.mubr.msk.bf16.gmra.mxu0 %vm1279_vm1, %v6622_v4  ;;  %v1955_v55 = vrot.slane %v1954_v50, 4  ;;  %v1972_v18 = vshrl.u32 %v1773_v40, 16  ;;  %v809_v50 = vld [vmem:[#allocation2 + $0x80] sm:$0x8] }
  0x80   : > { %v979_v17 = vor.u32 %v9797_v25, %v8109_v6  ;;  %v988_v38 = vor.u32 %v9798_v53, %v8116_v1  ;;  %v1975_v45 = vshll.u32 %v1773_v40, 16  ;;  %v1981_v48 = vshll.u32 %v1774_v21, 16  ;;  %v1780_v53 = vld [vmem:[#allocation2 + $0x98] sm:$0xf] }
  0x81   : > { %v1965_v59 = vrot.slane %v1964_v8, 4  ;;  %v1985_v49 = vshrl.u32 %v1774_v21, 16  ;;  %v1960_v39 = vsel %vm8124_vm7, %v1955_v55, %v1959_v44  ;;  %v1974_v20 = vrot.slane %v1972_v18, 4 }
  0x82   : > { %v980_v43 = vsel %vm8105_vm6, %v6537_v23, %v979_v17  ;;  %v989_v6 = vsel %vm8105_vm6, %v981_v37, %v988_v38  ;;  %v1977_v56 = vrot.slane %v1975_v45, 5  ;;  %v1983_v34 = vrot.slane %v1981_v48, 5  ;;  %v1779_v17 = vld [vmem:[#allocation2 + $0x94] sm:$0xf] }
  0x83   : > { %v6588_v1 = vcombine.low %v980_v43, %v989_v6  ;;  %v1970_v46 = vsel %vm8124_vm7, %v1965_v59, %v1969_v10  ;;  %v1987_v22 = vrot.slane %v1985_v49, 4  ;;  %v1991_v9 = vshll.u32 %v1775_v27, 16  ;;  %v1781_v43 = vld [vmem:[#allocation2 + $0x9c] sm:$0x1] }
  0x84   : > { %v6623_v58 = vcombine.low %v1960_v39, %v1970_v46  ;;  %v1978_v14 = vor.u32 %v1977_v56, %v1974_v20  ;;  %v991_v30 = vshrl.u32 %v806_v47, 16  ;;  %v9799_v28 = vshll.u32 %v8111_v29, 16 }
  0x85   : > { %7304 = vmatprep.mubr.msk.bf16.mxu1 %vm1279_vm1, %v6588_v1  ;;  %v1988_v31 = vor.u32 %v1987_v22, %v1983_v34  ;;  %v1993_v5 = vrot.slane %v1991_v9, 5  ;;  %v1003_v24 = vrot.slane %v8137_v51, 4  ;;  %v9800_v13 = vshll.u32 %v8128_v15, 16  ;;  %v812_v9 = vld [vmem:[#allocation2 + $0x90] sm:$0x8] }
  0x86   : > { %v1001_v36 = vor.u32 %v9799_v28, %v8137_v51  ;;  %7338 = vmatprep.mubr.msk.bf16.mxu0 %vm1279_vm1, %v6623_v58  ;;  %v1979_v44 = vrot.slane %v1978_v14, 4  ;;  %v6538_v40 = vrot.slane %v991_v30, 11  ;;  %v1996_v35 = vshrl.u32 %v1776_v42, 16 }
  0x87   : > { %v1010_v57 = vor.u32 %v9800_v13, %v8146_v3  ;;  %v1999_v32 = vshll.u32 %v1776_v42, 16  ;;  %v1989_v61 = vrot.slane %v1988_v31, 4  ;;  %v2005_v21 = vshll.u32 %v1777_v63, 16  ;;  %v1783_v31 = vld [vmem:[#allocation2 + $0xa8] sm:$0xf] }
  0x88   : > { %v2009_v4 = vshrl.u32 %v1777_v63, 16  ;;  %v1984_v51 = vsel %vm8124_vm7, %v1979_v44, %v1983_v34  ;;  %v1002_v15 = vsel %vm8105_vm6, %v6538_v40, %v1001_v36  ;;  %v1998_v3 = vrot.slane %v1996_v35, 4  ;;  %v1782_v63 = vld [vmem:[#allocation2 + $0xa4] sm:$0xf] }
  0x89   : > { %v1011_v29 = vsel %vm8105_vm6, %v1003_v24, %v1010_v57  ;;  %v2001_v25 = vrot.slane %v1999_v32, 5  ;;  %v1994_v37 = vsel %vm8124_vm7, %v1989_v61, %v1993_v5  ;;  %v2007_v10 = vrot.slane %v2005_v21, 5 }
  0x8a   : > { %v6589_v8 = vcombine.low %v1002_v15, %v1011_v29  ;;  %v2011_v23 = vrot.slane %v2009_v4, 4  ;;  %v6624_v38 = vcombine.low %v1984_v51, %v1994_v37  ;;  %v2015_v27 = vshll.u32 %v1778_v7, 16  ;;  %v1784_v29 = vld [vmem:[#allocation2 + $0xac] sm:$0x1] }
  0x8b   : > { %v2002_v55 = vor.u32 %v2001_v25, %v1998_v3  ;;  %v1013_v18 = vshrl.u32 %v809_v50, 16  ;;  %v9801_v48 = vrot.slane %v7871_v52, 4  ;;  %v2020_v6 = vshrl.u32 %v1779_v17, 16 }
  0x8c   : > { %7305 = vmatmul.mubr.msk.bf16.gmra.mxu1 %vm1279_vm1, %v6589_v8  ;;  %v2012_v45 = vor.u32 %v2011_v23, %v2007_v10  ;;  %v2023_v49 = vshll.u32 %v1779_v17, 16  ;;  %7339 = vmatmul.mubr.msk.bf16.gmra.mxu0 %vm1279_vm1, %v6624_v38  ;;  %v2017_v39 = vrot.slane %v2015_v27, 5  ;;  %v2029_v20 = vshll.u32 %v1780_v53, 16 }
  0x8d   : > { %v1033_v59 = vsel %vm8105_vm6, %v9801_v48, %v7890_v0  ;;  %v2003_v47 = vrot.slane %v2002_v55, 4  ;;  %v6539_v1 = vrot.slane %v1013_v18, 11  ;;  %v2022_v46 = vrot.slane %v2020_v6, 4  ;;  %v9804_v18 = vld [vmem:[#allocation3_spill] sm:$0xff] }
  0x8e   : > { %v2013_v56 = vrot.slane %v2012_v45, 4  ;;  %v2025_v34 = vrot.slane %v2023_v49, 5  ;;  %v2033_v22 = vshrl.u32 %v1780_v53, 16  ;;  %v2031_v42 = vrot.slane %v2029_v20, 5  ;;  %v1785_v53 = vld [vmem:[#allocation2 + $0xb4] sm:$0xf] }
  0x8f   : > { %v2008_v52 = vsel %vm8124_vm7, %v2003_v47, %v2007_v10  ;;  %v1024_v0 = vsel %vm8105_vm6, %v6539_v1, %v7887_v62  ;;  %v2039_v58 = vshll.u32 %v1781_v43, 16  ;;  %v1035_v13 = vshrl.u32 %v812_v9, 16  ;;  %v9806_v47 = vld [vmem:[#allocation5_spill] sm:$0xff] }
  0x90   : > { %v2018_v14 = vsel %vm8124_vm7, %v2013_v56, %v2017_v39  ;;  %v6590_v30 = vcombine.low %v1024_v0, %v1033_v59  ;;  %v2026_v28 = vor.u32 %v2025_v34, %v2022_v46  ;;  %v2035_v36 = vrot.slane %v2033_v22, 4  ;;  %v1786_v59 = vld [vmem:[#allocation2 + $0xb8] sm:$0xf]  ;;  %v9807_v39 = vld [vmem:[#allocation4_spill] sm:$0xff]  ;;  %v1787_v34 = vld [vmem:[#allocation2 + $0xbc] sm:$0x1] }
  0x91   : > { %v6625_v5 = vcombine.low %v2008_v52, %v2018_v14  ;;  %v2041_v24 = vrot.slane %v2039_v58, 5  ;;  %v9802_v57 = vshll.u32 %v7873_v54, 16  ;;  %v1047_v7 = vrot.slane %v7896_v2, 4  ;;  %v818_v14 = vld [vmem:[#allocation2 + $0xb0] sm:$0x8] }
  0x92   : > { %7308 = vmatprep.mubr.msk.bf16.mxu1 %vm1279_vm1, %v6590_v30  ;;  %v2027_v62 = vrot.slane %v2026_v28, 4  ;;  %v2036_v40 = vor.u32 %v2035_v36, %v2031_v42  ;;  %v9803_v35 = vshll.u32 %v7882_v60, 16  ;;  %v6540_v61 = vrot.slane %v1035_v13, 11  ;;  %v1788_v13 = vld [vmem:[#allocation2 + $0xc4] sm:$0xf] }
  0x93   : > { %v1045_v44 = vor.u32 %v9802_v57, %v7896_v2  ;;  %7342 = vmatprep.mubr.msk.bf16.mxu0 %vm1279_vm1, %v6625_v5  ;;  %v2044_v21 = vshrl.u32 %v1782_v63, 16  ;;  %v2047_v4 = vshll.u32 %v1782_v63, 16  ;;  %v2053_v50 = vshll.u32 %v1783_v31, 16  ;;  %v815_v2 = vld [vmem:[#allocation2 + $0xa0] sm:$0x8] }
  0x94   : > { %v1054_v32 = vor.u32 %v9803_v35, %v7914_v16  ;;  %v2032_v54 = vsel %vm8124_vm7, %v2027_v62, %v2031_v42  ;;  %v2037_v51 = vrot.slane %v2036_v40, 4  ;;  %v2057_v3 = vshrl.u32 %v1783_v31, 16 }
  0x95   : > { %v1046_v60 = vsel %vm8105_vm6, %v6540_v61, %v1045_v44  ;;  %v2046_v16 = vrot.slane %v2044_v21, 4  ;;  %v2049_v25 = vrot.slane %v2047_v4, 5  ;;  %v2055_v17 = vrot.slane %v2053_v50, 5  ;;  %v9810_v61 = vld [vmem:[#allocation6_spill] sm:$0xff]  ;;  %v9812_v50 = vld [vmem:[#allocation9_spill] sm:$0xff] }
  0x96   : > { %v1055_v15 = vsel %vm8105_vm6, %v1047_v7, %v1054_v32  ;;  %v2042_v37 = vsel %vm8124_vm7, %v2037_v51, %v2041_v24  ;;  %v2059_v10 = vrot.slane %v2057_v3, 4  ;;  %v2063_v23 = vshll.u32 %v1784_v29, 16  ;;  %v1789_v7 = vld [vmem:[#allocation2 + $0xc8] sm:$0xf] }
  0x97   : > { %v6591_v8 = vcombine.low %v1046_v60, %v1055_v15  ;;  %v6626_v38 = vcombine.low %v2032_v54, %v2042_v37  ;;  %v2050_v55 = vor.u32 %v2049_v25, %v2046_v16  ;;  %v1057_v27 = vshrl.u32 %v815_v2, 16  ;;  %v9809_v32 = vld [vmem:[#allocation8_spill] sm:$0xff]  ;;  %v9813_v54 = vld [vmem:[#allocation7_spill] sm:$0xff] }
  0x98   : > { %v9805_v45 = vshll.u32 %v9804_v18, 16  ;;  %v2060_v43 = vor.u32 %v2059_v10, %v2055_v17  ;;  %v2065_v6 = vrot.slane %v2063_v23, 5  ;;  %v1069_v49 = vrot.slane %v7975_v26, 4  ;;  %v1790_v16 = vld [vmem:[#allocation2 + $0xcc] sm:$0x1] }
  0x99   : > { %7309 = vmatmul.mubr.msk.bf16.gmra.mxu1 %vm1279_vm1, %v6591_v8  ;;  %v9808_v1 = vshll.u32 %v9807_v39, 16  ;;  %7343 = vmatmul.mubr.msk.bf16.gmra.mxu0 %vm1279_vm1, %v6626_v38  ;;  %v2051_v56 = vrot.slane %v2050_v55, 4  ;;  %v6541_v46 = vrot.slane %v1057_v27, 11  ;;  %v2068_v22 = vshrl.u32 %v1785_v53, 16  ;;  %v821_v23 = vld [vmem:[#allocation2 + $0xc0] sm:$0x8] }
  0x9a   : > { %v1067_v48 = vor.u32 %v9805_v45, %v7975_v26  ;;  %v2071_v9 = vshll.u32 %v1785_v53, 16  ;;  %v2061_v52 = vrot.slane %v2060_v43, 4  ;;  %v2077_v42 = vshll.u32 %v1786_v59, 16  ;;  %v1791_v43 = vld [vmem:[#allocation2 + $0xd4] sm:$0xf] }
  0x9b   : > { %v1076_v20 = vor.u32 %v9808_v1, %v9806_v47  ;;  %v2081_v58 = vshrl.u32 %v1786_v59, 16  ;;  %v2056_v26 = vsel %vm8124_vm7, %v2051_v56, %v2055_v17  ;;  %v2070_v28 = vrot.slane %v2068_v22, 4  ;;  %v1792_v1 = vld [vmem:[#allocation2 + $0xd8] sm:$0xf]  ;;  %v9815_v56 = vld [vmem:[#allocation12_spill] sm:$0xff] }
  0x9c   : > { %v1068_v30 = vsel %vm8105_vm6, %v6541_v46, %v1067_v48  ;;  %v2073_v36 = vrot.slane %v2071_v9, 5  ;;  %v2066_v63 = vsel %vm8124_vm7, %v2061_v52, %v2065_v6  ;;  %v2079_v5 = vrot.slane %v2077_v42, 5  ;;  %v9816_v46 = vld [vmem:[#allocation10_spill] sm:$0xff]  ;;  %v9818_v52 = vld [vmem:[#allocation13_spill] sm:$0xff] }
  0x9d   : > { %v1077_v0 = vsel %vm8105_vm6, %v1069_v49, %v1076_v20  ;;  %v2083_v24 = vrot.slane %v2081_v58, 4  ;;  %v6627_v57 = vcombine.low %v2056_v26, %v2066_v63  ;;  %v2087_v62 = vshll.u32 %v1787_v34, 16 }
  0x9e   : > { %v6592_v31 = vcombine.low %v1068_v30, %v1077_v0  ;;  %v2074_v44 = vor.u32 %v2073_v36, %v2070_v28  ;;  %v1079_v40 = vshrl.u32 %v818_v14, 16  ;;  %v9811_v29 = vshll.u32 %v9810_v61, 16  ;;  %v9819_v0 = vld [vmem:[#allocation11_spill] sm:$0xff]  ;;  %v1793_v28 = vld [vmem:[#allocation2 + $0xdc] sm:$0x1] }
  0x9f   : > { %v2084_v35 = vor.u32 %v2083_v24, %v2079_v5  ;;  %v1091_v4 = vrot.slane %v9809_v32, 4  ;;  %v9814_v51 = vshll.u32 %v9813_v54, 16  ;;  %7346 = vmatprep.mubr.msk.bf16.mxu0 %vm1279_vm1, %v6627_v57  ;;  %v2089_v2 = vrot.slane %v2087_v62, 5 }
  0xa0   : > { %7312 = vmatprep.mubr.msk.bf16.mxu1 %vm1279_vm1, %v6592_v31  ;;  %v1089_v21 = vor.u32 %v9811_v29, %v9809_v32  ;;  %v2075_v3 = vrot.slane %v2074_v44, 4  ;;  %v6542_v60 = vrot.slane %v1079_v40, 11  ;;  %v2092_v25 = vshrl.u32 %v1788_v13, 16  ;;  %v1794_v29 = vld [vmem:[#allocation2 + $0xe4] sm:$0xf] }
  0xa1   : > { %v1098_v15 = vor.u32 %v9814_v51, %v9812_v50  ;;  %v2085_v17 = vrot.slane %v2084_v35, 4  ;;  %v2095_v8 = vshll.u32 %v1788_v13, 16  ;;  %v2101_v10 = vshll.u32 %v1789_v7, 16  ;;  %v824_v13 = vld [vmem:[#allocation2 + $0xd0] sm:$0x8] }
  0xa2   : > { %v2080_v53 = vsel %vm8124_vm7, %v2075_v3, %v2079_v5  ;;  %v1090_v38 = vsel %vm8105_vm6, %v6542_v60, %v1089_v21  ;;  %v2094_v55 = vrot.slane %v2092_v25, 4  ;;  %v2105_v27 = vshrl.u32 %v1789_v7, 16  ;;  %v1795_v51 = vld [vmem:[#allocation2 + $0xe8] sm:$0xf]  ;;  %v9822_v60 = vld [vmem:[#allocation14_spill] sm:$0xff] }
  0xa3   : > { %v1099_v37 = vsel %vm8105_vm6, %v1091_v4, %v1098_v15  ;;  %v2090_v18 = vsel %vm8124_vm7, %v2085_v17, %v2089_v2  ;;  %v2097_v48 = vrot.slane %v2095_v8, 5  ;;  %v2103_v59 = vrot.slane %v2101_v10, 5  ;;  %v9821_v2 = vld [vmem:[#allocation16_spill] sm:$0xff] }
  0xa4   : > { %v6593_v45 = vcombine.low %v1090_v38, %v1099_v37  ;;  %v6628_v6 = vcombine.low %v2080_v53, %v2090_v18  ;;  %v2107_v49 = vrot.slane %v2105_v27, 4  ;;  %v2111_v47 = vshll.u32 %v1790_v16, 16  ;;  %v9825_v53 = vld [vmem:[#allocation15_spill] sm:$0xff]  ;;  %v1796_v18 = vld [vmem:[#allocation2 + $0xec] sm:$0x1] }
  0xa5   : > { %v1101_v39 = vshrl.u32 %v821_v23, 16  ;;  %v2098_v20 = vor.u32 %v2097_v48, %v2094_v55  ;;  %v9817_v34 = vshll.u32 %v9816_v46, 16  ;;  %v1113_v9 = vrot.slane %v9815_v56, 4  ;;  %v9824_v23 = vld [vmem:[#allocation17_spill] sm:$0xff] }
  0xa6   : > { %7313 = vmatmul.mubr.msk.bf16.gmra.mxu1 %vm1279_vm1, %v6593_v45  ;;  %v9820_v42 = vshll.u32 %v9819_v0, 16  ;;  %7347 = vmatmul.mubr.msk.bf16.gmra.mxu0 %vm1279_vm1, %v6628_v6  ;;  %v2108_v14 = vor.u32 %v2107_v49, %v2103_v59  ;;  %v2113_v26 = vrot.slane %v2111_v47, 5  ;;  %v2116_v36 = vshrl.u32 %v1791_v43, 16  ;;  %v1797_v0 = vld [vmem:[#allocation2 + $0xf4] sm:$0xf] }
  0xa7   : > { %v1111_v22 = vor.u32 %v9817_v34, %v9815_v56  ;;  %v6543_v30 = vrot.slane %v1101_v39, 11  ;;  %v2099_v63 = vrot.slane %v2098_v20, 4  ;;  %v2119_v5 = vshll.u32 %v1791_v43, 16  ;;  %v827_v39 = vld [vmem:[#allocation2 + $0xe0] sm:$0x8] }
  0xa8   : > { %v1120_v58 = vor.u32 %v9820_v42, %v9818_v52  ;;  %v2125_v24 = vshll.u32 %v1792_v1, 16  ;;  %v2109_v57 = vrot.slane %v2108_v14, 4  ;;  %v2118_v62 = vrot.slane %v2116_v36, 4 }
  0xa9   : > { %v1112_v44 = vsel %vm8105_vm6, %v6543_v30, %v1111_v22  ;;  %v2129_v40 = vshrl.u32 %v1792_v1, 16  ;;  %v2104_v7 = vsel %vm8124_vm7, %v2099_v63, %v2103_v59  ;;  %v2121_v32 = vrot.slane %v2119_v5, 5  ;;  %v9828_v30 = vld [vmem:[#allocation18_spill] sm:$0xff] }
  0xaa   : > { %v1121_v31 = vsel %vm8105_vm6, %v1113_v9, %v1120_v58  ;;  %v2127_v61 = vrot.slane %v2125_v24, 5  ;;  %v2114_v21 = vsel %vm8124_vm7, %v2109_v57, %v2113_v26  ;;  %v2135_v50 = vshll.u32 %v1793_v28, 16  ;;  %v9827_v26 = vld [vmem:[#allocation22_spill] sm:$0xff]  ;;  %v9831_v57 = vld [vmem:[#allocation19_spill] sm:$0xff] }
  0xab   : > { %v6594_v35 = vcombine.low %v1112_v44, %v1121_v31  ;;  %v2131_v4 = vrot.slane %v2129_v40, 4  ;;  %v1123_v54 = vshrl.u32 %v824_v13, 16  ;;  %v6629_v15 = vcombine.low %v2104_v7, %v2114_v21  ;;  %v1798_v63 = vld [vmem:[#allocation2 + $0xf8] sm:$0xf]  ;;  %v9830_v13 = vld [vmem:[#allocation23_spill] sm:$0xff] }
  0xac   : > { %v2122_v3 = vor.u32 %v2121_v32, %v2118_v62  ;;  %v9823_v16 = vshll.u32 %v9822_v60, 16  ;;  %v1135_v17 = vrot.slane %v9821_v2, 4  ;;  %v2137_v8 = vrot.slane %v2135_v50, 5 }
  0xad   : > { %7316 = vmatprep.mubr.msk.bf16.mxu1 %vm1279_vm1, %v6594_v35  ;;  %v2132_v37 = vor.u32 %v2131_v4, %v2127_v61  ;;  %v6544_v10 = vrot.slane %v1123_v54, 11  ;;  %v9826_v38 = vshll.u32 %v9825_v53, 16  ;;  %7350 = vmatprep.mubr.msk.bf16.mxu0 %vm1279_vm1, %v6629_v15  ;;  %v2140_v45 = vshrl.u32 %v1794_v29, 16  ;;  %v1799_v35 = vld [vmem:[#allocation2 + $0xfc] sm:$0x1] }
  0xae   : > { %v1133_v25 = vor.u32 %v9823_v16, %v9821_v2  ;;  %v2123_v27 = vrot.slane %v2122_v3, 4  ;;  %v2143_v48 = vshll.u32 %v1794_v29, 16  ;;  %v2149_v59 = vshll.u32 %v1795_v51, 16  ;;  %v830_v54 = vld [vmem:[#allocation2 + $0xf0] sm:$0x8] }
  0xaf   : > { %v1142_v55 = vor.u32 %v9826_v38, %v9824_v23  ;;  %v2133_v43 = vrot.slane %v2132_v37, 4  ;;  %v2153_v47 = vshrl.u32 %v1795_v51, 16  ;;  %v2142_v56 = vrot.slane %v2140_v45, 4  ;;  %v2487_v37 = vld [vmem:[#allocation2 + $0x14] sm:$0xf] }
  0xb0   : > { %v1134_v6 = vsel %vm8105_vm6, %v6544_v10, %v1133_v25  ;;  %v2128_v1 = vsel %vm8124_vm7, %v2123_v27, %v2127_v61  ;;  %v2145_v46 = vrot.slane %v2143_v48, 5  ;;  %v2151_v22 = vrot.slane %v2149_v59, 5  ;;  %v2488_v38 = vld [vmem:[#allocation2 + $0x18] sm:$0xf]  ;;  %v9833_v27 = vld [vmem:[#allocation20_spill] sm:$0xff] }
  0xb1   : > { %v1143_v49 = vsel %vm8105_vm6, %v1135_v17, %v1142_v55  ;;  %v2138_v34 = vsel %vm8124_vm7, %v2133_v43, %v2137_v8  ;;  %v2155_v9 = vrot.slane %v2153_v47, 4  ;;  %v2159_v52 = vshll.u32 %v1796_v18, 16  ;;  %v9835_v59 = vld [vmem:[#allocation24_spill] sm:$0xff]  ;;  %v9836_v43 = vld [vmem:[#allocation21_spill] sm:$0xff] }
  0xb2   : > { %v6595_v20 = vcombine.low %v1134_v6, %v1143_v49  ;;  %v6630_v42 = vcombine.low %v2128_v1, %v2138_v34  ;;  %v2146_v58 = vor.u32 %v2145_v46, %v2142_v56  ;;  %v1145_v14 = vshrl.u32 %v827_v39, 16 }
  0xb3   : > { %v9829_v28 = vshll.u32 %v9828_v30, 16  ;;  %v2156_v31 = vor.u32 %v2155_v9, %v2151_v22  ;;  %v2161_v5 = vrot.slane %v2159_v52, 5  ;;  %v1157_v24 = vrot.slane %v9827_v26, 4  ;;  %v2486_v9 = vld [vmem:[#allocation2 + $0x10] sm:$0x8] }
  0xb4   : > { %7317 = vmatmul.mubr.msk.bf16.gmra.mxu1 %vm1279_vm1, %v6595_v20  ;;  %v9832_v44 = vshll.u32 %v9831_v57, 16  ;;  %7351 = vmatmul.mubr.msk.bf16.gmra.mxu0 %vm1279_vm1, %v6630_v42  ;;  %v2147_v40 = vrot.slane %v2146_v58, 4  ;;  %v6545_v7 = vrot.slane %v1145_v14, 11  ;;  %v2164_v32 = vshrl.u32 %v1797_v0, 16  ;;  %v2490_v58 = vld [vmem:[#allocation2 + $0x24] sm:$0xf] }
  0xb5   : > { %v1155_v36 = vor.u32 %v9829_v28, %v9827_v26  ;;  %v2167_v61 = vshll.u32 %v1797_v0, 16  ;;  %v2157_v29 = vrot.slane %v2156_v31, 4  ;;  %v2173_v4 = vshll.u32 %v1798_v63, 16  ;;  %v2491_v14 = vld [vmem:[#allocation2 + $0x28] sm:$0xf] }
  0xb6   : > { %v1164_v62 = vor.u32 %v9832_v44, %v9830_v13  ;;  %v2177_v50 = vshrl.u32 %v1798_v63, 16  ;;  %v2152_v51 = vsel %vm8124_vm7, %v2147_v40, %v2151_v22  ;;  %v2166_v3 = vrot.slane %v2164_v32, 4  ;;  %v2489_v63 = vld [vmem:[#allocation2 + $0x20] sm:$0x8]  ;;  %v8447_v57 = vld [vmem:[#allocation2 + $0x34] sm:$0xf] }
  0xb7   : > { %v1156_v15 = vsel %vm8105_vm6, %v6545_v7, %v1155_v36  ;;  %v2169_v2 = vrot.slane %v2167_v61, 5  ;;  %v2162_v60 = vsel %vm8124_vm7, %v2157_v29, %v2161_v5  ;;  %v2175_v25 = vrot.slane %v2173_v4, 5 }
  0xb8   : > { %v1165_v21 = vsel %vm8105_vm6, %v1157_v24, %v1164_v62  ;;  %v2179_v17 = vrot.slane %v2177_v50, 4  ;;  %v6631_v8 = vcombine.low %v2152_v51, %v2162_v60  ;;  %v2183_v23 = vshll.u32 %v1799_v35, 16  ;;  %v2494_v35 = vld [vmem:[#allocation2 + $0x38] sm:$0xf] }
  0xb9   : > { %v6596_v16 = vcombine.low %v1156_v15, %v1165_v21  ;;  %v2170_v10 = vor.u32 %v2169_v2, %v2166_v3  ;;  %v1167_v53 = vshrl.u32 %v830_v54, 16  ;;  %v9834_v18 = vshll.u32 %v9833_v27, 16  ;;  %v2492_v15 = vld [vmem:[#allocation2 + $0x30] sm:$0x8]  ;;  %v8461_v27 = vld [vmem:[#allocation2 + $0x48] sm:$0xf] }
  0xba   : > { %v2180_v55 = vor.u32 %v2179_v17, %v2175_v25  ;;  %v1179_v48 = vrot.slane %v8179_v19, 4  ;;  %v9837_v6 = vshll.u32 %v9836_v43, 16  ;;  %7354 = vmatprep.mubr.msk.bf16.mxu0 %vm1279_vm1, %v6631_v8  ;;  %v2185_v39 = vrot.slane %v2183_v23, 5  ;;  %v2495_v43 = vld [vmem:[#allocation2 + $0x40] sm:$0x8] }
  0xbb   : > { %7320 = vmatprep.mubr.msk.bf16.mxu1 %vm1279_vm1, %v6596_v16  ;;  %v1177_v45 = vor.u32 %v9834_v18, %v8179_v19  ;;  %v2171_v47 = vrot.slane %v2170_v10, 4  ;;  %v6546_v1 = vrot.slane %v1167_v53, 11  ;;  %v2540_v20 = vshrl.u32 %v2487_v37, 16 }
  0xbc   : > { %v1186_v49 = vor.u32 %v9837_v6, %v9835_v59  ;;  %v2181_v56 = vrot.slane %v2180_v55, 4  ;;  %v2543_v34 = vshll.u32 %v2487_v37, 16  ;;  %v2549_v22 = vshrl.u32 %v2488_v38, 16 }
  0xbd   : > { %v2176_v19 = vsel %vm8124_vm7, %v2171_v47, %v2175_v25  ;;  %v1178_v52 = vsel %vm8105_vm6, %v6546_v1, %v1177_v45  ;;  %v2542_v0 = vrot.slane %v2540_v20, 7  ;;  %v2552_v42 = vshll.u32 %v2488_v38, 16  ;;  %v8458_v25 = vld [vmem:[#allocation2 + $0x44] sm:$0xf]  ;;  %v2499_v1 = vld [vmem:[#allocation2 + $0x54] sm:$0xf] }
  0xbe   : > { %v1187_v46 = vsel %vm8105_vm6, %v1179_v48, %v1186_v49  ;;  %v2186_v26 = vsel %vm8124_vm7, %v2181_v56, %v2185_v39  ;;  %v2551_v28 = vrot.slane %v2549_v22, 7  ;;  %v6703_v36 = vcombine.low %v2487_v37, %v2488_v38  ;;  %v8472_v20 = vld [vmem:[%s9740_s3 + $0x38] sm:$0xff]  }
  0xbf   : > { %v6597_v30 = vcombine.low %v1178_v52, %v1187_v46  ;;  %v6632_v31 = vcombine.low %v2176_v19, %v2186_v26  ;;  %v2535_v5 = vshrl.u32 %v2486_v9, 16  ;;  %v2545_v24 = vor.u32 %v2543_v34, %v2542_v0  ;;  %v8479_v9 = vld [vmem:[%s9740_s3 + $0x40] sm:$0xff]  }
  0xc0   : > { %v2547_v13 = vrot.slane %v2542_v0, 4  ;;  %v2554_v44 = vor.u32 %v2552_v42, %v2551_v28  ;;  %v2562_v62 = vshrl.u32 %v2490_v58, 16  ;;  %v2565_v40 = vshll.u32 %v2490_v58, 16 }
  0xc1   : > { %7321 = vmatmul.mubr.msk.bf16.gmra.mxu1 %vm1279_vm1, %v6597_v30  ;;  %v2571_v7 = vshrl.u32 %v2491_v14, 16  ;;  %7355 = vmatmul.mubr.msk.bf16.gmra.mxu0 %vm1279_vm1, %v6632_v31  ;;  %v6650_v32 = vrot.slane %v2535_v5, 11  ;;  %v2574_v61 = vshll.u32 %v2491_v14, 16  ;;  %v6704_v29 = vcombine.low %v2490_v58, %v2491_v14  ;;  %v2500_v58 = vld [vmem:[#allocation2 + $0x58] sm:$0xf] }
  0xc2   : > { %v2557_v21 = vshrl.u32 %v2489_v63, 16  ;;  %7394 = vmatprep.mubr.msk.bf16.mxu0 %vm1279_vm1, %v6703_v36  ;;  %v2555_v4 = vsel %vm8105_vm6, %v2547_v13, %v2554_v44  ;;  %v2564_v50 = vrot.slane %v2562_v62, 7  ;;  %v2584_v51 = vshrl.u32 %v8447_v57, 16  ;;  %v2498_v36 = vld [vmem:[#allocation2 + $0x50] sm:$0x8] }
  0xc3   : > { %v2573_v54 = vrot.slane %v2571_v7, 7  ;;  %v2546_v3 = vsel %vm8105_vm6, %v6650_v32, %v2545_v24  ;;  %v2587_v60 = vshll.u32 %v8447_v57, 16  ;;  %v2593_v16 = vshrl.u32 %v2494_v35, 16  ;;  %v8492_v63 = vld [vmem:[#allocation2 + $0x64] sm:$0xf] }
  0xc4   : > { %v6651_v2 = vrot.slane %v2557_v21, 11  ;;  %v6668_v17 = vcombine.low %v2546_v3, %v2555_v4  ;;  %v2567_v37 = vor.u32 %v2565_v40, %v2564_v50  ;;  %v2569_v8 = vrot.slane %v2564_v50, 4 }
  0xc5   : > { %v2576_v10 = vor.u32 %v2574_v61, %v2573_v54  ;;  %v2586_v23 = vrot.slane %v2584_v51, 7  ;;  %v2595_v53 = vrot.slane %v2593_v16, 7  ;;  %v2596_v38 = vshll.u32 %v2494_v35, 16  ;;  %v2501_v61 = vld [vmem:[#allocation2 + $0x60] sm:$0x8] }
  0xc6   : > { %v6705_v55 = vcombine.low %v8447_v57, %v2494_v35  ;;  %7360 = vmatprep.mubr.msk.bf16.mxu1 %vm1279_vm1, %v6668_v17  ;;  %v2568_v18 = vsel %vm8105_vm6, %v6651_v2, %v2567_v37  ;;  %v2579_v48 = vshrl.u32 %v2492_v15, 16  ;;  %v2606_v59 = vshrl.u32 %v8458_v25, 16  ;;  %v8495_v57 = vld [vmem:[#allocation2 + $0x68] sm:$0xf]  ;;  %v2505_v54 = vld [vmem:[#allocation2 + $0x74] sm:$0xf] }
  0xc7   : > { %v2577_v45 = vsel %vm8105_vm6, %v2569_v8, %v2576_v10  ;;  %v2589_v49 = vor.u32 %v2587_v60, %v2586_v23  ;;  %v2591_v47 = vrot.slane %v2586_v23, 4  ;;  %v2598_v39 = vor.u32 %v2596_v38, %v2595_v53  ;;  %v2506_v23 = vld [vmem:[#allocation2 + $0x78] sm:$0xf] }
  0xc8   : > { %v6669_v6 = vcombine.low %v2568_v18, %v2577_v45  ;;  %v6652_v56 = vrot.slane %v2579_v48, 11  ;;  %v2608_v46 = vrot.slane %v2606_v59, 7  ;;  %v2609_v34 = vshll.u32 %v8458_v25, 16  ;;  %v2504_v45 = vld [vmem:[#allocation2 + $0x70] sm:$0x8] }
  0xc9   : > { %v2615_v22 = vshrl.u32 %v8461_v27, 16  ;;  %7395 = vmatmul.mubr.msk.bf16.vlgmr.msra.gmra.mxu0 %vm1279_vm1, %v6704_v29  ;;  %v2599_v19 = vsel %vm8105_vm6, %v2591_v47, %v2598_v39  ;;  %v2618_v52 = vshll.u32 %v8461_v27, 16  ;;  %v6706_v0 = vcombine.low %v8458_v25, %v8461_v27 }
  0xca   : > { %7361 = vmatmul.mubr.msk.bf16.vlgmr.msra.gmra.mxu1 %vm1279_vm1, %v6669_v6  ;;  %v2601_v42 = vshrl.u32 %v2495_v43, 16  ;;  %7461 = vmatpush3.bf16.msra.mxu0 %v8201_v12  ;;  %v2590_v14 = vsel %vm8105_vm6, %v6652_v56, %v2589_v49  ;;  %v2611_v30 = vor.u32 %v2609_v34, %v2608_v46  ;;  %v2613_v28 = vrot.slane %v2608_v46, 4  ;;  %v8517_v49 = vld [vmem:[#allocation2 + $0x84] sm:$0xf]  ;;  %v8521_v46 = vld [vmem:[#allocation2 + $0x88] sm:$0xf] }
  0xcb   : > { %7427 = vmatpush3.bf16.msra.mxu1 %v8213_v11  ;;  %v2617_v26 = vrot.slane %v2615_v22, 7  ;;  %7398 = vmatprep.mubr.msk.bf16.mxu0 %vm1279_vm1, %v6705_v55  ;;  %v6670_v31 = vcombine.low %v2590_v14, %v2599_v19  ;;  %v2628_v24 = vshrl.u32 %v2499_v1, 16  ;;  %v2631_v13 = vshll.u32 %v2499_v1, 16 }
  0xcc   : > { %v6653_v5 = vrot.slane %v2601_v42, 11  ;;  %7494 = vmatprep.subr.bf16.mxu1 %v8472_v20  ;;  %v2637_v11 = vshrl.u32 %v2500_v58, 16  ;;  %v2640_v44 = vshll.u32 %v2500_v58, 16  ;;  %v6707_v62 = vcombine.low %v2499_v1, %v2500_v58  ;;  %7528 = vmatprep.subr.bf16.mxu0 %v8479_v9  ;;  %v8526_v42 = vld [vmem:[#allocation2 + $0x94] sm:$0xf] }
  0xcd   : > { %v2620_v12 = vor.u32 %v2618_v52, %v2617_v26  ;;  %7364 = vmatprep.mubr.msk.bf16.mxu1 %vm1279_vm1, %v6670_v31  ;;  %v2630_v7 = vrot.slane %v2628_v24, 7  ;;  %v2623_v35 = vshrl.u32 %v2498_v36, 16  ;;  %v2650_v32 = vshrl.u32 %v8492_v63, 16 }
  0xce   : > { %v2612_v40 = vsel %vm8105_vm6, %v6653_v5, %v2611_v30  ;;  %v2639_v21 = vrot.slane %v2637_v11, 7  ;;  %v2653_v4 = vshll.u32 %v8492_v63, 16  ;;  %v2659_v50 = vshrl.u32 %v8495_v57, 16 }
  0xcf   : > { %v2621_v29 = vsel %vm8105_vm6, %v2613_v28, %v2620_v12  ;;  %v6654_v15 = vrot.slane %v2623_v35, 11  ;;  %v2633_v3 = vor.u32 %v2631_v13, %v2630_v7  ;;  %v2635_v2 = vrot.slane %v2630_v7, 4  ;;  %v2512_v28 = vld [vmem:[#allocation2 + $0x98] sm:$0xf]  ;;  %v2510_v7 = vld [vmem:[#allocation2 + $0x90] sm:$0x8] }
  0xd0   : > { %v6671_v51 = vcombine.low %v2612_v40, %v2621_v29  ;;  %v2642_v60 = vor.u32 %v2640_v44, %v2639_v21  ;;  %v2652_v16 = vrot.slane %v2650_v32, 7  ;;  %v2661_v25 = vrot.slane %v2659_v50, 7  ;;  %v8543_v21 = vld [vmem:[#allocation2 + $0xa4] sm:$0xf] }
  0xd1   : > { %v2662_v17 = vshll.u32 %v8495_v57, 16  ;;  %7399 = vmatmul.mubr.msk.bf16.gmra.mxu0 %vm1279_vm1, %v6706_v0  ;;  %v2634_v37 = vsel %vm8105_vm6, %v6654_v15, %v2633_v3  ;;  %v6708_v8 = vcombine.low %v8492_v63, %v8495_v57  ;;  %v2645_v10 = vshrl.u32 %v2501_v61, 16  ;;  %v2507_v0 = vld [vmem:[#allocation2 + $0x80] sm:$0x8] }
  0xd2   : > { %7365 = vmatmul.mubr.msk.bf16.gmra.mxu1 %vm1279_vm1, %v6671_v51  ;;  %v2672_v53 = vshrl.u32 %v2505_v54, 16  ;;  %7402 = vmatprep.mubr.msk.bf16.mxu0 %vm1279_vm1, %v6707_v62  ;;  %v2643_v38 = vsel %vm8105_vm6, %v2635_v2, %v2642_v60  ;;  %v2655_v55 = vor.u32 %v2653_v4, %v2652_v16  ;;  %v2657_v27 = vrot.slane %v2652_v16, 4  ;;  %v8548_v16 = vld [vmem:[#allocation2 + $0xa8] sm:$0xf] }
  0xd3   : > { %v2664_v18 = vor.u32 %v2662_v17, %v2661_v25  ;;  %v6672_v48 = vcombine.low %v2634_v37, %v2643_v38  ;;  %v6655_v59 = vrot.slane %v2645_v10, 11  ;;  %v2675_v6 = vshll.u32 %v2505_v54, 16  ;;  %v2513_v10 = vld [vmem:[#allocation2 + $0xa0] sm:$0x8] }
  0xd4   : > { %v2674_v43 = vrot.slane %v2672_v53, 7  ;;  %v2681_v39 = vshrl.u32 %v2506_v23, 16  ;;  %v2684_v1 = vshll.u32 %v2506_v23, 16  ;;  %v6709_v56 = vcombine.low %v2505_v54, %v2506_v23  ;;  %v8554_v23 = vld [vmem:[#allocation2 + $0xb4] sm:$0xf] }
  0xd5   : > { %v2665_v47 = vsel %vm8105_vm6, %v2657_v27, %v2664_v18  ;;  %7368 = vmatprep.mubr.msk.bf16.mxu1 %vm1279_vm1, %v6672_v48  ;;  %v2656_v34 = vsel %vm8105_vm6, %v6655_v59, %v2655_v55  ;;  %v2667_v22 = vshrl.u32 %v2504_v45, 16  ;;  %v2694_v26 = vshrl.u32 %v8517_v49, 16 }
  0xd6   : > { %v2677_v19 = vor.u32 %v2675_v6, %v2674_v43  ;;  %v2679_v52 = vrot.slane %v2674_v43, 4  ;;  %v6673_v58 = vcombine.low %v2656_v34, %v2665_v47  ;;  %v2683_v14 = vrot.slane %v2681_v39, 7  ;;  %v2518_v43 = vld [vmem:[#allocation2 + $0xb8] sm:$0xf] }
  0xd7   : > { %v2697_v30 = vshll.u32 %v8517_v49, 16  ;;  %v6656_v36 = vrot.slane %v2667_v22, 11  ;;  %v2703_v63 = vshrl.u32 %v8521_v46, 16  ;;  %v2706_v31 = vshll.u32 %v8521_v46, 16 }
  0xd8   : > { %v6710_v5 = vcombine.low %v8517_v49, %v8521_v46  ;;  %v2686_v24 = vor.u32 %v2684_v1, %v2683_v14  ;;  %v2696_v13 = vrot.slane %v2694_v26, 7  ;;  %v2689_v57 = vshrl.u32 %v2507_v0, 16  ;;  %v2516_v1 = vld [vmem:[#allocation2 + $0xb0] sm:$0x8] }
  0xd9   : > { %v2716_v12 = vshrl.u32 %v8526_v42, 16  ;;  %7403 = vmatmul.mubr.msk.bf16.gmra.mxu0 %vm1279_vm1, %v6708_v8  ;;  %v2678_v11 = vsel %vm8105_vm6, %v6656_v36, %v2677_v19  ;;  %v2705_v44 = vrot.slane %v2703_v63, 7  ;;  %v2719_v62 = vshll.u32 %v8526_v42, 16  ;;  %v8574_v36 = vld [vmem:[#allocation2 + $0xc8] sm:$0xf] }
  0xda   : > { %7369 = vmatmul.mubr.msk.bf16.gmra.mxu1 %vm1279_vm1, %v6673_v58  ;;  %v2725_v40 = vshrl.u32 %v2512_v28, 16  ;;  %7406 = vmatprep.mubr.msk.bf16.mxu0 %vm1279_vm1, %v6709_v56  ;;  %v2687_v35 = vsel %vm8105_vm6, %v2679_v52, %v2686_v24  ;;  %v6657_v32 = vrot.slane %v2689_v57, 11  ;;  %v2699_v61 = vor.u32 %v2697_v30, %v2696_v13  ;;  %v8570_v58 = vld [vmem:[#allocation2 + $0xc4] sm:$0xf] }
  0xdb   : > { %v2701_v29 = vrot.slane %v2696_v13, 4  ;;  %v6674_v4 = vcombine.low %v2678_v11, %v2687_v35  ;;  %v2708_v50 = vor.u32 %v2706_v31, %v2705_v44  ;;  %v2718_v54 = vrot.slane %v2716_v12, 7  ;;  %v2519_v13 = vld [vmem:[#allocation2 + $0xc0] sm:$0x8] }
  0xdc   : > { %v2727_v51 = vrot.slane %v2725_v40, 7  ;;  %v2700_v15 = vsel %vm8105_vm6, %v6657_v32, %v2699_v61  ;;  %v2728_v3 = vshll.u32 %v2512_v28, 16  ;;  %v6711_v2 = vcombine.low %v8526_v42, %v2512_v28 }
  0xdd   : > { %v2711_v60 = vshrl.u32 %v2510_v7, 16  ;;  %7372 = vmatprep.mubr.msk.bf16.mxu1 %vm1279_vm1, %v6674_v4  ;;  %v2709_v25 = vsel %vm8105_vm6, %v2701_v29, %v2708_v50  ;;  %v2721_v17 = vor.u32 %v2719_v62, %v2718_v54  ;;  %v2723_v37 = vrot.slane %v2718_v54, 4  ;;  %v8582_v62 = vld [vmem:[#allocation2 + $0xd4] sm:$0xf]  ;;  %v2524_v50 = vld [vmem:[#allocation2 + $0xd8] sm:$0xf] }
  0xde   : > { %v2738_v8 = vshrl.u32 %v8543_v21, 16  ;;  %v6675_v53 = vcombine.low %v2700_v15, %v2709_v25  ;;  %v2730_v55 = vor.u32 %v2728_v3, %v2727_v51  ;;  %v2741_v27 = vshll.u32 %v8543_v21, 16  ;;  %v8590_v54 = vld [vmem:[#allocation2 + $0xe4] sm:$0xf] }
  0xdf   : > { %v6658_v38 = vrot.slane %v2711_v60, 11  ;;  %v2747_v45 = vshrl.u32 %v8548_v16, 16  ;;  %v2750_v48 = vshll.u32 %v8548_v16, 16  ;;  %v6712_v59 = vcombine.low %v8543_v21, %v8548_v16  ;;  %v2522_v60 = vld [vmem:[#allocation2 + $0xd0] sm:$0x8] }
  0xe0   : > { %v2740_v18 = vrot.slane %v2738_v8, 7  ;;  %v2731_v49 = vsel %vm8105_vm6, %v2723_v37, %v2730_v55  ;;  %v2733_v47 = vshrl.u32 %v2513_v10, 16  ;;  %v2760_v39 = vshrl.u32 %v8554_v23, 16 }
  0xe1   : > { %v2722_v6 = vsel %vm8105_vm6, %v6658_v38, %v2721_v17  ;;  %7407 = vmatmul.mubr.msk.bf16.gmra.mxu0 %vm1279_vm1, %v6710_v5  ;;  %v2749_v46 = vrot.slane %v2747_v45, 7  ;;  %v2763_v0 = vshll.u32 %v8554_v23, 16  ;;  %v2769_v42 = vshrl.u32 %v2518_v43, 16 }
  0xe2   : > { %7373 = vmatmul.mubr.msk.bf16.gmra.mxu1 %vm1279_vm1, %v6675_v53  ;;  %v6676_v56 = vcombine.low %v2722_v6, %v2731_v49  ;;  %v2743_v34 = vor.u32 %v2741_v27, %v2740_v18  ;;  %v2745_v22 = vrot.slane %v2740_v18, 4  ;;  %7410 = vmatprep.mubr.msk.bf16.mxu0 %vm1279_vm1, %v6711_v2  ;;  %v6659_v19 = vrot.slane %v2733_v47, 11  ;;  %v8603_v18 = vld [vmem:[#allocation2 + $0xe8] sm:$0xf]  ;;  %v2525_v49 = vld [vmem:[#allocation2 + $0xe0] sm:$0x8] }
  0xe3   : > { %v2762_v52 = vrot.slane %v2760_v39, 7  ;;  %v2752_v14 = vor.u32 %v2750_v48, %v2749_v46  ;;  %v2772_v26 = vshll.u32 %v2518_v43, 16  ;;  %v6713_v30 = vcombine.low %v8554_v23, %v2518_v43  ;;  %v8609_v46 = vld [vmem:[#allocation2 + $0xf4] sm:$0xf] }
  0xe4   : > { %7376 = vmatprep.mubr.msk.bf16.mxu1 %vm1279_vm1, %v6676_v56  ;;  %v2755_v28 = vshrl.u32 %v2516_v1, 16  ;;  %v2744_v63 = vsel %vm8105_vm6, %v6659_v19, %v2743_v34  ;;  %v2771_v31 = vrot.slane %v2769_v42, 7  ;;  %v2782_v11 = vshrl.u32 %v8570_v58, 16  ;;  %v8617_v42 = vld [vmem:[#allocation2 + $0xf8] sm:$0xf] }
  0xe5   : > { %v2765_v5 = vor.u32 %v2763_v0, %v2762_v52  ;;  %v2767_v24 = vrot.slane %v2762_v52, 4  ;;  %v2753_v57 = vsel %vm8105_vm6, %v2745_v22, %v2752_v14  ;;  %v2785_v44 = vshll.u32 %v8570_v58, 16 }
  0xe6   : > { %v6660_v12 = vrot.slane %v2755_v28, 11  ;;  %v6677_v40 = vcombine.low %v2744_v63, %v2753_v57  ;;  %v2774_v7 = vor.u32 %v2772_v26, %v2771_v31  ;;  %v2791_v35 = vshrl.u32 %v8574_v36, 16  ;;  %v2528_v28 = vld [vmem:[#allocation2 + $0xf0] sm:$0x8] }
  0xe7   : > { %v2794_v32 = vshll.u32 %v8574_v36, 16  ;;  %v2784_v29 = vrot.slane %v2782_v11, 7  ;;  %v6714_v21 = vcombine.low %v8570_v58, %v8574_v36  ;;  %v2777_v4 = vshrl.u32 %v2519_v13, 16 }
  0xe8   : > { %v2766_v61 = vsel %vm8105_vm6, %v6660_v12, %v2765_v5  ;;  %v2775_v51 = vsel %vm8105_vm6, %v2767_v24, %v2774_v7  ;;  %v2793_v15 = vrot.slane %v2791_v35, 7  ;;  %v2804_v3 = vshrl.u32 %v8582_v62, 16  ;;  %v7102_v24 = vld [vmem:[%s7785_s9 + $0x78] sm:$0xff]  }
  0xe9   : > { %v2807_v2 = vshll.u32 %v8582_v62, 16  ;;  %7411 = vmatmul.mubr.msk.bf16.gmra.mxu0 %vm1279_vm1, %v6712_v59  ;;  %v6678_v16 = vcombine.low %v2766_v61, %v2775_v51  ;;  %v6661_v25 = vrot.slane %v2777_v4, 11  ;;  %v2787_v17 = vor.u32 %v2785_v44, %v2784_v29 }
  0xea   : > { %7377 = vmatmul.mubr.msk.bf16.gmra.mxu1 %vm1279_vm1, %v6677_v40  ;;  %v2789_v37 = vrot.slane %v2784_v29, 4  ;;  %7414 = vmatprep.mubr.msk.bf16.mxu0 %vm1279_vm1, %v6713_v30  ;;  %v2796_v8 = vor.u32 %v2794_v32, %v2793_v15  ;;  %v2806_v10 = vrot.slane %v2804_v3, 7  ;;  %v2813_v23 = vshrl.u32 %v2524_v50, 16  ;;  %v2531_v32 = vld [vmem:[#allocation2 + $0x100] sm:$0x8] }
  0xeb   : > { %v2816_v53 = vshll.u32 %v2524_v50, 16  ;;  %7380 = vmatprep.mubr.msk.bf16.mxu1 %vm1279_vm1, %v6678_v16  ;;  %v2788_v38 = vsel %vm8105_vm6, %v6661_v25, %v2787_v17  ;;  %v6715_v55 = vcombine.low %v8582_v62, %v2524_v50  ;;  %v2799_v27 = vshrl.u32 %v2522_v60, 16  ;;  %v8611_v34 = vpop.f32.mrf.mxu0  ;;  %v4245_v50 = vld [vmem:[#allocation2 + $0x20] sm:$0x8]  ;;  %v7630_v17 = vld [vmem:[%s9738_s1] ss:$0 sm:$0xff] }
  0xec   : > { %v2826_v45 = vshrl.u32 %v8590_v54, 16  ;;  %v2797_v48 = vsel %vm8105_vm6, %v2789_v37, %v2796_v8  ;;  %v2815_v59 = vrot.slane %v2813_v23, 7  ;;  %v2809_v43 = vor.u32 %v2807_v2, %v2806_v10  ;;  %9838 = vst [vmem:[#allocation3_spill] sm:$0xff] %v8611_v34 }
  0xed   : > { %v2811_v6 = vrot.slane %v2806_v10, 4  ;;  %v6679_v47 = vcombine.low %v2788_v38, %v2797_v48  ;;  %v6662_v39 = vrot.slane %v2799_v27, 11  ;;  %v2829_v56 = vshll.u32 %v8590_v54, 16  ;;  %v8626_v13 = vpop.f32.mrf.mxu0  ;;  %v4247_v38 = vld [vmem:[#allocation2 + $0x28] sm:$0xf] }
  0xee   : > { %v2828_v1 = vrot.slane %v2826_v45, 7  ;;  %v2818_v22 = vor.u32 %v2816_v53, %v2815_v59  ;;  %v2835_v19 = vshrl.u32 %v8603_v18, 16  ;;  %v2838_v52 = vshll.u32 %v8603_v18, 16  ;;  %9839 = vst [vmem:[#allocation5_spill] sm:$0xff] %v8626_v13  ;;  %v8645_v10 = vpop.f32.mrf.mxu1  ;;  %v7631_v45 = vld [vmem:[%s9739_s2] ss:$0 sm:$0xff] }
  0xef   : > { %v6716_v0 = vcombine.low %v8590_v54, %v8603_v18  ;;  %v2810_v58 = vsel %vm8105_vm6, %v6662_v39, %v2809_v43  ;;  %v2821_v14 = vshrl.u32 %v2525_v49, 16  ;;  %v2848_v31 = vshrl.u32 %v8609_v46, 16  ;;  %v4246_v54 = vld [vmem:[#allocation2 + $0x24] sm:$0xf]  ;;  %v8640_v60 = vpop.f32.mrf.mxu0 }
  0xf0   : > { %v2831_v26 = vor.u32 %v2829_v56, %v2828_v1  ;;  %v2833_v30 = vrot.slane %v2828_v1, 4  ;;  %v2819_v36 = vsel %vm8105_vm6, %v2811_v6, %v2818_v22  ;;  %v2837_v63 = vrot.slane %v2835_v19, 7  ;;  %9840 = vst [vmem:[#allocation4_spill] sm:$0xff] %v8640_v60  ;;  %v3514_v6 = vld [vmem:[#allocation2 + $0x14] sm:$0xf] }
  0xf1   : > { %v2851_v5 = vshll.u32 %v8609_v46, 16  ;;  %7415 = vmatmul.mubr.msk.bf16.gmra.mxu0 %vm1279_vm1, %v6714_v21  ;;  %v6680_v57 = vcombine.low %v2810_v58, %v2819_v36  ;;  %v6663_v12 = vrot.slane %v2821_v14, 11  ;;  %v2857_v11 = vshrl.u32 %v8617_v42, 16  ;;  %v3515_v56 = vld [vmem:[#allocation2 + $0x18] sm:$0xf]  ;;  %v8660_v14 = vpop.f32.mrf.mxu1 }
  0xf2   : > { %7381 = vmatmul.mubr.msk.bf16.gmra.mxu1 %vm1279_vm1, %v6679_v47  ;;  %v2860_v44 = vshll.u32 %v8617_v42, 16  ;;  %7418 = vmatprep.mubr.msk.bf16.mxu0 %vm1279_vm1, %v6715_v55  ;;  %v2840_v62 = vor.u32 %v2838_v52, %v2837_v63  ;;  %v2850_v40 = vrot.slane %v2848_v31, 7  ;;  %v6717_v7 = vcombine.low %v8609_v46, %v8617_v42  ;;  %v8656_v46 = vpop.f32.mrf.mxu0  ;;  %v3516_v58 = vld [vmem:[#allocation2 + $0x1c] sm:$0x1]  ;;  %v4248_v63 = vld [vmem:[#allocation2 + $0x30] sm:$0x8] }
  0xf3   : > { %v2843_v35 = vshrl.u32 %v2528_v28, 16  ;;  %7384 = vmatprep.mubr.msk.bf16.mxu1 %vm1279_vm1, %v6680_v57  ;;  %v2832_v61 = vsel %vm8105_vm6, %v6663_v12, %v2831_v26  ;;  %v2859_v29 = vrot.slane %v2857_v11, 7  ;;  %v7086_v21 = vunpack.c.l.bf16 %v7102_v24  ;;  %9841 = vst [vmem:[#allocation8_spill] sm:$0xff] %v8656_v46  ;;  %v4249_v57 = vld [vmem:[#allocation2 + $0x34] sm:$0xf] }
  0xf4   : > { %v7087_v4 = vunpack.c.h.bf16 %v7102_v24  ;;  %v2841_v51 = vsel %vm8105_vm6, %v2833_v30, %v2840_v62  ;;  %v2853_v3 = vor.u32 %v2851_v5, %v2850_v40  ;;  %v2855_v2 = vrot.slane %v2850_v40, 4  ;;  %v4250_v40 = vld [vmem:[#allocation2 + $0x38] sm:$0xf]  ;;  %v3547_v13 = vld [vmem:[#allocation2 + $0xc4] sm:$0xf] }
  0xf5   : > { %v6664_v15 = vrot.slane %v2843_v35, 11  ;;  %v6681_v16 = vcombine.low %v2832_v61, %v2841_v51  ;;  %v2862_v25 = vor.u32 %v2860_v44, %v2859_v29  ;;  %v376_v37 = vmul.f32 %v7630_v17, %v7086_v21  ;;  %v8670_v21 = vpop.f32.mrf.mxu1 }
  0xf6   : > { %v377_v8 = vmul.f32 %v7630_v17, %v7087_v4  ;;  %v2865_v53 = vshrl.u32 %v2531_v32, 16  ;;  %v4294_v55 = vshrl.u32 %v4245_v50, 16  ;;  %v4299_v27 = vshrl.u32 %v4246_v54, 16 }
  0xf7   : > { %v2854_v23 = vsel %vm8105_vm6, %v6664_v15, %v2853_v3  ;;  %v2863_v18 = vsel %vm8105_vm6, %v2855_v2, %v2862_v25  ;;  %v414_v48 = vadd.f32 %v7631_v45, %v376_v37  ;;  %v4302_v43 = vshll.u32 %v4246_v54, 16  ;;  %v3517_v15 = vld [vmem:[#allocation2 + $0x24] sm:$0xf] }
  0xf8   : > { %v415_v59 = vadd.f32 %v7631_v45, %v377_v8  ;;  %v6682_v49 = vcombine.low %v2854_v23, %v2863_v18  ;;  %v8654_v47 = vrot.slane %v2865_v53, 11  ;;  %v6771_v39 = vrot.slane %v4294_v55, 11  ;;  %v3518_v53 = vld [vmem:[#allocation2 + $0x28] sm:$0xf]  ;;  %v3519_v18 = vld [vmem:[#allocation2 + $0x2c] sm:$0x1] }
  0xf9   : > { %v4301_v1 = vrot.slane %v4299_v27, 7  ;;  %7419 = vmatmul.mubr.msk.bf16.gmra.mxu0 %vm1279_vm1, %v6716_v0  ;;  %v446_v22 = vmax.f32 %v414_v48, 0.0  ;;  %v4308_v52 = vshrl.u32 %v4247_v38, 16  ;;  %v4311_v42 = vshll.u32 %v4247_v38, 16 }
  0xfa   : > { %7385 = vmatmul.mubr.msk.bf16.gmra.mxu1 %vm1279_vm1, %v6681_v16  ;;  %v447_v19 = vmax.f32 %v415_v59, 0.0  ;;  %7422 = vmatprep.mubr.msk.bf16.mxu0 %vm1279_vm1, %v6717_v7  ;;  %v3563_v28 = vshrl.u32 %v3514_v6, 16  ;;  %v3566_v36 = vshll.u32 %v3514_v6, 16  ;;  %v3572_v24 = vshll.u32 %v3515_v56, 16  ;;  %v8666_v7 = vpop.f32.mrf.mxu0  ;;  %v8676_v59 = vpop.f32.mrf.mxu1 }
  0xfb   : > { %7388 = vmatprep.mubr.msk.bf16.mxu1 %vm1279_vm1, %v6682_v49  ;;  %v4304_v26 = vor.u32 %v4302_v43, %v4301_v1  ;;  %v4306_v30 = vrot.slane %v4301_v1, 4  ;;  %v6989_v31 = vpack.c.bf16 %v446_v22, %v446_v22  ;;  %v4310_v5 = vrot.slane %v4308_v52, 7  ;;  %9842 = vst [vmem:[#allocation6_spill] sm:$0xff] %v8666_v7  ;;  %v4271_v7 = vld [vmem:[#allocation2 + $0xa8] sm:$0xf] }
  0xfc   : > { %v6990_v0 = vpack.c.bf16 %v447_v19, %v447_v19  ;;  %v3565_v11 = vrot.slane %v3563_v28, 4  ;;  %v3568_v44 = vrot.slane %v3566_v36, 5  ;;  %v3576_v62 = vshrl.u32 %v3515_v56, 16  ;;  %v8674_v38 = vpop.f32.mrf.mxu0 }
  0xfd   : > { %v4305_v12 = vsel %vm8105_vm6, %v6771_v39, %v4304_v26  ;;  %778 = vst.msk [vmem:[#allocation2 + $0x104] sm:$0xf] %vm712_vm0, %v6989_v31  ;;  %v4313_v35 = vor.u32 %v4311_v42, %v4310_v5  ;;  %v3574_v32 = vrot.slane %v3572_v24, 5  ;;  %v3582_v61 = vshll.u32 %v3516_v58, 16  ;;  %9843 = vst [vmem:[#allocation9_spill] sm:$0xff] %v8674_v38 }
  0xfe   : > { %779 = vst.msk [vmem:[#allocation2 + $0x108] sm:$0xf] %vm712_vm0, %v6990_v0  ;;  %v4316_v29 = vshrl.u32 %v4248_v63, 16  ;;  %v3569_v4 = vor.u32 %v3568_v44, %v3565_v11  ;;  %v3578_v50 = vrot.slane %v3576_v62, 4  ;;  %v4321_v54 = vshrl.u32 %v4249_v57, 16  ;;  %v8684_v36 = vpop.f32.mrf.mxu0 }
  0xff   : > { %v4324_v51 = vshll.u32 %v4249_v57, 16  ;;  %v4314_v3 = vsel %vm8105_vm6, %v4306_v30, %v4313_v35  ;;  %v3584_v2 = vrot.slane %v3582_v61, 5  ;;  %v4330_v25 = vshrl.u32 %v4250_v40, 16  ;;  %9844 = vst [vmem:[#allocation7_spill] sm:$0xff] %v8684_v36  ;;  %v4251_v24 = vld [vmem:[#allocation2 + $0x40] sm:$0x8]  ;;  %v8686_v57 = vpop.f32.mrf.mxu1 }
 0x100   : > { %v6772_v16 = vrot.slane %v4316_v29, 11  ;;  %v6789_v17 = vcombine.low %v4305_v12, %v4314_v3  ;;  %v3570_v37 = vrot.slane %v3569_v4, 4  ;;  %v3579_v8 = vor.u32 %v3578_v50, %v3574_v32 }
 0x101   : > { %v4323_v23 = vrot.slane %v4321_v54, 7  ;;  %v4332_v55 = vrot.slane %v4330_v25, 7  ;;  %v4333_v27 = vshll.u32 %v4250_v40, 16  ;;  %v3587_v45 = vshrl.u32 %v3517_v15, 16  ;;  %v4252_v40 = vld [vmem:[#allocation2 + $0x44] sm:$0xf]  ;;  %v8691_v3 = vpop.f32.mrf.mxu1 }
 0x102   : > { %v3590_v48 = vshll.u32 %v3517_v15, 16  ;;  %v3575_v43 = vsel %vm8124_vm7, %v3570_v37, %v3574_v32  ;;  %v3580_v6 = vrot.slane %v3579_v8, 4  ;;  %v3596_v19 = vshll.u32 %v3518_v53, 16 }
 0x103   : > { %v4326_v49 = vor.u32 %v4324_v51, %v4323_v23  ;;  %v4328_v39 = vrot.slane %v4323_v23, 4  ;;  %v4335_v1 = vor.u32 %v4333_v27, %v4332_v55  ;;  %v3589_v56 = vrot.slane %v3587_v45, 4  ;;  %v4253_v51 = vld [vmem:[#allocation2 + $0x48] sm:$0xf]  ;;  %v3520_v23 = vld [vmem:[#allocation2 + $0x34] sm:$0xf] }
 0x104   : > { %v3592_v22 = vrot.slane %v3590_v48, 5  ;;  %v2532_v52 = vld [vmem:[#allocation2 + $0x104] sm:$0xf]  ;;  %v3585_v58 = vsel %vm8124_vm7, %v3580_v6, %v3584_v2  ;;  %v3600_v30 = vshrl.u32 %v3518_v53, 16  ;;  %v3606_v28 = vshll.u32 %v3519_v18, 16  ;;  %v8693_v2 = vpop.f32.mrf.mxu0 }
 0x105   : > { %v2533_v42 = vld [vmem:[#allocation2 + $0x108] sm:$0xf]  ;;  %v4327_v26 = vsel %vm8105_vm6, %v6772_v16, %v4326_v49  ;;  %v2870_v63 = vshrl.u32 %v2532_v52, 16  ;;  %v2873_v31 = vshll.u32 %v2532_v52, 16  ;;  %v6738_v11 = vcombine.low %v3575_v43, %v3585_v58  ;;  %9845 = vst [vmem:[#allocation12_spill] sm:$0xff] %v8693_v2 }
 0x106   : > { %v2879_v0 = vshrl.u32 %v2533_v42, 16  ;;  %v2882_v5 = vshll.u32 %v2533_v42, 16  ;;  %v6718_v12 = vcombine.low %v2532_v52, %v2533_v42  ;;  %v4336_v44 = vsel %vm8105_vm6, %v4328_v39, %v4335_v1  ;;  %v3521_v49 = vld [vmem:[#allocation2 + $0x38] sm:$0xf]  ;;  %v8705_v52 = vpop.f32.mrf.mxu0 }
 0x107   : > { %v3593_v62 = vor.u32 %v3592_v22, %v3589_v56  ;;  %v2872_v35 = vrot.slane %v2870_v63, 7  ;;  %v6790_v61 = vcombine.low %v4327_v26, %v4336_v44  ;;  %v3598_v29 = vrot.slane %v3596_v19, 5  ;;  %v3522_v56 = vld [vmem:[#allocation2 + $0x3c] sm:$0x1]  ;;  %v8703_v19 = vpop.f32.mrf.mxu1 }
 0x108   : > { %v2881_v32 = vrot.slane %v2879_v0, 7  ;;  %7423 = vmatmul.mubr.msk.bf16.gmra.mxu0 %vm1279_vm1, %v6718_v12  ;;  %v3602_v50 = vrot.slane %v3600_v30, 4  ;;  %v3608_v54 = vrot.slane %v3606_v28, 5  ;;  %v4338_v15 = vshrl.u32 %v4251_v24, 16 }
 0x109   : > { %v3594_v4 = vrot.slane %v3593_v62, 4  ;;  %v2875_v16 = vor.u32 %v2873_v31, %v2872_v35  ;;  %v2877_v25 = vrot.slane %v2872_v35, 4  ;;  %7462 = vmatprep.mubr.msk.bf16.mxu0 %vm1279_vm1, %v6789_v17  ;;  %v4343_v8 = vshrl.u32 %v4252_v40, 16 }
 0x10a   : > { %v2884_v37 = vor.u32 %v2882_v5, %v2881_v32  ;;  %v3603_v55 = vor.u32 %v3602_v50, %v3598_v29  ;;  %v6773_v27 = vrot.slane %v4338_v15, 11  ;;  %v4346_v18 = vshll.u32 %v4252_v40, 16  ;;  %v4255_v5 = vld [vmem:[#allocation2 + $0x54] sm:$0xf]  ;;  %v8714_v50 = vpop.f32.mrf.mxu1 }
 0x10b   : > { %v3599_v53 = vsel %vm8124_vm7, %v3594_v4, %v3598_v29  ;;  %v2876_v45 = vsel %vm8105_vm6, %v8654_v47, %v2875_v16  ;;  %v4345_v43 = vrot.slane %v4343_v8, 7  ;;  %v4352_v6 = vshrl.u32 %v4253_v51, 16  ;;  %v4254_v47 = vld [vmem:[#allocation2 + $0x50] sm:$0x8]  ;;  %v4256_v29 = vld [vmem:[#allocation2 + $0x58] sm:$0xf] }
 0x10c   : > { %v2885_v48 = vsel %vm8105_vm6, %v2877_v25, %v2884_v37  ;;  %v3604_v17 = vrot.slane %v3603_v55, 4  ;;  %v4355_v1 = vshll.u32 %v4253_v51, 16  ;;  %v3611_v22 = vshrl.u32 %v3520_v23, 16  ;;  %9846 = vst [vmem:[#allocation10_spill] sm:$0xff] %v8714_v50  ;;  %v3523_v25 = vld [vmem:[#allocation2 + $0x44] sm:$0xf] }
 0x10d   : > { %v6683_v39 = vcombine.low %v2876_v45, %v2885_v48  ;;  %v4348_v42 = vor.u32 %v4346_v18, %v4345_v43  ;;  %v4350_v58 = vrot.slane %v4345_v43, 4  ;;  %v4354_v26 = vrot.slane %v4352_v6, 7  ;;  %v3524_v37 = vld [vmem:[#allocation2 + $0x48] sm:$0xf] }
 0x10e   : > { %v3614_v30 = vshll.u32 %v3520_v23, 16  ;;  %v3609_v28 = vsel %vm8124_vm7, %v3604_v17, %v3608_v54  ;;  %v3613_v63 = vrot.slane %v3611_v22, 4  ;;  %v3620_v31 = vshll.u32 %v3521_v49, 16  ;;  %v8716_v54 = vpop.f32.mrf.mxu0 }
 0x10f   : > { %7389 = vmatmul.mubr.msk.bf16.gmra.mxu1 %vm1279_vm1, %v6683_v39  ;;  %v3624_v0 = vshrl.u32 %v3521_v49, 16  ;;  %v6739_v24 = vcombine.low %v3599_v53, %v3609_v28  ;;  %v4349_v12 = vsel %vm8105_vm6, %v6773_v27, %v4348_v42  ;;  %v4357_v44 = vor.u32 %v4355_v1, %v4354_v26  ;;  %v8722_v39 = vpop.f32.mrf.mxu1  ;;  %v4258_v26 = vld [vmem:[#allocation2 + $0x64] sm:$0xf] }
 0x110   : > { %7428 = vmatprep.mubr.msk.bf16.mxu1 %vm1279_vm1, %v6738_v11  ;;  %v3616_v62 = vrot.slane %v3614_v30, 5  ;;  %7463 = vmatmul.mubr.msk.bf16.vlgmr.msra.gmra.mxu0 %vm1279_vm1, %v6790_v61  ;;  %v3622_v40 = vrot.slane %v3620_v31, 5  ;;  %v3630_v32 = vshll.u32 %v3522_v56, 16  ;;  %v4360_v4 = vshrl.u32 %v4254_v47, 16  ;;  %9847 = vst [vmem:[#allocation13_spill] sm:$0xff] %v8722_v39  ;;  %v8724_v17 = vpop.f32.mrf.mxu0 }
 0x111   : > { %v3626_v35 = vrot.slane %v3624_v0, 4  ;;  %7529 = vmatpush3.bf16.msra.mxu0 %v8479_v9  ;;  %v4358_v11 = vsel %vm8105_vm6, %v4350_v58, %v4357_v44  ;;  %v4365_v15 = vshrl.u32 %v4255_v5, 16  ;;  %v4368_v16 = vshll.u32 %v4255_v5, 16  ;;  %v3525_v9 = vld [vmem:[#allocation2 + $0x4c] sm:$0x1] }
 0x112   : > { %v3617_v51 = vor.u32 %v3616_v62, %v3613_v63  ;;  %v6791_v61 = vcombine.low %v4349_v12, %v4358_v11  ;;  %v3632_v23 = vrot.slane %v3630_v32, 5  ;;  %v6774_v53 = vrot.slane %v4360_v4, 11  ;;  %v4257_v58 = vld [vmem:[#allocation2 + $0x60] sm:$0x8]  ;;  %v4259_v31 = vld [vmem:[#allocation2 + $0x68] sm:$0xf]  ;;  %v8736_v4 = vpop.f32.mrf.mxu0 }
 0x113   : > { %v3627_v8 = vor.u32 %v3626_v35, %v3622_v40  ;;  %v4367_v27 = vrot.slane %v4365_v15, 7  ;;  %v4374_v18 = vshrl.u32 %v4256_v29, 16  ;;  %v4377_v45 = vshll.u32 %v4256_v29, 16  ;;  %v8734_v29 = vpop.f32.mrf.mxu1  ;;  %v5274_v39 = vld [vmem:[#allocation2 + $0x28] sm:$0xf] }
 0x114   : > { %v3618_v55 = vrot.slane %v3617_v51, 4  ;;  %7466 = vmatprep.mubr.msk.bf16.mxu0 %vm1279_vm1, %v6791_v61  ;;  %v3635_v43 = vshrl.u32 %v3523_v25, 16  ;;  %v3638_v6 = vshll.u32 %v3523_v25, 16  ;;  %v3644_v49 = vshll.u32 %v3524_v37, 16  ;;  %9848 = vst [vmem:[#allocation11_spill] sm:$0xff] %v8734_v29 }
 0x115   : > { %v3628_v48 = vrot.slane %v3627_v8, 4  ;;  %v4370_v56 = vor.u32 %v4368_v16, %v4367_v27  ;;  %v4372_v22 = vrot.slane %v4367_v27, 4  ;;  %v4376_v42 = vrot.slane %v4374_v18, 7  ;;  %v3527_v16 = vld [vmem:[#allocation2 + $0x58] sm:$0xf] }
 0x116   : > { %v3623_v1 = vsel %vm8124_vm7, %v3618_v55, %v3622_v40  ;;  %v3637_v47 = vrot.slane %v3635_v43, 4  ;;  %v3640_v28 = vrot.slane %v3638_v6, 5  ;;  %v3646_v63 = vrot.slane %v3644_v49, 5  ;;  %v8744_v6 = vpop.f32.mrf.mxu1 }
 0x117   : > { %7429 = vmatmul.mubr.msk.bf16.vlgmr.msra.gmra.mxu1 %vm1279_vm1, %v6739_v24  ;;  %v3633_v30 = vsel %vm8124_vm7, %v3628_v48, %v3632_v23  ;;  %v4371_v5 = vsel %vm8105_vm6, %v6774_v53, %v4370_v56  ;;  %v4379_v12 = vor.u32 %v4377_v45, %v4376_v42  ;;  %v3648_v44 = vshrl.u32 %v3524_v37, 16  ;;  %v3526_v24 = vld [vmem:[#allocation2 + $0x54] sm:$0xf]  ;;  %v3528_v45 = vld [vmem:[#allocation2 + $0x5c] sm:$0x1]  ;;  %9849 = vst [vmem:[#allocation16_spill] sm:$0xff] %v8744_v6  ;;  %v8746_v49 = vpop.f32.mrf.mxu0 }
 0x118   : > { %7495 = vmatpush3.bf16.msra.mxu1 %v8472_v20  ;;  %v6740_v0 = vcombine.low %v3623_v1, %v3633_v30  ;;  %v3641_v62 = vor.u32 %v3640_v28, %v3637_v47  ;;  %v3654_v40 = vshll.u32 %v3525_v9, 16  ;;  %v4382_v35 = vshrl.u32 %v4257_v58, 16  ;;  %v4261_v58 = vld [vmem:[#allocation2 + $0x74] sm:$0xf] }
 0x119   : > { %v4387_v32 = vshrl.u32 %v4258_v26, 16  ;;  %v4380_v20 = vsel %vm8105_vm6, %v4372_v22, %v4379_v12  ;;  %v3650_v11 = vrot.slane %v3648_v44, 4  ;;  %v4390_v51 = vshll.u32 %v4258_v26, 16  ;;  %v4262_v44 = vld [vmem:[#allocation2 + $0x78] sm:$0xf] }
 0x11a   : > { %7432 = vmatprep.mubr.msk.bf16.mxu1 %vm1279_vm1, %v6740_v0  ;;  %v4396_v15 = vshrl.u32 %v4259_v31, 16  ;;  %v6792_v25 = vcombine.low %v4371_v5, %v4380_v20  ;;  %v3642_v37 = vrot.slane %v3641_v62, 4  ;;  %v3656_v61 = vrot.slane %v3654_v40, 5  ;;  %v8754_v62 = vpop.f32.mrf.mxu0  ;;  %v3529_v20 = vld [vmem:[#allocation2 + $0x64] sm:$0xf] }
 0x11b   : > { %v6775_v8 = vrot.slane %v4382_v35, 11  ;;  %v3651_v23 = vor.u32 %v3650_v11, %v3646_v63  ;;  %v4389_v53 = vrot.slane %v4387_v32, 7  ;;  %v4399_v27 = vshll.u32 %v4259_v31, 16  ;;  %v4260_v31 = vld [vmem:[#allocation2 + $0x70] sm:$0x8]  ;;  %v8756_v11 = vpop.f32.mrf.mxu1 }
 0x11c   : > { %v4398_v55 = vrot.slane %v4396_v15, 7  ;;  %7467 = vmatmul.mubr.msk.bf16.gmra.mxu0 %vm1279_vm1, %v6792_v25  ;;  %v3647_v18 = vsel %vm8124_vm7, %v3642_v37, %v3646_v63  ;;  %v3659_v48 = vshrl.u32 %v3526_v24, 16  ;;  %v3662_v9 = vshll.u32 %v3526_v24, 16  ;;  %9850 = vst [vmem:[#allocation14_spill] sm:$0xff] %v8756_v11  ;;  %v3530_v37 = vld [vmem:[#allocation2 + $0x68] sm:$0xf] }
 0x11d   : > { %v3668_v43 = vshll.u32 %v3527_v16, 16  ;;  %v3652_v1 = vrot.slane %v3651_v23, 4  ;;  %v4392_v56 = vor.u32 %v4390_v51, %v4389_v53  ;;  %v4394_v22 = vrot.slane %v4389_v53, 4  ;;  %v4290_v11 = vld [vmem:[#allocation2 + $0x110] sm:$0x8] }
 0x11e   : > { %v4401_v42 = vor.u32 %v4399_v27, %v4398_v55  ;;  %v3661_v26 = vrot.slane %v3659_v48, 4  ;;  %v3664_v30 = vrot.slane %v3662_v9, 5  ;;  %v3672_v28 = vshrl.u32 %v3527_v16, 16  ;;  %v8760_v9 = vpop.f32.mrf.mxu0 }
 0x11f   : > { %v3670_v47 = vrot.slane %v3668_v43, 5  ;;  %v3657_v63 = vsel %vm8124_vm7, %v3652_v1, %v3656_v61  ;;  %v4393_v0 = vsel %vm8105_vm6, %v6775_v8, %v4392_v56  ;;  %v3678_v12 = vshll.u32 %v3528_v45, 16 }
 0x120   : > { %v4402_v5 = vsel %vm8105_vm6, %v4394_v22, %v4401_v42  ;;  %v6741_v40 = vcombine.low %v3647_v18, %v3657_v63  ;;  %v3665_v32 = vor.u32 %v3664_v30, %v3661_v26  ;;  %v3674_v24 = vrot.slane %v3672_v28, 4  ;;  %v3531_v18 = vld [vmem:[#allocation2 + $0x6c] sm:$0x1]  ;;  %v4264_v42 = vld [vmem:[#allocation2 + $0x84] sm:$0xf] }
 0x121   : > { %v6793_v35 = vcombine.low %v4393_v0, %v4402_v5  ;;  %v3680_v51 = vrot.slane %v3678_v12, 5  ;;  %v4404_v15 = vshrl.u32 %v4260_v31, 16  ;;  %v4409_v16 = vshrl.u32 %v4261_v58, 16  ;;  %v4263_v63 = vld [vmem:[#allocation2 + $0x80] sm:$0x8] }
 0x122   : > { %v4412_v25 = vshll.u32 %v4261_v58, 16  ;;  %7433 = vmatmul.mubr.msk.bf16.gmra.mxu1 %vm1279_vm1, %v6741_v40  ;;  %v3666_v61 = vrot.slane %v3665_v32, 4  ;;  %v3675_v8 = vor.u32 %v3674_v24, %v3670_v47  ;;  %v4418_v23 = vshrl.u32 %v4262_v44, 16  ;;  %v8764_v58 = vpop.f32.mrf.mxu1 }
 0x123   : > { %7470 = vmatprep.mubr.msk.bf16.mxu0 %vm1279_vm1, %v6793_v35  ;;  %v4421_v53 = vshll.u32 %v4262_v44, 16  ;;  %v6776_v55 = vrot.slane %v4404_v15, 11  ;;  %v4411_v27 = vrot.slane %v4409_v16, 7  ;;  %v3683_v45 = vshrl.u32 %v3529_v20, 16  ;;  %9851 = vst [vmem:[#allocation17_spill] sm:$0xff] %v8764_v58  ;;  %v8772_v15 = vpop.f32.mrf.mxu0 }
 0x124   : > { %v3686_v48 = vshll.u32 %v3529_v20, 16  ;;  %v3671_v43 = vsel %vm8124_vm7, %v3666_v61, %v3670_v47  ;;  %v3676_v1 = vrot.slane %v3675_v8, 4  ;;  %v4420_v56 = vrot.slane %v4418_v23, 7  ;;  %v8768_v40 = vpop.f32.mrf.mxu1  ;;  %v4265_v20 = vld [vmem:[#allocation2 + $0x88] sm:$0xf] }
 0x125   : > { %v3692_v22 = vshll.u32 %v3530_v37, 16  ;;  %v4414_v26 = vor.u32 %v4412_v25, %v4411_v27  ;;  %v4416_v30 = vrot.slane %v4411_v27, 4  ;;  %v3685_v28 = vrot.slane %v3683_v45, 4  ;;  %9852 = vst [vmem:[#allocation15_spill] sm:$0xff] %v8768_v40  ;;  %v3532_v8 = vld [vmem:[#allocation2 + $0x74] sm:$0xf] }
 0x126   : > { %v3688_v31 = vrot.slane %v3686_v48, 5  ;;  %v3681_v0 = vsel %vm8124_vm7, %v3676_v1, %v3680_v51  ;;  %v4423_v5 = vor.u32 %v4421_v53, %v4420_v56  ;;  %v3696_v44 = vshrl.u32 %v3530_v37, 16  ;;  %v8776_v23 = vpop.f32.mrf.mxu1  ;;  %v3533_v1 = vld [vmem:[#allocation2 + $0x78] sm:$0xf] }
 0x127   : > { %v3694_v12 = vrot.slane %v3692_v22, 5  ;;  %v6742_v47 = vcombine.low %v3671_v43, %v3681_v0  ;;  %v4415_v35 = vsel %vm8105_vm6, %v6776_v55, %v4414_v26  ;;  %v3702_v24 = vshll.u32 %v3531_v18, 16  ;;  %9853 = vst [vmem:[#allocation22_spill] sm:$0xff] %v8776_v23 }
 0x128   : > { %v3689_v32 = vor.u32 %v3688_v31, %v3685_v28  ;;  %v4424_v16 = vsel %vm8105_vm6, %v4416_v30, %v4423_v5  ;;  %v3698_v25 = vrot.slane %v3696_v44, 4  ;;  %v4426_v61 = vshrl.u32 %v4263_v63, 16  ;;  %v8779_v56 = vpop.f32.mrf.mxu1  ;;  %v3534_v30 = vld [vmem:[#allocation2 + $0x7c] sm:$0x1]  ;;  %v8784_v63 = vpop.f32.mrf.mxu0 }
 0x129   : > { %v4431_v51 = vshrl.u32 %v4264_v42, 16  ;;  %7436 = vmatprep.mubr.msk.bf16.mxu1 %vm1279_vm1, %v6742_v47  ;;  %v6794_v37 = vcombine.low %v4415_v35, %v4424_v16  ;;  %v3704_v27 = vrot.slane %v3702_v24, 5  ;;  %v4434_v55 = vshll.u32 %v4264_v42, 16  ;;  %9854 = vst [vmem:[#allocation18_spill] sm:$0xff] %v8779_v56  ;;  %9855 = vst [vmem:[#allocation23_spill] sm:$0xff] %v8784_v63 }
 0x12a   : > { %v3690_v53 = vrot.slane %v3689_v32, 4  ;;  %v3699_v45 = vor.u32 %v3698_v25, %v3694_v12  ;;  %v6777_v18 = vrot.slane %v4426_v61, 11  ;;  %v4440_v43 = vshrl.u32 %v4265_v20, 16  ;;  %v4267_v47 = vld [vmem:[#allocation2 + $0x94] sm:$0xf]  ;;  %v8786_v35 = vpop.f32.mrf.mxu1 }
 0x12b   : > { %v4433_v48 = vrot.slane %v4431_v51, 7  ;;  %7471 = vmatmul.mubr.msk.bf16.gmra.mxu0 %vm1279_vm1, %v6794_v37  ;;  %v4443_v26 = vshll.u32 %v4265_v20, 16  ;;  %v3707_v28 = vshrl.u32 %v3532_v8, 16  ;;  %v3710_v31 = vshll.u32 %v3532_v8, 16  ;;  %9856 = vst [vmem:[#allocation19_spill] sm:$0xff] %v8786_v35  ;;  %v8788_v51 = vpop.f32.mrf.mxu0 }
 0x12c   : > { %v3695_v22 = vsel %vm8124_vm7, %v3690_v53, %v3694_v12  ;;  %v3700_v0 = vrot.slane %v3699_v45, 4  ;;  %v4442_v44 = vrot.slane %v4440_v43, 7  ;;  %v3716_v16 = vshll.u32 %v3533_v1, 16  ;;  %v4266_v61 = vld [vmem:[#allocation2 + $0x90] sm:$0x8]  ;;  %9857 = vst [vmem:[#allocation20_spill] sm:$0xff] %v8788_v51  ;;  %v8794_v53 = vpop.f32.mrf.mxu1 }
 0x12d   : > { %v4436_v42 = vor.u32 %v4434_v55, %v4433_v48  ;;  %v4438_v5 = vrot.slane %v4433_v48, 4  ;;  %v3709_v32 = vrot.slane %v3707_v28, 4  ;;  %v3712_v24 = vrot.slane %v3710_v31, 5  ;;  %9858 = vst [vmem:[#allocation24_spill] sm:$0xff] %v8794_v53  ;;  %v4268_v28 = vld [vmem:[#allocation2 + $0x98] sm:$0xf]  ;;  %v8796_v31 = vpop.f32.mrf.mxu0 }
 0x12e   : > { %v3720_v25 = vshrl.u32 %v3533_v1, 16  ;;  %v3705_v12 = vsel %vm8124_vm7, %v3700_v0, %v3704_v27  ;;  %v4445_v8 = vor.u32 %v4443_v26, %v4442_v44  ;;  %v3726_v37 = vshll.u32 %v3534_v30, 16  ;;  %9859 = vst [vmem:[#allocation21_spill] sm:$0xff] %v8796_v31  ;;  %v3535_v0 = vld [vmem:[#allocation2 + $0x84] sm:$0xf]  ;;  %v8800_v38 = vpop.f32.mrf.mxu1 }
 0x12f   : > { %v4437_v20 = vsel %vm8105_vm6, %v6777_v18, %v4436_v42  ;;  %v6743_v55 = vcombine.low %v3695_v22, %v3705_v12  ;;  %v3713_v45 = vor.u32 %v3712_v24, %v3709_v32  ;;  %v3718_v48 = vrot.slane %v3716_v16, 5  ;;  %9860 = vst [vmem:[#allocation25_spill] sm:$0xff] %v8800_v38  ;;  %v3536_v42 = vld [vmem:[#allocation2 + $0x88] sm:$0xf]  ;;  %v3544_v38 = vld [vmem:[#allocation2 + $0xb4] sm:$0xf] }
 0x130   : > { %v3722_v43 = vrot.slane %v3720_v25, 4  ;;  %v4446_v1 = vsel %vm8105_vm6, %v4438_v5, %v4445_v8  ;;  %v3728_v2 = vrot.slane %v3726_v37, 5  ;;  %v4448_v36 = vshrl.u32 %v4266_v61, 16  ;;  %v3537_v25 = vld [vmem:[#allocation2 + $0x8c] sm:$0x1]  ;;  %v8803_v12 = vpop.f32.mrf.mxu1 }
 0x131   : > { %v4453_v27 = vshrl.u32 %v4267_v47, 16  ;;  %7437 = vmatmul.mubr.msk.bf16.gmra.mxu1 %vm1279_vm1, %v6743_v55  ;;  %v6795_v18 = vcombine.low %v4437_v20, %v4446_v1  ;;  %v3714_v26 = vrot.slane %v3713_v45, 4  ;;  %v4456_v30 = vshll.u32 %v4267_v47, 16  ;;  %9861 = vst [vmem:[#allocation26_spill] sm:$0xff] %v8803_v12  ;;  %v4270_v20 = vld [vmem:[#allocation2 + $0xa4] sm:$0xf]  ;;  %v8808_v55 = vpop.f32.mrf.mxu0 }
 0x132   : > { %v3723_v22 = vor.u32 %v3722_v43, %v3718_v48  ;;  %v6778_v44 = vrot.slane %v4448_v36, 11  ;;  %v4462_v24 = vshrl.u32 %v4268_v28, 16  ;;  %v4465_v16 = vshll.u32 %v4268_v28, 16  ;;  %9862 = vst [vmem:[#allocation27_spill] sm:$0xff] %v8808_v55  ;;  %v4269_v1 = vld [vmem:[#allocation2 + $0xa0] sm:$0x8] }
 0x133   : > { %v4455_v32 = vrot.slane %v4453_v27, 7  ;;  %7474 = vmatprep.mubr.msk.bf16.mxu0 %vm1279_vm1, %v6795_v18  ;;  %v3719_v5 = vsel %vm8124_vm7, %v3714_v26, %v3718_v48  ;;  %v3731_v8 = vshrl.u32 %v3535_v0, 16  ;;  %v3734_v37 = vshll.u32 %v3535_v0, 16  ;;  %v8816_v46 = vpop.f32.mrf.mxu0 }
 0x134   : > { %v3724_v61 = vrot.slane %v3723_v22, 4  ;;  %v4464_v36 = vrot.slane %v4462_v24, 7  ;;  %v3740_v43 = vshll.u32 %v3536_v42, 16  ;;  %v3744_v18 = vshrl.u32 %v3536_v42, 16  ;;  %v8814_v22 = vpop.f32.mrf.mxu1  ;;  %9864 = vst [vmem:[#allocation29_spill] sm:$0xff] %v8816_v46 }
 0x135   : > { %v4458_v47 = vor.u32 %v4456_v30, %v4455_v32  ;;  %v4460_v45 = vrot.slane %v4455_v32, 4  ;;  %v3733_v27 = vrot.slane %v3731_v8, 4  ;;  %v3736_v31 = vrot.slane %v3734_v37, 5  ;;  %9863 = vst [vmem:[#allocation28_spill] sm:$0xff] %v8814_v22  ;;  %v3538_v8 = vld [vmem:[#allocation2 + $0x94] sm:$0xf] }
 0x136   : > { %v3729_v28 = vsel %vm8124_vm7, %v3724_v61, %v3728_v2  ;;  %v4467_v0 = vor.u32 %v4465_v16, %v4464_v36  ;;  %v3742_v26 = vrot.slane %v3740_v43, 5  ;;  %v3746_v32 = vrot.slane %v3744_v18, 4  ;;  %v3539_v36 = vld [vmem:[#allocation2 + $0x98] sm:$0xf] }
 0x137   : > { %v6744_v12 = vcombine.low %v3719_v5, %v3729_v28  ;;  %v4459_v48 = vsel %vm8105_vm6, %v6778_v44, %v4458_v47  ;;  %v3737_v30 = vor.u32 %v3736_v31, %v3733_v27  ;;  %v3750_v24 = vshll.u32 %v3537_v25, 16  ;;  %v8821_v44 = vpop.f32.mrf.mxu1  ;;  %v8823_v25 = vpop.f32.mrf.mxu0 }
 0x138   : > { %v4470_v55 = vshrl.u32 %v4269_v1, 16  ;;  %v4468_v2 = vsel %vm8105_vm6, %v4460_v45, %v4467_v0  ;;  %v4475_v42 = vshrl.u32 %v4270_v20, 16  ;;  %v4478_v5 = vshll.u32 %v4270_v20, 16  ;;  %9865 = vst [vmem:[#allocation30_spill] sm:$0xff] %v8821_v44  ;;  %9866 = vst [vmem:[#allocation31_spill] sm:$0xff] %v8823_v25 }
 0x139   : > { %7440 = vmatprep.mubr.msk.bf16.mxu1 %vm1279_vm1, %v6744_v12  ;;  %v4484_v61 = vshrl.u32 %v4271_v7, 16  ;;  %v6796_v16 = vcombine.low %v4459_v48, %v4468_v2  ;;  %v3738_v37 = vrot.slane %v3737_v30, 4  ;;  %v3747_v47 = vor.u32 %v3746_v32, %v3742_v26  ;;  %v8825_v27 = vpop.f32.mrf.mxu1  ;;  %v4273_v0 = vld [vmem:[#allocation2 + $0xb4] sm:$0xf]  ;;  %v3540_v2 = vld [vmem:[#allocation2 + $0x9c] sm:$0x1] }
 0x13a   : > { %v3752_v31 = vrot.slane %v3750_v24, 5  ;;  %v6779_v43 = vrot.slane %v4470_v55, 11  ;;  %v4477_v1 = vrot.slane %v4475_v42, 7  ;;  %v4487_v12 = vshll.u32 %v4271_v7, 16  ;;  %9867 = vst [vmem:[#allocation32_spill] sm:$0xff] %v8825_v27  ;;  %v8830_v42 = vpop.f32.mrf.mxu0 }
 0x13b   : > { %v4486_v28 = vrot.slane %v4484_v61, 7  ;;  %7475 = vmatmul.mubr.msk.bf16.gmra.mxu0 %vm1279_vm1, %v6796_v16  ;;  %v3743_v20 = vsel %vm8124_vm7, %v3738_v37, %v3742_v26  ;;  %v3748_v45 = vrot.slane %v3747_v47, 4  ;;  %v3755_v18 = vshrl.u32 %v3538_v8, 16  ;;  %v4274_v55 = vld [vmem:[#allocation2 + $0xb8] sm:$0xf]  ;;  %9868 = vst [vmem:[#allocation33_spill] sm:$0xff] %v8830_v42  ;;  %v8838_v47 = vpop.f32.mrf.mxu1 }
 0x13c   : > { %v3758_v48 = vshll.u32 %v3538_v8, 16  ;;  %v4480_v30 = vor.u32 %v4478_v5, %v4477_v1  ;;  %v4482_v32 = vrot.slane %v4477_v1, 4  ;;  %v3764_v25 = vshll.u32 %v3539_v36, 16  ;;  %v4272_v27 = vld [vmem:[#allocation2 + $0xb0] sm:$0x8]  ;;  %9869 = vst [vmem:[#allocation34_spill] sm:$0xff] %v8838_v47 }
 0x13d   : > { %v4489_v24 = vor.u32 %v4487_v12, %v4486_v28  ;;  %v3753_v7 = vsel %vm8124_vm7, %v3748_v45, %v3752_v31  ;;  %v3757_v61 = vrot.slane %v3755_v18, 4  ;;  %v3768_v46 = vshrl.u32 %v3539_v36, 16  ;;  %v3541_v44 = vld [vmem:[#allocation2 + $0xa4] sm:$0xf]  ;;  %v3542_v18 = vld [vmem:[#allocation2 + $0xa8] sm:$0xf] }
 0x13e   : > { %v3760_v16 = vrot.slane %v3758_v48, 5  ;;  %v6745_v26 = vcombine.low %v3743_v20, %v3753_v7  ;;  %v4481_v8 = vsel %vm8105_vm6, %v6779_v43, %v4480_v30  ;;  %v3766_v37 = vrot.slane %v3764_v25, 5  ;;  %v8841_v48 = vpop.f32.mrf.mxu0 }
 0x13f   : > { %v4490_v5 = vsel %vm8105_vm6, %v4482_v32, %v4489_v24  ;;  %v3770_v12 = vrot.slane %v3768_v46, 4  ;;  %v3774_v42 = vshll.u32 %v3540_v2, 16  ;;  %v4492_v31 = vshrl.u32 %v4272_v27, 16  ;;  %9870 = vst [vmem:[#allocation35_spill] sm:$0xff] %v8841_v48 }
 0x140   : > { %v6797_v1 = vcombine.low %v4481_v8, %v4490_v5  ;;  %v3761_v28 = vor.u32 %v3760_v16, %v3757_v61  ;;  %7441 = vmatmul.mubr.msk.bf16.gmra.mxu1 %vm1279_vm1, %v6745_v26  ;;  %v4497_v36 = vshrl.u32 %v4273_v0, 16  ;;  %v4500_v45 = vshll.u32 %v4273_v0, 16  ;;  %v8844_v61 = vpop.f32.mrf.mxu1  ;;  %v3543_v16 = vld [vmem:[#allocation2 + $0xac] sm:$0x1] }
 0x141   : > { %v4506_v20 = vshrl.u32 %v4274_v55, 16  ;;  %v3771_v25 = vor.u32 %v3770_v12, %v3766_v37  ;;  %v3776_v30 = vrot.slane %v3774_v42, 5  ;;  %v4509_v32 = vshll.u32 %v4274_v55, 16  ;;  %v4275_v12 = vld [vmem:[#allocation2 + $0xc0] sm:$0x8]  ;;  %v8848_v55 = vpop.f32.mrf.mxu0 }
 0x142   : > { %7478 = vmatprep.mubr.msk.bf16.mxu0 %vm1279_vm1, %v6797_v1  ;;  %v3762_v43 = vrot.slane %v3761_v28, 4  ;;  %v6780_v24 = vrot.slane %v4492_v31, 11  ;;  %v4499_v7 = vrot.slane %v4497_v36, 7  ;;  %v3779_v2 = vshrl.u32 %v3541_v44, 16  ;;  %v4276_v42 = vld [vmem:[#allocation2 + $0xc4] sm:$0xf]  ;;  %v8850_v31 = vpop.f32.mrf.mxu1 }
 0x143   : > { %v4508_v46 = vrot.slane %v4506_v20, 7  ;;  %v3772_v0 = vrot.slane %v3771_v25, 4  ;;  %v3782_v26 = vshll.u32 %v3541_v44, 16  ;;  %v3788_v8 = vshll.u32 %v3542_v18, 16  ;;  %9871 = vst [vmem:[#allocation36_spill] sm:$0xff] %v8848_v55 }
 0x144   : > { %v3767_v27 = vsel %vm8124_vm7, %v3762_v43, %v3766_v37  ;;  %v4502_v5 = vor.u32 %v4500_v45, %v4499_v7  ;;  %v4504_v48 = vrot.slane %v4499_v7, 4  ;;  %v3781_v28 = vrot.slane %v3779_v2, 4  ;;  %v4277_v43 = vld [vmem:[#allocation2 + $0xc8] sm:$0xf]  ;;  %v8858_v7 = vpop.f32.mrf.mxu0 }
 0x145   : > { %v4511_v1 = vor.u32 %v4509_v32, %v4508_v46  ;;  %v3777_v36 = vsel %vm8124_vm7, %v3772_v0, %v3776_v30  ;;  %v3784_v20 = vrot.slane %v3782_v26, 5  ;;  %v3790_v47 = vrot.slane %v3788_v8, 5  ;;  %9872 = vst [vmem:[#allocation37_spill] sm:$0xff] %v8858_v7  ;;  %v8860_v30 = vpop.f32.mrf.mxu1 }
 0x146   : > { %v3792_v37 = vshrl.u32 %v3542_v18, 16  ;;  %v6746_v25 = vcombine.low %v3767_v27, %v3777_v36  ;;  %v4503_v44 = vsel %vm8105_vm6, %v6780_v24, %v4502_v5  ;;  %v3798_v32 = vshll.u32 %v3543_v16, 16  ;;  %v3545_v24 = vld [vmem:[#allocation2 + $0xb8] sm:$0xf]  ;;  %v8863_v8 = vpop.f32.mrf.mxu0 }
 0x147   : > { %v4512_v45 = vsel %vm8105_vm6, %v4504_v48, %v4511_v1  ;;  %v3785_v2 = vor.u32 %v3784_v20, %v3781_v28  ;;  %v4514_v51 = vshrl.u32 %v4275_v12, 16  ;;  %v4519_v27 = vshrl.u32 %v4276_v42, 16  ;;  %9873 = vst [vmem:[#allocation38_spill] sm:$0xff] %v8863_v8  ;;  %v4286_v8 = vld [vmem:[#allocation2 + $0xf8] sm:$0xf] }
 0x148   : > { %v6798_v46 = vcombine.low %v4503_v44, %v4512_v45  ;;  %v3794_v22 = vrot.slane %v3792_v37, 4  ;;  %7444 = vmatprep.mubr.msk.bf16.mxu1 %vm1279_vm1, %v6746_v25  ;;  %v3800_v18 = vrot.slane %v3798_v32, 5  ;;  %v4522_v0 = vshll.u32 %v4276_v42, 16  ;;  %v3546_v44 = vld [vmem:[#allocation2 + $0xbc] sm:$0x1]  ;;  %v8868_v32 = vpop.f32.mrf.mxu1 }
 0x149   : > { %v4528_v26 = vshrl.u32 %v4277_v43, 16  ;;  %v3786_v48 = vrot.slane %v3785_v2, 4  ;;  %v6781_v5 = vrot.slane %v4514_v51, 11  ;;  %v4531_v1 = vshll.u32 %v4277_v43, 16  ;;  %v4279_v51 = vld [vmem:[#allocation2 + $0xd4] sm:$0xf]  ;;  %v8870_v43 = vpop.f32.mrf.mxu0 }
 0x14a   : > { %7479 = vmatmul.mubr.msk.bf16.gmra.mxu0 %vm1279_vm1, %v6798_v46  ;;  %v3795_v16 = vor.u32 %v3794_v22, %v3790_v47  ;;  %v4521_v28 = vrot.slane %v4519_v27, 7  ;;  %v3803_v36 = vshrl.u32 %v3544_v38, 16  ;;  %v3806_v20 = vshll.u32 %v3544_v38, 16  ;;  %v4278_v22 = vld [vmem:[#allocation2 + $0xd0] sm:$0x8]  ;;  %9874 = vst [vmem:[#allocation39_spill] sm:$0xff] %v8870_v43 }
 0x14b   : > { %v4530_v12 = vrot.slane %v4528_v26, 7  ;;  %v3791_v37 = vsel %vm8124_vm7, %v3786_v48, %v3790_v47  ;;  %v3812_v42 = vshll.u32 %v3545_v24, 16  ;;  %v3816_v45 = vshrl.u32 %v3545_v24, 16  ;;  %v4280_v48 = vld [vmem:[#allocation2 + $0xd8] sm:$0xf] }
 0x14c   : > { %v3796_v25 = vrot.slane %v3795_v16, 4  ;;  %v4524_v60 = vor.u32 %v4522_v0, %v4521_v28  ;;  %v4526_v63 = vrot.slane %v4521_v28, 4  ;;  %v3805_v2 = vrot.slane %v3803_v36, 4  ;;  %v8878_v35 = vpop.f32.mrf.mxu1 }
 0x14d   : > { %v4533_v46 = vor.u32 %v4531_v1, %v4530_v12  ;;  %v3808_v27 = vrot.slane %v3806_v20, 5  ;;  %v3814_v26 = vrot.slane %v3812_v42, 5  ;;  %v3818_v47 = vrot.slane %v3816_v45, 4  ;;  %v3548_v42 = vld [vmem:[#allocation2 + $0xc8] sm:$0xf]  ;;  %v8881_v45 = vpop.f32.mrf.mxu0 }
 0x14e   : > { %v3801_v38 = vsel %vm8124_vm7, %v3796_v25, %v3800_v18  ;;  %v4525_v24 = vsel %vm8105_vm6, %v6781_v5, %v4524_v60  ;;  %v3822_v1 = vshll.u32 %v3546_v44, 16  ;;  %v4536_v53 = vshrl.u32 %v4278_v22, 16  ;;  %9875 = vst [vmem:[#allocation40_spill] sm:$0xff] %v8881_v45 }
 0x14f   : > { %v6747_v16 = vcombine.low %v3791_v37, %v3801_v38  ;;  %v4534_v0 = vsel %vm8105_vm6, %v4526_v63, %v4533_v46  ;;  %v3809_v12 = vor.u32 %v3808_v27, %v3805_v2  ;;  %v3819_v36 = vor.u32 %v3818_v47, %v3814_v26  ;;  %v8884_v46 = vpop.f32.mrf.mxu1  ;;  %v8886_v47 = vpop.f32.mrf.mxu0 }
 0x150   : > { %v6799_v28 = vcombine.low %v4525_v24, %v4534_v0  ;;  %v3824_v18 = vrot.slane %v3822_v1, 5  ;;  %v4541_v20 = vshrl.u32 %v4279_v51, 16  ;;  %v4544_v25 = vshll.u32 %v4279_v51, 16  ;;  %9876 = vst [vmem:[#allocation41_spill] sm:$0xff] %v8886_v47  ;;  %v3549_v24 = vld [vmem:[#allocation2 + $0xcc] sm:$0x1] }
 0x151   : > { %7445 = vmatmul.mubr.msk.bf16.gmra.mxu1 %vm1279_vm1, %v6747_v16  ;;  %v4550_v37 = vshrl.u32 %v4280_v48, 16  ;;  %v3810_v60 = vrot.slane %v3809_v12, 4  ;;  %v3820_v63 = vrot.slane %v3819_v36, 4  ;;  %v6782_v5 = vrot.slane %v4536_v53, 11  ;;  %v8892_v53 = vpop.f32.mrf.mxu1 }
 0x152   : > { %7482 = vmatprep.mubr.msk.bf16.mxu0 %vm1279_vm1, %v6799_v28  ;;  %v4553_v44 = vshll.u32 %v4280_v48, 16  ;;  %v4543_v2 = vrot.slane %v4541_v20, 7  ;;  %v3827_v38 = vshrl.u32 %v3547_v13, 16  ;;  %v3830_v27 = vshll.u32 %v3547_v13, 16  ;;  %v4281_v28 = vld [vmem:[#allocation2 + $0xe0] sm:$0x8]  ;;  %v8894_v13 = vpop.f32.mrf.mxu0 }
 0x153   : > { %v4552_v22 = vrot.slane %v4550_v37, 7  ;;  %v3815_v51 = vsel %vm8124_vm7, %v3810_v60, %v3814_v26  ;;  %v3825_v16 = vsel %vm8124_vm7, %v3820_v63, %v3824_v18  ;;  %v3836_v0 = vshll.u32 %v3548_v42, 16  ;;  %v4282_v37 = vld [vmem:[#allocation2 + $0xe4] sm:$0xf]  ;;  %9877 = vst [vmem:[#allocation42_spill] sm:$0xff] %v8894_v13 }
 0x154   : > { %v3840_v1 = vshrl.u32 %v3548_v42, 16  ;;  %v6748_v48 = vcombine.low %v3815_v51, %v3825_v16  ;;  %v4546_v12 = vor.u32 %v4544_v25, %v4543_v2  ;;  %v4548_v36 = vrot.slane %v4543_v2, 4  ;;  %v4283_v60 = vld [vmem:[#allocation2 + $0xe8] sm:$0xf]  ;;  %v3550_v16 = vld [vmem:[#allocation2 + $0xd4] sm:$0xf]  ;;  %v8903_v45 = vpop.f32.mrf.mxu0 }
 0x155   : > { %v4555_v20 = vor.u32 %v4553_v44, %v4552_v22  ;;  %v3829_v34 = vrot.slane %v3827_v38, 4  ;;  %v3832_v56 = vrot.slane %v3830_v27, 5  ;;  %v3838_v47 = vrot.slane %v3836_v0, 5  ;;  %v3551_v38 = vld [vmem:[#allocation2 + $0xd8] sm:$0xf]  ;;  %v8901_v27 = vpop.f32.mrf.mxu1  ;;  %9878 = vst [vmem:[#allocation43_spill] sm:$0xff] %v8903_v45 }
 0x156   : > { %v3842_v26 = vrot.slane %v3840_v1, 4  ;;  %7448 = vmatprep.mubr.msk.bf16.mxu1 %vm1279_vm1, %v6748_v48  ;;  %v4547_v18 = vsel %vm8105_vm6, %v6782_v5, %v4546_v12  ;;  %v3846_v63 = vshll.u32 %v3549_v24, 16  ;;  %v4558_v25 = vshrl.u32 %v4281_v28, 16  ;;  %v4285_v45 = vld [vmem:[#allocation2 + $0xf4] sm:$0xf] }
 0x157   : > { %v4556_v42 = vsel %vm8105_vm6, %v4548_v36, %v4555_v20  ;;  %v3833_v44 = vor.u32 %v3832_v56, %v3829_v34  ;;  %v4563_v51 = vshrl.u32 %v4282_v37, 16  ;;  %v4566_v13 = vshll.u32 %v4282_v37, 16  ;;  %v3552_v34 = vld [vmem:[#allocation2 + $0xdc] sm:$0x1] }
 0x158   : > { %v6800_v2 = vcombine.low %v4547_v18, %v4556_v42  ;;  %v3843_v22 = vor.u32 %v3842_v26, %v3838_v47  ;;  %v3848_v0 = vrot.slane %v3846_v63, 5  ;;  %v6783_v1 = vrot.slane %v4558_v25, 11  ;;  %v4284_v25 = vld [vmem:[#allocation2 + $0xf0] sm:$0x8] }
 0x159   : > { %v4572_v48 = vshrl.u32 %v4283_v60, 16  ;;  %v3834_v5 = vrot.slane %v3833_v44, 4  ;;  %v4565_v24 = vrot.slane %v4563_v51, 7  ;;  %v4575_v28 = vshll.u32 %v4283_v60, 16 }
 0x15a   : > { %7483 = vmatmul.mubr.msk.bf16.gmra.mxu0 %vm1279_vm1, %v6800_v2  ;;  %v3844_v12 = vrot.slane %v3843_v22, 4  ;;  %v3851_v56 = vshrl.u32 %v3550_v16, 16  ;;  %v3854_v20 = vshll.u32 %v3550_v16, 16  ;;  %v3860_v26 = vshll.u32 %v3551_v38, 16  ;;  %v8910_v2 = vpop.f32.mrf.mxu1 }
 0x15b   : > { %v4574_v36 = vrot.slane %v4572_v48, 7  ;;  %v3839_v18 = vsel %vm8124_vm7, %v3834_v5, %v3838_v47  ;;  %v4568_v42 = vor.u32 %v4566_v13, %v4565_v24  ;;  %v4570_v63 = vrot.slane %v4565_v24, 4  ;;  %v8912_v48 = vpop.f32.mrf.mxu0 }
 0x15c   : > { %v3849_v37 = vsel %vm8124_vm7, %v3844_v12, %v3848_v0  ;;  %v3853_v60 = vrot.slane %v3851_v56, 4  ;;  %v3856_v51 = vrot.slane %v3854_v20, 5  ;;  %9879 = vst [vmem:[#allocation44_spill] sm:$0xff] %v8912_v48  ;;  %v3862_v43 = vrot.slane %v3860_v26, 5  ;;  %v8916_v0 = vpop.f32.mrf.mxu1 }
 0x15d   : > { %v6749_v44 = vcombine.low %v3839_v18, %v3849_v37  ;;  %v4577_v22 = vor.u32 %v4575_v28, %v4574_v36  ;;  %v4569_v16 = vsel %vm8105_vm6, %v6783_v1, %v4568_v42  ;;  %v3864_v47 = vshrl.u32 %v3551_v38, 16  ;;  %v3553_v36 = vld [vmem:[#allocation2 + $0xe4] sm:$0xf]  ;;  %v8921_v56 = vpop.f32.mrf.mxu0 }
 0x15e   : > { %v3870_v5 = vshll.u32 %v3552_v34, 16  ;;  %v3857_v12 = vor.u32 %v3856_v51, %v3853_v60  ;;  %v4580_v24 = vshrl.u32 %v4284_v25, 16  ;;  %v4585_v28 = vshrl.u32 %v4285_v45, 16  ;;  %9880 = vst [vmem:[#allocation45_spill] sm:$0xff] %v8921_v56  ;;  %v8923_v38 = vpop.f32.mrf.mxu1 }
 0x15f   : > { %7449 = vmatmul.mubr.msk.bf16.gmra.mxu1 %vm1279_vm1, %v6749_v44  ;;  %v4578_v13 = vsel %vm8105_vm6, %v4570_v63, %v4577_v22  ;;  %v3866_v18 = vrot.slane %v3864_v47, 4  ;;  %v4588_v26 = vshll.u32 %v4285_v45, 16  ;;  %v4594_v48 = vshrl.u32 %v4286_v8, 16  ;;  %v3554_v44 = vld [vmem:[#allocation2 + $0xe8] sm:$0xf]  ;;  %v8925_v7 = vpop.f32.mrf.mxu0 }
 0x160   : > { %v6801_v20 = vcombine.low %v4569_v16, %v4578_v13  ;;  %v3872_v1 = vrot.slane %v3870_v5, 5  ;;  %v3858_v34 = vrot.slane %v3857_v12, 4  ;;  %v6784_v37 = vrot.slane %v4580_v24, 11  ;;  %9881 = vst [vmem:[#allocation46_spill] sm:$0xff] %v8925_v7  ;;  %v3555_v22 = vld [vmem:[#allocation2 + $0xec] sm:$0x1]  ;;  %v8930_v55 = vpop.f32.mrf.mxu1 }
 0x161   : > { %v4587_v42 = vrot.slane %v4585_v28, 7  ;;  %v3867_v63 = vor.u32 %v3866_v18, %v3862_v43  ;;  %v4597_v25 = vshll.u32 %v4286_v8, 16  ;;  %v3875_v60 = vshrl.u32 %v3553_v36, 16  ;;  %v4287_v13 = vld [vmem:[#allocation2 + $0x100] sm:$0x8]  ;;  %v8936_v23 = vpop.f32.mrf.mxu0 }
 0x162   : > { %7486 = vmatprep.mubr.msk.bf16.mxu0 %vm1279_vm1, %v6801_v20  ;;  %v3878_v51 = vshll.u32 %v3553_v36, 16  ;;  %v3863_v16 = vsel %vm8124_vm7, %v3858_v34, %v3862_v43  ;;  %v4596_v5 = vrot.slane %v4594_v48, 7  ;;  %v3884_v56 = vshll.u32 %v3554_v44, 16  ;;  %v8934_v36 = vld [vmem:[#allocation2 + $0x104] sm:$0xf]  ;;  %9882 = vst [vmem:[#allocation47_spill] sm:$0xff] %v8936_v23 }
 0x163   : > { %v4590_v45 = vor.u32 %v4588_v26, %v4587_v42  ;;  %v4592_v47 = vrot.slane %v4587_v42, 4  ;;  %v3868_v12 = vrot.slane %v3867_v63, 4  ;;  %v3877_v24 = vrot.slane %v3875_v60, 4  ;;  %v8940_v34 = vld [vmem:[#allocation2 + $0x108] sm:$0xf] }
 0x164   : > { %v3880_v28 = vrot.slane %v3878_v51, 5  ;;  %v4599_v8 = vor.u32 %v4597_v25, %v4596_v5  ;;  %v3888_v18 = vshrl.u32 %v3554_v44, 16  ;;  %v3894_v7 = vshll.u32 %v3555_v22, 16  ;;  %v3556_v44 = vld [vmem:[#allocation2 + $0xf4] sm:$0xf] }
 0x165   : > { %v4591_v20 = vsel %vm8105_vm6, %v6784_v37, %v4590_v45  ;;  %v3873_v43 = vsel %vm8124_vm7, %v3868_v12, %v3872_v1  ;;  %v3886_v26 = vrot.slane %v3884_v56, 5  ;;  %v4602_v42 = vshrl.u32 %v4287_v13, 16  ;;  %v3557_v23 = vld [vmem:[#allocation2 + $0xf8] sm:$0xf] }
 0x166   : > { %v3881_v48 = vor.u32 %v3880_v28, %v3877_v24  ;;  %v6750_v63 = vcombine.low %v3863_v16, %v3873_v43  ;;  %v4600_v60 = vsel %vm8105_vm6, %v4592_v47, %v4599_v8  ;;  %v3890_v37 = vrot.slane %v3888_v18, 4  ;;  %v8945_v40 = vpop.f32.mrf.mxu1  ;;  %v8951_v13 = vpop.f32.mrf.mxu0 }
 0x167   : > { %v3896_v25 = vrot.slane %v3894_v7, 5  ;;  %v6802_v22 = vcombine.low %v4591_v20, %v4600_v60  ;;  %v6785_v45 = vrot.slane %v4602_v42, 11  ;;  %v4607_v5 = vshrl.u32 %v8934_v36, 16  ;;  %9883 = vst [vmem:[#allocation48_spill] sm:$0xff] %v8951_v13  ;;  %v8956_v20 = vld [vmem:[#allocation2 + $0x114] sm:$0xf] }
 0x168   : > { %v3882_v51 = vrot.slane %v3881_v48, 4  ;;  %7452 = vmatprep.mubr.msk.bf16.mxu1 %vm1279_vm1, %v6750_v63  ;;  %v3891_v56 = vor.u32 %v3890_v37, %v3886_v26  ;;  %v4610_v1 = vshll.u32 %v8934_v36, 16  ;;  %v4616_v16 = vshrl.u32 %v8940_v34, 16  ;;  %v8958_v8 = vpop.f32.mrf.mxu1  ;;  %v3558_v48 = vld [vmem:[#allocation2 + $0xfc] sm:$0x1]  ;;  %v8960_v60 = vpop.f32.mrf.mxu0 }
 0x169   : > { %v4619_v47 = vshll.u32 %v8940_v34, 16  ;;  %7487 = vmatmul.mubr.msk.bf16.gmra.mxu0 %vm1279_vm1, %v6802_v22  ;;  %v4609_v12 = vrot.slane %v4607_v5, 7  ;;  %v3899_v24 = vshrl.u32 %v3556_v44, 16  ;;  %v3902_v28 = vshll.u32 %v3556_v44, 16  ;;  %9884 = vst [vmem:[#allocation49_spill] sm:$0xff] %v8960_v60 }
 0x16a   : > { %v3887_v7 = vsel %vm8124_vm7, %v3882_v51, %v3886_v26  ;;  %v3892_v18 = vrot.slane %v3891_v56, 4  ;;  %v4618_v43 = vrot.slane %v4616_v16, 7  ;;  %v3908_v42 = vshll.u32 %v3557_v23, 16  ;;  %v8962_v26 = vpop.f32.mrf.mxu1  ;;  %v8968_v60 = vld [vmem:[#allocation2 + $0x118] sm:$0xf] }
 0x16b   : > { %v3912_v63 = vshrl.u32 %v3557_v23, 16  ;;  %v4612_v37 = vor.u32 %v4610_v1, %v4609_v12  ;;  %v4614_v13 = vrot.slane %v4609_v12, 4  ;;  %v3901_v22 = vrot.slane %v3899_v24, 4  ;;  %v8970_v1 = vpop.f32.mrf.mxu0 }
 0x16c   : > { %v3904_v58 = vrot.slane %v3902_v28, 5  ;;  %v3897_v44 = vsel %vm8124_vm7, %v3892_v18, %v3896_v25  ;;  %v4621_v51 = vor.u32 %v4619_v47, %v4618_v43  ;;  %v3910_v5 = vrot.slane %v3908_v42, 5  ;;  %9885 = vst [vmem:[#allocation50_spill] sm:$0xff] %v8970_v1  ;;  %v3559_v47 = vld [vmem:[#allocation2 + $0x104] sm:$0xf] }
 0x16d   : > { %v3914_v6 = vrot.slane %v3912_v63, 4  ;;  %v6751_v56 = vcombine.low %v3887_v7, %v3897_v44  ;;  %v4613_v16 = vsel %vm8105_vm6, %v6785_v45, %v4612_v37  ;;  %v3918_v29 = vshll.u32 %v3558_v48, 16  ;;  %v8977_v45 = vpop.f32.mrf.mxu1 }
 0x16e   : > { %v3905_v23 = vor.u32 %v3904_v58, %v3901_v22  ;;  %v4622_v12 = vsel %vm8105_vm6, %v4614_v13, %v4621_v51  ;;  %v4624_v28 = vshrl.u32 %v4290_v11, 16  ;;  %v4629_v25 = vshrl.u32 %v8956_v20, 16  ;;  %9886 = vst [vmem:[#allocation51_spill] sm:$0xff] %v8977_v45  ;;  %v3560_v13 = vld [vmem:[#allocation2 + $0x108] sm:$0xf]  ;;  %v8984_v51 = vpop.f32.mrf.mxu0 }
 0x16f   : > { %v3915_v24 = vor.u32 %v3914_v6, %v3910_v5  ;;  %7453 = vmatmul.mubr.msk.bf16.gmra.mxu1 %vm1279_vm1, %v6751_v56  ;;  %v6803_v7 = vcombine.low %v4613_v16, %v4622_v12  ;;  %v3920_v43 = vrot.slane %v3918_v29, 5  ;;  %v4632_v58 = vshll.u32 %v8956_v20, 16  ;;  %v3561_v22 = vld [vmem:[#allocation2 + $0x10c] sm:$0x1]  ;;  %9887 = vst [vmem:[#allocation52_spill] sm:$0xff] %v8984_v51 }
 0x170   : > { %v3906_v18 = vrot.slane %v3905_v23, 4  ;;  %v6786_v42 = vrot.slane %v4624_v28, 11  ;;  %v4631_v63 = vrot.slane %v4629_v25, 7  ;;  %v4638_v37 = vshrl.u32 %v8968_v60, 16 }
 0x171   : > { %v3916_v48 = vrot.slane %v3915_v24, 4  ;;  %7490 = vmatprep.mubr.msk.bf16.mxu0 %vm1279_vm1, %v6803_v7  ;;  %v4641_v11 = vshll.u32 %v8968_v60, 16  ;;  %v3923_v44 = vshrl.u32 %v3559_v47, 16  ;;  %v3926_v29 = vshll.u32 %v3559_v47, 16  ;;  %v5273_v24 = vld [vmem:[#allocation2 + $0x24] sm:$0xf] }
 0x172   : > { %v3911_v6 = vsel %vm8124_vm7, %v3906_v18, %v3910_v5  ;;  %v4634_v16 = vor.u32 %v4632_v58, %v4631_v63  ;;  %v4636_v23 = vrot.slane %v4631_v63, 4  ;;  %v4640_v12 = vrot.slane %v4638_v37, 7 }
 0x173   : > { %v3921_v56 = vsel %vm8124_vm7, %v3916_v48, %v3920_v43  ;;  %v3925_v25 = vrot.slane %v3923_v44, 4  ;;  %v3928_v7 = vrot.slane %v3926_v29, 5  ;;  %v3932_v1 = vshll.u32 %v3560_v13, 16  ;;  %v5275_v48 = vld [vmem:[#allocation2 + $0x2c] sm:$0x1] }
 0x174   : > { %v6752_v28 = vcombine.low %v3911_v6, %v3921_v56  ;;  %v8988_v5 = vpop.f32.mrf.mxu1  ;;  %v4635_v18 = vsel %vm8105_vm6, %v6786_v42, %v4634_v16  ;;  %v4643_v47 = vor.u32 %v4641_v11, %v4640_v12  ;;  %v3936_v45 = vshrl.u32 %v3560_v13, 16  ;;  %v8993_v6 = vpop.f32.mrf.mxu0  ;;  %v5276_v11 = vld [vmem:[#allocation2 + $0x34] sm:$0xf] }
 0x175   : > { %9888 = vst [vmem:[#allocation53_spill] sm:$0xff] %v8988_v5  ;;  %v3942_v51 = vshll.u32 %v3561_v22, 16  ;;  %v3929_v43 = vor.u32 %v3928_v7, %v3925_v25  ;;  %v3934_v58 = vrot.slane %v3932_v1, 5  ;;  %v5322_v63 = vshrl.u32 %v5273_v24, 16  ;;  %9889 = vst [vmem:[#allocation54_spill] sm:$0xff] %v8993_v6 }
 0x176   : > { %7456 = vmatprep.mubr.msk.bf16.mxu1 %vm1279_vm1, %v6752_v28  ;;  %v5325_v37 = vshll.u32 %v5273_v24, 16  ;;  %v8995_v44 = vpop.f32.mrf.mxu1  ;;  %v4644_v29 = vsel %vm8105_vm6, %v4636_v23, %v4643_v47  ;;  %v3938_v56 = vrot.slane %v3936_v45, 4  ;;  %v5331_v42 = vshll.u32 %v5274_v39, 16  ;;  %v8999_v28 = vpop.f32.mrf.mxu0  ;;  %v5277_v6 = vld [vmem:[#allocation2 + $0x38] sm:$0xf] }
 0x177   : > { %9890 = vst [vmem:[#allocation55_spill] sm:$0xff] %v8995_v44  ;;  %v3944_v5 = vrot.slane %v3942_v51, 5  ;;  %v6804_v13 = vcombine.low %v4635_v18, %v4644_v29  ;;  %v3930_v22 = vrot.slane %v3929_v43, 4  ;;  %v5324_v16 = vrot.slane %v5322_v63, 4  ;;  %9891 = vst [vmem:[#allocation56_spill] sm:$0xff] %v8999_v28 }
 0x178   : > { %v5327_v12 = vrot.slane %v5325_v37, 5  ;;  %v3939_v1 = vor.u32 %v3938_v56, %v3934_v58  ;;  %v5333_v25 = vrot.slane %v5331_v42, 5  ;;  %v5335_v24 = vshrl.u32 %v5274_v39, 16  ;;  %v9001_v50 = vpop.f32.mrf.mxu1  ;;  %v7632_v51 = vld [vmem:[#allocation2 + $0x24] sm:$0xf]  ;;  %v9006_v63 = vpop.f32.mrf.mxu0 }
 0x179   : > { %v5341_v7 = vshll.u32 %v5275_v48, 16  ;;  %9892 = vst [vmem:[#allocation57_spill] sm:$0xff] %v9001_v50  ;;  %7491 = vmatmul.mubr.msk.bf16.gmra.mxu0 %vm1279_vm1, %v6804_v13  ;;  %v3935_v41 = vsel %vm8124_vm7, %v3930_v22, %v3934_v58  ;;  %v7633_v23 = vld [vmem:[#allocation2 + $0x28] sm:$0xf]  ;;  %v5278_v47 = vld [vmem:[#allocation2 + $0x3c] sm:$0x1]  ;;  %v1701_v33 = vadd.f32 %v8923_v38, %v8670_v21 }
 0x17a   : > { %v5328_v45 = vor.u32 %v5327_v12, %v5324_v16  ;;  %v6824_v18 = vcombine.low %v7632_v51, %v7633_v23  ;;  %v5346_v43 = vshrl.u32 %v5276_v11, 16  ;;  %9893 = vst [vmem:[#allocation58_spill] sm:$0xff] %v9006_v63  ;;  %v3940_v37 = vrot.slane %v3939_v1, 4  ;;  %v9010_v12 = vpop.f32.mrf.mxu1  ;;  %v5279_v63 = vld [vmem:[#allocation2 + $0x44] sm:$0xf]  ;;  %v9012_v1 = vpop.f32.mrf.mxu0 }
 0x17b   : > { %v5337_v29 = vrot.slane %v5335_v24, 4  ;;  %v5343_v39 = vrot.slane %v5341_v7, 5  ;;  %v5349_v48 = vshll.u32 %v5276_v11, 16  ;;  %v5355_v28 = vshll.u32 %v5277_v6, 16  ;;  %9894 = vst [vmem:[#allocation59_spill] sm:$0xff] %v9012_v1 }
 0x17c   : > { %v5329_v56 = vrot.slane %v5328_v45, 4  ;;  %v5348_v42 = vrot.slane %v5346_v43, 4  ;;  %v5359_v50 = vshrl.u32 %v5277_v6, 16  ;;  %v3945_v13 = vsel %vm8124_vm7, %v3940_v37, %v3944_v5  ;;  %v5280_v6 = vld [vmem:[#allocation2 + $0x48] sm:$0xf] }
 0x17d   : > { %v5338_v58 = vor.u32 %v5337_v29, %v5333_v25  ;;  %v5351_v22 = vrot.slane %v5349_v48, 5  ;;  %v5365_v16 = vshll.u32 %v5278_v47, 16  ;;  %v6753_v51 = vcombine.low %v3935_v41, %v3945_v13  ;;  %v5281_v43 = vld [vmem:[#allocation2 + $0x4c] sm:$0x1] }
 0x17e   : > { %v5357_v23 = vrot.slane %v5355_v28, 5  ;;  %v5361_v44 = vrot.slane %v5359_v50, 4  ;;  %v5334_v11 = vsel %vm8124_vm7, %v5329_v56, %v5333_v25  ;;  %v5370_v28 = vshrl.u32 %v5279_v63, 16  ;;  %v5282_v56 = vld [vmem:[#allocation2 + $0x54] sm:$0xf] }
 0x17f   : > { %v5339_v24 = vrot.slane %v5338_v58, 4  ;;  %v5352_v7 = vor.u32 %v5351_v22, %v5348_v42  ;;  %7457 = vmatmul.mubr.msk.bf16.gmra.mxu1 %vm1279_vm1, %v6753_v51  ;;  %v5367_v45 = vrot.slane %v5365_v16, 5  ;;  %v5373_v25 = vshll.u32 %v5279_v63, 16  ;;  %v7634_v51 = vld [vmem:[#allocation2 + $0x34] sm:$0xf] }
 0x180   : > { %v5362_v5 = vor.u32 %v5361_v44, %v5357_v23  ;;  %7496 = vmatprep.mubr.msk.bf16.mxu1 %vm1279_vm1, %v6824_v18  ;;  %v5379_v48 = vshll.u32 %v5280_v6, 16  ;;  %v5372_v13 = vrot.slane %v5370_v28, 4  ;;  %v5383_v58 = vshrl.u32 %v5280_v6, 16  ;;  %v7635_v63 = vld [vmem:[#allocation2 + $0x38] sm:$0xf] }
 0x181   : > { %v5344_v47 = vsel %vm8124_vm7, %v5339_v24, %v5343_v39  ;;  %v5353_v50 = vrot.slane %v5352_v7, 4  ;;  %v9020_v41 = vpop.f32.mrf.mxu1  ;;  %v9022_v42 = vpop.f32.mrf.mxu0  ;;  %v5389_v22 = vshll.u32 %v5281_v43, 16  ;;  %v5283_v39 = vld [vmem:[#allocation2 + $0x58] sm:$0xf]  ;;  %v5375_v24 = vrot.slane %v5373_v25, 5 }
 0x182   : > { %9895 = vst [vmem:[#allocation60_spill] sm:$0xff] %v9020_v41  ;;  %v6859_v37 = vcombine.low %v5334_v11, %v5344_v47  ;;  %v5363_v29 = vrot.slane %v5362_v5, 4  ;;  %9896 = vst [vmem:[#allocation61_spill] sm:$0xff] %v9022_v42  ;;  %v6825_v11 = vcombine.low %v7634_v51, %v7635_v63  ;;  %v5381_v7 = vrot.slane %v5379_v48, 5  ;;  %v5284_v5 = vld [vmem:[#allocation2 + $0x5c] sm:$0x1] }
 0x183   : > { %v5358_v44 = vsel %vm8124_vm7, %v5353_v50, %v5357_v23  ;;  %v9026_v16 = vpop.f32.mrf.mxu1  ;;  %v9031_v47 = vpop.f32.mrf.mxu0  ;;  %v5385_v50 = vrot.slane %v5383_v58, 4  ;;  %v7636_v6 = vld [vmem:[#allocation2 + $0x44] sm:$0xf]  ;;  %v7637_v43 = vld [vmem:[#allocation2 + $0x48] sm:$0xf]  ;;  %v5394_v42 = vshrl.u32 %v5282_v56, 16 }
 0x184   : > { %9897 = vst [vmem:[#allocation62_spill] sm:$0xff] %v9026_v16  ;;  %7530 = vmatprep.mubr.msk.bf16.mxu0 %vm1279_vm1, %v6859_v37  ;;  %v5368_v18 = vsel %vm8124_vm7, %v5363_v29, %v5367_v45  ;;  %9898 = vst [vmem:[#allocation63_spill] sm:$0xff] %v9031_v47  ;;  %v6826_v28 = vcombine.low %v7636_v6, %v7637_v43  ;;  %v5376_v37 = vor.u32 %v5375_v24, %v5372_v13  ;;  %v5285_v13 = vld [vmem:[#allocation2 + $0x64] sm:$0xf]  ;;  %v5286_v24 = vld [vmem:[#allocation2 + $0x68] sm:$0xf] }
 0x185   : > { %v6860_v23 = vcombine.low %v5358_v44, %v5368_v18  ;;  %v9033_v1 = vpop.f32.mrf.mxu1  ;;  %v5397_v16 = vshll.u32 %v5282_v56, 16  ;;  %v5403_v41 = vshll.u32 %v5283_v39, 16  ;;  %v5407_v45 = vshrl.u32 %v5283_v39, 16  ;;  %v9035_v29 = vpop.f32.mrf.mxu0 }
 0x186   : > { %9899 = vst [vmem:[#allocation64_spill] sm:$0xff] %v9033_v1  ;;  %9900 = vst [vmem:[#allocation65_spill] sm:$0xff] %v9035_v29  ;;  %v5386_v25 = vor.u32 %v5385_v50, %v5381_v7  ;;  %v5391_v48 = vrot.slane %v5389_v22, 5  ;;  %v5396_v51 = vrot.slane %v5394_v42, 4  ;;  %v5413_v63 = vshll.u32 %v5284_v5, 16 }
 0x187   : > { %7531 = vmatmul.mubr.msk.bf16.vlgmr.msra.gmra.mxu0 %vm1279_vm1, %v6860_v23  ;;  %v9038_v44 = vpop.f32.mrf.mxu1  ;;  %7497 = vmatmul.mubr.msk.bf16.vlgmr.msra.gmra.mxu1 %vm1279_vm1, %v6825_v11  ;;  %v5377_v58 = vrot.slane %v5376_v37, 4  ;;  %v5399_v18 = vrot.slane %v5397_v16, 5  ;;  %v5405_v6 = vrot.slane %v5403_v41, 5  ;;  %v5409_v43 = vrot.slane %v5407_v45, 4  ;;  %v9041_v56 = vpop.f32.mrf.mxu0  ;;  %v5287_v50 = vld [vmem:[#allocation2 + $0x6c] sm:$0x1] }
 0x188   : > { %9901 = vst [vmem:[#allocation66_spill] sm:$0xff] %v9038_v44  ;;  %9902 = vst [vmem:[#allocation67_spill] sm:$0xff] %v9041_v56  ;;  %v5387_v39 = vrot.slane %v5386_v25, 4  ;;  %7500 = vmatprep.mubr.msk.bf16.mxu1 %vm1279_vm1, %v6826_v28  ;;  %v5415_v23 = vrot.slane %v5413_v63, 5  ;;  %v7638_v16 = vld [vmem:[#allocation2 + $0x54] sm:$0xf] }
 0x189   : > { %v5382_v22 = vsel %vm8124_vm7, %v5377_v58, %v5381_v7  ;;  %v5400_v42 = vor.u32 %v5399_v18, %v5396_v51  ;;  %v5410_v5 = vor.u32 %v5409_v43, %v5405_v6  ;;  %v9046_v47 = vpop.f32.mrf.mxu0  ;;  %v7639_v37 = vld [vmem:[#allocation2 + $0x58] sm:$0xf]  ;;  %v5418_v25 = vshrl.u32 %v5285_v13, 16  ;;  %v5288_v51 = vld [vmem:[#allocation2 + $0x74] sm:$0xf] }
 0x18a   : > { %9903 = vst [vmem:[#allocation68_spill] sm:$0xff] %v9046_v47  ;;  %v9048_v11 = vpop.f32.mrf.mxu1  ;;  %v5392_v41 = vsel %vm8124_vm7, %v5387_v39, %v5391_v48  ;;  %v6827_v45 = vcombine.low %v7638_v16, %v7639_v37  ;;  %v5421_v28 = vshll.u32 %v5285_v13, 16  ;;  %v5427_v7 = vshll.u32 %v5286_v24, 16  ;;  %v5289_v1 = vld [vmem:[#allocation2 + $0x78] sm:$0xf] }
 0x18b   : > { %9904 = vst [vmem:[#allocation69_spill] sm:$0xff] %v9048_v11  ;;  %v6861_v56 = vcombine.low %v5382_v22, %v5392_v41  ;;  %v5401_v29 = vrot.slane %v5400_v42, 4  ;;  %v5411_v44 = vrot.slane %v5410_v5, 4  ;;  %v9052_v58 = vpop.f32.mrf.mxu0  ;;  %v5420_v18 = vrot.slane %v5418_v25, 4  ;;  %v7640_v22 = vld [vmem:[#allocation2 + $0x64] sm:$0xf] }
 0x18c   : > { %9905 = vst [vmem:[#allocation70_spill] sm:$0xff] %v9052_v58  ;;  %v9054_v63 = vpop.f32.mrf.mxu1  ;;  %v5423_v43 = vrot.slane %v5421_v28, 5  ;;  %v5431_v47 = vshrl.u32 %v5286_v24, 16  ;;  %v5437_v11 = vshll.u32 %v5287_v50, 16  ;;  %v5429_v39 = vrot.slane %v5427_v7, 5 }
 0x18d   : > { %9906 = vst [vmem:[#allocation71_spill] sm:$0xff] %v9054_v63  ;;  %7534 = vmatprep.mubr.msk.bf16.mxu0 %vm1279_vm1, %v6861_v56  ;;  %v5406_v48 = vsel %vm8124_vm7, %v5401_v29, %v5405_v6  ;;  %v5416_v13 = vsel %vm8124_vm7, %v5411_v44, %v5415_v23  ;;  %v7641_v42 = vld [vmem:[#allocation2 + $0x68] sm:$0xf]  ;;  %v5290_v41 = vld [vmem:[#allocation2 + $0x7c] sm:$0x1]  ;;  %v9061_v16 = vpop.f32.mrf.mxu0  ;;  %v5442_v56 = vshrl.u32 %v5288_v51, 16 }
 0x18e   : > { %v6828_v5 = vcombine.low %v7640_v22, %v7641_v42  ;;  %9907 = vst [vmem:[#allocation72_spill] sm:$0xff] %v9061_v16  ;;  %v9063_v37 = vpop.f32.mrf.mxu1  ;;  %v6862_v24 = vcombine.low %v5406_v48, %v5416_v13  ;;  %v5424_v50 = vor.u32 %v5423_v43, %v5420_v18  ;;  %v5433_v25 = vrot.slane %v5431_v47, 4  ;;  %v5291_v13 = vld [vmem:[#allocation2 + $0x84] sm:$0xf]  ;;  %v7642_v16 = vld [vmem:[#allocation2 + $0x74] sm:$0xf] }
 0x18f   : > { %9908 = vst [vmem:[#allocation73_spill] sm:$0xff] %v9063_v37  ;;  %7501 = vmatmul.mubr.msk.bf16.gmra.mxu1 %vm1279_vm1, %v6827_v45  ;;  %v5445_v28 = vshll.u32 %v5288_v51, 16  ;;  %v5451_v29 = vshll.u32 %v5289_v1, 16  ;;  %v5455_v6 = vshrl.u32 %v5289_v1, 16  ;;  %v9066_v58 = vpop.f32.mrf.mxu0  ;;  %v5439_v22 = vrot.slane %v5437_v11, 5 }
 0x190   : > { %9909 = vst [vmem:[#allocation74_spill] sm:$0xff] %v9066_v58  ;;  %v9068_v44 = vpop.f32.mrf.mxu1  ;;  %7535 = vmatmul.mubr.msk.bf16.gmra.mxu0 %vm1279_vm1, %v6862_v24  ;;  %v5425_v23 = vrot.slane %v5424_v50, 4  ;;  %v5434_v7 = vor.u32 %v5433_v25, %v5429_v39  ;;  %7504 = vmatprep.mubr.msk.bf16.mxu1 %vm1279_vm1, %v6828_v5  ;;  %v5461_v48 = vshll.u32 %v5290_v41, 16  ;;  %v5444_v18 = vrot.slane %v5442_v56, 4  ;;  %v5292_v24 = vld [vmem:[#allocation2 + $0x88] sm:$0xf] }
 0x191   : > { %9910 = vst [vmem:[#allocation75_spill] sm:$0xff] %v9068_v44  ;;  %v5447_v47 = vrot.slane %v5445_v28, 5  ;;  %v5453_v43 = vrot.slane %v5451_v29, 5  ;;  %v5457_v45 = vrot.slane %v5455_v6, 4  ;;  %v9072_v51 = vpop.f32.mrf.mxu0  ;;  %v7643_v5 = vld [vmem:[#allocation2 + $0x78] sm:$0xf] }
 0x192   : > { %9911 = vst [vmem:[#allocation76_spill] sm:$0xff] %v9072_v51  ;;  %v9074_v1 = vpop.f32.mrf.mxu1  ;;  %v5430_v42 = vsel %vm8124_vm7, %v5425_v23, %v5429_v39  ;;  %v5435_v58 = vrot.slane %v5434_v7, 4  ;;  %v5463_v11 = vrot.slane %v5461_v48, 5  ;;  %v6829_v41 = vcombine.low %v7642_v16, %v7643_v5  ;;  %v5293_v56 = vld [vmem:[#allocation2 + $0x8c] sm:$0x1] }
 0x193   : > { %9912 = vst [vmem:[#allocation77_spill] sm:$0xff] %v9074_v1  ;;  %v5448_v50 = vor.u32 %v5447_v47, %v5444_v18  ;;  %v5458_v25 = vor.u32 %v5457_v45, %v5453_v43  ;;  %v9078_v28 = vpop.f32.mrf.mxu0  ;;  %v5466_v51 = vshrl.u32 %v5291_v13, 16  ;;  %v5469_v1 = vshll.u32 %v5291_v13, 16  ;;  %v5294_v18 = vld [vmem:[#allocation2 + $0x94] sm:$0xf] }
 0x194   : > { %9913 = vst [vmem:[#allocation78_spill] sm:$0xff] %v9078_v28  ;;  %v9080_v29 = vpop.f32.mrf.mxu1  ;;  %v5440_v6 = vsel %vm8124_vm7, %v5435_v58, %v5439_v22  ;;  %v5475_v7 = vshll.u32 %v5292_v24, 16  ;;  %v5479_v5 = vshrl.u32 %v5292_v24, 16  ;;  %v5485_v28 = vshll.u32 %v5293_v56, 16  ;;  %v5295_v37 = vld [vmem:[#allocation2 + $0x98] sm:$0xf] }
 0x195   : > { %9914 = vst [vmem:[#allocation79_spill] sm:$0xff] %v9080_v29  ;;  %v6863_v44 = vcombine.low %v5430_v42, %v5440_v6  ;;  %v5449_v39 = vrot.slane %v5448_v50, 4  ;;  %v5459_v23 = vrot.slane %v5458_v25, 4  ;;  %v9084_v47 = vpop.f32.mrf.mxu0  ;;  %v5468_v16 = vrot.slane %v5466_v51, 4  ;;  %v7644_v42 = vld [vmem:[#allocation2 + $0x84] sm:$0xf] }
 0x196   : > { %9915 = vst [vmem:[#allocation80_spill] sm:$0xff] %v9084_v47  ;;  %v9086_v48 = vpop.f32.mrf.mxu1  ;;  %v5471_v45 = vrot.slane %v5469_v1, 5  ;;  %v5477_v13 = vrot.slane %v5475_v7, 5  ;;  %v7645_v50 = vld [vmem:[#allocation2 + $0x88] sm:$0xf]  ;;  %v5499_v47 = vshll.u32 %v5295_v37, 16 }
 0x197   : > { %9916 = vst [vmem:[#allocation81_spill] sm:$0xff] %v9086_v48  ;;  %7538 = vmatprep.mubr.msk.bf16.mxu0 %vm1279_vm1, %v6863_v44  ;;  %v5454_v58 = vsel %vm8124_vm7, %v5449_v39, %v5453_v43  ;;  %v5464_v22 = vsel %vm8124_vm7, %v5459_v23, %v5463_v11  ;;  %7505 = vmatmul.mubr.msk.bf16.gmra.mxu1 %vm1279_vm1, %v6829_v41  ;;  %v5296_v6 = vld [vmem:[#allocation2 + $0x9c] sm:$0x1]  ;;  %v9094_v51 = vpop.f32.mrf.mxu0  ;;  %v5481_v44 = vrot.slane %v5479_v5, 4  ;;  %v5490_v43 = vshrl.u32 %v5294_v18, 16 }
 0x198   : > { %v6830_v25 = vcombine.low %v7644_v42, %v7645_v50  ;;  %9917 = vst [vmem:[#allocation82_spill] sm:$0xff] %v9094_v51  ;;  %v9096_v1 = vpop.f32.mrf.mxu1  ;;  %v6864_v24 = vcombine.low %v5454_v58, %v5464_v22  ;;  %v5472_v56 = vor.u32 %v5471_v45, %v5468_v16  ;;  %v5493_v39 = vshll.u32 %v5294_v18, 16  ;;  %v5297_v5 = vld [vmem:[#allocation2 + $0xa4] sm:$0xf]  ;;  %v7646_v48 = vld [vmem:[#allocation2 + $0x94] sm:$0xf] }
 0x199   : > { %9918 = vst [vmem:[#allocation83_spill] sm:$0xff] %v9096_v1  ;;  %v5503_v11 = vshrl.u32 %v5295_v37, 16  ;;  %v9099_v23 = vpop.f32.mrf.mxu0  ;;  %v5482_v42 = vor.u32 %v5481_v44, %v5477_v13  ;;  %v5487_v50 = vrot.slane %v5485_v28, 5  ;;  %v5509_v51 = vshll.u32 %v5296_v6, 16  ;;  %v7647_v29 = vld [vmem:[#allocation2 + $0x98] sm:$0xf] }
 0x19a   : > { %7508 = vmatprep.mubr.msk.bf16.mxu1 %vm1279_vm1, %v6830_v25  ;;  %9919 = vst [vmem:[#allocation84_spill] sm:$0xff] %v9099_v23  ;;  %v9101_v41 = vpop.f32.mrf.mxu1  ;;  %7539 = vmatmul.mubr.msk.bf16.gmra.mxu0 %vm1279_vm1, %v6864_v24  ;;  %v5473_v7 = vrot.slane %v5472_v56, 4  ;;  %v5492_v1 = vrot.slane %v5490_v43, 4  ;;  %v5495_v58 = vrot.slane %v5493_v39, 5  ;;  %v5501_v16 = vrot.slane %v5499_v47, 5 }
 0x19b   : > { %v5505_v45 = vrot.slane %v5503_v11, 4  ;;  %v9104_v22 = vpop.f32.mrf.mxu0  ;;  %v5483_v25 = vrot.slane %v5482_v42, 4  ;;  %v6831_v24 = vcombine.low %v7646_v48, %v7647_v29  ;;  %v5298_v56 = vld [vmem:[#allocation2 + $0xa8] sm:$0xf]  ;;  %v5511_v6 = vrot.slane %v5509_v51, 5 }
 0x19c   : > { %9920 = vst [vmem:[#allocation85_spill] sm:$0xff] %v9104_v22  ;;  %v9106_v18 = vpop.f32.mrf.mxu1  ;;  %v5478_v37 = vsel %vm8124_vm7, %v5473_v7, %v5477_v13  ;;  %v5496_v44 = vor.u32 %v5495_v58, %v5492_v1  ;;  %v5299_v43 = vld [vmem:[#allocation2 + $0xac] sm:$0x1]  ;;  %v5514_v63 = vshrl.u32 %v5297_v5, 16  ;;  %v5517_v22 = vshll.u32 %v5297_v5, 16 }
 0x19d   : > { %v5506_v28 = vor.u32 %v5505_v45, %v5501_v16  ;;  %v9110_v39 = vpop.f32.mrf.mxu0  ;;  %v5488_v11 = vsel %vm8124_vm7, %v5483_v25, %v5487_v50  ;;  %v5523_v29 = vshll.u32 %v5298_v56, 16  ;;  %v5300_v48 = vld [vmem:[#allocation2 + $0xb4] sm:$0xf]  ;;  %v5527_v45 = vshrl.u32 %v5298_v56, 16  ;;  %v7648_v25 = vld [vmem:[#allocation2 + $0xa4] sm:$0xf] }
 0x19e   : > { %9921 = vst [vmem:[#allocation86_spill] sm:$0xff] %v9110_v39  ;;  %v9112_v47 = vpop.f32.mrf.mxu1  ;;  %v6865_v23 = vcombine.low %v5478_v37, %v5488_v11  ;;  %v5497_v13 = vrot.slane %v5496_v44, 4  ;;  %v5516_v42 = vrot.slane %v5514_v63, 4  ;;  %v5519_v58 = vrot.slane %v5517_v22, 5 }
 0x19f   : > { %9922 = vst [vmem:[#allocation87_spill] sm:$0xff] %v9112_v47  ;;  %v5507_v7 = vrot.slane %v5506_v28, 4  ;;  %7509 = vmatmul.mubr.msk.bf16.gmra.mxu1 %vm1279_vm1, %v6831_v24  ;;  %v9117_v1 = vpop.f32.mrf.mxu0  ;;  %v5533_v39 = vshll.u32 %v5299_v43, 16  ;;  %v5301_v47 = vld [vmem:[#allocation2 + $0xb8] sm:$0xf]  ;;  %v5525_v37 = vrot.slane %v5523_v29, 5 }
 0x1a0   : > { %9923 = vst [vmem:[#allocation88_spill] sm:$0xff] %v9117_v1  ;;  %v9119_v51 = vpop.f32.mrf.mxu1  ;;  %7542 = vmatprep.mubr.msk.bf16.mxu0 %vm1279_vm1, %v6865_v23  ;;  %v5502_v50 = vsel %vm8124_vm7, %v5497_v13, %v5501_v16  ;;  %v7649_v24 = vld [vmem:[#allocation2 + $0xa8] sm:$0xf]  ;;  %v5302_v28 = vld [vmem:[#allocation2 + $0xbc] sm:$0x1]  ;;  %v5520_v56 = vor.u32 %v5519_v58, %v5516_v42  ;;  %v5529_v43 = vrot.slane %v5527_v45, 4 }
 0x1a1   : > { %9924 = vst [vmem:[#allocation89_spill] sm:$0xff] %v9119_v51  ;;  %v5512_v5 = vsel %vm8124_vm7, %v5507_v7, %v5511_v6  ;;  %v6832_v44 = vcombine.low %v7648_v25, %v7649_v24  ;;  %v9126_v11 = vpop.f32.mrf.mxu0  ;;  %v5538_v23 = vshrl.u32 %v5300_v48, 16  ;;  %v5541_v1 = vshll.u32 %v5300_v48, 16  ;;  %v5303_v45 = vld [vmem:[#allocation2 + $0xc4] sm:$0xf] }
 0x1a2   : > { %9925 = vst [vmem:[#allocation90_spill] sm:$0xff] %v9126_v11  ;;  %v9128_v63 = vpop.f32.mrf.mxu1  ;;  %v6866_v22 = vcombine.low %v5502_v50, %v5512_v5  ;;  %v5547_v16 = vshll.u32 %v5301_v47, 16  ;;  %v5551_v13 = vshrl.u32 %v5301_v47, 16  ;;  %v5521_v7 = vrot.slane %v5520_v56, 4  ;;  %v5304_v56 = vld [vmem:[#allocation2 + $0xc8] sm:$0xf] }
 0x1a3   : > { %9926 = vst [vmem:[#allocation91_spill] sm:$0xff] %v9128_v63  ;;  %7512 = vmatprep.mubr.msk.bf16.mxu1 %vm1279_vm1, %v6832_v44  ;;  %v9131_v51 = vpop.f32.mrf.mxu0  ;;  %v5530_v29 = vor.u32 %v5529_v43, %v5525_v37  ;;  %v5535_v25 = vrot.slane %v5533_v39, 5  ;;  %v5557_v24 = vshll.u32 %v5302_v28, 16  ;;  %v5540_v11 = vrot.slane %v5538_v23, 4  ;;  %v5305_v23 = vld [vmem:[#allocation2 + $0xcc] sm:$0x1] }
 0x1a4   : > { %9927 = vst [vmem:[#allocation92_spill] sm:$0xff] %v9131_v51  ;;  %v9133_v6 = vpop.f32.mrf.mxu1  ;;  %7543 = vmatmul.mubr.msk.bf16.gmra.mxu0 %vm1279_vm1, %v6866_v22  ;;  %v5543_v50 = vrot.slane %v5541_v1, 5  ;;  %v5549_v42 = vrot.slane %v5547_v16, 5  ;;  %v5553_v58 = vrot.slane %v5551_v13, 4  ;;  %v5526_v47 = vsel %vm8124_vm7, %v5521_v7, %v5525_v37  ;;  %v7650_v51 = vld [vmem:[#allocation2 + $0xb4] sm:$0xf] }
 0x1a5   : > { %9928 = vst [vmem:[#allocation93_spill] sm:$0xff] %v9133_v6  ;;  %v9136_v5 = vpop.f32.mrf.mxu0  ;;  %v5531_v44 = vrot.slane %v5530_v29, 4  ;;  %v7651_v6 = vld [vmem:[#allocation2 + $0xb8] sm:$0xf]  ;;  %v5559_v28 = vrot.slane %v5557_v24, 5  ;;  %v5565_v37 = vshll.u32 %v5303_v45, 16 }
 0x1a6   : > { %9929 = vst [vmem:[#allocation94_spill] sm:$0xff] %v9136_v5  ;;  %v9138_v48 = vpop.f32.mrf.mxu1  ;;  %v6833_v22 = vcombine.low %v7650_v51, %v7651_v6  ;;  %v5544_v43 = vor.u32 %v5543_v50, %v5540_v11  ;;  %v5554_v39 = vor.u32 %v5553_v58, %v5549_v42  ;;  %v5562_v5 = vshrl.u32 %v5303_v45, 16  ;;  %v5306_v6 = vld [vmem:[#allocation2 + $0xd4] sm:$0xf]  ;;  %v5307_v63 = vld [vmem:[#allocation2 + $0xd8] sm:$0xf] }
 0x1a7   : > { %9930 = vst [vmem:[#allocation95_spill] sm:$0xff] %v9138_v48  ;;  %v9142_v1 = vpop.f32.mrf.mxu0  ;;  %v5536_v13 = vsel %vm8124_vm7, %v5531_v44, %v5535_v25  ;;  %v5571_v51 = vshll.u32 %v5304_v56, 16  ;;  %v5567_v58 = vrot.slane %v5565_v37, 5  ;;  %v7652_v44 = vld [vmem:[#allocation2 + $0xc4] sm:$0xf] }
 0x1a8   : > { %9931 = vst [vmem:[#allocation96_spill] sm:$0xff] %v9142_v1  ;;  %v9144_v16 = vpop.f32.mrf.mxu1  ;;  %7513 = vmatmul.mubr.msk.bf16.gmra.mxu1 %vm1279_vm1, %v6833_v22  ;;  %v6867_v7 = vcombine.low %v5526_v47, %v5536_v13  ;;  %v5545_v29 = vrot.slane %v5544_v43, 4  ;;  %v5555_v48 = vrot.slane %v5554_v39, 4  ;;  %v5564_v50 = vrot.slane %v5562_v5, 4  ;;  %v7653_v22 = vld [vmem:[#allocation2 + $0xc8] sm:$0xf] }
 0x1a9   : > { %9932 = vst [vmem:[#allocation97_spill] sm:$0xff] %v9144_v16  ;;  %v9149_v11 = vpop.f32.mrf.mxu0  ;;  %v5575_v1 = vshrl.u32 %v5304_v56, 16  ;;  %v5581_v16 = vshll.u32 %v5305_v23, 16  ;;  %v5573_v47 = vrot.slane %v5571_v51, 5  ;;  %v6834_v43 = vcombine.low %v7652_v44, %v7653_v22  ;;  %v5308_v39 = vld [vmem:[#allocation2 + $0xdc] sm:$0x1] }
 0x1aa   : > { %9933 = vst [vmem:[#allocation98_spill] sm:$0xff] %v9149_v11  ;;  %v9151_v24 = vpop.f32.mrf.mxu1  ;;  %7546 = vmatprep.mubr.msk.bf16.mxu0 %vm1279_vm1, %v6867_v7  ;;  %v5550_v25 = vsel %vm8124_vm7, %v5545_v29, %v5549_v42  ;;  %v5560_v45 = vsel %vm8124_vm7, %v5555_v48, %v5559_v28  ;;  %v5568_v23 = vor.u32 %v5567_v58, %v5564_v50  ;;  %v5586_v7 = vshrl.u32 %v5306_v6, 16  ;;  %v5309_v58 = vld [vmem:[#allocation2 + $0xe4] sm:$0xf] }
 0x1ab   : > { %9934 = vst [vmem:[#allocation99_spill] sm:$0xff] %v9151_v24  ;;  %v9158_v13 = vpop.f32.mrf.mxu0  ;;  %v6868_v56 = vcombine.low %v5550_v25, %v5560_v45  ;;  %v5577_v37 = vrot.slane %v5575_v1, 4  ;;  %7516 = vmatprep.mubr.msk.bf16.mxu1 %vm1279_vm1, %v6834_v43  ;;  %v5589_v11 = vshll.u32 %v5306_v6, 16  ;;  %v5595_v42 = vshll.u32 %v5307_v63, 16 }
 0x1ac   : > { %9935 = vst [vmem:[#allocation100_spill] sm:$0xff] %v9158_v13  ;;  %v9160_v5 = vpop.f32.mrf.mxu1  ;;  %v5599_v29 = vshrl.u32 %v5307_v63, 16  ;;  %v5569_v28 = vrot.slane %v5568_v23, 4  ;;  %v5583_v44 = vrot.slane %v5581_v16, 5  ;;  %v5605_v22 = vshll.u32 %v5308_v39, 16 }
 0x1ad   : > { %9936 = vst [vmem:[#allocation101_spill] sm:$0xff] %v9160_v5  ;;  %v9163_v24 = vpop.f32.mrf.mxu0  ;;  %7547 = vmatmul.mubr.msk.bf16.gmra.mxu0 %vm1279_vm1, %v6868_v56  ;;  %v5578_v51 = vor.u32 %v5577_v37, %v5573_v47  ;;  %v5588_v13 = vrot.slane %v5586_v7, 4  ;;  %v5591_v25 = vrot.slane %v5589_v11, 5  ;;  %v5597_v50 = vrot.slane %v5595_v42, 5  ;;  %v5310_v23 = vld [vmem:[#allocation2 + $0xe8] sm:$0xf] }
 0x1ae   : > { %9937 = vst [vmem:[#allocation102_spill] sm:$0xff] %v9163_v24  ;;  %v9165_v48 = vpop.f32.mrf.mxu1  ;;  %v5601_v1 = vrot.slane %v5599_v29, 4  ;;  %v5574_v63 = vsel %vm8124_vm7, %v5569_v28, %v5573_v47  ;;  %v7654_v24 = vld [vmem:[#allocation2 + $0xd4] sm:$0xf]  ;;  %v5607_v39 = vrot.slane %v5605_v22, 5  ;;  %v5613_v47 = vshll.u32 %v5309_v58, 16 }
 0x1af   : > { %9938 = vst [vmem:[#allocation103_spill] sm:$0xff] %v9165_v48  ;;  %v9168_v45 = vpop.f32.mrf.mxu0  ;;  %v5579_v43 = vrot.slane %v5578_v51, 4  ;;  %v7655_v48 = vld [vmem:[#allocation2 + $0xd8] sm:$0xf]  ;;  %v5592_v37 = vor.u32 %v5591_v25, %v5588_v13  ;;  %v5311_v7 = vld [vmem:[#allocation2 + $0xec] sm:$0x1] }
 0x1b0   : > { %9939 = vst [vmem:[#allocation104_spill] sm:$0xff] %v9168_v45  ;;  %v9170_v6 = vpop.f32.mrf.mxu1  ;;  %v6835_v56 = vcombine.low %v7654_v24, %v7655_v48  ;;  %v5602_v16 = vor.u32 %v5601_v1, %v5597_v50  ;;  %v5610_v45 = vshrl.u32 %v5309_v58, 16  ;;  %v5619_v24 = vshll.u32 %v5310_v23, 16  ;;  %v5312_v48 = vld [vmem:[#allocation2 + $0xf4] sm:$0xf] }
 0x1b1   : > { %9940 = vst [vmem:[#allocation105_spill] sm:$0xff] %v9170_v6  ;;  %v9174_v11 = vpop.f32.mrf.mxu0  ;;  %v5584_v29 = vsel %vm8124_vm7, %v5579_v43, %v5583_v44  ;;  %v5593_v51 = vrot.slane %v5592_v37, 4  ;;  %v5615_v1 = vrot.slane %v5613_v47, 5  ;;  %v5313_v5 = vld [vmem:[#allocation2 + $0xf8] sm:$0xf] }
 0x1b2   : > { %9941 = vst [vmem:[#allocation106_spill] sm:$0xff] %v9174_v11  ;;  %v9176_v42 = vpop.f32.mrf.mxu1  ;;  %7517 = vmatmul.mubr.msk.bf16.gmra.mxu1 %vm1279_vm1, %v6835_v56  ;;  %v6869_v28 = vcombine.low %v5574_v63, %v5584_v29  ;;  %v5603_v6 = vrot.slane %v5602_v16, 4  ;;  %v5612_v25 = vrot.slane %v5610_v45, 4  ;;  %v5623_v11 = vshrl.u32 %v5310_v23, 16  ;;  %v7656_v43 = vld [vmem:[#allocation2 + $0xe4] sm:$0xf] }
 0x1b3   : > { %9942 = vst [vmem:[#allocation107_spill] sm:$0xff] %v9176_v42  ;;  %v9181_v13 = vpop.f32.mrf.mxu0  ;;  %v5629_v42 = vshll.u32 %v5311_v7, 16  ;;  %v5598_v44 = vsel %vm8124_vm7, %v5593_v51, %v5597_v50  ;;  %v5621_v63 = vrot.slane %v5619_v24, 5  ;;  %v7657_v56 = vld [vmem:[#allocation2 + $0xe8] sm:$0xf]  ;;  %v5643_v50 = vshll.u32 %v5313_v5, 16 }
 0x1b4   : > { %9943 = vst [vmem:[#allocation108_spill] sm:$0xff] %v9181_v13  ;;  %v9183_v22 = vpop.f32.mrf.mxu1  ;;  %7550 = vmatprep.mubr.msk.bf16.mxu0 %vm1279_vm1, %v6869_v28  ;;  %v5608_v58 = vsel %vm8124_vm7, %v5603_v6, %v5607_v39  ;;  %v6836_v37 = vcombine.low %v7656_v43, %v7657_v56  ;;  %v5314_v16 = vld [vmem:[#allocation2 + $0xfc] sm:$0x1]  ;;  %v5616_v47 = vor.u32 %v5615_v1, %v5612_v25  ;;  %v5625_v23 = vrot.slane %v5623_v11, 4  ;;  %v5315_v1 = vld [vmem:[#allocation2 + $0x104] sm:$0xf] }
 0x1b5   : > { %9944 = vst [vmem:[#allocation109_spill] sm:$0xff] %v9183_v22  ;;  %v9190_v29 = vpop.f32.mrf.mxu0  ;;  %v6870_v45 = vcombine.low %v5598_v44, %v5608_v58  ;;  %v5634_v28 = vshrl.u32 %v5312_v48, 16  ;;  %v5637_v13 = vshll.u32 %v5312_v48, 16  ;;  %v5647_v51 = vshrl.u32 %v5313_v5, 16  ;;  %v7658_v5 = vld [vmem:[#allocation2 + $0xf4] sm:$0xf] }
 0x1b6   : > { %9945 = vst [vmem:[#allocation110_spill] sm:$0xff] %v9190_v29  ;;  %v9192_v7 = vpop.f32.mrf.mxu1  ;;  %7520 = vmatprep.mubr.msk.bf16.mxu1 %vm1279_vm1, %v6836_v37  ;;  %v5617_v6 = vrot.slane %v5616_v47, 4  ;;  %v5626_v39 = vor.u32 %v5625_v23, %v5621_v63  ;;  %v5631_v24 = vrot.slane %v5629_v42, 5  ;;  %v5653_v43 = vshll.u32 %v5314_v16, 16  ;;  %v7659_v29 = vld [vmem:[#allocation2 + $0xf8] sm:$0xf] }
 0x1b7   : > { %9946 = vst [vmem:[#allocation111_spill] sm:$0xff] %v9192_v7  ;;  %v9195_v22 = vpop.f32.mrf.mxu0  ;;  %7551 = vmatmul.mubr.msk.bf16.gmra.mxu0 %vm1279_vm1, %v6870_v45  ;;  %v5636_v56 = vrot.slane %v5634_v28, 4  ;;  %v5639_v44 = vrot.slane %v5637_v13, 5  ;;  %v5645_v25 = vrot.slane %v5643_v50, 5  ;;  %v5649_v11 = vrot.slane %v5647_v51, 4 }
 0x1b8   : > { %9947 = vst [vmem:[#allocation112_spill] sm:$0xff] %v9195_v22  ;;  %v5622_v48 = vsel %vm8124_vm7, %v5617_v6, %v5621_v63  ;;  %v5627_v37 = vrot.slane %v5626_v39, 4  ;;  %v6837_v22 = vcombine.low %v7658_v5, %v7659_v29  ;;  %v5316_v7 = vld [vmem:[#allocation2 + $0x108] sm:$0xf]  ;;  %v9202_v45 = vpop.f32.mrf.mxu1  ;;  %v5655_v16 = vrot.slane %v5653_v43, 5 }
 0x1b9   : > { %v9198_v58 = vpop.f32.mrf.mxu0  ;;  %9949 = vst [vmem:[#allocation114_spill] sm:$0xff] %v9202_v45  ;;  %v5640_v47 = vor.u32 %v5639_v44, %v5636_v56  ;;  %v5650_v42 = vor.u32 %v5649_v11, %v5645_v25  ;;  %v5317_v23 = vld [vmem:[#allocation2 + $0x10c] sm:$0x1]  ;;  %v5658_v28 = vshrl.u32 %v5315_v1, 16  ;;  %v5661_v50 = vshll.u32 %v5315_v1, 16 }
 0x1ba   : > { %9948 = vst [vmem:[#allocation113_spill] sm:$0xff] %v9198_v58  ;;  %v5632_v13 = vsel %vm8124_vm7, %v5627_v37, %v5631_v24  ;;  %7521 = vmatmul.mubr.msk.bf16.gmra.mxu1 %vm1279_vm1, %v6837_v22  ;;  %v5667_v29 = vshll.u32 %v5316_v7, 16  ;;  %v5318_v5 = vld [vmem:[#allocation2 + $0x114] sm:$0xf]  ;;  %v5671_v56 = vshrl.u32 %v5316_v7, 16  ;;  %v5677_v44 = vshll.u32 %v5317_v23, 16  ;;  %v9209_v11 = vpop.f32.mrf.mxu1 }
 0x1bb   : > { %v9207_v51 = vpop.f32.mrf.mxu0  ;;  %v6871_v63 = vcombine.low %v5622_v48, %v5632_v13  ;;  %v5641_v6 = vrot.slane %v5640_v47, 4  ;;  %v5651_v39 = vrot.slane %v5650_v42, 4  ;;  %v5660_v58 = vrot.slane %v5658_v28, 4  ;;  %v5319_v43 = vld [vmem:[#allocation2 + $0x118] sm:$0xf] }
 0x1bc   : > { %v5663_v45 = vrot.slane %v5661_v50, 5  ;;  %v5669_v1 = vrot.slane %v5667_v29, 5  ;;  %v6838_v48 = vcombine.low %v8934_v36, %v8940_v34  ;;  %v5320_v37 = vld [vmem:[#allocation2 + $0x11c] sm:$0x1]  ;;  %v5673_v7 = vrot.slane %v5671_v56, 4  ;;  %v9222_v29 = vpop.f32.mrf.mxu1 }
 0x1bd   : > { %7554 = vmatprep.mubr.msk.bf16.mxu0 %vm1279_vm1, %v6871_v63  ;;  %v5646_v22 = vsel %vm8124_vm7, %v5641_v6, %v5645_v25  ;;  %v5656_v24 = vsel %vm8124_vm7, %v5651_v39, %v5655_v16  ;;  %v9218_v23 = vpop.f32.mrf.mxu0  ;;  %v5682_v13 = vshrl.u32 %v5318_v5, 16  ;;  %v5685_v28 = vshll.u32 %v5318_v5, 16 }
 0x1be   : > { %v6872_v47 = vcombine.low %v5646_v22, %v5656_v24  ;;  %v5664_v42 = vor.u32 %v5663_v45, %v5660_v58  ;;  %7524 = vmatprep.mubr.msk.bf16.mxu1 %vm1279_vm1, %v6838_v48  ;;  %v5691_v50 = vshll.u32 %v5319_v43, 16  ;;  %v5695_v63 = vshrl.u32 %v5319_v43, 16 }
 0x1bf   : > { %v5674_v16 = vor.u32 %v5673_v7, %v5669_v1  ;;  %v5679_v6 = vrot.slane %v5677_v44, 5  ;;  %v5701_v39 = vshll.u32 %v5320_v37, 16  ;;  %v5684_v36 = vrot.slane %v5682_v13, 4  ;;  %v9228_v43 = vpop.f32.mrf.mxu0  ;;  %v9233_v37 = vpop.f32.mrf.mxu1 }
 0x1c0   : > { %7555 = vmatmul.mubr.msk.bf16.gmra.mxu0 %vm1279_vm1, %v6872_v47  ;;  %v5665_v25 = vrot.slane %v5664_v42, 4  ;;  %v5687_v34 = vrot.slane %v5685_v28, 5  ;;  %v5693_v58 = vrot.slane %v5691_v50, 5  ;;  %v5697_v45 = vrot.slane %v5695_v63, 4 }
 0x1c1   : > { %v5675_v22 = vrot.slane %v5674_v16, 4  ;;  %v6839_v5 = vcombine.low %v8956_v20, %v8968_v60  ;;  %v5703_v47 = vrot.slane %v5701_v39, 5  ;;  %v1658_v20 = vadd.f32 %v8850_v31, %v8716_v54  ;;  %v9962_v39 = vld [vmem:[#allocation62_spill] sm:$0xff] }
 0x1c2   : > { %v5670_v56 = vsel %vm8124_vm7, %v5665_v25, %v5669_v1  ;;  %v5688_v24 = vor.u32 %v5687_v34, %v5684_v36  ;;  %v5698_v48 = vor.u32 %v5697_v45, %v5693_v58  ;;  %v1666_v1 = vadd.f32 %v8844_v61, %v8705_v52  ;;  %v3124_v61 = vpop.f32.mrf.mxu1  ;;  %v9963_v34 = vld [vmem:[#allocation22_spill] sm:$0xff] }
 0x1c3   : > { %v5680_v44 = vsel %vm8124_vm7, %v5675_v22, %v5679_v6  ;;  %7525 = vmatmul.mubr.msk.bf16.gmra.mxu1 %vm1279_vm1, %v6839_v5  ;;  %v1669_v60 = vadd.f32 %v8860_v30, %v8724_v17  ;;  %v1661_v28 = vadd.f32 %v8868_v32, %v8736_v4  ;;  %v1682_v63 = vadd.f32 %v8878_v35, %v8746_v49  ;;  %v9950_v32 = vld [vmem:[#allocation10_spill] sm:$0xff]  ;;  %v9961_v6 = vld [vmem:[#allocation15_spill] sm:$0xff]  ;;  %v9966_v5 = vld [vmem:[#allocation37_spill] sm:$0xff] }
 0x1c4   : > { %v6873_v42 = vcombine.low %v5670_v56, %v5680_v44  ;;  %v5689_v7 = vrot.slane %v5688_v24, 4  ;;  %v5699_v13 = vrot.slane %v5698_v48, 4  ;;  %v1674_v25 = vadd.f32 %v8884_v46, %v8754_v62  ;;  %v9951_v46 = vld [vmem:[#allocation51_spill] sm:$0xff]  ;;  %v9965_v56 = vld [vmem:[#allocation36_spill] sm:$0xff]  ;;  %v9967_v44 = vld [vmem:[#allocation38_spill] sm:$0xff] }
 0x1c5   : > { %v1685_v17 = vadd.f32 %v8892_v53, %v8760_v9  ;;  %v1677_v4 = vadd.f32 %v8901_v27, %v8772_v15  ;;  %v1698_v49 = vadd.f32 %v8910_v2, %v8645_v10  ;;  %v1690_v31 = vadd.f32 %v8916_v0, %v8660_v14  ;;  %v9952_v27 = vld [vmem:[#allocation13_spill] sm:$0xff] }
 0x1c6   : > { %7558 = vmatprep.mubr.msk.bf16.mxu0 %vm1279_vm1, %v6873_v42  ;;  %v5694_v52 = vsel %vm8124_vm7, %v5689_v7, %v5693_v58  ;;  %v5704_v54 = vsel %vm8124_vm7, %v5699_v13, %v5703_v47  ;;  %v1693_v30 = vadd.f32 %v8930_v55, %v8676_v59  ;;  %v1714_v9 = vadd.f32 %v8945_v40, %v8686_v57  ;;  %v9953_v14 = vld [vmem:[#allocation53_spill] sm:$0xff]  ;;  %v9954_v59 = vld [vmem:[#allocation11_spill] sm:$0xff]  ;;  %v9956_v57 = vld [vmem:[#allocation16_spill] sm:$0xff] }
 0x1c7   : > { %v6874_v35 = vcombine.low %v5694_v52, %v5704_v54  ;;  %v1706_v15 = vadd.f32 %v8958_v8, %v8691_v3  ;;  %v1717_v10 = vadd.f32 %v8962_v26, %v8703_v19  ;;  %v1709_v53 = vadd.f32 %v9951_v46, %v9950_v32  ;;  %v9955_v55 = vld [vmem:[#allocation55_spill] sm:$0xff]  ;;  %v9957_v40 = vld [vmem:[#allocation57_spill] sm:$0xff]  ;;  %v9958_v3 = vld [vmem:[#allocation14_spill] sm:$0xff] }
 0x1c8   : > { %v9243_v50 = vpop.f32.mrf.mxu0  ;;  %v1730_v2 = vadd.f32 %v9953_v14, %v9952_v27  ;;  %v1722_v0 = vadd.f32 %v9955_v55, %v9954_v59  ;;  %v1733_v38 = vadd.f32 %v9957_v40, %v9956_v57  ;;  %v1725_v8 = vadd.f32 %v9010_v12, %v9958_v3  ;;  %v9959_v19 = vld [vmem:[#allocation17_spill] sm:$0xff]  ;;  %v9960_v26 = vld [vmem:[#allocation60_spill] sm:$0xff]  ;;  %v9968_v7 = vld [vmem:[#allocation39_spill] sm:$0xff] }
 0x1c9   : > { %7559 = vmatmul.mubr.msk.bf16.gmra.mxu0 %vm1279_vm1, %v6874_v35  ;;  %v1746_v16 = vadd.f32 %v9960_v26, %v9959_v19  ;;  %v1738_v36 = vadd.f32 %v9962_v39, %v9961_v6  ;;  %v9964_v58 = vld [vmem:[#allocation64_spill] sm:$0xff]  ;;  %v2463_v22 = vadd.f32 %v9965_v56, %v1666_v1  ;;  %v2461_v24 = vadd.f32 %v9966_v5, %v1658_v20  ;;  %v9970_v54 = vld [vmem:[#allocation41_spill] sm:$0xff]  ;;  %v9971_v32 = vld [vmem:[#allocation18_spill] sm:$0xff] }
 0x1ca   : > { %v9260_v62 = vpop.f32.mrf.mxu0  ;;  %v1749_v45 = vadd.f32 %v9964_v58, %v9963_v34  ;;  %v2464_v42 = vadd.f32 %v9967_v44, %v1669_v60  ;;  %v2462_v12 = vadd.f32 %v9968_v7, %v1661_v28  ;;  %v9969_v13 = vld [vmem:[#allocation40_spill] sm:$0xff]  ;;  %v2465_v35 = vadd.f32 %v9970_v54, %v1674_v25  ;;  %v9972_v46 = vld [vmem:[#allocation66_spill] sm:$0xff]  ;;  %v9974_v40 = vld [vmem:[#allocation87_spill] sm:$0xff] }
 0x1cb   : > { %v2467_v52 = vadd.f32 %v9969_v13, %v1682_v63  ;;  %v1741_v27 = vadd.f32 %v9972_v46, %v9971_v32  ;;  %v3162_v14 = vadd.f32 %v9101_v41, %v2463_v22  ;;  %v3160_v1 = vadd.f32 %v9106_v18, %v2461_v24  ;;  %v9973_v59 = vld [vmem:[#allocation42_spill] sm:$0xff]  ;;  %v9975_v3 = vld [vmem:[#allocation89_spill] sm:$0xff]  ;;  %v9976_v19 = vld [vmem:[#allocation91_spill] sm:$0xff] }
 0x1cc   : > { %v9279_v21 = vpop.f32.mrf.mxu0  ;;  %v2468_v20 = vadd.f32 %v9973_v59, %v1685_v17  ;;  %v3163_v60 = vadd.f32 %v9974_v40, %v2464_v42  ;;  %v3161_v28 = vadd.f32 %v9975_v3, %v2462_v12  ;;  %v9977_v26 = vld [vmem:[#allocation93_spill] sm:$0xff]  ;;  %v9978_v6 = vld [vmem:[#allocation95_spill] sm:$0xff]  ;;  %v9980_v41 = vld [vmem:[#allocation44_spill] sm:$0xff] }
 0x1cd   : > { %v3166_v63 = vadd.f32 %v9976_v19, %v2467_v52  ;;  %v3164_v25 = vadd.f32 %v9977_v26, %v2465_v35  ;;  %v9979_v34 = vld [vmem:[#allocation43_spill] sm:$0xff]  ;;  %v2471_v56 = vadd.f32 %v9980_v41, %v1698_v49  ;;  %v9981_v18 = vld [vmem:[#allocation45_spill] sm:$0xff]  ;;  %v9982_v24 = vld [vmem:[#allocation46_spill] sm:$0xff] }
 0x1ce   : > { %v9295_v47 = vpop.f32.mrf.mxu0  ;;  %v3167_v39 = vadd.f32 %v9978_v6, %v2468_v20  ;;  %v2466_v58 = vadd.f32 %v9979_v34, %v1677_v4  ;;  %v2469_v22 = vadd.f32 %v9981_v18, %v1690_v31  ;;  %v2472_v44 = vadd.f32 %v9982_v24, %v1701_v33  ;;  %v9983_v42 = vld [vmem:[#allocation47_spill] sm:$0xff]  ;;  %v9984_v12 = vld [vmem:[#allocation48_spill] sm:$0xff]  ;;  %v9986_v35 = vld [vmem:[#allocation97_spill] sm:$0xff] }
 0x1cf   : > { %v7390_v48 = vpop.f32.mrf.mxu1  ;;  %v2470_v7 = vadd.f32 %v9983_v42, %v1693_v30  ;;  %v2475_v13 = vadd.f32 %v9984_v12, %v1714_v9  ;;  %v9985_v52 = vld [vmem:[#allocation52_spill] sm:$0xff]  ;;  %v9987_v46 = vld [vmem:[#allocation99_spill] sm:$0xff]  ;;  %v9989_v49 = vld [vmem:[#allocation61_spill] sm:$0xff] }
 0x1d0   : > { %v9306_v57 = vpop.f32.mrf.mxu0  ;;  %v2474_v54 = vadd.f32 %v9985_v52, %v1709_v53  ;;  %v3165_v32 = vadd.f32 %v9986_v35, %v2466_v58  ;;  %v3170_v59 = vadd.f32 %v9987_v46, %v2471_v56  ;;  %v9988_v4 = vld [vmem:[#allocation59_spill] sm:$0xff]  ;;  %v2483_v40 = vadd.f32 %v9989_v49, %v1746_v16  ;;  %v9990_v19 = vld [vmem:[#allocation101_spill] sm:$0xff]  ;;  %v9993_v9 = vld [vmem:[#allocation114_spill] sm:$0xff] }
 0x1d1   : > { %v3137_v55 = vpop.f32.mrf.mxu1  ;;  %v2478_v20 = vadd.f32 %v9988_v4, %v1725_v8  ;;  %v3168_v26 = vadd.f32 %v9990_v19, %v2469_v22  ;;  %v9991_v33 = vld [vmem:[#allocation103_spill] sm:$0xff]  ;;  %v9992_v30 = vld [vmem:[#allocation49_spill] sm:$0xff]  ;;  %v9997_v52 = vld [vmem:[#allocation50_spill] sm:$0xff] }
 0x1d2   : > { %v9316_v5 = vpop.f32.mrf.mxu0  ;;  %v3171_v6 = vadd.f32 %v9991_v33, %v2472_v44  ;;  %v2473_v34 = vadd.f32 %v9992_v30, %v1706_v15  ;;  %v3173_v41 = vadd.f32 %v9993_v9, %v2474_v54  ;;  %v9994_v53 = vld [vmem:[#allocation105_spill] sm:$0xff]  ;;  %v3182_v24 = vadd.f32 %v7390_v48, %v2483_v40  ;;  %v9996_v16 = vld [vmem:[#allocation107_spill] sm:$0xff]  ;;  %v9998_v46 = vld [vmem:[#allocation54_spill] sm:$0xff] }
 0x1d3   : > { %v7391_v17 = vpop.f32.mrf.mxu1  ;;  %v3169_v18 = vadd.f32 %v9994_v53, %v2470_v7  ;;  %v3177_v58 = vadd.f32 %v3124_v61, %v2478_v20  ;;  %v9995_v56 = vld [vmem:[#allocation65_spill] sm:$0xff]  ;;  %v3174_v12 = vadd.f32 %v9996_v16, %v2475_v13  ;;  %v2476_v35 = vadd.f32 %v9997_v52, %v1717_v10  ;;  %v9999_v4 = vld [vmem:[#allocation67_spill] sm:$0xff]  ;;  %v10001_v19 = vld [vmem:[#allocation56_spill] sm:$0xff] }
 0x1d4   : > { %v9326_v3 = vpop.f32.mrf.mxu0  ;;  %v2484_v42 = vadd.f32 %v9995_v56, %v1749_v45  ;;  %v2479_v22 = vadd.f32 %v9998_v46, %v1730_v2  ;;  %v2482_v44 = vadd.f32 %v9999_v4, %v1741_v27  ;;  %v10000_v49 = vld [vmem:[#allocation109_spill] sm:$0xff]  ;;  %v2477_v54 = vadd.f32 %v10001_v19, %v1722_v0  ;;  %v10002_v33 = vld [vmem:[#allocation58_spill] sm:$0xff]  ;;  %v10003_v20 = vld [vmem:[#allocation111_spill] sm:$0xff] }
 0x1d5   : > { %v3140_v31 = vpop.f32.mrf.mxu1  ;;  %v3172_v15 = vadd.f32 %v10000_v49, %v2473_v34  ;;  %v2480_v7 = vadd.f32 %v10002_v33, %v1733_v38  ;;  %v3175_v40 = vadd.f32 %v10003_v20, %v2476_v35  ;;  %v10004_v10 = vld [vmem:[#allocation63_spill] sm:$0xff]  ;;  %v10005_v0 = vld [vmem:[#allocation84_spill] sm:$0xff]  ;;  %v10012_v46 = vld [vmem:[#allocation94_spill] sm:$0xff] }
 0x1d6   : > { %v3183_v61 = vadd.f32 %v7391_v17, %v2484_v42  ;;  %v9345_v45 = vpop.f32.mrf.mxu0  ;;  %v3178_v13 = vadd.f32 %v9209_v11, %v2479_v22  ;;  %v2481_v30 = vadd.f32 %v10004_v10, %v1738_v36  ;;  %v3181_v2 = vadd.f32 %v3140_v31, %v2482_v44  ;;  %v10006_v17 = vld [vmem:[#allocation85_spill] sm:$0xff]  ;;  %v10007_v42 = vld [vmem:[#allocation86_spill] sm:$0xff]  ;;  %v10008_v11 = vld [vmem:[#allocation88_spill] sm:$0xff] }
 0x1d7   : > { %v9334_v8 = vpop.f32.mrf.mxu1  ;;  %v3176_v27 = vadd.f32 %v9222_v29, %v2477_v54  ;;  %v3179_v34 = vadd.f32 %v9233_v37, %v2480_v7  ;;  %v9355_v38 = vadd.f32 %v10005_v0, %v3162_v14  ;;  %v9358_v53 = vadd.f32 %v10006_v17, %v3160_v1  ;;  %v10009_v36 = vld [vmem:[#allocation90_spill] sm:$0xff]  ;;  %v10011_v37 = vld [vmem:[#allocation92_spill] sm:$0xff] }
 0x1d8   : > { %v3180_v56 = vadd.f32 %v3137_v55, %v2481_v30  ;;  %v9361_v16 = vadd.f32 %v10007_v42, %v3163_v60  ;;  %v9364_v52 = vadd.f32 %v10008_v11, %v3161_v28  ;;  %v9367_v31 = vadd.f32 %v10009_v36, %v3166_v63  ;;  %v10014_v22 = vld [vmem:[#allocation96_spill] sm:$0xff]  ;;  %v10015_v4 = vld [vmem:[#allocation98_spill] sm:$0xff] }
 0x1d9   : > { %v9343_v48 = vpop.f32.mrf.mxu1  ;;  %v3494_v35 = vadd.f32 %v10011_v37, %v3164_v25  ;;  %v9373_v14 = vadd.f32 %v10012_v46, %v3167_v39  ;;  %v3495_v1 = vadd.f32 %v10014_v22, %v3165_v32  ;;  %v3500_v55 = vadd.f32 %v10015_v4, %v3170_v59  ;;  %v10016_v44 = vld [vmem:[#allocation100_spill] sm:$0xff]  ;;  %v10017_v49 = vld [vmem:[#allocation102_spill] sm:$0xff]  ;;  %v10023_v59 = vld [vmem:[#allocation113_spill] sm:$0xff] }
 0x1da   : > { %10010 = vst [vmem:[#allocation10_spill] sm:$0xff] %v9367_v31  ;;  %v3498_v60 = vadd.f32 %v10016_v44, %v3168_v26  ;;  %v3501_v19 = vadd.f32 %v10017_v49, %v3171_v6  ;;  %v10018_v28 = vld [vmem:[#allocation104_spill] sm:$0xff]  ;;  %v10019_v63 = vld [vmem:[#allocation106_spill] sm:$0xff]  ;;  %v9391_v17 = vadd.f32 %v10023_v59, %v3178_v13  ;;  %v9394_v26 = vadd.f32 %v9207_v51, %v3176_v27 }
 0x1db   : > { %v9352_v9 = vpop.f32.mrf.mxu1  ;;  %10013 = vst [vmem:[#allocation51_spill] sm:$0xff] %v9373_v14  ;;  %v3499_v54 = vadd.f32 %v10018_v28, %v3169_v18  ;;  %v3504_v7 = vadd.f32 %v10019_v63, %v3174_v12  ;;  %v10020_v20 = vld [vmem:[#allocation108_spill] sm:$0xff]  ;;  %v10021_v25 = vld [vmem:[#allocation110_spill] sm:$0xff]  ;;  %v9397_v6 = vadd.f32 %v9218_v23, %v3179_v34  ;;  %v9400_v18 = vadd.f32 %v9228_v43, %v3177_v58 }
 0x1dc   : > { %v9369_v29 = vpop.f32.mrf.mxu0  ;;  %v3502_v10 = vadd.f32 %v10020_v20, %v3172_v15  ;;  %v3505_v30 = vadd.f32 %v10021_v25, %v3175_v40  ;;  %v10022_v39 = vld [vmem:[#allocation112_spill] sm:$0xff]  ;;  %v9403_v12 = vadd.f32 %v9243_v50, %v3182_v24  ;;  %v9409_v15 = vadd.f32 %v9279_v21, %v3183_v61 }
 0x1dd   : > { %v9380_v33 = vpop.f32.mrf.mxu1  ;;  %v9386_v0 = vadd.f32 %v10022_v39, %v3173_v41  ;;  %v9406_v41 = vadd.f32 %v9260_v62, %v3180_v56  ;;  %v9412_v40 = vadd.f32 %v9295_v47, %v3181_v2 }
 0x1de   : > { %v9388_v32 = vpop.f32.mrf.mxu0 }
 0x1e0   : > { %v9416_v13 = vpop.f32.mrf.mxu0 }
 0x1e2   : > { %v9414_v51 = vpop.f32.mrf.mxu1  ;;  %v9420_v43 = vpop.f32.mrf.mxu0 }
 0x1e4   : > { %v9418_v23 = vpop.f32.mrf.mxu1 }
 0x1e6   : > { %v9422_v58 = vpop.f32.mrf.mxu1 }
 0x1e8   : > { %v9426_v62 = vpop.f32.mrf.mxu1 }
 0x1eb   : > { %v9424_v50 = vpop.f32.mrf.mxu0 }
 0x1ed   : > { %v9428_v24 = vpop.f32.mrf.mxu0 }
 0x1ef   : > { %v9432_v47 = vpop.f32.mrf.mxu0 }
 0x1f1   : > { %v9430_v21 = vpop.f32.mrf.mxu1  ;;  %v9436_v2 = vpop.f32.mrf.mxu0 }
 0x1f3   : > { %v9434_v61 = vpop.f32.mrf.mxu1 }
 0x1f5   : > { %v9438_v27 = vpop.f32.mrf.mxu1 }
 0x1f7   : > { %v9442_v56 = vpop.f32.mrf.mxu1 }
 0x1fb   : > { %v9440_v34 = vpop.f32.mrf.mxu0 }
 0x1fc   : > { %10024 = vst [vmem:[#allocation13_spill] sm:$0xff] %v9440_v34 }
 0x1fd   : > { %v4832_v42 = vpop.f32.mrf.mxu0 }
 0x1ff   : > { %v9446_v36 = vpop.f32.mrf.mxu0 }
 0x200   : > { %v9444_v11 = vpop.f32.mrf.mxu1  ;;  %10026 = vst [vmem:[#allocation11_spill] sm:$0xff] %v9446_v36 }
 0x201   : > { %10025 = vst [vmem:[#allocation53_spill] sm:$0xff] %v9444_v11  ;;  %v4835_v4 = vpop.f32.mrf.mxu0 }
 0x202   : > { %v4133_v37 = vpop.f32.mrf.mxu1 }
 0x203   : > { %v4224_v46 = vadd.f32 %v4133_v37, %v3494_v35 }
 0x204   : > { %v9448_v22 = vpop.f32.mrf.mxu1 }
 0x205   : > { %10027 = vst [vmem:[#allocation55_spill] sm:$0xff] %v9448_v22  ;;  %v9450_v44 = vadd.f32 %v4832_v42, %v4224_v46 }
 0x206   : > { %v4136_v49 = vpop.f32.mrf.mxu1 }
 0x207   : > { %10028 = vst [vmem:[#allocation16_spill] sm:$0xff] %v9450_v44  ;;  %v4225_v28 = vadd.f32 %v4136_v49, %v3495_v1 }
 0x209   : > { %v9452_v20 = vadd.f32 %v4835_v4, %v4225_v28 }
 0x20a   : > { %v7480_v63 = vpop.f32.mrf.mxu0 }
 0x20b   : > { %10029 = vst [vmem:[#allocation57_spill] sm:$0xff] %v9452_v20 }
 0x20c   : > { %v4848_v25 = vpop.f32.mrf.mxu0 }
 0x20e   : > { %v7481_v34 = vpop.f32.mrf.mxu0 }
 0x210   : > { %v4851_v37 = vpop.f32.mrf.mxu0 }
 0x211   : > { %v7446_v39 = vpop.f32.mrf.mxu1 }
 0x212   : > { %v4230_v59 = vadd.f32 %v7446_v39, %v3500_v55 }
 0x213   : > { %v4149_v14 = vpop.f32.mrf.mxu1 }
 0x214   : > { %v4228_v11 = vadd.f32 %v4149_v14, %v3498_v60  ;;  %v9454_v31 = vadd.f32 %v7480_v63, %v4230_v59 }
 0x215   : > { %v7447_v36 = vpop.f32.mrf.mxu1 }
 0x216   : > { %v4231_v35 = vadd.f32 %v7447_v36, %v3501_v19  ;;  %v9456_v22 = vadd.f32 %v4848_v25, %v4228_v11 }
 0x217   : > { %v4152_v42 = vpop.f32.mrf.mxu1 }
 0x218   : > { %v4229_v46 = vadd.f32 %v4152_v42, %v3499_v54  ;;  %v9458_v44 = vadd.f32 %v7481_v34, %v4231_v35 }
 0x21a   : > { %10030 = vst [vmem:[#allocation14_spill] sm:$0xff] %v9458_v44  ;;  %v7484_v1 = vpop.f32.mrf.mxu0  ;;  %v9460_v4 = vadd.f32 %v4851_v37, %v4229_v46 }
 0x21c   : > { %10031 = vst [vmem:[#allocation17_spill] sm:$0xff] %v9460_v4  ;;  %v4864_v49 = vpop.f32.mrf.mxu0 }
 0x21e   : > { %v7485_v14 = vpop.f32.mrf.mxu0 }
 0x21f   : > { %v7450_v28 = vpop.f32.mrf.mxu1 }
 0x220   : > { %v4234_v55 = vadd.f32 %v7450_v28, %v3504_v7  ;;  %v4867_v25 = vpop.f32.mrf.mxu0 }
 0x221   : > { %v4165_v39 = vpop.f32.mrf.mxu1 }
 0x222   : > { %v4232_v20 = vadd.f32 %v4165_v39, %v3502_v10  ;;  %v9462_v60 = vadd.f32 %v7484_v1, %v4234_v55  ;;  %v10038_v39 = vld [vmem:[#allocation3_spill] sm:$0xff] }
 0x223   : > { %v7451_v63 = vpop.f32.mrf.mxu1 }
 0x224   : > { %10032 = vst [vmem:[#allocation60_spill] sm:$0xff] %v9462_v60  ;;  %v4235_v19 = vadd.f32 %v7451_v63, %v3505_v30  ;;  %v9464_v36 = vadd.f32 %v4864_v49, %v4232_v20  ;;  %v10064_v60 = vld [vmem:[#allocation29_spill] sm:$0xff] }
 0x225   : > { %v4168_v11 = vpop.f32.mrf.mxu1 }
 0x226   : > { %10033 = vst [vmem:[#allocation15_spill] sm:$0xff] %v9464_v36  ;;  %v4233_v54 = vadd.f32 %v4168_v11, %v9386_v0  ;;  %v9467_v34 = vadd.f32 %v7485_v14, %v4235_v19  ;;  %v10039_v14 = vld [vmem:[#allocation19_spill] sm:$0xff]  ;;  %v10061_v36 = vld [vmem:[#allocation68_spill] sm:$0xff] }
 0x227   : > { %v1634_v63 = vadd.f32 %v10039_v14, %v10038_v39  ;;  %v10049_v14 = vld [vmem:[#allocation8_spill] sm:$0xff] }
 0x228   : > { %10034 = vst [vmem:[#allocation62_spill] sm:$0xff] %v9467_v34  ;;  %v9469_v59 = vadd.f32 %v4867_v25, %v4233_v54  ;;  %v10042_v25 = vld [vmem:[#allocation24_spill] sm:$0xff] }
 0x229   : > { %v7488_v35 = vpop.f32.mrf.mxu0 }
 0x22a   : > { %10035 = vst [vmem:[#allocation22_spill] sm:$0xff] %v9469_v59  ;;  %v10057_v59 = vld [vmem:[#allocation32_spill] sm:$0xff] }
 0x22b   : > { %v4880_v37 = vpop.f32.mrf.mxu0 }
 0x22d   : > { %v7489_v46 = vpop.f32.mrf.mxu0 }
 0x22f   : > { %v7454_v7 = vpop.f32.mrf.mxu1  ;;  %v4883_v0 = vpop.f32.mrf.mxu0 }
 0x230   : > { %v4238_v10 = vadd.f32 %v7454_v7, %v9391_v17  ;;  %v10041_v17 = vld [vmem:[#allocation5_spill] sm:$0xff]  ;;  %v10044_v7 = vld [vmem:[#allocation23_spill] sm:$0xff] }
 0x231   : > { %v4181_v42 = vpop.f32.mrf.mxu1  ;;  %v1626_v54 = vadd.f32 %v10042_v25, %v10041_v17  ;;  %v10053_v17 = vld [vmem:[#allocation71_spill] sm:$0xff]  ;;  %v10054_v25 = vld [vmem:[#allocation9_spill] sm:$0xff] }
 0x232   : > { %v4236_v1 = vadd.f32 %v4181_v42, %v9394_v26  ;;  %v9473_v30 = vadd.f32 %v7488_v35, %v4238_v10  ;;  %v2455_v10 = vadd.f32 %v10044_v7, %v1634_v63  ;;  %v10056_v7 = vld [vmem:[#allocation7_spill] sm:$0xff] }
 0x233   : > { %v7455_v20 = vpop.f32.mrf.mxu1 }
 0x234   : > { %10036 = vst [vmem:[#allocation64_spill] sm:$0xff] %v9473_v30  ;;  %v4239_v49 = vadd.f32 %v7455_v20, %v9397_v6  ;;  %v9476_v28 = vadd.f32 %v4880_v37, %v4236_v1  ;;  %v10045_v6 = vld [vmem:[#allocation4_spill] sm:$0xff]  ;;  %v10046_v37 = vld [vmem:[#allocation25_spill] sm:$0xff] }
 0x235   : > { %v4184_v55 = vpop.f32.mrf.mxu1  ;;  %v1637_v42 = vadd.f32 %v10046_v37, %v10045_v6  ;;  %v10047_v20 = vld [vmem:[#allocation69_spill] sm:$0xff]  ;;  %v10048_v30 = vld [vmem:[#allocation20_spill] sm:$0xff]  ;;  %v1653_v6 = vadd.f32 %v10057_v59, %v10056_v7  ;;  %v10065_v59 = vld [vmem:[#allocation70_spill] sm:$0xff] }
 0x236   : > { %10037 = vst [vmem:[#allocation36_spill] sm:$0xff] %v9476_v28  ;;  %v4237_v19 = vadd.f32 %v4184_v55, %v9400_v18  ;;  %v9481_v11 = vadd.f32 %v7489_v46, %v4239_v49  ;;  %v3154_v28 = vadd.f32 %v10047_v20, %v2455_v10  ;;  %v2453_v39 = vadd.f32 %v10048_v30, %v1626_v54  ;;  %v10050_v18 = vld [vmem:[#allocation26_spill] sm:$0xff]  ;;  %v10052_v55 = vld [vmem:[#allocation28_spill] sm:$0xff]  ;;  %v10058_v37 = vld [vmem:[#allocation21_spill] sm:$0xff] }
 0x237   : > { %v1629_v46 = vadd.f32 %v10050_v18, %v10049_v14  ;;  %v10051_v49 = vld [vmem:[#allocation6_spill] sm:$0xff]  ;;  %v2456_v34 = vadd.f32 %v10058_v37, %v1637_v42  ;;  %v10059_v20 = vld [vmem:[#allocation12_spill] sm:$0xff] }
 0x238   : > { %10040 = vst [vmem:[#allocation37_spill] sm:$0xff] %v9481_v11  ;;  %v9485_v26 = vadd.f32 %v4883_v0, %v4237_v19  ;;  %v1650_v11 = vadd.f32 %v10052_v55, %v10051_v49  ;;  %v3152_v0 = vadd.f32 %v10053_v17, %v2453_v39  ;;  %v10060_v30 = vld [vmem:[#allocation34_spill] sm:$0xff]  ;;  %v3484_v14 = vadd.f32 %v10061_v36, %v3154_v28  ;;  %v10062_v49 = vld [vmem:[#allocation73_spill] sm:$0xff]  ;;  %v10063_v39 = vld [vmem:[#allocation27_spill] sm:$0xff] }
 0x239   : > { %v7492_v35 = vpop.f32.mrf.mxu0  ;;  %v1645_v54 = vadd.f32 %v10060_v30, %v10059_v20  ;;  %v3155_v55 = vadd.f32 %v10062_v49, %v2456_v34  ;;  %v2454_v17 = vadd.f32 %v10063_v39, %v1629_v46  ;;  %v10066_v20 = vld [vmem:[#allocation75_spill] sm:$0xff]  ;;  %v10067_v28 = vld [vmem:[#allocation77_spill] sm:$0xff] }
 0x23a   : > { %10043 = vst [vmem:[#allocation38_spill] sm:$0xff] %v9485_v26  ;;  %v10055_v26 = vld [vmem:[#allocation30_spill] sm:$0xff]  ;;  %v2459_v4 = vadd.f32 %v10064_v60, %v1650_v11  ;;  %v3482_v7 = vadd.f32 %v10065_v59, %v3152_v0  ;;  %v10069_v30 = vld [vmem:[#allocation33_spill] sm:$0xff]  ;;  %v10070_v60 = vld [vmem:[#allocation35_spill] sm:$0xff] }
 0x23b   : > { %v4896_v1 = vpop.f32.mrf.mxu0  ;;  %v1642_v63 = vadd.f32 %v10055_v26, %v10054_v25  ;;  %v4214_v25 = vadd.f32 %v9334_v8, %v3484_v14  ;;  %v3153_v36 = vadd.f32 %v10066_v20, %v2454_v17  ;;  %v2460_v46 = vadd.f32 %v10069_v30, %v1653_v6  ;;  %v10073_v17 = vld [vmem:[#allocation72_spill] sm:$0xff]  ;;  %v10074_v59 = vld [vmem:[#allocation83_spill] sm:$0xff] }
 0x23c   : > { %v2458_v11 = vadd.f32 %v10070_v60, %v1645_v54  ;;  %v4212_v8 = vadd.f32 %v9343_v48, %v3482_v7 }
 0x23d   : > { %v7493_v19 = vpop.f32.mrf.mxu0  ;;  %v4913_v54 = vadd.f32 %v9306_v57, %v4214_v25 }
 0x23e   : > { %v4911_v30 = vadd.f32 %v9316_v5, %v4212_v8 }
 0x23f   : > { %v7458_v10 = vpop.f32.mrf.mxu1  ;;  %v4899_v37 = vpop.f32.mrf.mxu0 }
 0x240   : > { %v4242_v18 = vadd.f32 %v7458_v10, %v9403_v12  ;;  %v3158_v12 = vadd.f32 %v10067_v28, %v2459_v4  ;;  %v10068_v10 = vld [vmem:[#allocation31_spill] sm:$0xff] }
 0x241   : > { %v4197_v26 = vpop.f32.mrf.mxu1  ;;  %v2457_v34 = vadd.f32 %v10068_v10, %v1642_v63  ;;  %v3157_v63 = vadd.f32 %v10074_v59, %v2458_v11 }
 0x242   : > { %v4240_v42 = vadd.f32 %v4197_v26, %v9406_v41  ;;  %v9512_v44 = vadd.f32 %v7492_v35, %v4242_v18  ;;  %v10071_v41 = vld [vmem:[#allocation79_spill] sm:$0xff]  ;;  %v10072_v18 = vld [vmem:[#allocation81_spill] sm:$0xff]  ;;  %v3485_v26 = vadd.f32 %v10073_v17, %v3155_v55 }
 0x243   : > { %v7459_v49 = vpop.f32.mrf.mxu1  ;;  %v3156_v35 = vadd.f32 %v10071_v41, %v2457_v34  ;;  %v3159_v39 = vadd.f32 %v10072_v18, %v2460_v46 }
 0x244   : > { %v4243_v0 = vadd.f32 %v7459_v49, %v9409_v15  ;;  %v9521_v14 = vadd.f32 %v4896_v1, %v4240_v42  ;;  %v4215_v48 = vadd.f32 %v9352_v9, %v3485_v26  ;;  %v10075_v15 = vld [vmem:[#allocation74_spill] sm:$0xff]  ;;  %v10076_v42 = vld [vmem:[#allocation76_spill] sm:$0xff]  ;;  %v4220_v26 = vadd.f32 %v9434_v61, %v9358_v53 }
 0x245   : > { %v4200_v4 = vpop.f32.mrf.mxu1  ;;  %v3483_v1 = vadd.f32 %v10075_v15, %v3153_v36  ;;  %v3488_v10 = vadd.f32 %v10076_v42, %v3158_v12  ;;  %v10077_v49 = vld [vmem:[#allocation78_spill] sm:$0xff] }
 0x246   : > { %v4241_v6 = vadd.f32 %v4200_v4, %v9412_v40  ;;  %v9529_v28 = vadd.f32 %v7493_v19, %v4243_v0  ;;  %v3486_v57 = vadd.f32 %v10077_v49, %v3156_v35  ;;  %v10078_v19 = vld [vmem:[#allocation80_spill] sm:$0xff]  ;;  %v10079_v36 = vld [vmem:[#allocation82_spill] sm:$0xff]  ;;  %v4222_v35 = vadd.f32 %v9430_v21, %v9355_v38 }
 0x247   : > { %v7532_v20 = vpop.f32.mrf.mxu0  ;;  %v7498_v7 = vpop.f32.mrf.mxu1  ;;  %v4213_v40 = vadd.f32 %v9380_v33, %v3483_v1  ;;  %v3489_v25 = vadd.f32 %v10078_v19, %v3159_v39  ;;  %v4218_v9 = vadd.f32 %v9414_v51, %v3488_v10  ;;  %v3487_v11 = vadd.f32 %v10079_v36, %v3157_v63 }
 0x248   : > { %v5243_v34 = vadd.f32 %v7498_v7, %v4913_v54  ;;  %v9535_v46 = vadd.f32 %v4899_v37, %v4241_v6  ;;  %v4216_v5 = vadd.f32 %v9418_v23, %v3486_v57  ;;  %v4914_v37 = vadd.f32 %v9326_v3, %v4215_v48 }
 0x249   : > { %v5844_v55 = vpop.f32.mrf.mxu0  ;;  %v5114_v60 = vpop.f32.mrf.mxu1  ;;  %v4219_v33 = vadd.f32 %v9422_v58, %v3489_v25  ;;  %v4217_v51 = vadd.f32 %v9426_v62, %v3487_v11  ;;  %v4223_v23 = vadd.f32 %v9438_v27, %v9361_v16  ;;  %v4912_v58 = vadd.f32 %v9345_v45, %v4213_v40 }
 0x24a   : > { %v5973_v0 = vadd.f32 %v7532_v20, %v5243_v34  ;;  %v5241_v41 = vadd.f32 %v5114_v60, %v4911_v30  ;;  %v4221_v62 = vadd.f32 %v9442_v56, %v9364_v52  ;;  %v4917_v21 = vadd.f32 %v9369_v29, %v4218_v9 }
 0x24b   : > { %v7533_v12 = vpop.f32.mrf.mxu0  ;;  %v7499_v8 = vpop.f32.mrf.mxu1  ;;  %v4915_v53 = vadd.f32 %v9388_v32, %v4216_v5  ;;  %v4918_v61 = vadd.f32 %v9416_v13, %v4219_v33  ;;  %v4916_v52 = vadd.f32 %v9420_v43, %v4217_v51  ;;  %v4921_v56 = vadd.f32 %v9424_v50, %v4222_v35 }
 0x24c   : > { %v6994_v18 = vpack.c.bf16 %v5973_v0, %v5973_v0  ;;  %v5971_v39 = vadd.f32 %v5844_v55, %v5241_v41  ;;  %v5244_v4 = vadd.f32 %v7499_v8, %v4914_v37  ;;  %v4919_v48 = vadd.f32 %v9428_v24, %v4220_v26 }
 0x24d   : > { %v5847_v17 = vpop.f32.mrf.mxu0  ;;  %v5117_v3 = vpop.f32.mrf.mxu1  ;;  %v4922_v15 = vadd.f32 %v9432_v47, %v4223_v23  ;;  %v6234_v32 = vmul.f32 %v5973_v0, %v5973_v0  ;;  %v9574_v42 = vadd.f32 %v9436_v2, %v4221_v62  ;;  %v6166_v47 = vsel %vm1279_vm1, %v5973_v0, 0.0 }
 0x24e   : > { %6133 = vst.msk [vmem:[%s9547_s11 + $0x8] sm:$0xf] %vm712_vm0, %v6994_v18  ;;  %v6992_v38 = vpack.c.bf16 %v5971_v39, %v5971_v39  ;;  %v5974_v59 = vadd.f32 %v7533_v12, %v5244_v4  ;;  %v5242_v63 = vadd.f32 %v5117_v3, %v4912_v58  ;;  %v6232_v16 = vmul.f32 %v5971_v39, %v5971_v39 }
 0x24f   : > { %v7502_v6 = vpop.f32.mrf.mxu1  ;;  %v6163_v10 = vsel %vm1279_vm1, %v5971_v39, 0.0  ;;  %v6267_v9 = vsel %vm1279_vm1, %v6234_v32, 0.0 }
 0x250   : > { %6131 = vst.msk [vmem:[%s9547_s11] sm:$0xf] %vm712_vm0, %v6992_v38  ;;  %v7536_v45 = vpop.f32.mrf.mxu0  ;;  %v5247_v27 = vadd.f32 %v7502_v6, %v4917_v21  ;;  %v6995_v20 = vpack.c.bf16 %v5974_v59, %v5974_v59  ;;  %v5972_v54 = vadd.f32 %v5847_v17, %v5242_v63  ;;  %v6264_v55 = vsel %vm1279_vm1, %v6232_v16, 0.0 }
 0x251   : > { %v5130_v29 = vpop.f32.mrf.mxu1  ;;  %v6235_v57 = vmul.f32 %v5974_v59, %v5974_v59  ;;  %v6168_v12 = vsel %vm1279_vm1, %v5974_v59, 0.0 }
 0x252   : > { %v5977_v1 = vadd.f32 %v7536_v45, %v5247_v27  ;;  %v5860_v13 = vpop.f32.mrf.mxu0  ;;  %v5245_v7 = vadd.f32 %v5130_v29, %v4915_v53  ;;  %6134 = vst.msk [vmem:[%s9547_s11 + $0xc] sm:$0xf] %vm712_vm0, %v6995_v20  ;;  %v6993_v43 = vpack.c.bf16 %v5972_v54, %v5972_v54  ;;  %v6164_v50 = vsel %vm1279_vm1, %v5972_v54, 0.0  ;;  %v10080_v45 = vld [vmem:[#allocation10_spill] sm:$0xff]  ;;  %v10081_v27 = vld [vmem:[#allocation53_spill] sm:$0xff] }
 0x253   : > { %v6233_v34 = vmul.f32 %v5972_v54, %v5972_v54  ;;  %v7503_v24 = vpop.f32.mrf.mxu1  ;;  %v6165_v30 = vadd.f32 %v6164_v50, %v6163_v10  ;;  %v6269_v17 = vsel %vm1279_vm1, %v6235_v57, 0.0 }
 0x254   : > { %v6998_v40 = vpack.c.bf16 %v5977_v1, %v5977_v1  ;;  %v7537_v49 = vpop.f32.mrf.mxu0  ;;  %6132 = vst.msk [vmem:[%s9547_s11 + $0x4] sm:$0xf] %vm712_vm0, %v6993_v43  ;;  %v5975_v19 = vadd.f32 %v5860_v13, %v5245_v7  ;;  %v5248_v25 = vadd.f32 %v7503_v24, %v4918_v61  ;;  %v6238_v26 = vmul.f32 %v5977_v1, %v5977_v1 }
 0x255   : > { %v6265_v2 = vsel %vm1279_vm1, %v6233_v34, 0.0  ;;  %v5133_v60 = vpop.f32.mrf.mxu1  ;;  %v6167_v36 = vadd.f32 %v6166_v47, %v6165_v30  ;;  %v6174_v32 = vsel %vm1279_vm1, %v5977_v1, 0.0  ;;  %v10083_v30 = vld [vmem:[#allocation55_spill] sm:$0xff] }
 0x256   : > { %v6266_v11 = vadd.f32 %v6265_v2, %v6264_v55  ;;  %6137 = vst.msk [vmem:[%s9547_s11 + $0x18] sm:$0xf] %vm712_vm0, %v6998_v40  ;;  %v5863_v0 = vpop.f32.mrf.mxu0  ;;  %v5246_v41 = vadd.f32 %v5133_v60, %v4916_v52  ;;  %v6996_v5 = vpack.c.bf16 %v5975_v19, %v5975_v19  ;;  %v6236_v33 = vmul.f32 %v5975_v19, %v5975_v19  ;;  %v10082_v55 = vld [vmem:[#allocation51_spill] sm:$0xff] }
 0x257   : > { %v5978_v37 = vadd.f32 %v7537_v49, %v5248_v25  ;;  %v7506_v8 = vpop.f32.mrf.mxu1  ;;  %v6169_v35 = vadd.f32 %v6168_v12, %v6167_v36  ;;  %v6170_v23 = vsel %vm1279_vm1, %v5975_v19, 0.0  ;;  %v4226_v52 = vadd.f32 %v10081_v27, %v10080_v45 }
 0x258   : > { %v6268_v51 = vadd.f32 %v6267_v9, %v6266_v11  ;;  %v5976_v18 = vadd.f32 %v5863_v0, %v5246_v41  ;;  %v5251_v39 = vadd.f32 %v7506_v8, %v4921_v56  ;;  %6135 = vst.msk [vmem:[%s9547_s11 + $0x10] sm:$0xf] %vm712_vm0, %v6996_v5  ;;  %v6271_v63 = vsel %vm1279_vm1, %v6236_v33, 0.0  ;;  %v10084_v9 = vld [vmem:[#allocation13_spill] sm:$0xff] }
 0x259   : > { %v6999_v4 = vpack.c.bf16 %v5978_v37, %v5978_v37  ;;  %v5146_v58 = vpop.f32.mrf.mxu1  ;;  %v6171_v3 = vadd.f32 %v6170_v23, %v6169_v35  ;;  %v6239_v13 = vmul.f32 %v5978_v37, %v5978_v37  ;;  %v4227_v40 = vadd.f32 %v10083_v30, %v10082_v55 }
 0x25a   : > { %v6270_v62 = vadd.f32 %v6269_v17, %v6268_v51  ;;  %v6997_v38 = vpack.c.bf16 %v5976_v18, %v5976_v18  ;;  %v6172_v21 = vsel %vm1279_vm1, %v5976_v18, 0.0  ;;  %v7540_v59 = vpop.f32.mrf.mxu0  ;;  %v6237_v6 = vmul.f32 %v5976_v18, %v5976_v18  ;;  %v10085_v18 = vld [vmem:[#allocation16_spill] sm:$0xff]  ;;  %v10086_v17 = vld [vmem:[#allocation11_spill] sm:$0xff] }
 0x25b   : > { %6138 = vst.msk [vmem:[%s9547_s11 + $0x1c] sm:$0xf] %vm712_vm0, %v6999_v4  ;;  %v5981_v53 = vadd.f32 %v7540_v59, %v5251_v39  ;;  %v5249_v61 = vadd.f32 %v5146_v58, %v4919_v48  ;;  %v7507_v16 = vpop.f32.mrf.mxu1  ;;  %v6173_v20 = vadd.f32 %v6172_v21, %v6171_v3  ;;  %v6275_v49 = vsel %vm1279_vm1, %v6238_v26, 0.0 }
 0x25c   : > { %v6272_v56 = vadd.f32 %v6271_v63, %v6270_v62  ;;  %6136 = vst.msk [vmem:[%s9547_s11 + $0x14] sm:$0xf] %vm712_vm0, %v6997_v38  ;;  %v5876_v54 = vpop.f32.mrf.mxu0  ;;  %v5252_v29 = vadd.f32 %v7507_v16, %v4922_v15  ;;  %v6273_v7 = vsel %vm1279_vm1, %v6237_v6, 0.0  ;;  %v6176_v15 = vsel %vm1279_vm1, %v5978_v37, 0.0 }
 0x25d   : > { %v7002_v10 = vpack.c.bf16 %v5981_v53, %v5981_v53  ;;  %v5149_v43 = vpop.f32.mrf.mxu1  ;;  %v6175_v50 = vadd.f32 %v6174_v32, %v6173_v20  ;;  %v5979_v34 = vadd.f32 %v5876_v54, %v5249_v61  ;;  %v4925_v36 = vadd.f32 %v10084_v9, %v4226_v52 }
 0x25e   : > { %v6274_v48 = vadd.f32 %v6273_v7, %v6272_v56  ;;  %v7541_v24 = vpop.f32.mrf.mxu0  ;;  %v5250_v47 = vadd.f32 %v5149_v43, %v9574_v42  ;;  %v6277_v42 = vsel %vm1279_vm1, %v6239_v13, 0.0  ;;  %v6242_v51 = vmul.f32 %v5981_v53, %v5981_v53  ;;  %v10087_v7 = vld [vmem:[#allocation57_spill] sm:$0xff] }
 0x25f   : > { %6141 = vst.msk [vmem:[%s9547_s11 + $0x28] sm:$0xf] %vm712_vm0, %v7002_v10  ;;  %v5982_v1 = vadd.f32 %v7541_v24, %v5252_v29  ;;  %v7510_v57 = vpop.f32.mrf.mxu1  ;;  %v7000_v19 = vpack.c.bf16 %v5979_v34, %v5979_v34  ;;  %v6177_v25 = vadd.f32 %v6176_v15, %v6175_v50  ;;  %v6178_v11 = vsel %vm1279_vm1, %v5979_v34, 0.0 }
 0x260   : > { %v6276_v2 = vadd.f32 %v6275_v49, %v6274_v48  ;;  %v5879_v60 = vpop.f32.mrf.mxu0  ;;  %v6240_v0 = vmul.f32 %v5979_v34, %v5979_v34  ;;  %v5255_v8 = vadd.f32 %v7510_v57, %v4925_v36  ;;  %v4926_v26 = vadd.f32 %v10086_v17, %v4227_v40 }
 0x261   : > { %v7003_v41 = vpack.c.bf16 %v5982_v1, %v5982_v1  ;;  %v5162_v12 = vpop.f32.mrf.mxu1  ;;  %6139 = vst.msk [vmem:[%s9547_s11 + $0x20] sm:$0xf] %vm712_vm0, %v7000_v19  ;;  %v6179_v5 = vadd.f32 %v6178_v11, %v6177_v25  ;;  %v5980_v37 = vadd.f32 %v5879_v60, %v5250_v47  ;;  %v6182_v61 = vsel %vm1279_vm1, %v5981_v53, 0.0 }
 0x262   : > { %v6278_v33 = vadd.f32 %v6277_v42, %v6276_v2  ;;  %v6279_v35 = vsel %vm1279_vm1, %v6240_v0, 0.0  ;;  %v5253_v39 = vadd.f32 %v5162_v12, %v10085_v18  ;;  %v6243_v16 = vmul.f32 %v5982_v1, %v5982_v1 }
 0x263   : > { %6142 = vst.msk [vmem:[%s9547_s11 + $0x2c] sm:$0xf] %vm712_vm0, %v7003_v41  ;;  %v7511_v23 = vpop.f32.mrf.mxu1  ;;  %v7001_v58 = vpack.c.bf16 %v5980_v37, %v5980_v37  ;;  %v6180_v3 = vsel %vm1279_vm1, %v5980_v37, 0.0  ;;  %v6241_v62 = vmul.f32 %v5980_v37, %v5980_v37  ;;  %v6283_v54 = vsel %vm1279_vm1, %v6242_v51, 0.0 }
 0x264   : > { %v6280_v4 = vadd.f32 %v6279_v35, %v6278_v33  ;;  %v7544_v38 = vpop.f32.mrf.mxu0  ;;  %v6181_v21 = vadd.f32 %v6180_v3, %v6179_v5  ;;  %v5256_v63 = vadd.f32 %v7511_v23, %v4926_v26  ;;  %v6184_v29 = vsel %vm1279_vm1, %v5982_v1, 0.0  ;;  %v10088_v33 = vld [vmem:[#allocation14_spill] sm:$0xff]  ;;  %v10089_v3 = vld [vmem:[#allocation17_spill] sm:$0xff] }
 0x265   : > { %v5985_v59 = vadd.f32 %v7544_v38, %v5255_v8  ;;  %v5165_v6 = vpop.f32.mrf.mxu1  ;;  %6140 = vst.msk [vmem:[%s9547_s11 + $0x24] sm:$0xf] %vm712_vm0, %v7001_v58  ;;  %v6281_v45 = vsel %vm1279_vm1, %v6241_v62, 0.0  ;;  %v6285_v34 = vsel %vm1279_vm1, %v6243_v16, 0.0 }
 0x266   : > { %v5892_v27 = vpop.f32.mrf.mxu0  ;;  %v6183_v52 = vadd.f32 %v6182_v61, %v6181_v21  ;;  %v6282_v56 = vadd.f32 %v6281_v45, %v6280_v4  ;;  %v5254_v10 = vadd.f32 %v5165_v6, %v10087_v7 }
 0x267   : > { %v7006_v20 = vpack.c.bf16 %v5985_v59, %v5985_v59  ;;  %v5983_v32 = vadd.f32 %v5892_v27, %v5253_v39  ;;  %v6246_v60 = vmul.f32 %v5985_v59, %v5985_v59  ;;  %v6190_v8 = vsel %vm1279_vm1, %v5985_v59, 0.0 }
 0x268   : > { %v7545_v13 = vpop.f32.mrf.mxu0  ;;  %v7514_v43 = vpop.f32.mrf.mxu1  ;;  %v6284_v53 = vadd.f32 %v6283_v54, %v6282_v56  ;;  %v6185_v50 = vadd.f32 %v6184_v29, %v6183_v52  ;;  %v10090_v29 = vld [vmem:[#allocation60_spill] sm:$0xff] }
 0x269   : > { %6145 = vst.msk [vmem:[%s9547_s11 + $0x38] sm:$0xf] %vm712_vm0, %v7006_v20  ;;  %v5986_v48 = vadd.f32 %v7545_v13, %v5256_v63  ;;  %v7004_v24 = vpack.c.bf16 %v5983_v32, %v5983_v32  ;;  %v6186_v47 = vsel %vm1279_vm1, %v5983_v32, 0.0  ;;  %v6244_v55 = vmul.f32 %v5983_v32, %v5983_v32 }
 0x26a   : > { %v5895_v30 = vpop.f32.mrf.mxu0  ;;  %v5178_v40 = vpop.f32.mrf.mxu1  ;;  %v6187_v49 = vadd.f32 %v6186_v47, %v6185_v50  ;;  %v6286_v15 = vadd.f32 %v6285_v34, %v6284_v53  ;;  %v5259_v57 = vadd.f32 %v7514_v43, %v9454_v31  ;;  %v6291_v23 = vsel %vm1279_vm1, %v6246_v60, 0.0  ;;  %v10091_v47 = vld [vmem:[#allocation15_spill] sm:$0xff] }
 0x26b   : > { %v7007_v1 = vpack.c.bf16 %v5986_v48, %v5986_v48  ;;  %6143 = vst.msk [vmem:[%s9547_s11 + $0x30] sm:$0xf] %vm712_vm0, %v7004_v24  ;;  %v6287_v2 = vsel %vm1279_vm1, %v6244_v55, 0.0  ;;  %v5984_v19 = vadd.f32 %v5895_v30, %v5254_v10  ;;  %v5257_v41 = vadd.f32 %v5178_v40, %v9456_v22 }
 0x26c   : > { %v7515_v25 = vpop.f32.mrf.mxu1  ;;  %v6288_v9 = vadd.f32 %v6287_v2, %v6286_v15  ;;  %v6247_v51 = vmul.f32 %v5986_v48, %v5986_v48  ;;  %v6192_v22 = vsel %vm1279_vm1, %v5986_v48, 0.0  ;;  %v10092_v15 = vld [vmem:[#allocation62_spill] sm:$0xff] }
 0x26d   : > { %6146 = vst.msk [vmem:[%s9547_s11 + $0x3c] sm:$0xf] %vm712_vm0, %v7007_v1  ;;  %v7005_v36 = vpack.c.bf16 %v5984_v19, %v5984_v19  ;;  %v6188_v42 = vsel %vm1279_vm1, %v5984_v19, 0.0  ;;  %v6245_v11 = vmul.f32 %v5984_v19, %v5984_v19  ;;  %v7548_v0 = vpop.f32.mrf.mxu0  ;;  %v5260_v37 = vadd.f32 %v7515_v25, %v10088_v33 }
 0x26e   : > { %v5181_v12 = vpop.f32.mrf.mxu1  ;;  %v6189_v31 = vadd.f32 %v6188_v42, %v6187_v49  ;;  %v5989_v5 = vadd.f32 %v7548_v0, %v5259_v57  ;;  %v6293_v6 = vsel %vm1279_vm1, %v6247_v51, 0.0 }
 0x26f   : > { %6144 = vst.msk [vmem:[%s9547_s11 + $0x34] sm:$0xf] %vm712_vm0, %v7005_v36  ;;  %v6289_v35 = vsel %vm1279_vm1, %v6245_v11, 0.0  ;;  %v5908_v18 = vpop.f32.mrf.mxu0  ;;  %v5258_v62 = vadd.f32 %v5181_v12, %v10089_v3  ;;  %v10093_v12 = vld [vmem:[#allocation22_spill] sm:$0xff] }
 0x270   : > { %v6191_v39 = vadd.f32 %v6190_v8, %v6189_v31  ;;  %v6290_v17 = vadd.f32 %v6289_v35, %v6288_v9  ;;  %v7010_v26 = vpack.c.bf16 %v5989_v5, %v5989_v5  ;;  %v5987_v4 = vadd.f32 %v5908_v18, %v5257_v41 }
 0x271   : > { %v7549_v58 = vpop.f32.mrf.mxu0  ;;  %v6250_v43 = vmul.f32 %v5989_v5, %v5989_v5  ;;  %v6198_v57 = vsel %vm1279_vm1, %v5989_v5, 0.0 }
 0x272   : > { %v7518_v38 = vpop.f32.mrf.mxu1  ;;  %v6292_v21 = vadd.f32 %v6291_v23, %v6290_v17  ;;  %6149 = vst.msk [vmem:[%s9547_s11 + $0x48] sm:$0xf] %vm712_vm0, %v7010_v26  ;;  %v6193_v59 = vadd.f32 %v6192_v22, %v6191_v39  ;;  %v5990_v63 = vadd.f32 %v7549_v58, %v5260_v37  ;;  %v7008_v61 = vpack.c.bf16 %v5987_v4, %v5987_v4  ;;  %v10094_v58 = vld [vmem:[#allocation64_spill] sm:$0xff] }
 0x273   : > { %v6194_v16 = vsel %vm1279_vm1, %v5987_v4, 0.0  ;;  %v6248_v45 = vmul.f32 %v5987_v4, %v5987_v4  ;;  %v5911_v27 = vpop.f32.mrf.mxu0  ;;  %v5263_v32 = vadd.f32 %v7518_v38, %v10090_v29  ;;  %v6299_v42 = vsel %vm1279_vm1, %v6250_v43, 0.0  ;;  %v10096_v29 = vld [vmem:[#allocation37_spill] sm:$0xff] }
 0x274   : > { %v5194_v52 = vpop.f32.mrf.mxu1  ;;  %v6195_v56 = vadd.f32 %v6194_v16, %v6193_v59  ;;  %v6294_v20 = vadd.f32 %v6293_v6, %v6292_v21  ;;  %v7011_v54 = vpack.c.bf16 %v5990_v63, %v5990_v63  ;;  %6147 = vst.msk [vmem:[%s9547_s11 + $0x40] sm:$0xf] %vm712_vm0, %v7008_v61  ;;  %v5988_v7 = vadd.f32 %v5911_v27, %v5258_v62  ;;  %v10095_v27 = vld [vmem:[#allocation36_spill] sm:$0xff] }
 0x275   : > { %v6295_v13 = vsel %vm1279_vm1, %v6248_v45, 0.0  ;;  %v5261_v55 = vadd.f32 %v5194_v52, %v10091_v47  ;;  %v6251_v2 = vmul.f32 %v5990_v63, %v5990_v63  ;;  %v6200_v11 = vsel %vm1279_vm1, %v5990_v63, 0.0 }
 0x276   : > { %v7519_v10 = vpop.f32.mrf.mxu1  ;;  %v6296_v53 = vadd.f32 %v6295_v13, %v6294_v20  ;;  %6150 = vst.msk [vmem:[%s9547_s11 + $0x4c] sm:$0xf] %vm712_vm0, %v7011_v54  ;;  %v7009_v50 = vpack.c.bf16 %v5988_v7, %v5988_v7  ;;  %v6196_v48 = vsel %vm1279_vm1, %v5988_v7, 0.0  ;;  %v6249_v34 = vmul.f32 %v5988_v7, %v5988_v7 }
 0x277   : > { %v7552_v24 = vpop.f32.mrf.mxu0  ;;  %v6197_v40 = vadd.f32 %v6196_v48, %v6195_v56  ;;  %v5264_v1 = vadd.f32 %v7519_v10, %v10092_v15  ;;  %v6301_v51 = vsel %vm1279_vm1, %v6251_v2, 0.0 }
 0x278   : > { %v5197_v30 = vpop.f32.mrf.mxu1  ;;  %v5993_v49 = vadd.f32 %v7552_v24, %v5263_v32  ;;  %6148 = vst.msk [vmem:[%s9547_s11 + $0x44] sm:$0xf] %vm712_vm0, %v7009_v50  ;;  %v6297_v19 = vsel %vm1279_vm1, %v6249_v34, 0.0 }
 0x279   : > { %v5924_v25 = vpop.f32.mrf.mxu0  ;;  %v6199_v60 = vadd.f32 %v6198_v57, %v6197_v40  ;;  %v6298_v9 = vadd.f32 %v6297_v19, %v6296_v53  ;;  %v5262_v31 = vadd.f32 %v5197_v30, %v10093_v12  ;;  %v10097_v30 = vld [vmem:[#allocation38_spill] sm:$0xff] }
 0x27a   : > { %v7014_v36 = vpack.c.bf16 %v5993_v49, %v5993_v49  ;;  %v5991_v0 = vadd.f32 %v5924_v25, %v5261_v55  ;;  %v7522_v33 = vpop.f32.mrf.mxu1  ;;  %v6254_v59 = vmul.f32 %v5993_v49, %v5993_v49  ;;  %v6206_v13 = vsel %vm1279_vm1, %v5993_v49, 0.0 }
 0x27b   : > { %v7553_v41 = vpop.f32.mrf.mxu0  ;;  %v6300_v5 = vadd.f32 %v6299_v42, %v6298_v9  ;;  %v6201_v37 = vadd.f32 %v6200_v11, %v6199_v60  ;;  %v5267_v3 = vadd.f32 %v7522_v33, %v10094_v58 }
 0x27c   : > { %6153 = vst.msk [vmem:[%s9547_s11 + $0x58] sm:$0xf] %vm712_vm0, %v7014_v36  ;;  %v5994_v8 = vadd.f32 %v7553_v41, %v5264_v1  ;;  %v7012_v35 = vpack.c.bf16 %v5991_v0, %v5991_v0  ;;  %v6202_v18 = vsel %vm1279_vm1, %v5991_v0, 0.0  ;;  %v6252_v39 = vmul.f32 %v5991_v0, %v5991_v0  ;;  %v5210_v26 = vpop.f32.mrf.mxu1 }
 0x27d   : > { %v5927_v17 = vpop.f32.mrf.mxu0  ;;  %v6203_v23 = vadd.f32 %v6202_v18, %v6201_v37  ;;  %v6302_v22 = vadd.f32 %v6301_v51, %v6300_v5  ;;  %v5265_v52 = vadd.f32 %v5210_v26, %v10095_v27  ;;  %v6307_v34 = vsel %vm1279_vm1, %v6254_v59, 0.0 }
 0x27e   : > { %v7015_v4 = vpack.c.bf16 %v5994_v8, %v5994_v8  ;;  %6151 = vst.msk [vmem:[%s9547_s11 + $0x50] sm:$0xf] %vm712_vm0, %v7012_v35  ;;  %v6303_v62 = vsel %vm1279_vm1, %v6252_v39, 0.0  ;;  %v5992_v38 = vadd.f32 %v5927_v17, %v5262_v31  ;;  %v7523_v21 = vpop.f32.mrf.mxu1  ;;  %v6255_v7 = vmul.f32 %v5994_v8, %v5994_v8 }
 0x27f   : > { %v6304_v63 = vadd.f32 %v6303_v62, %v6302_v22  ;;  %v5268_v32 = vadd.f32 %v7523_v21, %v10096_v29  ;;  %v6208_v24 = vsel %vm1279_vm1, %v5994_v8, 0.0 }
 0x280   : > { %6154 = vst.msk [vmem:[%s9547_s11 + $0x5c] sm:$0xf] %vm712_vm0, %v7015_v4  ;;  %v7013_v6 = vpack.c.bf16 %v5992_v38, %v5992_v38  ;;  %v6204_v61 = vsel %vm1279_vm1, %v5992_v38, 0.0  ;;  %v6253_v16 = vmul.f32 %v5992_v38, %v5992_v38  ;;  %v7556_v45 = vpop.f32.mrf.mxu0  ;;  %v5213_v56 = vpop.f32.mrf.mxu1  ;;  %v6309_v2 = vsel %vm1279_vm1, %v6255_v7, 0.0 }
 0x281   : > { %v6205_v20 = vadd.f32 %v6204_v61, %v6203_v23  ;;  %v5997_v54 = vadd.f32 %v7556_v45, %v5267_v3  ;;  %v5266_v40 = vadd.f32 %v5213_v56, %v10097_v30 }
 0x282   : > { %6152 = vst.msk [vmem:[%s9547_s11 + $0x54] sm:$0xf] %vm712_vm0, %v7013_v6  ;;  %v6305_v10 = vsel %vm1279_vm1, %v6253_v16, 0.0  ;;  %v5940_v43 = vpop.f32.mrf.mxu0 }
 0x283   : > { %v6207_v53 = vadd.f32 %v6206_v13, %v6205_v20  ;;  %v6306_v50 = vadd.f32 %v6305_v10, %v6304_v63  ;;  %v7018_v48 = vpack.c.bf16 %v5997_v54, %v5997_v54  ;;  %v5995_v47 = vadd.f32 %v5940_v43, %v5265_v52  ;;  %v7526_v15 = vpop.f32.mrf.mxu1 }
 0x284   : > { %v7557_v55 = vpop.f32.mrf.mxu0  ;;  %v5271_v41 = vadd.f32 %v7526_v15, %v9512_v44  ;;  %v6258_v5 = vmul.f32 %v5997_v54, %v5997_v54  ;;  %v6214_v22 = vsel %vm1279_vm1, %v5997_v54, 0.0 }
 0x285   : > { %v6308_v49 = vadd.f32 %v6307_v34, %v6306_v50  ;;  %6157 = vst.msk [vmem:[%s9547_s11 + $0x68] sm:$0xf] %vm712_vm0, %v7018_v48  ;;  %v6209_v1 = vadd.f32 %v6208_v24, %v6207_v53  ;;  %v5998_v57 = vadd.f32 %v7557_v55, %v5268_v32  ;;  %v7016_v19 = vpack.c.bf16 %v5995_v47, %v5995_v47  ;;  %v5226_v36 = vpop.f32.mrf.mxu1 }
 0x286   : > { %v6210_v25 = vsel %vm1279_vm1, %v5995_v47, 0.0  ;;  %v6256_v60 = vmul.f32 %v5995_v47, %v5995_v47  ;;  %v5943_v9 = vpop.f32.mrf.mxu0  ;;  %v5269_v39 = vadd.f32 %v5226_v36, %v9521_v14  ;;  %v6315_v59 = vsel %vm1279_vm1, %v6258_v5, 0.0 }
 0x287   : > { %v6211_v42 = vadd.f32 %v6210_v25, %v6209_v1  ;;  %v6310_v11 = vadd.f32 %v6309_v2, %v6308_v49  ;;  %v7019_v0 = vpack.c.bf16 %v5998_v57, %v5998_v57  ;;  %6155 = vst.msk [vmem:[%s9547_s11 + $0x60] sm:$0xf] %vm712_vm0, %v7016_v19  ;;  %v5996_v31 = vadd.f32 %v5943_v9, %v5266_v40  ;;  %v7527_v33 = vpop.f32.mrf.mxu1 }
 0x288   : > { %v6311_v12 = vsel %vm1279_vm1, %v6256_v60, 0.0  ;;  %v5272_v26 = vadd.f32 %v7527_v33, %v9529_v28  ;;  %v6259_v4 = vmul.f32 %v5998_v57, %v5998_v57  ;;  %v6216_v14 = vsel %vm1279_vm1, %v5998_v57, 0.0 }
 0x289   : > { %v6312_v37 = vadd.f32 %v6311_v12, %v6310_v11  ;;  %6158 = vst.msk [vmem:[%s9547_s11 + $0x6c] sm:$0xf] %vm712_vm0, %v7019_v0  ;;  %v7017_v8 = vpack.c.bf16 %v5996_v31, %v5996_v31  ;;  %v6212_v51 = vsel %vm1279_vm1, %v5996_v31, 0.0  ;;  %v6257_v35 = vmul.f32 %v5996_v31, %v5996_v31  ;;  %v7560_v18 = vpop.f32.mrf.mxu0  ;;  %v5229_v23 = vpop.f32.mrf.mxu1 }
 0x28a   : > { %v6213_v17 = vadd.f32 %v6212_v51, %v6211_v42  ;;  %v6001_v44 = vadd.f32 %v7560_v18, %v5271_v41  ;;  %v5270_v6 = vadd.f32 %v5229_v23, %v9535_v46  ;;  %v6317_v27 = vsel %vm1279_vm1, %v6259_v4, 0.0 }
 0x28b   : > { %6156 = vst.msk [vmem:[%s9547_s11 + $0x64] sm:$0xf] %vm712_vm0, %v7017_v8  ;;  %v6313_v58 = vsel %vm1279_vm1, %v6257_v35, 0.0  ;;  %v5956_v3 = vpop.f32.mrf.mxu0 }
 0x28c   : > { %v6215_v62 = vadd.f32 %v6214_v22, %v6213_v17  ;;  %v6314_v38 = vadd.f32 %v6313_v58, %v6312_v37  ;;  %v7022_v21 = vpack.c.bf16 %v6001_v44, %v6001_v44  ;;  %v5999_v63 = vadd.f32 %v5956_v3, %v5269_v39 }
 0x28d   : > { %v7561_v28 = vpop.f32.mrf.mxu0  ;;  %v6262_v43 = vmul.f32 %v6001_v44, %v6001_v44  ;;  %v6222_v24 = vsel %vm1279_vm1, %v6001_v44, 0.0 }
 0x28e   : > { %v6316_v61 = vadd.f32 %v6315_v59, %v6314_v38  ;;  %6161 = vst.msk [vmem:[%s9547_s11 + $0x78] sm:$0xf] %vm712_vm0, %v7022_v21  ;;  %v6217_v16 = vadd.f32 %v6216_v14, %v6215_v62  ;;  %v6002_v45 = vadd.f32 %v7561_v28, %v5272_v26  ;;  %v7020_v52 = vpack.c.bf16 %v5999_v63, %v5999_v63 }
 0x28f   : > { %v6218_v56 = vsel %vm1279_vm1, %v5999_v63, 0.0  ;;  %v6260_v20 = vmul.f32 %v5999_v63, %v5999_v63  ;;  %v5959_v13 = vpop.f32.mrf.mxu0  ;;  %v6323_v15 = vsel %vm1279_vm1, %v6262_v43, 0.0 }
 0x290   : > { %v6219_v54 = vadd.f32 %v6218_v56, %v6217_v16  ;;  %v6318_v29 = vadd.f32 %v6317_v27, %v6316_v61  ;;  %v7023_v32 = vpack.c.bf16 %v6002_v45, %v6002_v45  ;;  %6159 = vst.msk [vmem:[%s9547_s11 + $0x70] sm:$0xf] %vm712_vm0, %v7020_v52  ;;  %v6000_v7 = vadd.f32 %v5959_v13, %v5270_v6 }
 0x291   : > { %v6319_v46 = vsel %vm1279_vm1, %v6260_v20, 0.0  ;;  %v6263_v47 = vmul.f32 %v6002_v45, %v6002_v45  ;;  %v6224_v49 = vsel %vm1279_vm1, %v6002_v45, 0.0 }
 0x292   : > { %v6320_v10 = vadd.f32 %v6319_v46, %v6318_v29  ;;  %6162 = vst.msk [vmem:[%s9547_s11 + $0x7c] sm:$0xf] %vm712_vm0, %v7023_v32  ;;  %v7021_v53 = vpack.c.bf16 %v6000_v7, %v6000_v7  ;;  %v6220_v50 = vsel %vm1279_vm1, %v6000_v7, 0.0  ;;  %v6261_v48 = vmul.f32 %v6000_v7, %v6000_v7 }
 0x293   : > { %v6221_v34 = vadd.f32 %v6220_v50, %v6219_v54  ;;  %v6325_v2 = vsel %vm1279_vm1, %v6263_v47, 0.0 }
 0x294   : > { %6160 = vst.msk [vmem:[%s9547_s11 + $0x74] sm:$0xf] %vm712_vm0, %v7021_v53  ;;  %v6321_v55 = vsel %vm1279_vm1, %v6261_v48, 0.0 }
 0x295   : > { %v6223_v30 = vadd.f32 %v6222_v24, %v6221_v34  ;;  %v6322_v40 = vadd.f32 %v6321_v55, %v6320_v10 }
 0x297   : > { %v6225_v1 = vadd.f32 %v6224_v49, %v6223_v30  ;;  %v6324_v57 = vadd.f32 %v6323_v15, %v6322_v40 }
 0x299   : > { %v6226_v19 = vrot.slane %v6225_v1, 4  ;;  %v6326_v25 = vadd.f32 %v6325_v2, %v6324_v57 }
 0x29b   : > { %v6227_v60 = vadd.f32 %v6226_v19, %v6225_v1  ;;  %v6327_v9 = vrot.slane %v6326_v25, 4 }
 0x29d   : > { %v6228_v36 = vrot.slane %v6227_v60, 2  ;;  %v6328_v42 = vadd.f32 %v6327_v9, %v6326_v25 }
 0x29f   : > { %v6229_v11 = vadd.f32 %v6228_v36, %v6227_v60  ;;  %v6329_v0 = vrot.slane %v6328_v42, 2 }
 0x2a1   : > { %v6230_v41 = vrot.slane %v6229_v11, 1  ;;  %v6330_v12 = vadd.f32 %v6329_v0, %v6328_v42 }
 0x2a3   : > { %v6231_v31 = vadd.f32 %v6230_v41, %v6229_v11  ;;  %v6331_v33 = vrot.slane %v6330_v12, 1 }
 0x2a5   : > { %v6332_v5 = vadd.f32 %v6331_v33, %v6330_v12  ;;  %6333 = vst.msk [vmem:[%s268_s14] sm:$0xff] %vm1279_vm1, %v6231_v31 }
 0x2a7   : > { %6334 = vst.msk [vmem:[%s272_s17] sm:$0xff] %vm1279_vm1, %v6332_v5 }
 0x2a8 PF: > { %s17_s21 = sadd.s32 1, %s7666_s21  }
 0x2a9   : > { %p14_p4 = scmp.ge.s32.totalorder %s17_s21, 4  }
 0x2ab   :  { %16 = sbr.rel (!%p14_p4) target bundleno = 1 (0x1), region = 100 }

</bundles_post_ra>
